<compile_context>
chip_gen: v5e
topology: v5e:2x2
jax: 0.10.0
libtpu: 0.0.40
codegen_flags: <defaults>
</compile_context>

<pallas_src>
import functools

import numpy as np

import jax
import jax.numpy as jnp
from jax import lax
from jax.experimental import pallas as pl
from jax.experimental.pallas import tpu as pltpu

EPS = 1e-5          # torch.nn.BatchNorm2d default eps
NEG_SLOPE = 0.2     # LeakyReLU(0.2)
KSIZE = 4           # all convs are k=4, pad=1


def _round_up(x, m):
    return (x + m - 1) // m * m


def _vmem_limit_bytes():
    """Generation-dependent scoped-VMEM limit (~75% of physical VMEM)."""
    try:
        info = pltpu.get_tpu_info()
        cap = getattr(info, "vmem_capacity_bytes", None)
        if cap:
            return int(cap) * 3 // 4
    except Exception:
        pass
    return 48 * 1024 * 1024          # conservative fallback (v7x-sized)


_VMEM_LIMIT = _vmem_limit_bytes()


def _block_spec(shape, index_map, single_buffered=False):
    """BlockSpec helper; requests single-buffering for constant-index blocks."""
    if single_buffered:
        try:
            return pl.BlockSpec(shape, index_map, pipeline_mode=pl.Buffered(1))
        except TypeError:            # pipeline_mode unsupported: fall back safely
            pass
    return pl.BlockSpec(shape, index_map)


# ---------------------------------------------------------------------------
# Pallas kernels
# ---------------------------------------------------------------------------

def _make_conv_kernel(taps, rows, use_bn, neg_slope):
    """Fused conv kernel: 16 tap-dots (bf16 in, f32 acc) + epilogue.

    taps: static tuple of (plane_index, flat_offset) per (kh, kw) tap.
    rows: flattened output rows per block (= Ho * padded_row_stride).
    """
    def accumulate(x_ref, w_ref):
        acc = None
        for t, (p, off) in enumerate(taps):
            lhs = x_ref[p, off:off + rows, :]                       # (rows, Cin) bf16
            d = jnp.dot(lhs, w_ref[t], preferred_element_type=jnp.float32)
            acc = d if acc is None else acc + d
        return acc                                                  # (rows, tco) f32

    if use_bn:
        def kernel(x_ref, w_ref, m_ref, y_ref, s_ref):
            acc = accumulate(x_ref, w_ref)
            y_ref[...] = acc.astype(y_ref.dtype)
            # Masked batch statistics (garbage columns excluded).  The conv bias is
            # skipped entirely: BatchNorm's mean subtraction cancels it exactly.
            masked = jnp.where(m_ref[...] != 0.0, acc, 0.0)
            s_ref[0:1, :] = jnp.sum(masked, axis=0, keepdims=True)
            s_ref[1:2, :] = jnp.sum(masked * masked, axis=0, keepdims=True)
        return kernel

    def kernel(x_ref, w_ref, b_ref, y_ref):
        acc = accumulate(x_ref, w_ref) + b_ref[...]
        if neg_slope is not None:
            acc = jnp.where(acc >= 0, acc, neg_slope * acc)
        y_ref[...] = acc.astype(y_ref.dtype)
    return kernel


def _affine_act_kernel(y_ref, sc_ref, sh_ref, o_ref, *, neg_slope):
    """Folded training-mode BatchNorm (y*scale + shift) + LeakyReLU, f32 math."""
    v = y_ref[...].astype(jnp.float32) * sc_ref[...] + sh_ref[...]
    o_ref[...] = jnp.where(v >= 0, v, neg_slope * v).astype(o_ref.dtype)


# ---------------------------------------------------------------------------
# Per-layer glue
# ---------------------------------------------------------------------------

def _prepare_planes(x, stride):
    """x: (N, H, W, C) bf16 -> planes (N, P, L, C) plus the static tap schedule.

    stride 1: P=1, plane = spatially padded image flattened row-major.
    stride 2: P=4 space-to-depth phases so every tap is a unit-stride slice.
    Flattening uses the padded row width S as the per-output-row stride, so each
    output row carries (S - Wo) garbage columns; they are masked / cropped later.
    """
    N, H, W, C = x.shape
    xp = jnp.pad(x, ((0, 0), (1, 1), (1, 1), (0, 0)))
    if stride == 2:
        Hp, Wp = H + 2, W + 2
        if Hp % 2:
            xp = jnp.pad(xp, ((0, 0), (0, 1), (0, 0), (0, 0)))
            Hp += 1
        if Wp % 2:
            xp = jnp.pad(xp, ((0, 0), (0, 0), (0, 1), (0, 0)))
            Wp += 1
        H2, W2 = Hp // 2, Wp // 2
        planes = (xp.reshape(N, H2, 2, W2, 2, C)
                    .transpose(0, 2, 4, 1, 3, 5)          # (N, 2, 2, H2, W2, C)
                    .reshape(N, 4, H2 * W2, C))
        S = W2
        Ho = (H - 2) // 2 + 1
        Wo = (W - 2) // 2 + 1
        taps = tuple(((kh % 2) * 2 + (kw % 2), (kh // 2) * S + (kw // 2))
                     for kh in range(KSIZE) for kw in range(KSIZE))
    else:
        Hp, Wp = H + 2, W + 2
        planes = xp.reshape(N, 1, Hp * Wp, C)
        S = Wp
        Ho, Wo = H - 1, W - 1
        taps = tuple((0, kh * S + kw) for kh in range(KSIZE) for kw in range(KSIZE))

    rows = Ho * S                                    # flattened output rows per image
    need = rows + max(off for _, off in taps)        # max flat index any tap reads
    if planes.shape[2] < need:
        planes = jnp.pad(planes, ((0, 0), (0, 0), (0, need - planes.shape[2]), (0, 0)))
    return planes, taps, S, Ho, Wo, rows


def _conv_layer(x_nhwc, p):
    """One Conv2d(k=4, pad=1) [+BatchNorm2d (training stats)] [+LeakyReLU] layer.
    Input:  (N, H, W, Cin_carried) bf16.  Output: (N, Ho, Wo, Coutp)."""
    N = x_nhwc.shape[0]
    planes, taps, S, Ho, Wo, rows = _prepare_planes(x_nhwc, p["stride"])
    _, P, L, Cin = planes.shape
    Coutp, tco = p["Coutp"], p["tco"]
    n_co = Coutp // tco
    grid = (N, n_co)

    cparams = pltpu.CompilerParams(
        dimension_semantics=("parallel", "parallel"),      # batch x cout-tiles
        vmem_limit_bytes=_VMEM_LIMIT)

    # Whole padded image resident per batch element (not re-fetched across co).
    x_spec = pl.BlockSpec((None, P, L, Cin), lambda n, co: (n, 0, 0, 0))
    w_spec = _block_spec((KSIZE * KSIZE, Cin, tco), lambda n, co: (0, 0, co),
                         single_buffered=(n_co == 1))
    y_spec = pl.BlockSpec((None, rows, tco), lambda n, co: (n, 0, co))

    out_dtype = jnp.bfloat16 if (p["use_bn"] or p["use_leaky"]) else jnp.float32
    kernel = _make_conv_kernel(taps, rows, p["use_bn"],
                               NEG_SLOPE if p["use_leaky"] else None)

    if p["use_bn"]:
        # Column-validity mask: garbage columns (j >= Wo) are excluded from stats.
        mask = jnp.asarray(
            np.tile(np.arange(S) < Wo, Ho).reshape(rows, 1).astype(np.float32))
        m_spec = _block_spec((rows, 1), lambda n, co: (0, 0), single_buffered=True)
        s_spec = pl.BlockSpec((None, 8, tco), lambda n, co: (n, 0, co))

        y, stats = pl.pallas_call(
            kernel,
            grid=grid,
            in_specs=[x_spec, w_spec, m_spec],
            out_specs=[y_spec, s_spec],
            out_shape=[jax.ShapeDtypeStruct((N, rows, Coutp), out_dtype),
                       jax.ShapeDtypeStruct((N, 8, Coutp), jnp.float32)],
            compiler_params=cparams,
        )(planes, p["w16"], mask)

        # Fold batch statistics into one per-channel scale / shift (tiny JAX glue).
        count = float(N * Ho * Wo)
        ssum = jnp.sum(stats[:, 0, :], axis=0)
        ssq = jnp.sum(stats[:, 1, :], axis=0)
        mean = ssum / count
        var = jnp.maximum(ssq / count - mean * mean, 0.0)   # biased var (BN training)
        scale1 = p["gamma_pad"] * lax.rsqrt(var + EPS)
        shift1 = p["beta_pad"] - mean * scale1
        scale = scale1.reshape(1, Coutp)
        shift = shift1.reshape(1, Coutp)

        # Pass 2: normalize + LeakyReLU on whole-batch-element blocks (bf16 io).
        aff_spec = pl.BlockSpec((None, rows, Coutp), lambda n: (n, 0, 0))
        par_spec = _block_spec((1, Coutp), lambda n: (0, 0), single_buffered=True)
        act = pl.pallas_call(
            functools.partial(_affine_act_kernel, neg_slope=NEG_SLOPE),
            grid=(N,),
            in_specs=[aff_spec, par_spec, par_spec],
            out_specs=aff_spec,
            out_shape=jax.ShapeDtypeStruct((N, rows, Coutp), jnp.bfloat16),
            compiler_params=pltpu.CompilerParams(
                dimension_semantics=("parallel",),
                vmem_limit_bytes=_VMEM_LIMIT),
        )(y, scale, shift)
    else:
        b_spec = _block_spec((1, tco), lambda n, co: (0, co),
                             single_buffered=(n_co == 1))
        act = pl.pallas_call(
            kernel,
            grid=grid,
            in_specs=[x_spec, w_spec, b_spec],
            out_specs=y_spec,
            out_shape=jax.ShapeDtypeStruct((N, rows, Coutp), out_dtype),
            compiler_params=cparams,
        )(planes, p["w16"], p["b_pad"])

    # Drop the garbage columns; XLA fuses this slice into the next layer's prep.
    return act.reshape(N, Ho, S, Coutp)[:, :, :Wo, :]


# ---------------------------------------------------------------------------
# Parameters & forward
# ---------------------------------------------------------------------------

def init_params(ndf, key):
    """init_weights('normal', 0.02): conv w ~ N(0, 0.02), bias 0; BN gamma ~ N(1, 0.02),
    beta 0.  Precomputes the tap-major (16, Cin_carried, Coutp) bf16 weight layout."""
    cfgs = [
        # (Cin_true, Cout,     stride, use_bn, use_leaky)
        (6,         ndf,       2, False, True),
        (ndf,       2 * ndf,   2, True,  True),
        (2 * ndf,   4 * ndf,   2, True,  True),
        (4 * ndf,   8 * ndf,   1, True,  True),
        (8 * ndf,   1,         1, False, False),
    ]
    params = []
    cin_carried = 6            # channels actually present in this layer's input tensor
    for cin_true, cout, stride, use_bn, use_leaky in cfgs:
        key, k_w, k_g = jax.random.split(key, 3)
        w = 0.02 * jax.random.normal(k_w, (cout, cin_true, KSIZE, KSIZE), jnp.float32)
        b = jnp.zeros((cout,), jnp.float32)
        gamma = (1.0 + 0.02 * jax.random.normal(k_g, (cout,), jnp.float32)
                 if use_bn else jnp.ones((cout,), jnp.float32))
        beta = jnp.zeros((cout,), jnp.float32)

        coutp = _round_up(cout, 128)
        if coutp > 256:
            tco = 256 if coutp % 256 == 0 else 128
        else:
            tco = coutp
        # (Cout, Cin, kh, kw) -> (kh, kw, Cin, Cout) -> (16, Cin, Cout); zero-pad Cin
        # to the carried (lane-padded) input channel count and Cout to 128-multiple.
        w16 = jnp.transpose(w, (2, 3, 1, 0)).reshape(KSIZE * KSIZE, cin_true, cout)
        w16 = jnp.pad(w16, ((0, 0), (0, cin_carried - cin_true), (0, coutp - cout)))
        w16 = w16.astype(jnp.bfloat16)
        b_pad = jnp.pad(b, (0, coutp - cout)).reshape(1, coutp)
        gamma_pad = jnp.pad(gamma, (0, coutp - cout))
        beta_pad = jnp.pad(beta, (0, coutp - cout))

        params.append(dict(w=w, b=b, gamma=gamma, beta=beta,
                           w16=w16, b_pad=b_pad,
                           gamma_pad=gamma_pad, beta_pad=beta_pad,
                           stride=stride, use_bn=use_bn, use_leaky=use_leaky,
                           Cout=cout, Coutp=coutp, tco=tco))
        cin_carried = coutp
    return params


def discriminator_forward(x_nchw, params):
    x = jnp.transpose(x_nchw, (0, 2, 3, 1)).astype(jnp.bfloat16)   # NCHW -> NHWC once
    for p in params:
        x = _conv_layer(x, p)
    x = x[..., :params[-1]["Cout"]].astype(jnp.float32)            # drop padded channels
    return jnp.transpose(x, (0, 3, 1, 2))                          # tiny NHWC -> NCHW


# ---------------------------------------------------------------------------
# Pure-JAX reference (mirrors the PyTorch forward; same bf16 quantization points
# as the kernel: bf16 matmul inputs / inter-layer storage, f32 accumulation & stats)
# ---------------------------------------------------------------------------

def _ref_forward(x, params):
    for p in params:
        y = lax.conv_general_dilated(
            x.astype(jnp.bfloat16), p["w"].astype(jnp.bfloat16),
            (p["stride"],) * 2, [(1, 1), (1, 1)],
            dimension_numbers=("NCHW", "OIHW", "NCHW"),
            preferred_element_type=jnp.float32,
            precision=lax.Precision.HIGHEST)
        y = y + p["b"].reshape(1, -1, 1, 1)
        if p["use_bn"]:
            mean = jnp.mean(y, axis=(0, 2, 3), keepdims=True)
            var = jnp.mean(jnp.square(y - mean), axis=(0, 2, 3), keepdims=True)
            yq = y.astype(jnp.bfloat16).astype(jnp.float32)   # kernel stores conv out bf16
            y = (yq - mean) * lax.rsqrt(var + EPS) * p["gamma"].reshape(1, -1, 1, 1) \
                + p["beta"].reshape(1, -1, 1, 1)
        if p["use_leaky"]:
            y = jnp.where(y >= 0, y, NEG_SLOPE * y)
        x = y
    return x


if __name__ == "__main__":
    key = jax.random.PRNGKey(0)
    kx, kp = jax.random.split(key)

    # Small shapes consistent with the module: first conv fixes 6 input channels;
    # batch=2, spatial=32x32, ndf=8 (default 64, scaled down for the smoke test).
    ndf = 8
    x = jax.random.normal(kx, (2, 6, 32, 32), jnp.float32)
    params = init_params(ndf, kp)

    fwd = jax.jit(lambda xx: discriminator_forward(xx, params))
    out = jax.block_until_ready(fwd(x))

    # Output spatial chain: 32 -> 16 -> 8 -> 4 -> 3 -> 2 (1-channel PatchGAN logits).
    assert out.shape == (2, 1, 2, 2), out.shape

    ref = _ref_forward(x, params)
    assert jnp.allclose(out, ref, rtol=2e-2, atol=2e-2), (out, ref)

    print("KERNEL_OK")
</pallas_src>

<mosaic_0001>
module attributes {stable_mosaic.version = 11 : i64} {
  func.func @kernel(%arg0: i32, %arg1: i32, %arg2: memref<1x4x290x6xbf16, #tpu.memory_space<vmem>>, %arg3: memref<16x6x128xbf16, #tpu.memory_space<vmem>>, %arg4: memref<1x128xf32, #tpu.memory_space<vmem>>, %arg5: memref<1x272x128xbf16, #tpu.memory_space<vmem>>) attributes {dimension_semantics = [#tpu.dimension_semantics<parallel>, #tpu.dimension_semantics<parallel>], iteration_bounds = array<i64: 2, 1>, scalar_prefetch = 0 : i64, scratch_operands = 0 : i64, tpu.core_type = #tpu.core_type<tc>, window_params = [{transform_indices = @transform_0, window_bounds = array<i64: 1, 4, 290, 6>}, {pipeline_mode = #tpu.pipeline_mode<synchronous>, transform_indices = @transform_1, window_bounds = array<i64: 16, 6, 128>}, {pipeline_mode = #tpu.pipeline_mode<synchronous>, transform_indices = @transform_2, window_bounds = array<i64: 1, 128>}, {transform_indices = @transform_3, window_bounds = array<i64: 1, 272, 128>}]} {
    %c0 = arith.constant 0 : index
    %c0_0 = arith.constant 0 : index
    %c0_1 = arith.constant 0 : index
    %c0_2 = arith.constant 0 : index
    %0 = vector.load %arg2[%c0, %c0_0, %c0_1, %c0_2] : memref<1x4x290x6xbf16, #tpu.memory_space<vmem>>, vector<1x1x272x6xbf16>
    %1 = vector.shape_cast %0 : vector<1x1x272x6xbf16> to vector<272x6xbf16>
    %c0_3 = arith.constant 0 : index
    %c0_4 = arith.constant 0 : index
    %c0_5 = arith.constant 0 : index
    %2 = vector.load %arg3[%c0_3, %c0_4, %c0_5] : memref<16x6x128xbf16, #tpu.memory_space<vmem>>, vector<1x6x128xbf16>
    %3 = vector.shape_cast %2 : vector<1x6x128xbf16> to vector<6x128xbf16>
    %cst = arith.constant dense<0.000000e+00> : vector<272x128xf32>
    %4 = tpu.matmul %1, %3, %cst {dimension_numbers = #tpu.dot_dimension_numbers<[1], [0], [0], [1], [0, 0, 1, 1], [], []>} : vector<272x6xbf16>, vector<6x128xbf16>, vector<272x128xf32> -> vector<272x128xf32>
    %c0_6 = arith.constant 0 : index
    %c1 = arith.constant 1 : index
    %c0_7 = arith.constant 0 : index
    %c0_8 = arith.constant 0 : index
    %5 = vector.load %arg2[%c0_6, %c1, %c0_7, %c0_8] : memref<1x4x290x6xbf16, #tpu.memory_space<vmem>>, vector<1x1x272x6xbf16>
    %6 = vector.shape_cast %5 : vector<1x1x272x6xbf16> to vector<272x6xbf16>
    %c1_9 = arith.constant 1 : index
    %c0_10 = arith.constant 0 : index
    %c0_11 = arith.constant 0 : index
    %7 = vector.load %arg3[%c1_9, %c0_10, %c0_11] : memref<16x6x128xbf16, #tpu.memory_space<vmem>>, vector<1x6x128xbf16>
    %8 = vector.shape_cast %7 : vector<1x6x128xbf16> to vector<6x128xbf16>
    %cst_12 = arith.constant dense<0.000000e+00> : vector<272x128xf32>
    %9 = tpu.matmul %6, %8, %cst_12 {dimension_numbers = #tpu.dot_dimension_numbers<[1], [0], [0], [1], [0, 0, 1, 1], [], []>} : vector<272x6xbf16>, vector<6x128xbf16>, vector<272x128xf32> -> vector<272x128xf32>
    %10 = arith.addf %4, %9 : vector<272x128xf32>
    %c0_13 = arith.constant 0 : index
    %c0_14 = arith.constant 0 : index
    %c1_15 = arith.constant 1 : index
    %c0_16 = arith.constant 0 : index
    %11 = vector.load %arg2[%c0_13, %c0_14, %c1_15, %c0_16] : memref<1x4x290x6xbf16, #tpu.memory_space<vmem>>, vector<1x1x272x6xbf16>
    %12 = vector.shape_cast %11 : vector<1x1x272x6xbf16> to vector<272x6xbf16>
    %c2 = arith.constant 2 : index
    %c0_17 = arith.constant 0 : index
    %c0_18 = arith.constant 0 : index
    %13 = vector.load %arg3[%c2, %c0_17, %c0_18] : memref<16x6x128xbf16, #tpu.memory_space<vmem>>, vector<1x6x128xbf16>
    %14 = vector.shape_cast %13 : vector<1x6x128xbf16> to vector<6x128xbf16>
    %cst_19 = arith.constant dense<0.000000e+00> : vector<272x128xf32>
    %15 = tpu.matmul %12, %14, %cst_19 {dimension_numbers = #tpu.dot_dimension_numbers<[1], [0], [0], [1], [0, 0, 1, 1], [], []>} : vector<272x6xbf16>, vector<6x128xbf16>, vector<272x128xf32> -> vector<272x128xf32>
    %16 = arith.addf %10, %15 : vector<272x128xf32>
    %c0_20 = arith.constant 0 : index
    %c1_21 = arith.constant 1 : index
    %c1_22 = arith.constant 1 : index
    %c0_23 = arith.constant 0 : index
    %17 = vector.load %arg2[%c0_20, %c1_21, %c1_22, %c0_23] : memref<1x4x290x6xbf16, #tpu.memory_space<vmem>>, vector<1x1x272x6xbf16>
    %18 = vector.shape_cast %17 : vector<1x1x272x6xbf16> to vector<272x6xbf16>
    %c3 = arith.constant 3 : index
    %c0_24 = arith.constant 0 : index
    %c0_25 = arith.constant 0 : index
    %19 = vector.load %arg3[%c3, %c0_24, %c0_25] : memref<16x6x128xbf16, #tpu.memory_space<vmem>>, vector<1x6x128xbf16>
    %20 = vector.shape_cast %19 : vector<1x6x128xbf16> to vector<6x128xbf16>
    %cst_26 = arith.constant dense<0.000000e+00> : vector<272x128xf32>
    %21 = tpu.matmul %18, %20, %cst_26 {dimension_numbers = #tpu.dot_dimension_numbers<[1], [0], [0], [1], [0, 0, 1, 1], [], []>} : vector<272x6xbf16>, vector<6x128xbf16>, vector<272x128xf32> -> vector<272x128xf32>
    %22 = arith.addf %16, %21 : vector<272x128xf32>
    %c0_27 = arith.constant 0 : index
    %c2_28 = arith.constant 2 : index
    %c0_29 = arith.constant 0 : index
    %c0_30 = arith.constant 0 : index
    %23 = vector.load %arg2[%c0_27, %c2_28, %c0_29, %c0_30] : memref<1x4x290x6xbf16, #tpu.memory_space<vmem>>, vector<1x1x272x6xbf16>
    %24 = vector.shape_cast %23 : vector<1x1x272x6xbf16> to vector<272x6xbf16>
    %c4 = arith.constant 4 : index
    %c0_31 = arith.constant 0 : index
    %c0_32 = arith.constant 0 : index
    %25 = vector.load %arg3[%c4, %c0_31, %c0_32] : memref<16x6x128xbf16, #tpu.memory_space<vmem>>, vector<1x6x128xbf16>
    %26 = vector.shape_cast %25 : vector<1x6x128xbf16> to vector<6x128xbf16>
    %cst_33 = arith.constant dense<0.000000e+00> : vector<272x128xf32>
    %27 = tpu.matmul %24, %26, %cst_33 {dimension_numbers = #tpu.dot_dimension_numbers<[1], [0], [0], [1], [0, 0, 1, 1], [], []>} : vector<272x6xbf16>, vector<6x128xbf16>, vector<272x128xf32> -> vector<272x128xf32>
    %28 = arith.addf %22, %27 : vector<272x128xf32>
    %c0_34 = arith.constant 0 : index
    %c3_35 = arith.constant 3 : index
    %c0_36 = arith.constant 0 : index
    %c0_37 = arith.constant 0 : index
    %29 = vector.load %arg2[%c0_34, %c3_35, %c0_36, %c0_37] : memref<1x4x290x6xbf16, #tpu.memory_space<vmem>>, vector<1x1x272x6xbf16>
    %30 = vector.shape_cast %29 : vector<1x1x272x6xbf16> to vector<272x6xbf16>
    %c5 = arith.constant 5 : index
    %c0_38 = arith.constant 0 : index
    %c0_39 = arith.constant 0 : index
    %31 = vector.load %arg3[%c5, %c0_38, %c0_39] : memref<16x6x128xbf16, #tpu.memory_space<vmem>>, vector<1x6x128xbf16>
    %32 = vector.shape_cast %31 : vector<1x6x128xbf16> to vector<6x128xbf16>
    %cst_40 = arith.constant dense<0.000000e+00> : vector<272x128xf32>
    %33 = tpu.matmul %30, %32, %cst_40 {dimension_numbers = #tpu.dot_dimension_numbers<[1], [0], [0], [1], [0, 0, 1, 1], [], []>} : vector<272x6xbf16>, vector<6x128xbf16>, vector<272x128xf32> -> vector<272x128xf32>
    %34 = arith.addf %28, %33 : vector<272x128xf32>
    %c0_41 = arith.constant 0 : index
    %c2_42 = arith.constant 2 : index
    %c1_43 = arith.constant 1 : index
    %c0_44 = arith.constant 0 : index
    %35 = vector.load %arg2[%c0_41, %c2_42, %c1_43, %c0_44] : memref<1x4x290x6xbf16, #tpu.memory_space<vmem>>, vector<1x1x272x6xbf16>
    %36 = vector.shape_cast %35 : vector<1x1x272x6xbf16> to vector<272x6xbf16>
    %c6 = arith.constant 6 : index
    %c0_45 = arith.constant 0 : index
    %c0_46 = arith.constant 0 : index
    %37 = vector.load %arg3[%c6, %c0_45, %c0_46] : memref<16x6x128xbf16, #tpu.memory_space<vmem>>, vector<1x6x128xbf16>
    %38 = vector.shape_cast %37 : vector<1x6x128xbf16> to vector<6x128xbf16>
    %cst_47 = arith.constant dense<0.000000e+00> : vector<272x128xf32>
    %39 = tpu.matmul %36, %38, %cst_47 {dimension_numbers = #tpu.dot_dimension_numbers<[1], [0], [0], [1], [0, 0, 1, 1], [], []>} : vector<272x6xbf16>, vector<6x128xbf16>, vector<272x128xf32> -> vector<272x128xf32>
    %40 = arith.addf %34, %39 : vector<272x128xf32>
    %c0_48 = arith.constant 0 : index
    %c3_49 = arith.constant 3 : index
    %c1_50 = arith.constant 1 : index
    %c0_51 = arith.constant 0 : index
    %41 = vector.load %arg2[%c0_48, %c3_49, %c1_50, %c0_51] : memref<1x4x290x6xbf16, #tpu.memory_space<vmem>>, vector<1x1x272x6xbf16>
    %42 = vector.shape_cast %41 : vector<1x1x272x6xbf16> to vector<272x6xbf16>
    %c7 = arith.constant 7 : index
    %c0_52 = arith.constant 0 : index
    %c0_53 = arith.constant 0 : index
    %43 = vector.load %arg3[%c7, %c0_52, %c0_53] : memref<16x6x128xbf16, #tpu.memory_space<vmem>>, vector<1x6x128xbf16>
    %44 = vector.shape_cast %43 : vector<1x6x128xbf16> to vector<6x128xbf16>
    %cst_54 = arith.constant dense<0.000000e+00> : vector<272x128xf32>
    %45 = tpu.matmul %42, %44, %cst_54 {dimension_numbers = #tpu.dot_dimension_numbers<[1], [0], [0], [1], [0, 0, 1, 1], [], []>} : vector<272x6xbf16>, vector<6x128xbf16>, vector<272x128xf32> -> vector<272x128xf32>
    %46 = arith.addf %40, %45 : vector<272x128xf32>
    %c0_55 = arith.constant 0 : index
    %c0_56 = arith.constant 0 : index
    %c17 = arith.constant 17 : index
    %c0_57 = arith.constant 0 : index
    %47 = vector.load %arg2[%c0_55, %c0_56, %c17, %c0_57] : memref<1x4x290x6xbf16, #tpu.memory_space<vmem>>, vector<1x1x272x6xbf16>
    %48 = vector.shape_cast %47 : vector<1x1x272x6xbf16> to vector<272x6xbf16>
    %c8 = arith.constant 8 : index
    %c0_58 = arith.constant 0 : index
    %c0_59 = arith.constant 0 : index
    %49 = vector.load %arg3[%c8, %c0_58, %c0_59] : memref<16x6x128xbf16, #tpu.memory_space<vmem>>, vector<1x6x128xbf16>
    %50 = vector.shape_cast %49 : vector<1x6x128xbf16> to vector<6x128xbf16>
    %cst_60 = arith.constant dense<0.000000e+00> : vector<272x128xf32>
    %51 = tpu.matmul %48, %50, %cst_60 {dimension_numbers = #tpu.dot_dimension_numbers<[1], [0], [0], [1], [0, 0, 1, 1], [], []>} : vector<272x6xbf16>, vector<6x128xbf16>, vector<272x128xf32> -> vector<272x128xf32>
    %52 = arith.addf %46, %51 : vector<272x128xf32>
    %c0_61 = arith.constant 0 : index
    %c1_62 = arith.constant 1 : index
    %c17_63 = arith.constant 17 : index
    %c0_64 = arith.constant 0 : index
    %53 = vector.load %arg2[%c0_61, %c1_62, %c17_63, %c0_64] : memref<1x4x290x6xbf16, #tpu.memory_space<vmem>>, vector<1x1x272x6xbf16>
    %54 = vector.shape_cast %53 : vector<1x1x272x6xbf16> to vector<272x6xbf16>
    %c9 = arith.constant 9 : index
    %c0_65 = arith.constant 0 : index
    %c0_66 = arith.constant 0 : index
    %55 = vector.load %arg3[%c9, %c0_65, %c0_66] : memref<16x6x128xbf16, #tpu.memory_space<vmem>>, vector<1x6x128xbf16>
    %56 = vector.shape_cast %55 : vector<1x6x128xbf16> to vector<6x128xbf16>
    %cst_67 = arith.constant dense<0.000000e+00> : vector<272x128xf32>
    %57 = tpu.matmul %54, %56, %cst_67 {dimension_numbers = #tpu.dot_dimension_numbers<[1], [0], [0], [1], [0, 0, 1, 1], [], []>} : vector<272x6xbf16>, vector<6x128xbf16>, vector<272x128xf32> -> vector<272x128xf32>
    %58 = arith.addf %52, %57 : vector<272x128xf32>
    %c0_68 = arith.constant 0 : index
    %c0_69 = arith.constant 0 : index
    %c18 = arith.constant 18 : index
    %c0_70 = arith.constant 0 : index
    %59 = vector.load %arg2[%c0_68, %c0_69, %c18, %c0_70] : memref<1x4x290x6xbf16, #tpu.memory_space<vmem>>, vector<1x1x272x6xbf16>
    %60 = vector.shape_cast %59 : vector<1x1x272x6xbf16> to vector<272x6xbf16>
    %c10 = arith.constant 10 : index
    %c0_71 = arith.constant 0 : index
    %c0_72 = arith.constant 0 : index
    %61 = vector.load %arg3[%c10, %c0_71, %c0_72] : memref<16x6x128xbf16, #tpu.memory_space<vmem>>, vector<1x6x128xbf16>
    %62 = vector.shape_cast %61 : vector<1x6x128xbf16> to vector<6x128xbf16>
    %cst_73 = arith.constant dense<0.000000e+00> : vector<272x128xf32>
    %63 = tpu.matmul %60, %62, %cst_73 {dimension_numbers = #tpu.dot_dimension_numbers<[1], [0], [0], [1], [0, 0, 1, 1], [], []>} : vector<272x6xbf16>, vector<6x128xbf16>, vector<272x128xf32> -> vector<272x128xf32>
    %64 = arith.addf %58, %63 : vector<272x128xf32>
    %c0_74 = arith.constant 0 : index
    %c1_75 = arith.constant 1 : index
    %c18_76 = arith.constant 18 : index
    %c0_77 = arith.constant 0 : index
    %65 = vector.load %arg2[%c0_74, %c1_75, %c18_76, %c0_77] : memref<1x4x290x6xbf16, #tpu.memory_space<vmem>>, vector<1x1x272x6xbf16>
    %66 = vector.shape_cast %65 : vector<1x1x272x6xbf16> to vector<272x6xbf16>
    %c11 = arith.constant 11 : index
    %c0_78 = arith.constant 0 : index
    %c0_79 = arith.constant 0 : index
    %67 = vector.load %arg3[%c11, %c0_78, %c0_79] : memref<16x6x128xbf16, #tpu.memory_space<vmem>>, vector<1x6x128xbf16>
    %68 = vector.shape_cast %67 : vector<1x6x128xbf16> to vector<6x128xbf16>
    %cst_80 = arith.constant dense<0.000000e+00> : vector<272x128xf32>
    %69 = tpu.matmul %66, %68, %cst_80 {dimension_numbers = #tpu.dot_dimension_numbers<[1], [0], [0], [1], [0, 0, 1, 1], [], []>} : vector<272x6xbf16>, vector<6x128xbf16>, vector<272x128xf32> -> vector<272x128xf32>
    %70 = arith.addf %64, %69 : vector<272x128xf32>
    %c0_81 = arith.constant 0 : index
    %c2_82 = arith.constant 2 : index
    %c17_83 = arith.constant 17 : index
    %c0_84 = arith.constant 0 : index
    %71 = vector.load %arg2[%c0_81, %c2_82, %c17_83, %c0_84] : memref<1x4x290x6xbf16, #tpu.memory_space<vmem>>, vector<1x1x272x6xbf16>
    %72 = vector.shape_cast %71 : vector<1x1x272x6xbf16> to vector<272x6xbf16>
    %c12 = arith.constant 12 : index
    %c0_85 = arith.constant 0 : index
    %c0_86 = arith.constant 0 : index
    %73 = vector.load %arg3[%c12, %c0_85, %c0_86] : memref<16x6x128xbf16, #tpu.memory_space<vmem>>, vector<1x6x128xbf16>
    %74 = vector.shape_cast %73 : vector<1x6x128xbf16> to vector<6x128xbf16>
    %cst_87 = arith.constant dense<0.000000e+00> : vector<272x128xf32>
    %75 = tpu.matmul %72, %74, %cst_87 {dimension_numbers = #tpu.dot_dimension_numbers<[1], [0], [0], [1], [0, 0, 1, 1], [], []>} : vector<272x6xbf16>, vector<6x128xbf16>, vector<272x128xf32> -> vector<272x128xf32>
    %76 = arith.addf %70, %75 : vector<272x128xf32>
    %c0_88 = arith.constant 0 : index
    %c3_89 = arith.constant 3 : index
    %c17_90 = arith.constant 17 : index
    %c0_91 = arith.constant 0 : index
    %77 = vector.load %arg2[%c0_88, %c3_89, %c17_90, %c0_91] : memref<1x4x290x6xbf16, #tpu.memory_space<vmem>>, vector<1x1x272x6xbf16>
    %78 = vector.shape_cast %77 : vector<1x1x272x6xbf16> to vector<272x6xbf16>
    %c13 = arith.constant 13 : index
    %c0_92 = arith.constant 0 : index
    %c0_93 = arith.constant 0 : index
    %79 = vector.load %arg3[%c13, %c0_92, %c0_93] : memref<16x6x128xbf16, #tpu.memory_space<vmem>>, vector<1x6x128xbf16>
    %80 = vector.shape_cast %79 : vector<1x6x128xbf16> to vector<6x128xbf16>
    %cst_94 = arith.constant dense<0.000000e+00> : vector<272x128xf32>
    %81 = tpu.matmul %78, %80, %cst_94 {dimension_numbers = #tpu.dot_dimension_numbers<[1], [0], [0], [1], [0, 0, 1, 1], [], []>} : vector<272x6xbf16>, vector<6x128xbf16>, vector<272x128xf32> -> vector<272x128xf32>
    %82 = arith.addf %76, %81 : vector<272x128xf32>
    %c0_95 = arith.constant 0 : index
    %c2_96 = arith.constant 2 : index
    %c18_97 = arith.constant 18 : index
    %c0_98 = arith.constant 0 : index
    %83 = vector.load %arg2[%c0_95, %c2_96, %c18_97, %c0_98] : memref<1x4x290x6xbf16, #tpu.memory_space<vmem>>, vector<1x1x272x6xbf16>
    %84 = vector.shape_cast %83 : vector<1x1x272x6xbf16> to vector<272x6xbf16>
    %c14 = arith.constant 14 : index
    %c0_99 = arith.constant 0 : index
    %c0_100 = arith.constant 0 : index
    %85 = vector.load %arg3[%c14, %c0_99, %c0_100] : memref<16x6x128xbf16, #tpu.memory_space<vmem>>, vector<1x6x128xbf16>
    %86 = vector.shape_cast %85 : vector<1x6x128xbf16> to vector<6x128xbf16>
    %cst_101 = arith.constant dense<0.000000e+00> : vector<272x128xf32>
    %87 = tpu.matmul %84, %86, %cst_101 {dimension_numbers = #tpu.dot_dimension_numbers<[1], [0], [0], [1], [0, 0, 1, 1], [], []>} : vector<272x6xbf16>, vector<6x128xbf16>, vector<272x128xf32> -> vector<272x128xf32>
    %88 = arith.addf %82, %87 : vector<272x128xf32>
    %c0_102 = arith.constant 0 : index
    %c3_103 = arith.constant 3 : index
    %c18_104 = arith.constant 18 : index
    %c0_105 = arith.constant 0 : index
    %89 = vector.load %arg2[%c0_102, %c3_103, %c18_104, %c0_105] : memref<1x4x290x6xbf16, #tpu.memory_space<vmem>>, vector<1x1x272x6xbf16>
    %90 = vector.shape_cast %89 : vector<1x1x272x6xbf16> to vector<272x6xbf16>
    %c15 = arith.constant 15 : index
    %c0_106 = arith.constant 0 : index
    %c0_107 = arith.constant 0 : index
    %91 = vector.load %arg3[%c15, %c0_106, %c0_107] : memref<16x6x128xbf16, #tpu.memory_space<vmem>>, vector<1x6x128xbf16>
    %92 = vector.shape_cast %91 : vector<1x6x128xbf16> to vector<6x128xbf16>
    %cst_108 = arith.constant dense<0.000000e+00> : vector<272x128xf32>
    %93 = tpu.matmul %90, %92, %cst_108 {dimension_numbers = #tpu.dot_dimension_numbers<[1], [0], [0], [1], [0, 0, 1, 1], [], []>} : vector<272x6xbf16>, vector<6x128xbf16>, vector<272x128xf32> -> vector<272x128xf32>
    %94 = arith.addf %88, %93 : vector<272x128xf32>
    %c0_109 = arith.constant 0 : index
    %c0_110 = arith.constant 0 : index
    %95 = vector.load %arg4[%c0_109, %c0_110] : memref<1x128xf32, #tpu.memory_space<vmem>>, vector<1x128xf32>
    %96 = vector.broadcast %95 : vector<1x128xf32> to vector<272x128xf32>
    %97 = arith.addf %94, %96 : vector<272x128xf32>
    %cst_111 = arith.constant 0.000000e+00 : f32
    %98 = vector.broadcast %cst_111 : f32 to vector<272x128xf32>
    %99 = arith.cmpf oge, %97, %98 : vector<272x128xf32>
    %cst_112 = arith.constant 2.000000e-01 : f32
    %100 = vector.broadcast %cst_112 : f32 to vector<272x128xf32>
    %101 = arith.mulf %100, %97 : vector<272x128xf32>
    %102 = arith.select %99, %97, %101 : vector<272x128xi1>, vector<272x128xf32>
    %103 = arith.truncf %102 : vector<272x128xf32> to vector<272x128xbf16>
    %c0_113 = arith.constant 0 : index
    %c0_114 = arith.constant 0 : index
    %c0_115 = arith.constant 0 : index
    %104 = vector.load %arg5[%c0_113, %c0_114, %c0_115] : memref<1x272x128xbf16, #tpu.memory_space<vmem>>, vector<1x272x128xbf16>
    %105 = vector.shape_cast %104 : vector<1x272x128xbf16> to vector<272x128xbf16>
    %106 = vector.shape_cast %103 : vector<272x128xbf16> to vector<1x272x128xbf16>
    tpu.vector_store %arg5[%c0_113, %c0_114, %c0_115], %106 {strides = array<i32>} : memref<1x272x128xbf16, #tpu.memory_space<vmem>>, vector<1x272x128xbf16>,
    return
  }
  func.func @transform_0(%arg0: i32, %arg1: i32) -> (i32, i32, i32, i32) {
    %c0_i32 = arith.constant 0 : i32
    %c0_i32_0 = arith.constant 0 : i32
    %c0_i32_1 = arith.constant 0 : i32
    %c0_i32_2 = arith.constant 0 : i32
    return %arg0, %c0_i32, %c0_i32_0, %c0_i32_1 : i32, i32, i32, i32
  }
  func.func @transform_1(%arg0: i32, %arg1: i32) -> (i32, i32, i32) {
    %c0_i32 = arith.constant 0 : i32
    %c0_i32_0 = arith.constant 0 : i32
    %c0_i32_1 = arith.constant 0 : i32
    return %c0_i32, %c0_i32_0, %arg1 : i32, i32, i32
  }
  func.func @transform_2(%arg0: i32, %arg1: i32) -> (i32, i32) {
    %c0_i32 = arith.constant 0 : i32
    %c0_i32_0 = arith.constant 0 : i32
    return %c0_i32, %arg1 : i32, i32
  }
  func.func @transform_3(%arg0: i32, %arg1: i32) -> (i32, i32, i32) {
    %c0_i32 = arith.constant 0 : i32
    %c0_i32_0 = arith.constant 0 : i32
    return %arg0, %c0_i32, %arg1 : i32, i32, i32
  }
}

module attributes {stable_mosaic.version = 11 : i64} {
  func.func @kernel(%arg0: i32, %arg1: i32, %arg2: memref<1x4x82x128xbf16, #tpu.memory_space<vmem>>, %arg3: memref<16x128x128xbf16, #tpu.memory_space<vmem>>, %arg4: memref<72x1xf32, #tpu.memory_space<vmem>>, %arg5: memref<1x72x128xbf16, #tpu.memory_space<vmem>>, %arg6: memref<1x8x128xf32, #tpu.memory_space<vmem>>) attributes {dimension_semantics = [#tpu.dimension_semantics<parallel>, #tpu.dimension_semantics<parallel>], iteration_bounds = array<i64: 2, 1>, scalar_prefetch = 0 : i64, scratch_operands = 0 : i64, tpu.core_type = #tpu.core_type<tc>, window_params = [{transform_indices = @transform_0, window_bounds = array<i64: 1, 4, 82, 128>}, {pipeline_mode = #tpu.pipeline_mode<synchronous>, transform_indices = @transform_1, window_bounds = array<i64: 16, 128, 128>}, {pipeline_mode = #tpu.pipeline_mode<synchronous>, transform_indices = @transform_2, window_bounds = array<i64: 72, 1>}, {transform_indices = @transform_3, window_bounds = array<i64: 1, 72, 128>}, {transform_indices = @transform_4, window_bounds = array<i64: 1, 8, 128>}]} {
    %c0 = arith.constant 0 : index
    %c0_0 = arith.constant 0 : index
    %c0_1 = arith.constant 0 : index
    %c0_2 = arith.constant 0 : index
    %0 = vector.load %arg2[%c0, %c0_0, %c0_1, %c0_2] : memref<1x4x82x128xbf16, #tpu.memory_space<vmem>>, vector<1x1x72x128xbf16>
    %1 = vector.shape_cast %0 : vector<1x1x72x128xbf16> to vector<72x128xbf16>
    %c0_3 = arith.constant 0 : index
    %c0_4 = arith.constant 0 : index
    %c0_5 = arith.constant 0 : index
    %2 = vector.load %arg3[%c0_3, %c0_4, %c0_5] : memref<16x128x128xbf16, #tpu.memory_space<vmem>>, vector<1x128x128xbf16>
    %3 = vector.shape_cast %2 : vector<1x128x128xbf16> to vector<128x128xbf16>
    %cst = arith.constant dense<0.000000e+00> : vector<72x128xf32>
    %4 = tpu.matmul %1, %3, %cst {dimension_numbers = #tpu.dot_dimension_numbers<[1], [0], [0], [1], [0, 0, 1, 1], [], []>} : vector<72x128xbf16>, vector<128x128xbf16>, vector<72x128xf32> -> vector<72x128xf32>
    %c0_6 = arith.constant 0 : index
    %c1 = arith.constant 1 : index
    %c0_7 = arith.constant 0 : index
    %c0_8 = arith.constant 0 : index
    %5 = vector.load %arg2[%c0_6, %c1, %c0_7, %c0_8] : memref<1x4x82x128xbf16, #tpu.memory_space<vmem>>, vector<1x1x72x128xbf16>
    %6 = vector.shape_cast %5 : vector<1x1x72x128xbf16> to vector<72x128xbf16>
    %c1_9 = arith.constant 1 : index
    %c0_10 = arith.constant 0 : index
    %c0_11 = arith.constant 0 : index
    %7 = vector.load %arg3[%c1_9, %c0_10, %c0_11] : memref<16x128x128xbf16, #tpu.memory_space<vmem>>, vector<1x128x128xbf16>
    %8 = vector.shape_cast %7 : vector<1x128x128xbf16> to vector<128x128xbf16>
    %cst_12 = arith.constant dense<0.000000e+00> : vector<72x128xf32>
    %9 = tpu.matmul %6, %8, %cst_12 {dimension_numbers = #tpu.dot_dimension_numbers<[1], [0], [0], [1], [0, 0, 1, 1], [], []>} : vector<72x128xbf16>, vector<128x128xbf16>, vector<72x128xf32> -> vector<72x128xf32>
    %10 = arith.addf %4, %9 : vector<72x128xf32>
    %c0_13 = arith.constant 0 : index
    %c0_14 = arith.constant 0 : index
    %c1_15 = arith.constant 1 : index
    %c0_16 = arith.constant 0 : index
    %11 = vector.load %arg2[%c0_13, %c0_14, %c1_15, %c0_16] : memref<1x4x82x128xbf16, #tpu.memory_space<vmem>>, vector<1x1x72x128xbf16>
    %12 = vector.shape_cast %11 : vector<1x1x72x128xbf16> to vector<72x128xbf16>
    %c2 = arith.constant 2 : index
    %c0_17 = arith.constant 0 : index
    %c0_18 = arith.constant 0 : index
    %13 = vector.load %arg3[%c2, %c0_17, %c0_18] : memref<16x128x128xbf16, #tpu.memory_space<vmem>>, vector<1x128x128xbf16>
    %14 = vector.shape_cast %13 : vector<1x128x128xbf16> to vector<128x128xbf16>
    %cst_19 = arith.constant dense<0.000000e+00> : vector<72x128xf32>
    %15 = tpu.matmul %12, %14, %cst_19 {dimension_numbers = #tpu.dot_dimension_numbers<[1], [0], [0], [1], [0, 0, 1, 1], [], []>} : vector<72x128xbf16>, vector<128x128xbf16>, vector<72x128xf32> -> vector<72x128xf32>
    %16 = arith.addf %10, %15 : vector<72x128xf32>
    %c0_20 = arith.constant 0 : index
    %c1_21 = arith.constant 1 : index
    %c1_22 = arith.constant 1 : index
    %c0_23 = arith.constant 0 : index
    %17 = vector.load %arg2[%c0_20, %c1_21, %c1_22, %c0_23] : memref<1x4x82x128xbf16, #tpu.memory_space<vmem>>, vector<1x1x72x128xbf16>
    %18 = vector.shape_cast %17 : vector<1x1x72x128xbf16> to vector<72x128xbf16>
    %c3 = arith.constant 3 : index
    %c0_24 = arith.constant 0 : index
    %c0_25 = arith.constant 0 : index
    %19 = vector.load %arg3[%c3, %c0_24, %c0_25] : memref<16x128x128xbf16, #tpu.memory_space<vmem>>, vector<1x128x128xbf16>
    %20 = vector.shape_cast %19 : vector<1x128x128xbf16> to vector<128x128xbf16>
    %cst_26 = arith.constant dense<0.000000e+00> : vector<72x128xf32>
    %21 = tpu.matmul %18, %20, %cst_26 {dimension_numbers = #tpu.dot_dimension_numbers<[1], [0], [0], [1], [0, 0, 1, 1], [], []>} : vector<72x128xbf16>, vector<128x128xbf16>, vector<72x128xf32> -> vector<72x128xf32>
    %22 = arith.addf %16, %21 : vector<72x128xf32>
    %c0_27 = arith.constant 0 : index
    %c2_28 = arith.constant 2 : index
    %c0_29 = arith.constant 0 : index
    %c0_30 = arith.constant 0 : index
    %23 = vector.load %arg2[%c0_27, %c2_28, %c0_29, %c0_30] : memref<1x4x82x128xbf16, #tpu.memory_space<vmem>>, vector<1x1x72x128xbf16>
    %24 = vector.shape_cast %23 : vector<1x1x72x128xbf16> to vector<72x128xbf16>
    %c4 = arith.constant 4 : index
    %c0_31 = arith.constant 0 : index
    %c0_32 = arith.constant 0 : index
    %25 = vector.load %arg3[%c4, %c0_31, %c0_32] : memref<16x128x128xbf16, #tpu.memory_space<vmem>>, vector<1x128x128xbf16>
    %26 = vector.shape_cast %25 : vector<1x128x128xbf16> to vector<128x128xbf16>
    %cst_33 = arith.constant dense<0.000000e+00> : vector<72x128xf32>
    %27 = tpu.matmul %24, %26, %cst_33 {dimension_numbers = #tpu.dot_dimension_numbers<[1], [0], [0], [1], [0, 0, 1, 1], [], []>} : vector<72x128xbf16>, vector<128x128xbf16>, vector<72x128xf32> -> vector<72x128xf32>
    %28 = arith.addf %22, %27 : vector<72x128xf32>
    %c0_34 = arith.constant 0 : index
    %c3_35 = arith.constant 3 : index
    %c0_36 = arith.constant 0 : index
    %c0_37 = arith.constant 0 : index
    %29 = vector.load %arg2[%c0_34, %c3_35, %c0_36, %c0_37] : memref<1x4x82x128xbf16, #tpu.memory_space<vmem>>, vector<1x1x72x128xbf16>
    %30 = vector.shape_cast %29 : vector<1x1x72x128xbf16> to vector<72x128xbf16>
    %c5 = arith.constant 5 : index
    %c0_38 = arith.constant 0 : index
    %c0_39 = arith.constant 0 : index
    %31 = vector.load %arg3[%c5, %c0_38, %c0_39] : memref<16x128x128xbf16, #tpu.memory_space<vmem>>, vector<1x128x128xbf16>
    %32 = vector.shape_cast %31 : vector<1x128x128xbf16> to vector<128x128xbf16>
    %cst_40 = arith.constant dense<0.000000e+00> : vector<72x128xf32>
    %33 = tpu.matmul %30, %32, %cst_40 {dimension_numbers = #tpu.dot_dimension_numbers<[1], [0], [0], [1], [0, 0, 1, 1], [], []>} : vector<72x128xbf16>, vector<128x128xbf16>, vector<72x128xf32> -> vector<72x128xf32>
    %34 = arith.addf %28, %33 : vector<72x128xf32>
    %c0_41 = arith.constant 0 : index
    %c2_42 = arith.constant 2 : index
    %c1_43 = arith.constant 1 : index
    %c0_44 = arith.constant 0 : index
    %35 = vector.load %arg2[%c0_41, %c2_42, %c1_43, %c0_44] : memref<1x4x82x128xbf16, #tpu.memory_space<vmem>>, vector<1x1x72x128xbf16>
    %36 = vector.shape_cast %35 : vector<1x1x72x128xbf16> to vector<72x128xbf16>
    %c6 = arith.constant 6 : index
    %c0_45 = arith.constant 0 : index
    %c0_46 = arith.constant 0 : index
    %37 = vector.load %arg3[%c6, %c0_45, %c0_46] : memref<16x128x128xbf16, #tpu.memory_space<vmem>>, vector<1x128x128xbf16>
    %38 = vector.shape_cast %37 : vector<1x128x128xbf16> to vector<128x128xbf16>
    %cst_47 = arith.constant dense<0.000000e+00> : vector<72x128xf32>
    %39 = tpu.matmul %36, %38, %cst_47 {dimension_numbers = #tpu.dot_dimension_numbers<[1], [0], [0], [1], [0, 0, 1, 1], [], []>} : vector<72x128xbf16>, vector<128x128xbf16>, vector<72x128xf32> -> vector<72x128xf32>
    %40 = arith.addf %34, %39 : vector<72x128xf32>
    %c0_48 = arith.constant 0 : index
    %c3_49 = arith.constant 3 : index
    %c1_50 = arith.constant 1 : index
    %c0_51 = arith.constant 0 : index
    %41 = vector.load %arg2[%c0_48, %c3_49, %c1_50, %c0_51] : memref<1x4x82x128xbf16, #tpu.memory_space<vmem>>, vector<1x1x72x128xbf16>
    %42 = vector.shape_cast %41 : vector<1x1x72x128xbf16> to vector<72x128xbf16>
    %c7 = arith.constant 7 : index
    %c0_52 = arith.constant 0 : index
    %c0_53 = arith.constant 0 : index
    %43 = vector.load %arg3[%c7, %c0_52, %c0_53] : memref<16x128x128xbf16, #tpu.memory_space<vmem>>, vector<1x128x128xbf16>
    %44 = vector.shape_cast %43 : vector<1x128x128xbf16> to vector<128x128xbf16>
    %cst_54 = arith.constant dense<0.000000e+00> : vector<72x128xf32>
    %45 = tpu.matmul %42, %44, %cst_54 {dimension_numbers = #tpu.dot_dimension_numbers<[1], [0], [0], [1], [0, 0, 1, 1], [], []>} : vector<72x128xbf16>, vector<128x128xbf16>, vector<72x128xf32> -> vector<72x128xf32>
    %46 = arith.addf %40, %45 : vector<72x128xf32>
    %c0_55 = arith.constant 0 : index
    %c0_56 = arith.constant 0 : index
    %c9 = arith.constant 9 : index
    %c0_57 = arith.constant 0 : index
    %47 = vector.load %arg2[%c0_55, %c0_56, %c9, %c0_57] : memref<1x4x82x128xbf16, #tpu.memory_space<vmem>>, vector<1x1x72x128xbf16>
    %48 = vector.shape_cast %47 : vector<1x1x72x128xbf16> to vector<72x128xbf16>
    %c8 = arith.constant 8 : index
    %c0_58 = arith.constant 0 : index
    %c0_59 = arith.constant 0 : index
    %49 = vector.load %arg3[%c8, %c0_58, %c0_59] : memref<16x128x128xbf16, #tpu.memory_space<vmem>>, vector<1x128x128xbf16>
    %50 = vector.shape_cast %49 : vector<1x128x128xbf16> to vector<128x128xbf16>
    %cst_60 = arith.constant dense<0.000000e+00> : vector<72x128xf32>
    %51 = tpu.matmul %48, %50, %cst_60 {dimension_numbers = #tpu.dot_dimension_numbers<[1], [0], [0], [1], [0, 0, 1, 1], [], []>} : vector<72x128xbf16>, vector<128x128xbf16>, vector<72x128xf32> -> vector<72x128xf32>
    %52 = arith.addf %46, %51 : vector<72x128xf32>
    %c0_61 = arith.constant 0 : index
    %c1_62 = arith.constant 1 : index
    %c9_63 = arith.constant 9 : index
    %c0_64 = arith.constant 0 : index
    %53 = vector.load %arg2[%c0_61, %c1_62, %c9_63, %c0_64] : memref<1x4x82x128xbf16, #tpu.memory_space<vmem>>, vector<1x1x72x128xbf16>
    %54 = vector.shape_cast %53 : vector<1x1x72x128xbf16> to vector<72x128xbf16>
    %c9_65 = arith.constant 9 : index
    %c0_66 = arith.constant 0 : index
    %c0_67 = arith.constant 0 : index
    %55 = vector.load %arg3[%c9_65, %c0_66, %c0_67] : memref<16x128x128xbf16, #tpu.memory_space<vmem>>, vector<1x128x128xbf16>
    %56 = vector.shape_cast %55 : vector<1x128x128xbf16> to vector<128x128xbf16>
    %cst_68 = arith.constant dense<0.000000e+00> : vector<72x128xf32>
    %57 = tpu.matmul %54, %56, %cst_68 {dimension_numbers = #tpu.dot_dimension_numbers<[1], [0], [0], [1], [0, 0, 1, 1], [], []>} : vector<72x128xbf16>, vector<128x128xbf16>, vector<72x128xf32> -> vector<72x128xf32>
    %58 = arith.addf %52, %57 : vector<72x128xf32>
    %c0_69 = arith.constant 0 : index
    %c0_70 = arith.constant 0 : index
    %c10 = arith.constant 10 : index
    %c0_71 = arith.constant 0 : index
    %59 = vector.load %arg2[%c0_69, %c0_70, %c10, %c0_71] : memref<1x4x82x128xbf16, #tpu.memory_space<vmem>>, vector<1x1x72x128xbf16>
    %60 = vector.shape_cast %59 : vector<1x1x72x128xbf16> to vector<72x128xbf16>
    %c10_72 = arith.constant 10 : index
    %c0_73 = arith.constant 0 : index
    %c0_74 = arith.constant 0 : index
    %61 = vector.load %arg3[%c10_72, %c0_73, %c0_74] : memref<16x128x128xbf16, #tpu.memory_space<vmem>>, vector<1x128x128xbf16>
    %62 = vector.shape_cast %61 : vector<1x128x128xbf16> to vector<128x128xbf16>
    %cst_75 = arith.constant dense<0.000000e+00> : vector<72x128xf32>
    %63 = tpu.matmul %60, %62, %cst_75 {dimension_numbers = #tpu.dot_dimension_numbers<[1], [0], [0], [1], [0, 0, 1, 1], [], []>} : vector<72x128xbf16>, vector<128x128xbf16>, vector<72x128xf32> -> vector<72x128xf32>
    %64 = arith.addf %58, %63 : vector<72x128xf32>
    %c0_76 = arith.constant 0 : index
    %c1_77 = arith.constant 1 : index
    %c10_78 = arith.constant 10 : index
    %c0_79 = arith.constant 0 : index
    %65 = vector.load %arg2[%c0_76, %c1_77, %c10_78, %c0_79] : memref<1x4x82x128xbf16, #tpu.memory_space<vmem>>, vector<1x1x72x128xbf16>
    %66 = vector.shape_cast %65 : vector<1x1x72x128xbf16> to vector<72x128xbf16>
    %c11 = arith.constant 11 : index
    %c0_80 = arith.constant 0 : index
    %c0_81 = arith.constant 0 : index
    %67 = vector.load %arg3[%c11, %c0_80, %c0_81] : memref<16x128x128xbf16, #tpu.memory_space<vmem>>, vector<1x128x128xbf16>
    %68 = vector.shape_cast %67 : vector<1x128x128xbf16> to vector<128x128xbf16>
    %cst_82 = arith.constant dense<0.000000e+00> : vector<72x128xf32>
    %69 = tpu.matmul %66, %68, %cst_82 {dimension_numbers = #tpu.dot_dimension_numbers<[1], [0], [0], [1], [0, 0, 1, 1], [], []>} : vector<72x128xbf16>, vector<128x128xbf16>, vector<72x128xf32> -> vector<72x128xf32>
    %70 = arith.addf %64, %69 : vector<72x128xf32>
    %c0_83 = arith.constant 0 : index
    %c2_84 = arith.constant 2 : index
    %c9_85 = arith.constant 9 : index
    %c0_86 = arith.constant 0 : index
    %71 = vector.load %arg2[%c0_83, %c2_84, %c9_85, %c0_86] : memref<1x4x82x128xbf16, #tpu.memory_space<vmem>>, vector<1x1x72x128xbf16>
    %72 = vector.shape_cast %71 : vector<1x1x72x128xbf16> to vector<72x128xbf16>
    %c12 = arith.constant 12 : index
    %c0_87 = arith.constant 0 : index
    %c0_88 = arith.constant 0 : index
    %73 = vector.load %arg3[%c12, %c0_87, %c0_88] : memref<16x128x128xbf16, #tpu.memory_space<vmem>>, vector<1x128x128xbf16>
    %74 = vector.shape_cast %73 : vector<1x128x128xbf16> to vector<128x128xbf16>
    %cst_89 = arith.constant dense<0.000000e+00> : vector<72x128xf32>
    %75 = tpu.matmul %72, %74, %cst_89 {dimension_numbers = #tpu.dot_dimension_numbers<[1], [0], [0], [1], [0, 0, 1, 1], [], []>} : vector<72x128xbf16>, vector<128x128xbf16>, vector<72x128xf32> -> vector<72x128xf32>
    %76 = arith.addf %70, %75 : vector<72x128xf32>
    %c0_90 = arith.constant 0 : index
    %c3_91 = arith.constant 3 : index
    %c9_92 = arith.constant 9 : index
    %c0_93 = arith.constant 0 : index
    %77 = vector.load %arg2[%c0_90, %c3_91, %c9_92, %c0_93] : memref<1x4x82x128xbf16, #tpu.memory_space<vmem>>, vector<1x1x72x128xbf16>
    %78 = vector.shape_cast %77 : vector<1x1x72x128xbf16> to vector<72x128xbf16>
    %c13 = arith.constant 13 : index
    %c0_94 = arith.constant 0 : index
    %c0_95 = arith.constant 0 : index
    %79 = vector.load %arg3[%c13, %c0_94, %c0_95] : memref<16x128x128xbf16, #tpu.memory_space<vmem>>, vector<1x128x128xbf16>
    %80 = vector.shape_cast %79 : vector<1x128x128xbf16> to vector<128x128xbf16>
    %cst_96 = arith.constant dense<0.000000e+00> : vector<72x128xf32>
    %81 = tpu.matmul %78, %80, %cst_96 {dimension_numbers = #tpu.dot_dimension_numbers<[1], [0], [0], [1], [0, 0, 1, 1], [], []>} : vector<72x128xbf16>, vector<128x128xbf16>, vector<72x128xf32> -> vector<72x128xf32>
    %82 = arith.addf %76, %81 : vector<72x128xf32>
    %c0_97 = arith.constant 0 : index
    %c2_98 = arith.constant 2 : index
    %c10_99 = arith.constant 10 : index
    %c0_100 = arith.constant 0 : index
    %83 = vector.load %arg2[%c0_97, %c2_98, %c10_99, %c0_100] : memref<1x4x82x128xbf16, #tpu.memory_space<vmem>>, vector<1x1x72x128xbf16>
    %84 = vector.shape_cast %83 : vector<1x1x72x128xbf16> to vector<72x128xbf16>
    %c14 = arith.constant 14 : index
    %c0_101 = arith.constant 0 : index
    %c0_102 = arith.constant 0 : index
    %85 = vector.load %arg3[%c14, %c0_101, %c0_102] : memref<16x128x128xbf16, #tpu.memory_space<vmem>>, vector<1x128x128xbf16>
    %86 = vector.shape_cast %85 : vector<1x128x128xbf16> to vector<128x128xbf16>
    %cst_103 = arith.constant dense<0.000000e+00> : vector<72x128xf32>
    %87 = tpu.matmul %84, %86, %cst_103 {dimension_numbers = #tpu.dot_dimension_numbers<[1], [0], [0], [1], [0, 0, 1, 1], [], []>} : vector<72x128xbf16>, vector<128x128xbf16>, vector<72x128xf32> -> vector<72x128xf32>
    %88 = arith.addf %82, %87 : vector<72x128xf32>
    %c0_104 = arith.constant 0 : index
    %c3_105 = arith.constant 3 : index
    %c10_106 = arith.constant 10 : index
    %c0_107 = arith.constant 0 : index
    %89 = vector.load %arg2[%c0_104, %c3_105, %c10_106, %c0_107] : memref<1x4x82x128xbf16, #tpu.memory_space<vmem>>, vector<1x1x72x128xbf16>
    %90 = vector.shape_cast %89 : vector<1x1x72x128xbf16> to vector<72x128xbf16>
    %c15 = arith.constant 15 : index
    %c0_108 = arith.constant 0 : index
    %c0_109 = arith.constant 0 : index
    %91 = vector.load %arg3[%c15, %c0_108, %c0_109] : memref<16x128x128xbf16, #tpu.memory_space<vmem>>, vector<1x128x128xbf16>
    %92 = vector.shape_cast %91 : vector<1x128x128xbf16> to vector<128x128xbf16>
    %cst_110 = arith.constant dense<0.000000e+00> : vector<72x128xf32>
    %93 = tpu.matmul %90, %92, %cst_110 {dimension_numbers = #tpu.dot_dimension_numbers<[1], [0], [0], [1], [0, 0, 1, 1], [], []>} : vector<72x128xbf16>, vector<128x128xbf16>, vector<72x128xf32> -> vector<72x128xf32>
    %94 = arith.addf %88, %93 : vector<72x128xf32>
    %95 = arith.truncf %94 : vector<72x128xf32> to vector<72x128xbf16>
    %c0_111 = arith.constant 0 : index
    %c0_112 = arith.constant 0 : index
    %c0_113 = arith.constant 0 : index
    %96 = vector.load %arg5[%c0_111, %c0_112, %c0_113] : memref<1x72x128xbf16, #tpu.memory_space<vmem>>, vector<1x72x128xbf16>
    %97 = vector.shape_cast %96 : vector<1x72x128xbf16> to vector<72x128xbf16>
    %98 = vector.shape_cast %95 : vector<72x128xbf16> to vector<1x72x128xbf16>
    tpu.vector_store %arg5[%c0_111, %c0_112, %c0_113], %98 {strides = array<i32>} : memref<1x72x128xbf16, #tpu.memory_space<vmem>>, vector<1x72x128xbf16>,
    %c0_114 = arith.constant 0 : index
    %c0_115 = arith.constant 0 : index
    %99 = vector.load %arg4[%c0_114, %c0_115] : memref<72x1xf32, #tpu.memory_space<vmem>>, vector<72x1xf32>
    %cst_116 = arith.constant 0.000000e+00 : f32
    %100 = vector.broadcast %cst_116 : f32 to vector<72x1xf32>
    %101 = arith.cmpf one, %99, %100 : vector<72x1xf32>
    %cst_117 = arith.constant 0.000000e+00 : f32
    %102 = vector.shape_cast %101 : vector<72x1xi1> to vector<72x1xi1>
    %103 = vector.broadcast %102 : vector<72x1xi1> to vector<72x128xi1>
    %104 = vector.broadcast %cst_117 : f32 to vector<72x128xf32>
    %105 = arith.select %103, %94, %104 : vector<72x128xi1>, vector<72x128xf32>
    %cst_118 = arith.constant dense<0.000000e+00> : vector<128xf32>
    %106 = vector.multi_reduction <add>, %105, %cst_118 [0] : vector<72x128xf32> to vector<128xf32>
    %107 = vector.shape_cast %106 : vector<128xf32> to vector<1x128xf32>
    %c0_119 = arith.constant 0 : index
    %c0_120 = arith.constant 0 : index
    %c0_121 = arith.constant 0 : index
    %108 = vector.load %arg6[%c0_119, %c0_120, %c0_121] : memref<1x8x128xf32, #tpu.memory_space<vmem>>, vector<1x1x128xf32>
    %109 = vector.shape_cast %108 : vector<1x1x128xf32> to vector<1x128xf32>
    %110 = vector.shape_cast %107 : vector<1x128xf32> to vector<1x1x128xf32>
    tpu.vector_store %arg6[%c0_119, %c0_120, %c0_121], %110 {strides = array<i32>} : memref<1x8x128xf32, #tpu.memory_space<vmem>>, vector<1x1x128xf32>,
    %111 = arith.mulf %105, %105 : vector<72x128xf32>
    %cst_122 = arith.constant dense<0.000000e+00> : vector<128xf32>
    %112 = vector.multi_reduction <add>, %111, %cst_122 [0] : vector<72x128xf32> to vector<128xf32>
    %113 = vector.shape_cast %112 : vector<128xf32> to vector<1x128xf32>
    %c0_123 = arith.constant 0 : index
    %c1_124 = arith.constant 1 : index
    %c0_125 = arith.constant 0 : index
    %114 = vector.load %arg6[%c0_123, %c1_124, %c0_125] : memref<1x8x128xf32, #tpu.memory_space<vmem>>, vector<1x1x128xf32>
    %115 = vector.shape_cast %114 : vector<1x1x128xf32> to vector<1x128xf32>
    %116 = vector.shape_cast %113 : vector<1x128xf32> to vector<1x1x128xf32>
    tpu.vector_store %arg6[%c0_123, %c1_124, %c0_125], %116 {strides = array<i32>} : memref<1x8x128xf32, #tpu.memory_space<vmem>>, vector<1x1x128xf32>,
    return
  }
  func.func @transform_0(%arg0: i32, %arg1: i32) -> (i32, i32, i32, i32) {
    %c0_i32 = arith.constant 0 : i32
    %c0_i32_0 = arith.constant 0 : i32
    %c0_i32_1 = arith.constant 0 : i32
    %c0_i32_2 = arith.constant 0 : i32
    return %arg0, %c0_i32, %c0_i32_0, %c0_i32_1 : i32, i32, i32, i32
  }
  func.func @transform_1(%arg0: i32, %arg1: i32) -> (i32, i32, i32) {
    %c0_i32 = arith.constant 0 : i32
    %c0_i32_0 = arith.constant 0 : i32
    %c0_i32_1 = arith.constant 0 : i32
    return %c0_i32, %c0_i32_0, %arg1 : i32, i32, i32
  }
  func.func @transform_2(%arg0: i32, %arg1: i32) -> (i32, i32) {
    %c0_i32 = arith.constant 0 : i32
    %c0_i32_0 = arith.constant 0 : i32
    %c0_i32_1 = arith.constant 0 : i32
    return %c0_i32, %c0_i32_0 : i32, i32
  }
  func.func @transform_3(%arg0: i32, %arg1: i32) -> (i32, i32, i32) {
    %c0_i32 = arith.constant 0 : i32
    %c0_i32_0 = arith.constant 0 : i32
    return %arg0, %c0_i32, %arg1 : i32, i32, i32
  }
  func.func @transform_4(%arg0: i32, %arg1: i32) -> (i32, i32, i32) {
    %c0_i32 = arith.constant 0 : i32
    %c0_i32_0 = arith.constant 0 : i32
    return %arg0, %c0_i32, %arg1 : i32, i32, i32
  }
}

module attributes {stable_mosaic.version = 11 : i64} {
  func.func @_affine_act_kernel(%arg0: i32, %arg1: memref<1x72x128xbf16, #tpu.memory_space<vmem>>, %arg2: memref<1x128xf32, #tpu.memory_space<vmem>>, %arg3: memref<1x128xf32, #tpu.memory_space<vmem>>, %arg4: memref<1x72x128xbf16, #tpu.memory_space<vmem>>) attributes {dimension_semantics = [#tpu.dimension_semantics<parallel>], iteration_bounds = array<i64: 2>, scalar_prefetch = 0 : i64, scratch_operands = 0 : i64, tpu.core_type = #tpu.core_type<tc>, window_params = [{transform_indices = @transform_0, window_bounds = array<i64: 1, 72, 128>}, {pipeline_mode = #tpu.pipeline_mode<synchronous>, transform_indices = @transform_1, window_bounds = array<i64: 1, 128>}, {pipeline_mode = #tpu.pipeline_mode<synchronous>, transform_indices = @transform_2, window_bounds = array<i64: 1, 128>}, {transform_indices = @transform_3, window_bounds = array<i64: 1, 72, 128>}]} {
    %c0 = arith.constant 0 : index
    %c0_0 = arith.constant 0 : index
    %c0_1 = arith.constant 0 : index
    %0 = vector.load %arg1[%c0, %c0_0, %c0_1] : memref<1x72x128xbf16, #tpu.memory_space<vmem>>, vector<1x72x128xbf16>
    %1 = vector.shape_cast %0 : vector<1x72x128xbf16> to vector<72x128xbf16>
    %2 = arith.extf %1 : vector<72x128xbf16> to vector<72x128xf32>
    %c0_2 = arith.constant 0 : index
    %c0_3 = arith.constant 0 : index
    %3 = vector.load %arg2[%c0_2, %c0_3] : memref<1x128xf32, #tpu.memory_space<vmem>>, vector<1x128xf32>
    %4 = vector.broadcast %3 : vector<1x128xf32> to vector<72x128xf32>
    %5 = arith.mulf %2, %4 : vector<72x128xf32>
    %c0_4 = arith.constant 0 : index
    %c0_5 = arith.constant 0 : index
    %6 = vector.load %arg3[%c0_4, %c0_5] : memref<1x128xf32, #tpu.memory_space<vmem>>, vector<1x128xf32>
    %7 = vector.broadcast %6 : vector<1x128xf32> to vector<72x128xf32>
    %8 = arith.addf %5, %7 : vector<72x128xf32>
    %cst = arith.constant 0.000000e+00 : f32
    %9 = vector.broadcast %cst : f32 to vector<72x128xf32>
    %10 = arith.cmpf oge, %8, %9 : vector<72x128xf32>
    %cst_6 = arith.constant 2.000000e-01 : f32
    %11 = vector.broadcast %cst_6 : f32 to vector<72x128xf32>
    %12 = arith.mulf %11, %8 : vector<72x128xf32>
    %13 = arith.select %10, %8, %12 : vector<72x128xi1>, vector<72x128xf32>
    %14 = arith.truncf %13 : vector<72x128xf32> to vector<72x128xbf16>
    %c0_7 = arith.constant 0 : index
    %c0_8 = arith.constant 0 : index
    %c0_9 = arith.constant 0 : index
    %15 = vector.load %arg4[%c0_7, %c0_8, %c0_9] : memref<1x72x128xbf16, #tpu.memory_space<vmem>>, vector<1x72x128xbf16>
    %16 = vector.shape_cast %15 : vector<1x72x128xbf16> to vector<72x128xbf16>
    %17 = vector.shape_cast %14 : vector<72x128xbf16> to vector<1x72x128xbf16>
    tpu.vector_store %arg4[%c0_7, %c0_8, %c0_9], %17 {strides = array<i32>} : memref<1x72x128xbf16, #tpu.memory_space<vmem>>, vector<1x72x128xbf16>,
    return
  }
  func.func @transform_0(%arg0: i32) -> (i32, i32, i32) {
    %c0_i32 = arith.constant 0 : i32
    %c0_i32_0 = arith.constant 0 : i32
    %c0_i32_1 = arith.constant 0 : i32
    return %arg0, %c0_i32, %c0_i32_0 : i32, i32, i32
  }
  func.func @transform_1(%arg0: i32) -> (i32, i32) {
    %c0_i32 = arith.constant 0 : i32
    %c0_i32_0 = arith.constant 0 : i32
    %c0_i32_1 = arith.constant 0 : i32
    return %c0_i32, %c0_i32_0 : i32, i32
  }
  func.func @transform_2(%arg0: i32) -> (i32, i32) {
    %c0_i32 = arith.constant 0 : i32
    %c0_i32_0 = arith.constant 0 : i32
    %c0_i32_1 = arith.constant 0 : i32
    return %c0_i32, %c0_i32_0 : i32, i32
  }
  func.func @transform_3(%arg0: i32) -> (i32, i32, i32) {
    %c0_i32 = arith.constant 0 : i32
    %c0_i32_0 = arith.constant 0 : i32
    %c0_i32_1 = arith.constant 0 : i32
    return %arg0, %c0_i32, %c0_i32_0 : i32, i32, i32
  }
}

module attributes {stable_mosaic.version = 11 : i64} {
  func.func @_affine_act_kernel(%arg0: i32, %arg1: memref<1x20x128xbf16, #tpu.memory_space<vmem>>, %arg2: memref<1x128xf32, #tpu.memory_space<vmem>>, %arg3: memref<1x128xf32, #tpu.memory_space<vmem>>, %arg4: memref<1x20x128xbf16, #tpu.memory_space<vmem>>) attributes {dimension_semantics = [#tpu.dimension_semantics<parallel>], iteration_bounds = array<i64: 2>, scalar_prefetch = 0 : i64, scratch_operands = 0 : i64, tpu.core_type = #tpu.core_type<tc>, window_params = [{transform_indices = @transform_0, window_bounds = array<i64: 1, 20, 128>}, {pipeline_mode = #tpu.pipeline_mode<synchronous>, transform_indices = @transform_1, window_bounds = array<i64: 1, 128>}, {pipeline_mode = #tpu.pipeline_mode<synchronous>, transform_indices = @transform_2, window_bounds = array<i64: 1, 128>}, {transform_indices = @transform_3, window_bounds = array<i64: 1, 20, 128>}]} {
    %c0 = arith.constant 0 : index
    %c0_0 = arith.constant 0 : index
    %c0_1 = arith.constant 0 : index
    %0 = vector.load %arg1[%c0, %c0_0, %c0_1] : memref<1x20x128xbf16, #tpu.memory_space<vmem>>, vector<1x20x128xbf16>
    %1 = vector.shape_cast %0 : vector<1x20x128xbf16> to vector<20x128xbf16>
    %2 = arith.extf %1 : vector<20x128xbf16> to vector<20x128xf32>
    %c0_2 = arith.constant 0 : index
    %c0_3 = arith.constant 0 : index
    %3 = vector.load %arg2[%c0_2, %c0_3] : memref<1x128xf32, #tpu.memory_space<vmem>>, vector<1x128xf32>
    %4 = vector.broadcast %3 : vector<1x128xf32> to vector<20x128xf32>
    %5 = arith.mulf %2, %4 : vector<20x128xf32>
    %c0_4 = arith.constant 0 : index
    %c0_5 = arith.constant 0 : index
    %6 = vector.load %arg3[%c0_4, %c0_5] : memref<1x128xf32, #tpu.memory_space<vmem>>, vector<1x128xf32>
    %7 = vector.broadcast %6 : vector<1x128xf32> to vector<20x128xf32>
    %8 = arith.addf %5, %7 : vector<20x128xf32>
    %cst = arith.constant 0.000000e+00 : f32
    %9 = vector.broadcast %cst : f32 to vector<20x128xf32>
    %10 = arith.cmpf oge, %8, %9 : vector<20x128xf32>
    %cst_6 = arith.constant 2.000000e-01 : f32
    %11 = vector.broadcast %cst_6 : f32 to vector<20x128xf32>
    %12 = arith.mulf %11, %8 : vector<20x128xf32>
    %13 = arith.select %10, %8, %12 : vector<20x128xi1>, vector<20x128xf32>
    %14 = arith.truncf %13 : vector<20x128xf32> to vector<20x128xbf16>
    %c0_7 = arith.constant 0 : index
    %c0_8 = arith.constant 0 : index
    %c0_9 = arith.constant 0 : index
    %15 = vector.load %arg4[%c0_7, %c0_8, %c0_9] : memref<1x20x128xbf16, #tpu.memory_space<vmem>>, vector<1x20x128xbf16>
    %16 = vector.shape_cast %15 : vector<1x20x128xbf16> to vector<20x128xbf16>
    %17 = vector.shape_cast %14 : vector<20x128xbf16> to vector<1x20x128xbf16>
    tpu.vector_store %arg4[%c0_7, %c0_8, %c0_9], %17 {strides = array<i32>} : memref<1x20x128xbf16, #tpu.memory_space<vmem>>, vector<1x20x128xbf16>,
    return
  }
  func.func @transform_0(%arg0: i32) -> (i32, i32, i32) {
    %c0_i32 = arith.constant 0 : i32
    %c0_i32_0 = arith.constant 0 : i32
    %c0_i32_1 = arith.constant 0 : i32
    return %arg0, %c0_i32, %c0_i32_0 : i32, i32, i32
  }
  func.func @transform_1(%arg0: i32) -> (i32, i32) {
    %c0_i32 = arith.constant 0 : i32
    %c0_i32_0 = arith.constant 0 : i32
    %c0_i32_1 = arith.constant 0 : i32
    return %c0_i32, %c0_i32_0 : i32, i32
  }
  func.func @transform_2(%arg0: i32) -> (i32, i32) {
    %c0_i32 = arith.constant 0 : i32
    %c0_i32_0 = arith.constant 0 : i32
    %c0_i32_1 = arith.constant 0 : i32
    return %c0_i32, %c0_i32_0 : i32, i32
  }
  func.func @transform_3(%arg0: i32) -> (i32, i32, i32) {
    %c0_i32 = arith.constant 0 : i32
    %c0_i32_0 = arith.constant 0 : i32
    %c0_i32_1 = arith.constant 0 : i32
    return %arg0, %c0_i32, %c0_i32_0 : i32, i32, i32
  }
}

module attributes {stable_mosaic.version = 11 : i64} {
  func.func @kernel(%arg0: i32, %arg1: i32, %arg2: memref<1x4x26x128xbf16, #tpu.memory_space<vmem>>, %arg3: memref<16x128x128xbf16, #tpu.memory_space<vmem>>, %arg4: memref<20x1xf32, #tpu.memory_space<vmem>>, %arg5: memref<1x20x128xbf16, #tpu.memory_space<vmem>>, %arg6: memref<1x8x128xf32, #tpu.memory_space<vmem>>) attributes {dimension_semantics = [#tpu.dimension_semantics<parallel>, #tpu.dimension_semantics<parallel>], iteration_bounds = array<i64: 2, 1>, scalar_prefetch = 0 : i64, scratch_operands = 0 : i64, tpu.core_type = #tpu.core_type<tc>, window_params = [{transform_indices = @transform_0, window_bounds = array<i64: 1, 4, 26, 128>}, {pipeline_mode = #tpu.pipeline_mode<synchronous>, transform_indices = @transform_1, window_bounds = array<i64: 16, 128, 128>}, {pipeline_mode = #tpu.pipeline_mode<synchronous>, transform_indices = @transform_2, window_bounds = array<i64: 20, 1>}, {transform_indices = @transform_3, window_bounds = array<i64: 1, 20, 128>}, {transform_indices = @transform_4, window_bounds = array<i64: 1, 8, 128>}]} {
    %c0 = arith.constant 0 : index
    %c0_0 = arith.constant 0 : index
    %c0_1 = arith.constant 0 : index
    %c0_2 = arith.constant 0 : index
    %0 = vector.load %arg2[%c0, %c0_0, %c0_1, %c0_2] : memref<1x4x26x128xbf16, #tpu.memory_space<vmem>>, vector<1x1x20x128xbf16>
    %1 = vector.shape_cast %0 : vector<1x1x20x128xbf16> to vector<20x128xbf16>
    %c0_3 = arith.constant 0 : index
    %c0_4 = arith.constant 0 : index
    %c0_5 = arith.constant 0 : index
    %2 = vector.load %arg3[%c0_3, %c0_4, %c0_5] : memref<16x128x128xbf16, #tpu.memory_space<vmem>>, vector<1x128x128xbf16>
    %3 = vector.shape_cast %2 : vector<1x128x128xbf16> to vector<128x128xbf16>
    %cst = arith.constant dense<0.000000e+00> : vector<20x128xf32>
    %4 = tpu.matmul %1, %3, %cst {dimension_numbers = #tpu.dot_dimension_numbers<[1], [0], [0], [1], [0, 0, 1, 1], [], []>} : vector<20x128xbf16>, vector<128x128xbf16>, vector<20x128xf32> -> vector<20x128xf32>
    %c0_6 = arith.constant 0 : index
    %c1 = arith.constant 1 : index
    %c0_7 = arith.constant 0 : index
    %c0_8 = arith.constant 0 : index
    %5 = vector.load %arg2[%c0_6, %c1, %c0_7, %c0_8] : memref<1x4x26x128xbf16, #tpu.memory_space<vmem>>, vector<1x1x20x128xbf16>
    %6 = vector.shape_cast %5 : vector<1x1x20x128xbf16> to vector<20x128xbf16>
    %c1_9 = arith.constant 1 : index
    %c0_10 = arith.constant 0 : index
    %c0_11 = arith.constant 0 : index
    %7 = vector.load %arg3[%c1_9, %c0_10, %c0_11] : memref<16x128x128xbf16, #tpu.memory_space<vmem>>, vector<1x128x128xbf16>
    %8 = vector.shape_cast %7 : vector<1x128x128xbf16> to vector<128x128xbf16>
    %cst_12 = arith.constant dense<0.000000e+00> : vector<20x128xf32>
    %9 = tpu.matmul %6, %8, %cst_12 {dimension_numbers = #tpu.dot_dimension_numbers<[1], [0], [0], [1], [0, 0, 1, 1], [], []>} : vector<20x128xbf16>, vector<128x128xbf16>, vector<20x128xf32> -> vector<20x128xf32>
    %10 = arith.addf %4, %9 : vector<20x128xf32>
    %c0_13 = arith.constant 0 : index
    %c0_14 = arith.constant 0 : index
    %c1_15 = arith.constant 1 : index
    %c0_16 = arith.constant 0 : index
    %11 = vector.load %arg2[%c0_13, %c0_14, %c1_15, %c0_16] : memref<1x4x26x128xbf16, #tpu.memory_space<vmem>>, vector<1x1x20x128xbf16>
    %12 = vector.shape_cast %11 : vector<1x1x20x128xbf16> to vector<20x128xbf16>
    %c2 = arith.constant 2 : index
    %c0_17 = arith.constant 0 : index
    %c0_18 = arith.constant 0 : index
    %13 = vector.load %arg3[%c2, %c0_17, %c0_18] : memref<16x128x128xbf16, #tpu.memory_space<vmem>>, vector<1x128x128xbf16>
    %14 = vector.shape_cast %13 : vector<1x128x128xbf16> to vector<128x128xbf16>
    %cst_19 = arith.constant dense<0.000000e+00> : vector<20x128xf32>
    %15 = tpu.matmul %12, %14, %cst_19 {dimension_numbers = #tpu.dot_dimension_numbers<[1], [0], [0], [1], [0, 0, 1, 1], [], []>} : vector<20x128xbf16>, vector<128x128xbf16>, vector<20x128xf32> -> vector<20x128xf32>
    %16 = arith.addf %10, %15 : vector<20x128xf32>
    %c0_20 = arith.constant 0 : index
    %c1_21 = arith.constant 1 : index
    %c1_22 = arith.constant 1 : index
    %c0_23 = arith.constant 0 : index
    %17 = vector.load %arg2[%c0_20, %c1_21, %c1_22, %c0_23] : memref<1x4x26x128xbf16, #tpu.memory_space<vmem>>, vector<1x1x20x128xbf16>
    %18 = vector.shape_cast %17 : vector<1x1x20x128xbf16> to vector<20x128xbf16>
    %c3 = arith.constant 3 : index
    %c0_24 = arith.constant 0 : index
    %c0_25 = arith.constant 0 : index
    %19 = vector.load %arg3[%c3, %c0_24, %c0_25] : memref<16x128x128xbf16, #tpu.memory_space<vmem>>, vector<1x128x128xbf16>
    %20 = vector.shape_cast %19 : vector<1x128x128xbf16> to vector<128x128xbf16>
    %cst_26 = arith.constant dense<0.000000e+00> : vector<20x128xf32>
    %21 = tpu.matmul %18, %20, %cst_26 {dimension_numbers = #tpu.dot_dimension_numbers<[1], [0], [0], [1], [0, 0, 1, 1], [], []>} : vector<20x128xbf16>, vector<128x128xbf16>, vector<20x128xf32> -> vector<20x128xf32>
    %22 = arith.addf %16, %21 : vector<20x128xf32>
    %c0_27 = arith.constant 0 : index
    %c2_28 = arith.constant 2 : index
    %c0_29 = arith.constant 0 : index
    %c0_30 = arith.constant 0 : index
    %23 = vector.load %arg2[%c0_27, %c2_28, %c0_29, %c0_30] : memref<1x4x26x128xbf16, #tpu.memory_space<vmem>>, vector<1x1x20x128xbf16>
    %24 = vector.shape_cast %23 : vector<1x1x20x128xbf16> to vector<20x128xbf16>
    %c4 = arith.constant 4 : index
    %c0_31 = arith.constant 0 : index
    %c0_32 = arith.constant 0 : index
    %25 = vector.load %arg3[%c4, %c0_31, %c0_32] : memref<16x128x128xbf16, #tpu.memory_space<vmem>>, vector<1x128x128xbf16>
    %26 = vector.shape_cast %25 : vector<1x128x128xbf16> to vector<128x128xbf16>
    %cst_33 = arith.constant dense<0.000000e+00> : vector<20x128xf32>
    %27 = tpu.matmul %24, %26, %cst_33 {dimension_numbers = #tpu.dot_dimension_numbers<[1], [0], [0], [1], [0, 0, 1, 1], [], []>} : vector<20x128xbf16>, vector<128x128xbf16>, vector<20x128xf32> -> vector<20x128xf32>
    %28 = arith.addf %22, %27 : vector<20x128xf32>
    %c0_34 = arith.constant 0 : index
    %c3_35 = arith.constant 3 : index
    %c0_36 = arith.constant 0 : index
    %c0_37 = arith.constant 0 : index
    %29 = vector.load %arg2[%c0_34, %c3_35, %c0_36, %c0_37] : memref<1x4x26x128xbf16, #tpu.memory_space<vmem>>, vector<1x1x20x128xbf16>
    %30 = vector.shape_cast %29 : vector<1x1x20x128xbf16> to vector<20x128xbf16>
    %c5 = arith.constant 5 : index
    %c0_38 = arith.constant 0 : index
    %c0_39 = arith.constant 0 : index
    %31 = vector.load %arg3[%c5, %c0_38, %c0_39] : memref<16x128x128xbf16, #tpu.memory_space<vmem>>, vector<1x128x128xbf16>
    %32 = vector.shape_cast %31 : vector<1x128x128xbf16> to vector<128x128xbf16>
    %cst_40 = arith.constant dense<0.000000e+00> : vector<20x128xf32>
    %33 = tpu.matmul %30, %32, %cst_40 {dimension_numbers = #tpu.dot_dimension_numbers<[1], [0], [0], [1], [0, 0, 1, 1], [], []>} : vector<20x128xbf16>, vector<128x128xbf16>, vector<20x128xf32> -> vector<20x128xf32>
    %34 = arith.addf %28, %33 : vector<20x128xf32>
    %c0_41 = arith.constant 0 : index
    %c2_42 = arith.constant 2 : index
    %c1_43 = arith.constant 1 : index
    %c0_44 = arith.constant 0 : index
    %35 = vector.load %arg2[%c0_41, %c2_42, %c1_43, %c0_44] : memref<1x4x26x128xbf16, #tpu.memory_space<vmem>>, vector<1x1x20x128xbf16>
    %36 = vector.shape_cast %35 : vector<1x1x20x128xbf16> to vector<20x128xbf16>
    %c6 = arith.constant 6 : index
    %c0_45 = arith.constant 0 : index
    %c0_46 = arith.constant 0 : index
    %37 = vector.load %arg3[%c6, %c0_45, %c0_46] : memref<16x128x128xbf16, #tpu.memory_space<vmem>>, vector<1x128x128xbf16>
    %38 = vector.shape_cast %37 : vector<1x128x128xbf16> to vector<128x128xbf16>
    %cst_47 = arith.constant dense<0.000000e+00> : vector<20x128xf32>
    %39 = tpu.matmul %36, %38, %cst_47 {dimension_numbers = #tpu.dot_dimension_numbers<[1], [0], [0], [1], [0, 0, 1, 1], [], []>} : vector<20x128xbf16>, vector<128x128xbf16>, vector<20x128xf32> -> vector<20x128xf32>
    %40 = arith.addf %34, %39 : vector<20x128xf32>
    %c0_48 = arith.constant 0 : index
    %c3_49 = arith.constant 3 : index
    %c1_50 = arith.constant 1 : index
    %c0_51 = arith.constant 0 : index
    %41 = vector.load %arg2[%c0_48, %c3_49, %c1_50, %c0_51] : memref<1x4x26x128xbf16, #tpu.memory_space<vmem>>, vector<1x1x20x128xbf16>
    %42 = vector.shape_cast %41 : vector<1x1x20x128xbf16> to vector<20x128xbf16>
    %c7 = arith.constant 7 : index
    %c0_52 = arith.constant 0 : index
    %c0_53 = arith.constant 0 : index
    %43 = vector.load %arg3[%c7, %c0_52, %c0_53] : memref<16x128x128xbf16, #tpu.memory_space<vmem>>, vector<1x128x128xbf16>
    %44 = vector.shape_cast %43 : vector<1x128x128xbf16> to vector<128x128xbf16>
    %cst_54 = arith.constant dense<0.000000e+00> : vector<20x128xf32>
    %45 = tpu.matmul %42, %44, %cst_54 {dimension_numbers = #tpu.dot_dimension_numbers<[1], [0], [0], [1], [0, 0, 1, 1], [], []>} : vector<20x128xbf16>, vector<128x128xbf16>, vector<20x128xf32> -> vector<20x128xf32>
    %46 = arith.addf %40, %45 : vector<20x128xf32>
    %c0_55 = arith.constant 0 : index
    %c0_56 = arith.constant 0 : index
    %c5_57 = arith.constant 5 : index
    %c0_58 = arith.constant 0 : index
    %47 = vector.load %arg2[%c0_55, %c0_56, %c5_57, %c0_58] : memref<1x4x26x128xbf16, #tpu.memory_space<vmem>>, vector<1x1x20x128xbf16>
    %48 = vector.shape_cast %47 : vector<1x1x20x128xbf16> to vector<20x128xbf16>
    %c8 = arith.constant 8 : index
    %c0_59 = arith.constant 0 : index
    %c0_60 = arith.constant 0 : index
    %49 = vector.load %arg3[%c8, %c0_59, %c0_60] : memref<16x128x128xbf16, #tpu.memory_space<vmem>>, vector<1x128x128xbf16>
    %50 = vector.shape_cast %49 : vector<1x128x128xbf16> to vector<128x128xbf16>
    %cst_61 = arith.constant dense<0.000000e+00> : vector<20x128xf32>
    %51 = tpu.matmul %48, %50, %cst_61 {dimension_numbers = #tpu.dot_dimension_numbers<[1], [0], [0], [1], [0, 0, 1, 1], [], []>} : vector<20x128xbf16>, vector<128x128xbf16>, vector<20x128xf32> -> vector<20x128xf32>
    %52 = arith.addf %46, %51 : vector<20x128xf32>
    %c0_62 = arith.constant 0 : index
    %c1_63 = arith.constant 1 : index
    %c5_64 = arith.constant 5 : index
    %c0_65 = arith.constant 0 : index
    %53 = vector.load %arg2[%c0_62, %c1_63, %c5_64, %c0_65] : memref<1x4x26x128xbf16, #tpu.memory_space<vmem>>, vector<1x1x20x128xbf16>
    %54 = vector.shape_cast %53 : vector<1x1x20x128xbf16> to vector<20x128xbf16>
    %c9 = arith.constant 9 : index
    %c0_66 = arith.constant 0 : index
    %c0_67 = arith.constant 0 : index
    %55 = vector.load %arg3[%c9, %c0_66, %c0_67] : memref<16x128x128xbf16, #tpu.memory_space<vmem>>, vector<1x128x128xbf16>
    %56 = vector.shape_cast %55 : vector<1x128x128xbf16> to vector<128x128xbf16>
    %cst_68 = arith.constant dense<0.000000e+00> : vector<20x128xf32>
    %57 = tpu.matmul %54, %56, %cst_68 {dimension_numbers = #tpu.dot_dimension_numbers<[1], [0], [0], [1], [0, 0, 1, 1], [], []>} : vector<20x128xbf16>, vector<128x128xbf16>, vector<20x128xf32> -> vector<20x128xf32>
    %58 = arith.addf %52, %57 : vector<20x128xf32>
    %c0_69 = arith.constant 0 : index
    %c0_70 = arith.constant 0 : index
    %c6_71 = arith.constant 6 : index
    %c0_72 = arith.constant 0 : index
    %59 = vector.load %arg2[%c0_69, %c0_70, %c6_71, %c0_72] : memref<1x4x26x128xbf16, #tpu.memory_space<vmem>>, vector<1x1x20x128xbf16>
    %60 = vector.shape_cast %59 : vector<1x1x20x128xbf16> to vector<20x128xbf16>
    %c10 = arith.constant 10 : index
    %c0_73 = arith.constant 0 : index
    %c0_74 = arith.constant 0 : index
    %61 = vector.load %arg3[%c10, %c0_73, %c0_74] : memref<16x128x128xbf16, #tpu.memory_space<vmem>>, vector<1x128x128xbf16>
    %62 = vector.shape_cast %61 : vector<1x128x128xbf16> to vector<128x128xbf16>
    %cst_75 = arith.constant dense<0.000000e+00> : vector<20x128xf32>
    %63 = tpu.matmul %60, %62, %cst_75 {dimension_numbers = #tpu.dot_dimension_numbers<[1], [0], [0], [1], [0, 0, 1, 1], [], []>} : vector<20x128xbf16>, vector<128x128xbf16>, vector<20x128xf32> -> vector<20x128xf32>
    %64 = arith.addf %58, %63 : vector<20x128xf32>
    %c0_76 = arith.constant 0 : index
    %c1_77 = arith.constant 1 : index
    %c6_78 = arith.constant 6 : index
    %c0_79 = arith.constant 0 : index
    %65 = vector.load %arg2[%c0_76, %c1_77, %c6_78, %c0_79] : memref<1x4x26x128xbf16, #tpu.memory_space<vmem>>, vector<1x1x20x128xbf16>
    %66 = vector.shape_cast %65 : vector<1x1x20x128xbf16> to vector<20x128xbf16>
    %c11 = arith.constant 11 : index
    %c0_80 = arith.constant 0 : index
    %c0_81 = arith.constant 0 : index
    %67 = vector.load %arg3[%c11, %c0_80, %c0_81] : memref<16x128x128xbf16, #tpu.memory_space<vmem>>, vector<1x128x128xbf16>
    %68 = vector.shape_cast %67 : vector<1x128x128xbf16> to vector<128x128xbf16>
    %cst_82 = arith.constant dense<0.000000e+00> : vector<20x128xf32>
    %69 = tpu.matmul %66, %68, %cst_82 {dimension_numbers = #tpu.dot_dimension_numbers<[1], [0], [0], [1], [0, 0, 1, 1], [], []>} : vector<20x128xbf16>, vector<128x128xbf16>, vector<20x128xf32> -> vector<20x128xf32>
    %70 = arith.addf %64, %69 : vector<20x128xf32>
    %c0_83 = arith.constant 0 : index
    %c2_84 = arith.constant 2 : index
    %c5_85 = arith.constant 5 : index
    %c0_86 = arith.constant 0 : index
    %71 = vector.load %arg2[%c0_83, %c2_84, %c5_85, %c0_86] : memref<1x4x26x128xbf16, #tpu.memory_space<vmem>>, vector<1x1x20x128xbf16>
    %72 = vector.shape_cast %71 : vector<1x1x20x128xbf16> to vector<20x128xbf16>
    %c12 = arith.constant 12 : index
    %c0_87 = arith.constant 0 : index
    %c0_88 = arith.constant 0 : index
    %73 = vector.load %arg3[%c12, %c0_87, %c0_88] : memref<16x128x128xbf16, #tpu.memory_space<vmem>>, vector<1x128x128xbf16>
    %74 = vector.shape_cast %73 : vector<1x128x128xbf16> to vector<128x128xbf16>
    %cst_89 = arith.constant dense<0.000000e+00> : vector<20x128xf32>
    %75 = tpu.matmul %72, %74, %cst_89 {dimension_numbers = #tpu.dot_dimension_numbers<[1], [0], [0], [1], [0, 0, 1, 1], [], []>} : vector<20x128xbf16>, vector<128x128xbf16>, vector<20x128xf32> -> vector<20x128xf32>
    %76 = arith.addf %70, %75 : vector<20x128xf32>
    %c0_90 = arith.constant 0 : index
    %c3_91 = arith.constant 3 : index
    %c5_92 = arith.constant 5 : index
    %c0_93 = arith.constant 0 : index
    %77 = vector.load %arg2[%c0_90, %c3_91, %c5_92, %c0_93] : memref<1x4x26x128xbf16, #tpu.memory_space<vmem>>, vector<1x1x20x128xbf16>
    %78 = vector.shape_cast %77 : vector<1x1x20x128xbf16> to vector<20x128xbf16>
    %c13 = arith.constant 13 : index
    %c0_94 = arith.constant 0 : index
    %c0_95 = arith.constant 0 : index
    %79 = vector.load %arg3[%c13, %c0_94, %c0_95] : memref<16x128x128xbf16, #tpu.memory_space<vmem>>, vector<1x128x128xbf16>
    %80 = vector.shape_cast %79 : vector<1x128x128xbf16> to vector<128x128xbf16>
    %cst_96 = arith.constant dense<0.000000e+00> : vector<20x128xf32>
    %81 = tpu.matmul %78, %80, %cst_96 {dimension_numbers = #tpu.dot_dimension_numbers<[1], [0], [0], [1], [0, 0, 1, 1], [], []>} : vector<20x128xbf16>, vector<128x128xbf16>, vector<20x128xf32> -> vector<20x128xf32>
    %82 = arith.addf %76, %81 : vector<20x128xf32>
    %c0_97 = arith.constant 0 : index
    %c2_98 = arith.constant 2 : index
    %c6_99 = arith.constant 6 : index
    %c0_100 = arith.constant 0 : index
    %83 = vector.load %arg2[%c0_97, %c2_98, %c6_99, %c0_100] : memref<1x4x26x128xbf16, #tpu.memory_space<vmem>>, vector<1x1x20x128xbf16>
    %84 = vector.shape_cast %83 : vector<1x1x20x128xbf16> to vector<20x128xbf16>
    %c14 = arith.constant 14 : index
    %c0_101 = arith.constant 0 : index
    %c0_102 = arith.constant 0 : index
    %85 = vector.load %arg3[%c14, %c0_101, %c0_102] : memref<16x128x128xbf16, #tpu.memory_space<vmem>>, vector<1x128x128xbf16>
    %86 = vector.shape_cast %85 : vector<1x128x128xbf16> to vector<128x128xbf16>
    %cst_103 = arith.constant dense<0.000000e+00> : vector<20x128xf32>
    %87 = tpu.matmul %84, %86, %cst_103 {dimension_numbers = #tpu.dot_dimension_numbers<[1], [0], [0], [1], [0, 0, 1, 1], [], []>} : vector<20x128xbf16>, vector<128x128xbf16>, vector<20x128xf32> -> vector<20x128xf32>
    %88 = arith.addf %82, %87 : vector<20x128xf32>
    %c0_104 = arith.constant 0 : index
    %c3_105 = arith.constant 3 : index
    %c6_106 = arith.constant 6 : index
    %c0_107 = arith.constant 0 : index
    %89 = vector.load %arg2[%c0_104, %c3_105, %c6_106, %c0_107] : memref<1x4x26x128xbf16, #tpu.memory_space<vmem>>, vector<1x1x20x128xbf16>
    %90 = vector.shape_cast %89 : vector<1x1x20x128xbf16> to vector<20x128xbf16>
    %c15 = arith.constant 15 : index
    %c0_108 = arith.constant 0 : index
    %c0_109 = arith.constant 0 : index
    %91 = vector.load %arg3[%c15, %c0_108, %c0_109] : memref<16x128x128xbf16, #tpu.memory_space<vmem>>, vector<1x128x128xbf16>
    %92 = vector.shape_cast %91 : vector<1x128x128xbf16> to vector<128x128xbf16>
    %cst_110 = arith.constant dense<0.000000e+00> : vector<20x128xf32>
    %93 = tpu.matmul %90, %92, %cst_110 {dimension_numbers = #tpu.dot_dimension_numbers<[1], [0], [0], [1], [0, 0, 1, 1], [], []>} : vector<20x128xbf16>, vector<128x128xbf16>, vector<20x128xf32> -> vector<20x128xf32>
    %94 = arith.addf %88, %93 : vector<20x128xf32>
    %95 = arith.truncf %94 : vector<20x128xf32> to vector<20x128xbf16>
    %c0_111 = arith.constant 0 : index
    %c0_112 = arith.constant 0 : index
    %c0_113 = arith.constant 0 : index
    %96 = vector.load %arg5[%c0_111, %c0_112, %c0_113] : memref<1x20x128xbf16, #tpu.memory_space<vmem>>, vector<1x20x128xbf16>
    %97 = vector.shape_cast %96 : vector<1x20x128xbf16> to vector<20x128xbf16>
    %98 = vector.shape_cast %95 : vector<20x128xbf16> to vector<1x20x128xbf16>
    tpu.vector_store %arg5[%c0_111, %c0_112, %c0_113], %98 {strides = array<i32>} : memref<1x20x128xbf16, #tpu.memory_space<vmem>>, vector<1x20x128xbf16>,
    %c0_114 = arith.constant 0 : index
    %c0_115 = arith.constant 0 : index
    %99 = vector.load %arg4[%c0_114, %c0_115] : memref<20x1xf32, #tpu.memory_space<vmem>>, vector<20x1xf32>
    %cst_116 = arith.constant 0.000000e+00 : f32
    %100 = vector.broadcast %cst_116 : f32 to vector<20x1xf32>
    %101 = arith.cmpf one, %99, %100 : vector<20x1xf32>
    %cst_117 = arith.constant 0.000000e+00 : f32
    %102 = vector.shape_cast %101 : vector<20x1xi1> to vector<20x1xi1>
    %103 = vector.broadcast %102 : vector<20x1xi1> to vector<20x128xi1>
    %104 = vector.broadcast %cst_117 : f32 to vector<20x128xf32>
    %105 = arith.select %103, %94, %104 : vector<20x128xi1>, vector<20x128xf32>
    %cst_118 = arith.constant dense<0.000000e+00> : vector<128xf32>
    %106 = vector.multi_reduction <add>, %105, %cst_118 [0] : vector<20x128xf32> to vector<128xf32>
    %107 = vector.shape_cast %106 : vector<128xf32> to vector<1x128xf32>
    %c0_119 = arith.constant 0 : index
    %c0_120 = arith.constant 0 : index
    %c0_121 = arith.constant 0 : index
    %108 = vector.load %arg6[%c0_119, %c0_120, %c0_121] : memref<1x8x128xf32, #tpu.memory_space<vmem>>, vector<1x1x128xf32>
    %109 = vector.shape_cast %108 : vector<1x1x128xf32> to vector<1x128xf32>
    %110 = vector.shape_cast %107 : vector<1x128xf32> to vector<1x1x128xf32>
    tpu.vector_store %arg6[%c0_119, %c0_120, %c0_121], %110 {strides = array<i32>} : memref<1x8x128xf32, #tpu.memory_space<vmem>>, vector<1x1x128xf32>,
    %111 = arith.mulf %105, %105 : vector<20x128xf32>
    %cst_122 = arith.constant dense<0.000000e+00> : vector<128xf32>
    %112 = vector.multi_reduction <add>, %111, %cst_122 [0] : vector<20x128xf32> to vector<128xf32>
    %113 = vector.shape_cast %112 : vector<128xf32> to vector<1x128xf32>
    %c0_123 = arith.constant 0 : index
    %c1_124 = arith.constant 1 : index
    %c0_125 = arith.constant 0 : index
    %114 = vector.load %arg6[%c0_123, %c1_124, %c0_125] : memref<1x8x128xf32, #tpu.memory_space<vmem>>, vector<1x1x128xf32>
    %115 = vector.shape_cast %114 : vector<1x1x128xf32> to vector<1x128xf32>
    %116 = vector.shape_cast %113 : vector<1x128xf32> to vector<1x1x128xf32>
    tpu.vector_store %arg6[%c0_123, %c1_124, %c0_125], %116 {strides = array<i32>} : memref<1x8x128xf32, #tpu.memory_space<vmem>>, vector<1x1x128xf32>,
    return
  }
  func.func @transform_0(%arg0: i32, %arg1: i32) -> (i32, i32, i32, i32) {
    %c0_i32 = arith.constant 0 : i32
    %c0_i32_0 = arith.constant 0 : i32
    %c0_i32_1 = arith.constant 0 : i32
    %c0_i32_2 = arith.constant 0 : i32
    return %arg0, %c0_i32, %c0_i32_0, %c0_i32_1 : i32, i32, i32, i32
  }
  func.func @transform_1(%arg0: i32, %arg1: i32) -> (i32, i32, i32) {
    %c0_i32 = arith.constant 0 : i32
    %c0_i32_0 = arith.constant 0 : i32
    %c0_i32_1 = arith.constant 0 : i32
    return %c0_i32, %c0_i32_0, %arg1 : i32, i32, i32
  }
  func.func @transform_2(%arg0: i32, %arg1: i32) -> (i32, i32) {
    %c0_i32 = arith.constant 0 : i32
    %c0_i32_0 = arith.constant 0 : i32
    %c0_i32_1 = arith.constant 0 : i32
    return %c0_i32, %c0_i32_0 : i32, i32
  }
  func.func @transform_3(%arg0: i32, %arg1: i32) -> (i32, i32, i32) {
    %c0_i32 = arith.constant 0 : i32
    %c0_i32_0 = arith.constant 0 : i32
    return %arg0, %c0_i32, %arg1 : i32, i32, i32
  }
  func.func @transform_4(%arg0: i32, %arg1: i32) -> (i32, i32, i32) {
    %c0_i32 = arith.constant 0 : i32
    %c0_i32_0 = arith.constant 0 : i32
    return %arg0, %c0_i32, %arg1 : i32, i32, i32
  }
}

module attributes {stable_mosaic.version = 11 : i64} {
  func.func @kernel(%arg0: i32, %arg1: i32, %arg2: memref<1x1x39x128xbf16, #tpu.memory_space<vmem>>, %arg3: memref<16x128x128xbf16, #tpu.memory_space<vmem>>, %arg4: memref<18x1xf32, #tpu.memory_space<vmem>>, %arg5: memref<1x18x128xbf16, #tpu.memory_space<vmem>>, %arg6: memref<1x8x128xf32, #tpu.memory_space<vmem>>) attributes {dimension_semantics = [#tpu.dimension_semantics<parallel>, #tpu.dimension_semantics<parallel>], iteration_bounds = array<i64: 2, 1>, scalar_prefetch = 0 : i64, scratch_operands = 0 : i64, tpu.core_type = #tpu.core_type<tc>, window_params = [{transform_indices = @transform_0, window_bounds = array<i64: 1, 1, 39, 128>}, {pipeline_mode = #tpu.pipeline_mode<synchronous>, transform_indices = @transform_1, window_bounds = array<i64: 16, 128, 128>}, {pipeline_mode = #tpu.pipeline_mode<synchronous>, transform_indices = @transform_2, window_bounds = array<i64: 18, 1>}, {transform_indices = @transform_3, window_bounds = array<i64: 1, 18, 128>}, {transform_indices = @transform_4, window_bounds = array<i64: 1, 8, 128>}]} {
    %c0 = arith.constant 0 : index
    %c0_0 = arith.constant 0 : index
    %c0_1 = arith.constant 0 : index
    %c0_2 = arith.constant 0 : index
    %0 = vector.load %arg2[%c0, %c0_0, %c0_1, %c0_2] : memref<1x1x39x128xbf16, #tpu.memory_space<vmem>>, vector<1x1x18x128xbf16>
    %1 = vector.shape_cast %0 : vector<1x1x18x128xbf16> to vector<18x128xbf16>
    %c0_3 = arith.constant 0 : index
    %c0_4 = arith.constant 0 : index
    %c0_5 = arith.constant 0 : index
    %2 = vector.load %arg3[%c0_3, %c0_4, %c0_5] : memref<16x128x128xbf16, #tpu.memory_space<vmem>>, vector<1x128x128xbf16>
    %3 = vector.shape_cast %2 : vector<1x128x128xbf16> to vector<128x128xbf16>
    %cst = arith.constant dense<0.000000e+00> : vector<18x128xf32>
    %4 = tpu.matmul %1, %3, %cst {dimension_numbers = #tpu.dot_dimension_numbers<[1], [0], [0], [1], [0, 0, 1, 1], [], []>} : vector<18x128xbf16>, vector<128x128xbf16>, vector<18x128xf32> -> vector<18x128xf32>
    %c0_6 = arith.constant 0 : index
    %c0_7 = arith.constant 0 : index
    %c1 = arith.constant 1 : index
    %c0_8 = arith.constant 0 : index
    %5 = vector.load %arg2[%c0_6, %c0_7, %c1, %c0_8] : memref<1x1x39x128xbf16, #tpu.memory_space<vmem>>, vector<1x1x18x128xbf16>
    %6 = vector.shape_cast %5 : vector<1x1x18x128xbf16> to vector<18x128xbf16>
    %c1_9 = arith.constant 1 : index
    %c0_10 = arith.constant 0 : index
    %c0_11 = arith.constant 0 : index
    %7 = vector.load %arg3[%c1_9, %c0_10, %c0_11] : memref<16x128x128xbf16, #tpu.memory_space<vmem>>, vector<1x128x128xbf16>
    %8 = vector.shape_cast %7 : vector<1x128x128xbf16> to vector<128x128xbf16>
    %cst_12 = arith.constant dense<0.000000e+00> : vector<18x128xf32>
    %9 = tpu.matmul %6, %8, %cst_12 {dimension_numbers = #tpu.dot_dimension_numbers<[1], [0], [0], [1], [0, 0, 1, 1], [], []>} : vector<18x128xbf16>, vector<128x128xbf16>, vector<18x128xf32> -> vector<18x128xf32>
    %10 = arith.addf %4, %9 : vector<18x128xf32>
    %c0_13 = arith.constant 0 : index
    %c0_14 = arith.constant 0 : index
    %c2 = arith.constant 2 : index
    %c0_15 = arith.constant 0 : index
    %11 = vector.load %arg2[%c0_13, %c0_14, %c2, %c0_15] : memref<1x1x39x128xbf16, #tpu.memory_space<vmem>>, vector<1x1x18x128xbf16>
    %12 = vector.shape_cast %11 : vector<1x1x18x128xbf16> to vector<18x128xbf16>
    %c2_16 = arith.constant 2 : index
    %c0_17 = arith.constant 0 : index
    %c0_18 = arith.constant 0 : index
    %13 = vector.load %arg3[%c2_16, %c0_17, %c0_18] : memref<16x128x128xbf16, #tpu.memory_space<vmem>>, vector<1x128x128xbf16>
    %14 = vector.shape_cast %13 : vector<1x128x128xbf16> to vector<128x128xbf16>
    %cst_19 = arith.constant dense<0.000000e+00> : vector<18x128xf32>
    %15 = tpu.matmul %12, %14, %cst_19 {dimension_numbers = #tpu.dot_dimension_numbers<[1], [0], [0], [1], [0, 0, 1, 1], [], []>} : vector<18x128xbf16>, vector<128x128xbf16>, vector<18x128xf32> -> vector<18x128xf32>
    %16 = arith.addf %10, %15 : vector<18x128xf32>
    %c0_20 = arith.constant 0 : index
    %c0_21 = arith.constant 0 : index
    %c3 = arith.constant 3 : index
    %c0_22 = arith.constant 0 : index
    %17 = vector.load %arg2[%c0_20, %c0_21, %c3, %c0_22] : memref<1x1x39x128xbf16, #tpu.memory_space<vmem>>, vector<1x1x18x128xbf16>
    %18 = vector.shape_cast %17 : vector<1x1x18x128xbf16> to vector<18x128xbf16>
    %c3_23 = arith.constant 3 : index
    %c0_24 = arith.constant 0 : index
    %c0_25 = arith.constant 0 : index
    %19 = vector.load %arg3[%c3_23, %c0_24, %c0_25] : memref<16x128x128xbf16, #tpu.memory_space<vmem>>, vector<1x128x128xbf16>
    %20 = vector.shape_cast %19 : vector<1x128x128xbf16> to vector<128x128xbf16>
    %cst_26 = arith.constant dense<0.000000e+00> : vector<18x128xf32>
    %21 = tpu.matmul %18, %20, %cst_26 {dimension_numbers = #tpu.dot_dimension_numbers<[1], [0], [0], [1], [0, 0, 1, 1], [], []>} : vector<18x128xbf16>, vector<128x128xbf16>, vector<18x128xf32> -> vector<18x128xf32>
    %22 = arith.addf %16, %21 : vector<18x128xf32>
    %c0_27 = arith.constant 0 : index
    %c0_28 = arith.constant 0 : index
    %c6 = arith.constant 6 : index
    %c0_29 = arith.constant 0 : index
    %23 = vector.load %arg2[%c0_27, %c0_28, %c6, %c0_29] : memref<1x1x39x128xbf16, #tpu.memory_space<vmem>>, vector<1x1x18x128xbf16>
    %24 = vector.shape_cast %23 : vector<1x1x18x128xbf16> to vector<18x128xbf16>
    %c4 = arith.constant 4 : index
    %c0_30 = arith.constant 0 : index
    %c0_31 = arith.constant 0 : index
    %25 = vector.load %arg3[%c4, %c0_30, %c0_31] : memref<16x128x128xbf16, #tpu.memory_space<vmem>>, vector<1x128x128xbf16>
    %26 = vector.shape_cast %25 : vector<1x128x128xbf16> to vector<128x128xbf16>
    %cst_32 = arith.constant dense<0.000000e+00> : vector<18x128xf32>
    %27 = tpu.matmul %24, %26, %cst_32 {dimension_numbers = #tpu.dot_dimension_numbers<[1], [0], [0], [1], [0, 0, 1, 1], [], []>} : vector<18x128xbf16>, vector<128x128xbf16>, vector<18x128xf32> -> vector<18x128xf32>
    %28 = arith.addf %22, %27 : vector<18x128xf32>
    %c0_33 = arith.constant 0 : index
    %c0_34 = arith.constant 0 : index
    %c7 = arith.constant 7 : index
    %c0_35 = arith.constant 0 : index
    %29 = vector.load %arg2[%c0_33, %c0_34, %c7, %c0_35] : memref<1x1x39x128xbf16, #tpu.memory_space<vmem>>, vector<1x1x18x128xbf16>
    %30 = vector.shape_cast %29 : vector<1x1x18x128xbf16> to vector<18x128xbf16>
    %c5 = arith.constant 5 : index
    %c0_36 = arith.constant 0 : index
    %c0_37 = arith.constant 0 : index
    %31 = vector.load %arg3[%c5, %c0_36, %c0_37] : memref<16x128x128xbf16, #tpu.memory_space<vmem>>, vector<1x128x128xbf16>
    %32 = vector.shape_cast %31 : vector<1x128x128xbf16> to vector<128x128xbf16>
    %cst_38 = arith.constant dense<0.000000e+00> : vector<18x128xf32>
    %33 = tpu.matmul %30, %32, %cst_38 {dimension_numbers = #tpu.dot_dimension_numbers<[1], [0], [0], [1], [0, 0, 1, 1], [], []>} : vector<18x128xbf16>, vector<128x128xbf16>, vector<18x128xf32> -> vector<18x128xf32>
    %34 = arith.addf %28, %33 : vector<18x128xf32>
    %c0_39 = arith.constant 0 : index
    %c0_40 = arith.constant 0 : index
    %c8 = arith.constant 8 : index
    %c0_41 = arith.constant 0 : index
    %35 = vector.load %arg2[%c0_39, %c0_40, %c8, %c0_41] : memref<1x1x39x128xbf16, #tpu.memory_space<vmem>>, vector<1x1x18x128xbf16>
    %36 = vector.shape_cast %35 : vector<1x1x18x128xbf16> to vector<18x128xbf16>
    %c6_42 = arith.constant 6 : index
    %c0_43 = arith.constant 0 : index
    %c0_44 = arith.constant 0 : index
    %37 = vector.load %arg3[%c6_42, %c0_43, %c0_44] : memref<16x128x128xbf16, #tpu.memory_space<vmem>>, vector<1x128x128xbf16>
    %38 = vector.shape_cast %37 : vector<1x128x128xbf16> to vector<128x128xbf16>
    %cst_45 = arith.constant dense<0.000000e+00> : vector<18x128xf32>
    %39 = tpu.matmul %36, %38, %cst_45 {dimension_numbers = #tpu.dot_dimension_numbers<[1], [0], [0], [1], [0, 0, 1, 1], [], []>} : vector<18x128xbf16>, vector<128x128xbf16>, vector<18x128xf32> -> vector<18x128xf32>
    %40 = arith.addf %34, %39 : vector<18x128xf32>
    %c0_46 = arith.constant 0 : index
    %c0_47 = arith.constant 0 : index
    %c9 = arith.constant 9 : index
    %c0_48 = arith.constant 0 : index
    %41 = vector.load %arg2[%c0_46, %c0_47, %c9, %c0_48] : memref<1x1x39x128xbf16, #tpu.memory_space<vmem>>, vector<1x1x18x128xbf16>
    %42 = vector.shape_cast %41 : vector<1x1x18x128xbf16> to vector<18x128xbf16>
    %c7_49 = arith.constant 7 : index
    %c0_50 = arith.constant 0 : index
    %c0_51 = arith.constant 0 : index
    %43 = vector.load %arg3[%c7_49, %c0_50, %c0_51] : memref<16x128x128xbf16, #tpu.memory_space<vmem>>, vector<1x128x128xbf16>
    %44 = vector.shape_cast %43 : vector<1x128x128xbf16> to vector<128x128xbf16>
    %cst_52 = arith.constant dense<0.000000e+00> : vector<18x128xf32>
    %45 = tpu.matmul %42, %44, %cst_52 {dimension_numbers = #tpu.dot_dimension_numbers<[1], [0], [0], [1], [0, 0, 1, 1], [], []>} : vector<18x128xbf16>, vector<128x128xbf16>, vector<18x128xf32> -> vector<18x128xf32>
    %46 = arith.addf %40, %45 : vector<18x128xf32>
    %c0_53 = arith.constant 0 : index
    %c0_54 = arith.constant 0 : index
    %c12 = arith.constant 12 : index
    %c0_55 = arith.constant 0 : index
    %47 = vector.load %arg2[%c0_53, %c0_54, %c12, %c0_55] : memref<1x1x39x128xbf16, #tpu.memory_space<vmem>>, vector<1x1x18x128xbf16>
    %48 = vector.shape_cast %47 : vector<1x1x18x128xbf16> to vector<18x128xbf16>
    %c8_56 = arith.constant 8 : index
    %c0_57 = arith.constant 0 : index
    %c0_58 = arith.constant 0 : index
    %49 = vector.load %arg3[%c8_56, %c0_57, %c0_58] : memref<16x128x128xbf16, #tpu.memory_space<vmem>>, vector<1x128x128xbf16>
    %50 = vector.shape_cast %49 : vector<1x128x128xbf16> to vector<128x128xbf16>
    %cst_59 = arith.constant dense<0.000000e+00> : vector<18x128xf32>
    %51 = tpu.matmul %48, %50, %cst_59 {dimension_numbers = #tpu.dot_dimension_numbers<[1], [0], [0], [1], [0, 0, 1, 1], [], []>} : vector<18x128xbf16>, vector<128x128xbf16>, vector<18x128xf32> -> vector<18x128xf32>
    %52 = arith.addf %46, %51 : vector<18x128xf32>
    %c0_60 = arith.constant 0 : index
    %c0_61 = arith.constant 0 : index
    %c13 = arith.constant 13 : index
    %c0_62 = arith.constant 0 : index
    %53 = vector.load %arg2[%c0_60, %c0_61, %c13, %c0_62] : memref<1x1x39x128xbf16, #tpu.memory_space<vmem>>, vector<1x1x18x128xbf16>
    %54 = vector.shape_cast %53 : vector<1x1x18x128xbf16> to vector<18x128xbf16>
    %c9_63 = arith.constant 9 : index
    %c0_64 = arith.constant 0 : index
    %c0_65 = arith.constant 0 : index
    %55 = vector.load %arg3[%c9_63, %c0_64, %c0_65] : memref<16x128x128xbf16, #tpu.memory_space<vmem>>, vector<1x128x128xbf16>
    %56 = vector.shape_cast %55 : vector<1x128x128xbf16> to vector<128x128xbf16>
    %cst_66 = arith.constant dense<0.000000e+00> : vector<18x128xf32>
    %57 = tpu.matmul %54, %56, %cst_66 {dimension_numbers = #tpu.dot_dimension_numbers<[1], [0], [0], [1], [0, 0, 1, 1], [], []>} : vector<18x128xbf16>, vector<128x128xbf16>, vector<18x128xf32> -> vector<18x128xf32>
    %58 = arith.addf %52, %57 : vector<18x128xf32>
    %c0_67 = arith.constant 0 : index
    %c0_68 = arith.constant 0 : index
    %c14 = arith.constant 14 : index
    %c0_69 = arith.constant 0 : index
    %59 = vector.load %arg2[%c0_67, %c0_68, %c14, %c0_69] : memref<1x1x39x128xbf16, #tpu.memory_space<vmem>>, vector<1x1x18x128xbf16>
    %60 = vector.shape_cast %59 : vector<1x1x18x128xbf16> to vector<18x128xbf16>
    %c10 = arith.constant 10 : index
    %c0_70 = arith.constant 0 : index
    %c0_71 = arith.constant 0 : index
    %61 = vector.load %arg3[%c10, %c0_70, %c0_71] : memref<16x128x128xbf16, #tpu.memory_space<vmem>>, vector<1x128x128xbf16>
    %62 = vector.shape_cast %61 : vector<1x128x128xbf16> to vector<128x128xbf16>
    %cst_72 = arith.constant dense<0.000000e+00> : vector<18x128xf32>
    %63 = tpu.matmul %60, %62, %cst_72 {dimension_numbers = #tpu.dot_dimension_numbers<[1], [0], [0], [1], [0, 0, 1, 1], [], []>} : vector<18x128xbf16>, vector<128x128xbf16>, vector<18x128xf32> -> vector<18x128xf32>
    %64 = arith.addf %58, %63 : vector<18x128xf32>
    %c0_73 = arith.constant 0 : index
    %c0_74 = arith.constant 0 : index
    %c15 = arith.constant 15 : index
    %c0_75 = arith.constant 0 : index
    %65 = vector.load %arg2[%c0_73, %c0_74, %c15, %c0_75] : memref<1x1x39x128xbf16, #tpu.memory_space<vmem>>, vector<1x1x18x128xbf16>
    %66 = vector.shape_cast %65 : vector<1x1x18x128xbf16> to vector<18x128xbf16>
    %c11 = arith.constant 11 : index
    %c0_76 = arith.constant 0 : index
    %c0_77 = arith.constant 0 : index
    %67 = vector.load %arg3[%c11, %c0_76, %c0_77] : memref<16x128x128xbf16, #tpu.memory_space<vmem>>, vector<1x128x128xbf16>
    %68 = vector.shape_cast %67 : vector<1x128x128xbf16> to vector<128x128xbf16>
    %cst_78 = arith.constant dense<0.000000e+00> : vector<18x128xf32>
    %69 = tpu.matmul %66, %68, %cst_78 {dimension_numbers = #tpu.dot_dimension_numbers<[1], [0], [0], [1], [0, 0, 1, 1], [], []>} : vector<18x128xbf16>, vector<128x128xbf16>, vector<18x128xf32> -> vector<18x128xf32>
    %70 = arith.addf %64, %69 : vector<18x128xf32>
    %c0_79 = arith.constant 0 : index
    %c0_80 = arith.constant 0 : index
    %c18 = arith.constant 18 : index
    %c0_81 = arith.constant 0 : index
    %71 = vector.load %arg2[%c0_79, %c0_80, %c18, %c0_81] : memref<1x1x39x128xbf16, #tpu.memory_space<vmem>>, vector<1x1x18x128xbf16>
    %72 = vector.shape_cast %71 : vector<1x1x18x128xbf16> to vector<18x128xbf16>
    %c12_82 = arith.constant 12 : index
    %c0_83 = arith.constant 0 : index
    %c0_84 = arith.constant 0 : index
    %73 = vector.load %arg3[%c12_82, %c0_83, %c0_84] : memref<16x128x128xbf16, #tpu.memory_space<vmem>>, vector<1x128x128xbf16>
    %74 = vector.shape_cast %73 : vector<1x128x128xbf16> to vector<128x128xbf16>
    %cst_85 = arith.constant dense<0.000000e+00> : vector<18x128xf32>
    %75 = tpu.matmul %72, %74, %cst_85 {dimension_numbers = #tpu.dot_dimension_numbers<[1], [0], [0], [1], [0, 0, 1, 1], [], []>} : vector<18x128xbf16>, vector<128x128xbf16>, vector<18x128xf32> -> vector<18x128xf32>
    %76 = arith.addf %70, %75 : vector<18x128xf32>
    %c0_86 = arith.constant 0 : index
    %c0_87 = arith.constant 0 : index
    %c19 = arith.constant 19 : index
    %c0_88 = arith.constant 0 : index
    %77 = vector.load %arg2[%c0_86, %c0_87, %c19, %c0_88] : memref<1x1x39x128xbf16, #tpu.memory_space<vmem>>, vector<1x1x18x128xbf16>
    %78 = vector.shape_cast %77 : vector<1x1x18x128xbf16> to vector<18x128xbf16>
    %c13_89 = arith.constant 13 : index
    %c0_90 = arith.constant 0 : index
    %c0_91 = arith.constant 0 : index
    %79 = vector.load %arg3[%c13_89, %c0_90, %c0_91] : memref<16x128x128xbf16, #tpu.memory_space<vmem>>, vector<1x128x128xbf16>
    %80 = vector.shape_cast %79 : vector<1x128x128xbf16> to vector<128x128xbf16>
    %cst_92 = arith.constant dense<0.000000e+00> : vector<18x128xf32>
    %81 = tpu.matmul %78, %80, %cst_92 {dimension_numbers = #tpu.dot_dimension_numbers<[1], [0], [0], [1], [0, 0, 1, 1], [], []>} : vector<18x128xbf16>, vector<128x128xbf16>, vector<18x128xf32> -> vector<18x128xf32>
    %82 = arith.addf %76, %81 : vector<18x128xf32>
    %c0_93 = arith.constant 0 : index
    %c0_94 = arith.constant 0 : index
    %c20 = arith.constant 20 : index
    %c0_95 = arith.constant 0 : index
    %83 = vector.load %arg2[%c0_93, %c0_94, %c20, %c0_95] : memref<1x1x39x128xbf16, #tpu.memory_space<vmem>>, vector<1x1x18x128xbf16>
    %84 = vector.shape_cast %83 : vector<1x1x18x128xbf16> to vector<18x128xbf16>
    %c14_96 = arith.constant 14 : index
    %c0_97 = arith.constant 0 : index
    %c0_98 = arith.constant 0 : index
    %85 = vector.load %arg3[%c14_96, %c0_97, %c0_98] : memref<16x128x128xbf16, #tpu.memory_space<vmem>>, vector<1x128x128xbf16>
    %86 = vector.shape_cast %85 : vector<1x128x128xbf16> to vector<128x128xbf16>
    %cst_99 = arith.constant dense<0.000000e+00> : vector<18x128xf32>
    %87 = tpu.matmul %84, %86, %cst_99 {dimension_numbers = #tpu.dot_dimension_numbers<[1], [0], [0], [1], [0, 0, 1, 1], [], []>} : vector<18x128xbf16>, vector<128x128xbf16>, vector<18x128xf32> -> vector<18x128xf32>
    %88 = arith.addf %82, %87 : vector<18x128xf32>
    %c0_100 = arith.constant 0 : index
    %c0_101 = arith.constant 0 : index
    %c21 = arith.constant 21 : index
    %c0_102 = arith.constant 0 : index
    %89 = vector.load %arg2[%c0_100, %c0_101, %c21, %c0_102] : memref<1x1x39x128xbf16, #tpu.memory_space<vmem>>, vector<1x1x18x128xbf16>
    %90 = vector.shape_cast %89 : vector<1x1x18x128xbf16> to vector<18x128xbf16>
    %c15_103 = arith.constant 15 : index
    %c0_104 = arith.constant 0 : index
    %c0_105 = arith.constant 0 : index
    %91 = vector.load %arg3[%c15_103, %c0_104, %c0_105] : memref<16x128x128xbf16, #tpu.memory_space<vmem>>, vector<1x128x128xbf16>
    %92 = vector.shape_cast %91 : vector<1x128x128xbf16> to vector<128x128xbf16>
    %cst_106 = arith.constant dense<0.000000e+00> : vector<18x128xf32>
    %93 = tpu.matmul %90, %92, %cst_106 {dimension_numbers = #tpu.dot_dimension_numbers<[1], [0], [0], [1], [0, 0, 1, 1], [], []>} : vector<18x128xbf16>, vector<128x128xbf16>, vector<18x128xf32> -> vector<18x128xf32>
    %94 = arith.addf %88, %93 : vector<18x128xf32>
    %95 = arith.truncf %94 : vector<18x128xf32> to vector<18x128xbf16>
    %c0_107 = arith.constant 0 : index
    %c0_108 = arith.constant 0 : index
    %c0_109 = arith.constant 0 : index
    %96 = vector.load %arg5[%c0_107, %c0_108, %c0_109] : memref<1x18x128xbf16, #tpu.memory_space<vmem>>, vector<1x18x128xbf16>
    %97 = vector.shape_cast %96 : vector<1x18x128xbf16> to vector<18x128xbf16>
    %98 = vector.shape_cast %95 : vector<18x128xbf16> to vector<1x18x128xbf16>
    tpu.vector_store %arg5[%c0_107, %c0_108, %c0_109], %98 {strides = array<i32>} : memref<1x18x128xbf16, #tpu.memory_space<vmem>>, vector<1x18x128xbf16>,
    %c0_110 = arith.constant 0 : index
    %c0_111 = arith.constant 0 : index
    %99 = vector.load %arg4[%c0_110, %c0_111] : memref<18x1xf32, #tpu.memory_space<vmem>>, vector<18x1xf32>
    %cst_112 = arith.constant 0.000000e+00 : f32
    %100 = vector.broadcast %cst_112 : f32 to vector<18x1xf32>
    %101 = arith.cmpf one, %99, %100 : vector<18x1xf32>
    %cst_113 = arith.constant 0.000000e+00 : f32
    %102 = vector.shape_cast %101 : vector<18x1xi1> to vector<18x1xi1>
    %103 = vector.broadcast %102 : vector<18x1xi1> to vector<18x128xi1>
    %104 = vector.broadcast %cst_113 : f32 to vector<18x128xf32>
    %105 = arith.select %103, %94, %104 : vector<18x128xi1>, vector<18x128xf32>
    %cst_114 = arith.constant dense<0.000000e+00> : vector<128xf32>
    %106 = vector.multi_reduction <add>, %105, %cst_114 [0] : vector<18x128xf32> to vector<128xf32>
    %107 = vector.shape_cast %106 : vector<128xf32> to vector<1x128xf32>
    %c0_115 = arith.constant 0 : index
    %c0_116 = arith.constant 0 : index
    %c0_117 = arith.constant 0 : index
    %108 = vector.load %arg6[%c0_115, %c0_116, %c0_117] : memref<1x8x128xf32, #tpu.memory_space<vmem>>, vector<1x1x128xf32>
    %109 = vector.shape_cast %108 : vector<1x1x128xf32> to vector<1x128xf32>
    %110 = vector.shape_cast %107 : vector<1x128xf32> to vector<1x1x128xf32>
    tpu.vector_store %arg6[%c0_115, %c0_116, %c0_117], %110 {strides = array<i32>} : memref<1x8x128xf32, #tpu.memory_space<vmem>>, vector<1x1x128xf32>,
    %111 = arith.mulf %105, %105 : vector<18x128xf32>
    %cst_118 = arith.constant dense<0.000000e+00> : vector<128xf32>
    %112 = vector.multi_reduction <add>, %111, %cst_118 [0] : vector<18x128xf32> to vector<128xf32>
    %113 = vector.shape_cast %112 : vector<128xf32> to vector<1x128xf32>
    %c0_119 = arith.constant 0 : index
    %c1_120 = arith.constant 1 : index
    %c0_121 = arith.constant 0 : index
    %114 = vector.load %arg6[%c0_119, %c1_120, %c0_121] : memref<1x8x128xf32, #tpu.memory_space<vmem>>, vector<1x1x128xf32>
    %115 = vector.shape_cast %114 : vector<1x1x128xf32> to vector<1x128xf32>
    %116 = vector.shape_cast %113 : vector<1x128xf32> to vector<1x1x128xf32>
    tpu.vector_store %arg6[%c0_119, %c1_120, %c0_121], %116 {strides = array<i32>} : memref<1x8x128xf32, #tpu.memory_space<vmem>>, vector<1x1x128xf32>,
    return
  }
  func.func @transform_0(%arg0: i32, %arg1: i32) -> (i32, i32, i32, i32) {
    %c0_i32 = arith.constant 0 : i32
    %c0_i32_0 = arith.constant 0 : i32
    %c0_i32_1 = arith.constant 0 : i32
    %c0_i32_2 = arith.constant 0 : i32
    return %arg0, %c0_i32, %c0_i32_0, %c0_i32_1 : i32, i32, i32, i32
  }
  func.func @transform_1(%arg0: i32, %arg1: i32) -> (i32, i32, i32) {
    %c0_i32 = arith.constant 0 : i32
    %c0_i32_0 = arith.constant 0 : i32
    %c0_i32_1 = arith.constant 0 : i32
    return %c0_i32, %c0_i32_0, %arg1 : i32, i32, i32
  }
  func.func @transform_2(%arg0: i32, %arg1: i32) -> (i32, i32) {
    %c0_i32 = arith.constant 0 : i32
    %c0_i32_0 = arith.constant 0 : i32
    %c0_i32_1 = arith.constant 0 : i32
    return %c0_i32, %c0_i32_0 : i32, i32
  }
  func.func @transform_3(%arg0: i32, %arg1: i32) -> (i32, i32, i32) {
    %c0_i32 = arith.constant 0 : i32
    %c0_i32_0 = arith.constant 0 : i32
    return %arg0, %c0_i32, %arg1 : i32, i32, i32
  }
  func.func @transform_4(%arg0: i32, %arg1: i32) -> (i32, i32, i32) {
    %c0_i32 = arith.constant 0 : i32
    %c0_i32_0 = arith.constant 0 : i32
    return %arg0, %c0_i32, %arg1 : i32, i32, i32
  }
}

module attributes {stable_mosaic.version = 11 : i64} {
  func.func @_affine_act_kernel(%arg0: i32, %arg1: memref<1x18x128xbf16, #tpu.memory_space<vmem>>, %arg2: memref<1x128xf32, #tpu.memory_space<vmem>>, %arg3: memref<1x128xf32, #tpu.memory_space<vmem>>, %arg4: memref<1x18x128xbf16, #tpu.memory_space<vmem>>) attributes {dimension_semantics = [#tpu.dimension_semantics<parallel>], iteration_bounds = array<i64: 2>, scalar_prefetch = 0 : i64, scratch_operands = 0 : i64, tpu.core_type = #tpu.core_type<tc>, window_params = [{transform_indices = @transform_0, window_bounds = array<i64: 1, 18, 128>}, {pipeline_mode = #tpu.pipeline_mode<synchronous>, transform_indices = @transform_1, window_bounds = array<i64: 1, 128>}, {pipeline_mode = #tpu.pipeline_mode<synchronous>, transform_indices = @transform_2, window_bounds = array<i64: 1, 128>}, {transform_indices = @transform_3, window_bounds = array<i64: 1, 18, 128>}]} {
    %c0 = arith.constant 0 : index
    %c0_0 = arith.constant 0 : index
    %c0_1 = arith.constant 0 : index
    %0 = vector.load %arg1[%c0, %c0_0, %c0_1] : memref<1x18x128xbf16, #tpu.memory_space<vmem>>, vector<1x18x128xbf16>
    %1 = vector.shape_cast %0 : vector<1x18x128xbf16> to vector<18x128xbf16>
    %2 = arith.extf %1 : vector<18x128xbf16> to vector<18x128xf32>
    %c0_2 = arith.constant 0 : index
    %c0_3 = arith.constant 0 : index
    %3 = vector.load %arg2[%c0_2, %c0_3] : memref<1x128xf32, #tpu.memory_space<vmem>>, vector<1x128xf32>
    %4 = vector.broadcast %3 : vector<1x128xf32> to vector<18x128xf32>
    %5 = arith.mulf %2, %4 : vector<18x128xf32>
    %c0_4 = arith.constant 0 : index
    %c0_5 = arith.constant 0 : index
    %6 = vector.load %arg3[%c0_4, %c0_5] : memref<1x128xf32, #tpu.memory_space<vmem>>, vector<1x128xf32>
    %7 = vector.broadcast %6 : vector<1x128xf32> to vector<18x128xf32>
    %8 = arith.addf %5, %7 : vector<18x128xf32>
    %cst = arith.constant 0.000000e+00 : f32
    %9 = vector.broadcast %cst : f32 to vector<18x128xf32>
    %10 = arith.cmpf oge, %8, %9 : vector<18x128xf32>
    %cst_6 = arith.constant 2.000000e-01 : f32
    %11 = vector.broadcast %cst_6 : f32 to vector<18x128xf32>
    %12 = arith.mulf %11, %8 : vector<18x128xf32>
    %13 = arith.select %10, %8, %12 : vector<18x128xi1>, vector<18x128xf32>
    %14 = arith.truncf %13 : vector<18x128xf32> to vector<18x128xbf16>
    %c0_7 = arith.constant 0 : index
    %c0_8 = arith.constant 0 : index
    %c0_9 = arith.constant 0 : index
    %15 = vector.load %arg4[%c0_7, %c0_8, %c0_9] : memref<1x18x128xbf16, #tpu.memory_space<vmem>>, vector<1x18x128xbf16>
    %16 = vector.shape_cast %15 : vector<1x18x128xbf16> to vector<18x128xbf16>
    %17 = vector.shape_cast %14 : vector<18x128xbf16> to vector<1x18x128xbf16>
    tpu.vector_store %arg4[%c0_7, %c0_8, %c0_9], %17 {strides = array<i32>} : memref<1x18x128xbf16, #tpu.memory_space<vmem>>, vector<1x18x128xbf16>,
    return
  }
  func.func @transform_0(%arg0: i32) -> (i32, i32, i32) {
    %c0_i32 = arith.constant 0 : i32
    %c0_i32_0 = arith.constant 0 : i32
    %c0_i32_1 = arith.constant 0 : i32
    return %arg0, %c0_i32, %c0_i32_0 : i32, i32, i32
  }
  func.func @transform_1(%arg0: i32) -> (i32, i32) {
    %c0_i32 = arith.constant 0 : i32
    %c0_i32_0 = arith.constant 0 : i32
    %c0_i32_1 = arith.constant 0 : i32
    return %c0_i32, %c0_i32_0 : i32, i32
  }
  func.func @transform_2(%arg0: i32) -> (i32, i32) {
    %c0_i32 = arith.constant 0 : i32
    %c0_i32_0 = arith.constant 0 : i32
    %c0_i32_1 = arith.constant 0 : i32
    return %c0_i32, %c0_i32_0 : i32, i32
  }
  func.func @transform_3(%arg0: i32) -> (i32, i32, i32) {
    %c0_i32 = arith.constant 0 : i32
    %c0_i32_0 = arith.constant 0 : i32
    %c0_i32_1 = arith.constant 0 : i32
    return %arg0, %c0_i32, %c0_i32_0 : i32, i32, i32
  }
}

module attributes {stable_mosaic.version = 11 : i64} {
  func.func @kernel(%arg0: i32, %arg1: i32, %arg2: memref<1x1x28x128xbf16, #tpu.memory_space<vmem>>, %arg3: memref<16x128x128xbf16, #tpu.memory_space<vmem>>, %arg4: memref<1x128xf32, #tpu.memory_space<vmem>>, %arg5: memref<1x10x128xf32, #tpu.memory_space<vmem>>) attributes {dimension_semantics = [#tpu.dimension_semantics<parallel>, #tpu.dimension_semantics<parallel>], iteration_bounds = array<i64: 2, 1>, scalar_prefetch = 0 : i64, scratch_operands = 0 : i64, tpu.core_type = #tpu.core_type<tc>, window_params = [{transform_indices = @transform_0, window_bounds = array<i64: 1, 1, 28, 128>}, {pipeline_mode = #tpu.pipeline_mode<synchronous>, transform_indices = @transform_1, window_bounds = array<i64: 16, 128, 128>}, {pipeline_mode = #tpu.pipeline_mode<synchronous>, transform_indices = @transform_2, window_bounds = array<i64: 1, 128>}, {transform_indices = @transform_3, window_bounds = array<i64: 1, 10, 128>}]} {
    %c0 = arith.constant 0 : index
    %c0_0 = arith.constant 0 : index
    %c0_1 = arith.constant 0 : index
    %c0_2 = arith.constant 0 : index
    %0 = vector.load %arg2[%c0, %c0_0, %c0_1, %c0_2] : memref<1x1x28x128xbf16, #tpu.memory_space<vmem>>, vector<1x1x10x128xbf16>
    %1 = vector.shape_cast %0 : vector<1x1x10x128xbf16> to vector<10x128xbf16>
    %c0_3 = arith.constant 0 : index
    %c0_4 = arith.constant 0 : index
    %c0_5 = arith.constant 0 : index
    %2 = vector.load %arg3[%c0_3, %c0_4, %c0_5] : memref<16x128x128xbf16, #tpu.memory_space<vmem>>, vector<1x128x128xbf16>
    %3 = vector.shape_cast %2 : vector<1x128x128xbf16> to vector<128x128xbf16>
    %cst = arith.constant dense<0.000000e+00> : vector<10x128xf32>
    %4 = tpu.matmul %1, %3, %cst {dimension_numbers = #tpu.dot_dimension_numbers<[1], [0], [0], [1], [0, 0, 1, 1], [], []>} : vector<10x128xbf16>, vector<128x128xbf16>, vector<10x128xf32> -> vector<10x128xf32>
    %c0_6 = arith.constant 0 : index
    %c0_7 = arith.constant 0 : index
    %c1 = arith.constant 1 : index
    %c0_8 = arith.constant 0 : index
    %5 = vector.load %arg2[%c0_6, %c0_7, %c1, %c0_8] : memref<1x1x28x128xbf16, #tpu.memory_space<vmem>>, vector<1x1x10x128xbf16>
    %6 = vector.shape_cast %5 : vector<1x1x10x128xbf16> to vector<10x128xbf16>
    %c1_9 = arith.constant 1 : index
    %c0_10 = arith.constant 0 : index
    %c0_11 = arith.constant 0 : index
    %7 = vector.load %arg3[%c1_9, %c0_10, %c0_11] : memref<16x128x128xbf16, #tpu.memory_space<vmem>>, vector<1x128x128xbf16>
    %8 = vector.shape_cast %7 : vector<1x128x128xbf16> to vector<128x128xbf16>
    %cst_12 = arith.constant dense<0.000000e+00> : vector<10x128xf32>
    %9 = tpu.matmul %6, %8, %cst_12 {dimension_numbers = #tpu.dot_dimension_numbers<[1], [0], [0], [1], [0, 0, 1, 1], [], []>} : vector<10x128xbf16>, vector<128x128xbf16>, vector<10x128xf32> -> vector<10x128xf32>
    %10 = arith.addf %4, %9 : vector<10x128xf32>
    %c0_13 = arith.constant 0 : index
    %c0_14 = arith.constant 0 : index
    %c2 = arith.constant 2 : index
    %c0_15 = arith.constant 0 : index
    %11 = vector.load %arg2[%c0_13, %c0_14, %c2, %c0_15] : memref<1x1x28x128xbf16, #tpu.memory_space<vmem>>, vector<1x1x10x128xbf16>
    %12 = vector.shape_cast %11 : vector<1x1x10x128xbf16> to vector<10x128xbf16>
    %c2_16 = arith.constant 2 : index
    %c0_17 = arith.constant 0 : index
    %c0_18 = arith.constant 0 : index
    %13 = vector.load %arg3[%c2_16, %c0_17, %c0_18] : memref<16x128x128xbf16, #tpu.memory_space<vmem>>, vector<1x128x128xbf16>
    %14 = vector.shape_cast %13 : vector<1x128x128xbf16> to vector<128x128xbf16>
    %cst_19 = arith.constant dense<0.000000e+00> : vector<10x128xf32>
    %15 = tpu.matmul %12, %14, %cst_19 {dimension_numbers = #tpu.dot_dimension_numbers<[1], [0], [0], [1], [0, 0, 1, 1], [], []>} : vector<10x128xbf16>, vector<128x128xbf16>, vector<10x128xf32> -> vector<10x128xf32>
    %16 = arith.addf %10, %15 : vector<10x128xf32>
    %c0_20 = arith.constant 0 : index
    %c0_21 = arith.constant 0 : index
    %c3 = arith.constant 3 : index
    %c0_22 = arith.constant 0 : index
    %17 = vector.load %arg2[%c0_20, %c0_21, %c3, %c0_22] : memref<1x1x28x128xbf16, #tpu.memory_space<vmem>>, vector<1x1x10x128xbf16>
    %18 = vector.shape_cast %17 : vector<1x1x10x128xbf16> to vector<10x128xbf16>
    %c3_23 = arith.constant 3 : index
    %c0_24 = arith.constant 0 : index
    %c0_25 = arith.constant 0 : index
    %19 = vector.load %arg3[%c3_23, %c0_24, %c0_25] : memref<16x128x128xbf16, #tpu.memory_space<vmem>>, vector<1x128x128xbf16>
    %20 = vector.shape_cast %19 : vector<1x128x128xbf16> to vector<128x128xbf16>
    %cst_26 = arith.constant dense<0.000000e+00> : vector<10x128xf32>
    %21 = tpu.matmul %18, %20, %cst_26 {dimension_numbers = #tpu.dot_dimension_numbers<[1], [0], [0], [1], [0, 0, 1, 1], [], []>} : vector<10x128xbf16>, vector<128x128xbf16>, vector<10x128xf32> -> vector<10x128xf32>
    %22 = arith.addf %16, %21 : vector<10x128xf32>
    %c0_27 = arith.constant 0 : index
    %c0_28 = arith.constant 0 : index
    %c5 = arith.constant 5 : index
    %c0_29 = arith.constant 0 : index
    %23 = vector.load %arg2[%c0_27, %c0_28, %c5, %c0_29] : memref<1x1x28x128xbf16, #tpu.memory_space<vmem>>, vector<1x1x10x128xbf16>
    %24 = vector.shape_cast %23 : vector<1x1x10x128xbf16> to vector<10x128xbf16>
    %c4 = arith.constant 4 : index
    %c0_30 = arith.constant 0 : index
    %c0_31 = arith.constant 0 : index
    %25 = vector.load %arg3[%c4, %c0_30, %c0_31] : memref<16x128x128xbf16, #tpu.memory_space<vmem>>, vector<1x128x128xbf16>
    %26 = vector.shape_cast %25 : vector<1x128x128xbf16> to vector<128x128xbf16>
    %cst_32 = arith.constant dense<0.000000e+00> : vector<10x128xf32>
    %27 = tpu.matmul %24, %26, %cst_32 {dimension_numbers = #tpu.dot_dimension_numbers<[1], [0], [0], [1], [0, 0, 1, 1], [], []>} : vector<10x128xbf16>, vector<128x128xbf16>, vector<10x128xf32> -> vector<10x128xf32>
    %28 = arith.addf %22, %27 : vector<10x128xf32>
    %c0_33 = arith.constant 0 : index
    %c0_34 = arith.constant 0 : index
    %c6 = arith.constant 6 : index
    %c0_35 = arith.constant 0 : index
    %29 = vector.load %arg2[%c0_33, %c0_34, %c6, %c0_35] : memref<1x1x28x128xbf16, #tpu.memory_space<vmem>>, vector<1x1x10x128xbf16>
    %30 = vector.shape_cast %29 : vector<1x1x10x128xbf16> to vector<10x128xbf16>
    %c5_36 = arith.constant 5 : index
    %c0_37 = arith.constant 0 : index
    %c0_38 = arith.constant 0 : index
    %31 = vector.load %arg3[%c5_36, %c0_37, %c0_38] : memref<16x128x128xbf16, #tpu.memory_space<vmem>>, vector<1x128x128xbf16>
    %32 = vector.shape_cast %31 : vector<1x128x128xbf16> to vector<128x128xbf16>
    %cst_39 = arith.constant dense<0.000000e+00> : vector<10x128xf32>
    %33 = tpu.matmul %30, %32, %cst_39 {dimension_numbers = #tpu.dot_dimension_numbers<[1], [0], [0], [1], [0, 0, 1, 1], [], []>} : vector<10x128xbf16>, vector<128x128xbf16>, vector<10x128xf32> -> vector<10x128xf32>
    %34 = arith.addf %28, %33 : vector<10x128xf32>
    %c0_40 = arith.constant 0 : index
    %c0_41 = arith.constant 0 : index
    %c7 = arith.constant 7 : index
    %c0_42 = arith.constant 0 : index
    %35 = vector.load %arg2[%c0_40, %c0_41, %c7, %c0_42] : memref<1x1x28x128xbf16, #tpu.memory_space<vmem>>, vector<1x1x10x128xbf16>
    %36 = vector.shape_cast %35 : vector<1x1x10x128xbf16> to vector<10x128xbf16>
    %c6_43 = arith.constant 6 : index
    %c0_44 = arith.constant 0 : index
    %c0_45 = arith.constant 0 : index
    %37 = vector.load %arg3[%c6_43, %c0_44, %c0_45] : memref<16x128x128xbf16, #tpu.memory_space<vmem>>, vector<1x128x128xbf16>
    %38 = vector.shape_cast %37 : vector<1x128x128xbf16> to vector<128x128xbf16>
    %cst_46 = arith.constant dense<0.000000e+00> : vector<10x128xf32>
    %39 = tpu.matmul %36, %38, %cst_46 {dimension_numbers = #tpu.dot_dimension_numbers<[1], [0], [0], [1], [0, 0, 1, 1], [], []>} : vector<10x128xbf16>, vector<128x128xbf16>, vector<10x128xf32> -> vector<10x128xf32>
    %40 = arith.addf %34, %39 : vector<10x128xf32>
    %c0_47 = arith.constant 0 : index
    %c0_48 = arith.constant 0 : index
    %c8 = arith.constant 8 : index
    %c0_49 = arith.constant 0 : index
    %41 = vector.load %arg2[%c0_47, %c0_48, %c8, %c0_49] : memref<1x1x28x128xbf16, #tpu.memory_space<vmem>>, vector<1x1x10x128xbf16>
    %42 = vector.shape_cast %41 : vector<1x1x10x128xbf16> to vector<10x128xbf16>
    %c7_50 = arith.constant 7 : index
    %c0_51 = arith.constant 0 : index
    %c0_52 = arith.constant 0 : index
    %43 = vector.load %arg3[%c7_50, %c0_51, %c0_52] : memref<16x128x128xbf16, #tpu.memory_space<vmem>>, vector<1x128x128xbf16>
    %44 = vector.shape_cast %43 : vector<1x128x128xbf16> to vector<128x128xbf16>
    %cst_53 = arith.constant dense<0.000000e+00> : vector<10x128xf32>
    %45 = tpu.matmul %42, %44, %cst_53 {dimension_numbers = #tpu.dot_dimension_numbers<[1], [0], [0], [1], [0, 0, 1, 1], [], []>} : vector<10x128xbf16>, vector<128x128xbf16>, vector<10x128xf32> -> vector<10x128xf32>
    %46 = arith.addf %40, %45 : vector<10x128xf32>
    %c0_54 = arith.constant 0 : index
    %c0_55 = arith.constant 0 : index
    %c10 = arith.constant 10 : index
    %c0_56 = arith.constant 0 : index
    %47 = vector.load %arg2[%c0_54, %c0_55, %c10, %c0_56] : memref<1x1x28x128xbf16, #tpu.memory_space<vmem>>, vector<1x1x10x128xbf16>
    %48 = vector.shape_cast %47 : vector<1x1x10x128xbf16> to vector<10x128xbf16>
    %c8_57 = arith.constant 8 : index
    %c0_58 = arith.constant 0 : index
    %c0_59 = arith.constant 0 : index
    %49 = vector.load %arg3[%c8_57, %c0_58, %c0_59] : memref<16x128x128xbf16, #tpu.memory_space<vmem>>, vector<1x128x128xbf16>
    %50 = vector.shape_cast %49 : vector<1x128x128xbf16> to vector<128x128xbf16>
    %cst_60 = arith.constant dense<0.000000e+00> : vector<10x128xf32>
    %51 = tpu.matmul %48, %50, %cst_60 {dimension_numbers = #tpu.dot_dimension_numbers<[1], [0], [0], [1], [0, 0, 1, 1], [], []>} : vector<10x128xbf16>, vector<128x128xbf16>, vector<10x128xf32> -> vector<10x128xf32>
    %52 = arith.addf %46, %51 : vector<10x128xf32>
    %c0_61 = arith.constant 0 : index
    %c0_62 = arith.constant 0 : index
    %c11 = arith.constant 11 : index
    %c0_63 = arith.constant 0 : index
    %53 = vector.load %arg2[%c0_61, %c0_62, %c11, %c0_63] : memref<1x1x28x128xbf16, #tpu.memory_space<vmem>>, vector<1x1x10x128xbf16>
    %54 = vector.shape_cast %53 : vector<1x1x10x128xbf16> to vector<10x128xbf16>
    %c9 = arith.constant 9 : index
    %c0_64 = arith.constant 0 : index
    %c0_65 = arith.constant 0 : index
    %55 = vector.load %arg3[%c9, %c0_64, %c0_65] : memref<16x128x128xbf16, #tpu.memory_space<vmem>>, vector<1x128x128xbf16>
    %56 = vector.shape_cast %55 : vector<1x128x128xbf16> to vector<128x128xbf16>
    %cst_66 = arith.constant dense<0.000000e+00> : vector<10x128xf32>
    %57 = tpu.matmul %54, %56, %cst_66 {dimension_numbers = #tpu.dot_dimension_numbers<[1], [0], [0], [1], [0, 0, 1, 1], [], []>} : vector<10x128xbf16>, vector<128x128xbf16>, vector<10x128xf32> -> vector<10x128xf32>
    %58 = arith.addf %52, %57 : vector<10x128xf32>
    %c0_67 = arith.constant 0 : index
    %c0_68 = arith.constant 0 : index
    %c12 = arith.constant 12 : index
    %c0_69 = arith.constant 0 : index
    %59 = vector.load %arg2[%c0_67, %c0_68, %c12, %c0_69] : memref<1x1x28x128xbf16, #tpu.memory_space<vmem>>, vector<1x1x10x128xbf16>
    %60 = vector.shape_cast %59 : vector<1x1x10x128xbf16> to vector<10x128xbf16>
    %c10_70 = arith.constant 10 : index
    %c0_71 = arith.constant 0 : index
    %c0_72 = arith.constant 0 : index
    %61 = vector.load %arg3[%c10_70, %c0_71, %c0_72] : memref<16x128x128xbf16, #tpu.memory_space<vmem>>, vector<1x128x128xbf16>
    %62 = vector.shape_cast %61 : vector<1x128x128xbf16> to vector<128x128xbf16>
    %cst_73 = arith.constant dense<0.000000e+00> : vector<10x128xf32>
    %63 = tpu.matmul %60, %62, %cst_73 {dimension_numbers = #tpu.dot_dimension_numbers<[1], [0], [0], [1], [0, 0, 1, 1], [], []>} : vector<10x128xbf16>, vector<128x128xbf16>, vector<10x128xf32> -> vector<10x128xf32>
    %64 = arith.addf %58, %63 : vector<10x128xf32>
    %c0_74 = arith.constant 0 : index
    %c0_75 = arith.constant 0 : index
    %c13 = arith.constant 13 : index
    %c0_76 = arith.constant 0 : index
    %65 = vector.load %arg2[%c0_74, %c0_75, %c13, %c0_76] : memref<1x1x28x128xbf16, #tpu.memory_space<vmem>>, vector<1x1x10x128xbf16>
    %66 = vector.shape_cast %65 : vector<1x1x10x128xbf16> to vector<10x128xbf16>
    %c11_77 = arith.constant 11 : index
    %c0_78 = arith.constant 0 : index
    %c0_79 = arith.constant 0 : index
    %67 = vector.load %arg3[%c11_77, %c0_78, %c0_79] : memref<16x128x128xbf16, #tpu.memory_space<vmem>>, vector<1x128x128xbf16>
    %68 = vector.shape_cast %67 : vector<1x128x128xbf16> to vector<128x128xbf16>
    %cst_80 = arith.constant dense<0.000000e+00> : vector<10x128xf32>
    %69 = tpu.matmul %66, %68, %cst_80 {dimension_numbers = #tpu.dot_dimension_numbers<[1], [0], [0], [1], [0, 0, 1, 1], [], []>} : vector<10x128xbf16>, vector<128x128xbf16>, vector<10x128xf32> -> vector<10x128xf32>
    %70 = arith.addf %64, %69 : vector<10x128xf32>
    %c0_81 = arith.constant 0 : index
    %c0_82 = arith.constant 0 : index
    %c15 = arith.constant 15 : index
    %c0_83 = arith.constant 0 : index
    %71 = vector.load %arg2[%c0_81, %c0_82, %c15, %c0_83] : memref<1x1x28x128xbf16, #tpu.memory_space<vmem>>, vector<1x1x10x128xbf16>
    %72 = vector.shape_cast %71 : vector<1x1x10x128xbf16> to vector<10x128xbf16>
    %c12_84 = arith.constant 12 : index
    %c0_85 = arith.constant 0 : index
    %c0_86 = arith.constant 0 : index
    %73 = vector.load %arg3[%c12_84, %c0_85, %c0_86] : memref<16x128x128xbf16, #tpu.memory_space<vmem>>, vector<1x128x128xbf16>
    %74 = vector.shape_cast %73 : vector<1x128x128xbf16> to vector<128x128xbf16>
    %cst_87 = arith.constant dense<0.000000e+00> : vector<10x128xf32>
    %75 = tpu.matmul %72, %74, %cst_87 {dimension_numbers = #tpu.dot_dimension_numbers<[1], [0], [0], [1], [0, 0, 1, 1], [], []>} : vector<10x128xbf16>, vector<128x128xbf16>, vector<10x128xf32> -> vector<10x128xf32>
    %76 = arith.addf %70, %75 : vector<10x128xf32>
    %c0_88 = arith.constant 0 : index
    %c0_89 = arith.constant 0 : index
    %c16 = arith.constant 16 : index
    %c0_90 = arith.constant 0 : index
    %77 = vector.load %arg2[%c0_88, %c0_89, %c16, %c0_90] : memref<1x1x28x128xbf16, #tpu.memory_space<vmem>>, vector<1x1x10x128xbf16>
    %78 = vector.shape_cast %77 : vector<1x1x10x128xbf16> to vector<10x128xbf16>
    %c13_91 = arith.constant 13 : index
    %c0_92 = arith.constant 0 : index
    %c0_93 = arith.constant 0 : index
    %79 = vector.load %arg3[%c13_91, %c0_92, %c0_93] : memref<16x128x128xbf16, #tpu.memory_space<vmem>>, vector<1x128x128xbf16>
    %80 = vector.shape_cast %79 : vector<1x128x128xbf16> to vector<128x128xbf16>
    %cst_94 = arith.constant dense<0.000000e+00> : vector<10x128xf32>
    %81 = tpu.matmul %78, %80, %cst_94 {dimension_numbers = #tpu.dot_dimension_numbers<[1], [0], [0], [1], [0, 0, 1, 1], [], []>} : vector<10x128xbf16>, vector<128x128xbf16>, vector<10x128xf32> -> vector<10x128xf32>
    %82 = arith.addf %76, %81 : vector<10x128xf32>
    %c0_95 = arith.constant 0 : index
    %c0_96 = arith.constant 0 : index
    %c17 = arith.constant 17 : index
    %c0_97 = arith.constant 0 : index
    %83 = vector.load %arg2[%c0_95, %c0_96, %c17, %c0_97] : memref<1x1x28x128xbf16, #tpu.memory_space<vmem>>, vector<1x1x10x128xbf16>
    %84 = vector.shape_cast %83 : vector<1x1x10x128xbf16> to vector<10x128xbf16>
    %c14 = arith.constant 14 : index
    %c0_98 = arith.constant 0 : index
    %c0_99 = arith.constant 0 : index
    %85 = vector.load %arg3[%c14, %c0_98, %c0_99] : memref<16x128x128xbf16, #tpu.memory_space<vmem>>, vector<1x128x128xbf16>
    %86 = vector.shape_cast %85 : vector<1x128x128xbf16> to vector<128x128xbf16>
    %cst_100 = arith.constant dense<0.000000e+00> : vector<10x128xf32>
    %87 = tpu.matmul %84, %86, %cst_100 {dimension_numbers = #tpu.dot_dimension_numbers<[1], [0], [0], [1], [0, 0, 1, 1], [], []>} : vector<10x128xbf16>, vector<128x128xbf16>, vector<10x128xf32> -> vector<10x128xf32>
    %88 = arith.addf %82, %87 : vector<10x128xf32>
    %c0_101 = arith.constant 0 : index
    %c0_102 = arith.constant 0 : index
    %c18 = arith.constant 18 : index
    %c0_103 = arith.constant 0 : index
    %89 = vector.load %arg2[%c0_101, %c0_102, %c18, %c0_103] : memref<1x1x28x128xbf16, #tpu.memory_space<vmem>>, vector<1x1x10x128xbf16>
    %90 = vector.shape_cast %89 : vector<1x1x10x128xbf16> to vector<10x128xbf16>
    %c15_104 = arith.constant 15 : index
    %c0_105 = arith.constant 0 : index
    %c0_106 = arith.constant 0 : index
    %91 = vector.load %arg3[%c15_104, %c0_105, %c0_106] : memref<16x128x128xbf16, #tpu.memory_space<vmem>>, vector<1x128x128xbf16>
    %92 = vector.shape_cast %91 : vector<1x128x128xbf16> to vector<128x128xbf16>
    %cst_107 = arith.constant dense<0.000000e+00> : vector<10x128xf32>
    %93 = tpu.matmul %90, %92, %cst_107 {dimension_numbers = #tpu.dot_dimension_numbers<[1], [0], [0], [1], [0, 0, 1, 1], [], []>} : vector<10x128xbf16>, vector<128x128xbf16>, vector<10x128xf32> -> vector<10x128xf32>
    %94 = arith.addf %88, %93 : vector<10x128xf32>
    %c0_108 = arith.constant 0 : index
    %c0_109 = arith.constant 0 : index
    %95 = vector.load %arg4[%c0_108, %c0_109] : memref<1x128xf32, #tpu.memory_space<vmem>>, vector<1x128xf32>
    %96 = vector.broadcast %95 : vector<1x128xf32> to vector<10x128xf32>
    %97 = arith.addf %94, %96 : vector<10x128xf32>
    %c0_110 = arith.constant 0 : index
    %c0_111 = arith.constant 0 : index
    %c0_112 = arith.constant 0 : index
    %98 = vector.load %arg5[%c0_110, %c0_111, %c0_112] : memref<1x10x128xf32, #tpu.memory_space<vmem>>, vector<1x10x128xf32>
    %99 = vector.shape_cast %98 : vector<1x10x128xf32> to vector<10x128xf32>
    %100 = vector.shape_cast %97 : vector<10x128xf32> to vector<1x10x128xf32>
    tpu.vector_store %arg5[%c0_110, %c0_111, %c0_112], %100 {strides = array<i32>} : memref<1x10x128xf32, #tpu.memory_space<vmem>>, vector<1x10x128xf32>,
    return
  }
  func.func @transform_0(%arg0: i32, %arg1: i32) -> (i32, i32, i32, i32) {
    %c0_i32 = arith.constant 0 : i32
    %c0_i32_0 = arith.constant 0 : i32
    %c0_i32_1 = arith.constant 0 : i32
    %c0_i32_2 = arith.constant 0 : i32
    return %arg0, %c0_i32, %c0_i32_0, %c0_i32_1 : i32, i32, i32, i32
  }
  func.func @transform_1(%arg0: i32, %arg1: i32) -> (i32, i32, i32) {
    %c0_i32 = arith.constant 0 : i32
    %c0_i32_0 = arith.constant 0 : i32
    %c0_i32_1 = arith.constant 0 : i32
    return %c0_i32, %c0_i32_0, %arg1 : i32, i32, i32
  }
  func.func @transform_2(%arg0: i32, %arg1: i32) -> (i32, i32) {
    %c0_i32 = arith.constant 0 : i32
    %c0_i32_0 = arith.constant 0 : i32
    return %c0_i32, %arg1 : i32, i32
  }
  func.func @transform_3(%arg0: i32, %arg1: i32) -> (i32, i32, i32) {
    %c0_i32 = arith.constant 0 : i32
    %c0_i32_0 = arith.constant 0 : i32
    return %arg0, %c0_i32, %arg1 : i32, i32, i32
  }
}

</mosaic_0001>

<bundles_post_ra>
// kernel: _lambda_.10
= control target key start
LH: loop header
LB: loop body
LE: loop exit
PB: predicated region body
PF: predicated region fallthrough
CT: control target
= control target key end

     0   :  { %s405_s12 = smov 0   ;;  %s461_s0 = inlined_call_operand.vmem [shape: bf16[2,72,128], index: 0, kind: input, shape index: {}]   ;;  %s462_s1 = inlined_call_operand.vmem [shape: f32[1,128], index: 1, kind: input, shape index: {}]   ;;  %s463_s2 = inlined_call_operand.vmem [shape: f32[1,128], index: 2, kind: input, shape index: {}]   ;;  %s464_s3 = inlined_call_operand.vmem [shape: bf16[2,72,128], index: 3, kind: output, shape index: {}]  }
   0x1 LB: > { %s315_s13 = sadd.s32 4294967295, %s383_s12   ;;  %p319_p0 = scmp.ge.s32.totalorder %s383_s12, 1  ;;  %s383_s12 = sphi %s405_s12, %s13_s12  }
   0x2   : > { %p137_p1 = scmp.lt.s32.totalorder %s383_s12, 3 }
   0x4   : > { %p138_p2 = pnand %p319_p0, %p137_p1 }
   0x5   : > { %p161_p3 = scmp.lt.s32.totalorder (!%p138_p2), %s315_s13, 1 }
   0x6   : > { %141 = sbr.rel (%p138_p2) target bundleno = 39 (0x27), region = 32 }
   0xb   : > { %s466_s13 = smov (!%p161_p3, %s315_s13), 1  ;;  %v426_v0 = vld [vmem:[%s462_s1] ss:$0 sm:$0xff] }
   0xc   : > { %s366_s14 = smul.u32 36, %s466_s13  ;;  %v376_v6 = vld [vmem:[%s463_s2] ss:$0 sm:$0xff] }
   0xe   : > { %s421_s17 = scalar_lea.vmem %s461_s0, %s366_s14  ;;  %s448_s24 = scalar_lea.vmem %s464_s3, %s366_s14 }
   0xf   : > { %v325_v1 = vld [vmem:[%s421_s17] sm:$0xff]   ;;  %v360_v2 = vld [vmem:[%s421_s17 + $0x8] sm:$0xff]   ;;  %v361_v3 = vld [vmem:[%s421_s17 + $0x10] sm:$0xff]  }
  0x10   : > { %v326_v4 = vunpack.c.l.bf16 %v325_v1  ;;  %v327_v5 = vunpack.c.h.bf16 %v325_v1  ;;  %v330_v7 = vunpack.c.l.bf16 %v360_v2  ;;  %v331_v8 = vunpack.c.h.bf16 %v360_v2  ;;  %v362_v9 = vld [vmem:[%s421_s17 + $0x18] sm:$0xff]   ;;  %v179_v36 = vld [vmem:[%s421_s17 + $0x20] sm:$0xf] }
  0x11   : > { %v334_v10 = vunpack.c.l.bf16 %v361_v3  ;;  %v335_v11 = vunpack.c.h.bf16 %v361_v3  ;;  %v338_v12 = vunpack.c.l.bf16 %v362_v9  ;;  %v339_v13 = vunpack.c.h.bf16 %v362_v9 }
  0x12   : > { %v193_v14 = vmul.f32 %v426_v0, %v326_v4  ;;  %v194_v15 = vmul.f32 %v426_v0, %v327_v5  ;;  %v195_v16 = vmul.f32 %v426_v0, %v330_v7  ;;  %v196_v17 = vmul.f32 %v426_v0, %v331_v8 }
  0x13   : > { %v197_v18 = vmul.f32 %v426_v0, %v334_v10  ;;  %v198_v19 = vmul.f32 %v426_v0, %v335_v11  ;;  %v199_v20 = vmul.f32 %v426_v0, %v338_v12  ;;  %v200_v21 = vmul.f32 %v426_v0, %v339_v13 }
  0x14   : > { %v206_v22 = vadd.f32 %v376_v6, %v193_v14  ;;  %v207_v23 = vadd.f32 %v376_v6, %v194_v15  ;;  %v208_v24 = vadd.f32 %v376_v6, %v195_v16  ;;  %v209_v25 = vadd.f32 %v376_v6, %v196_v17 }
  0x15   : > { %v210_v26 = vadd.f32 %v376_v6, %v197_v18  ;;  %v211_v27 = vadd.f32 %v376_v6, %v198_v19  ;;  %v212_v28 = vadd.f32 %v376_v6, %v199_v20  ;;  %v213_v29 = vadd.f32 %v376_v6, %v200_v21 }
  0x16   : > { %vm215_vm0 = vcmp.ge.f32.partialorder %v206_v22, 0.0  ;;  %vm216_vm1 = vcmp.ge.f32.partialorder %v207_v23, 0.0  ;;  %v224_v30 = vmul.f32 0.2, %v206_v22  ;;  %v225_v31 = vmul.f32 0.2, %v207_v23 }
  0x17   : > { %vm217_vm2 = vcmp.ge.f32.partialorder %v208_v24, 0.0  ;;  %vm218_vm3 = vcmp.ge.f32.partialorder %v209_v25, 0.0  ;;  %v226_v32 = vmul.f32 0.2, %v208_v24  ;;  %v227_v33 = vmul.f32 0.2, %v209_v25 }
  0x18   : > { %v233_v34 = vsel %vm215_vm0, %v206_v22, %v224_v30  ;;  %v234_v35 = vsel %vm216_vm1, %v207_v23, %v225_v31  ;;  %vm219_vm4 = vcmp.ge.f32.partialorder %v210_v26, 0.0  ;;  %vm220_vm5 = vcmp.ge.f32.partialorder %v211_v27, 0.0 }
  0x19   : > { %v343_v37 = vpack.c.bf16 %v234_v35, %v233_v34  ;;  %v235_v38 = vsel %vm217_vm2, %v208_v24, %v226_v32  ;;  %v236_v39 = vsel %vm218_vm3, %v209_v25, %v227_v33  ;;  %v228_v40 = vmul.f32 0.2, %v210_v26 }
  0x1a   : > { %v348_v41 = vpack.c.bf16 %v236_v39, %v235_v38  ;;  %v229_v42 = vmul.f32 0.2, %v211_v27  ;;  %vm221_vm6 = vcmp.ge.f32.partialorder %v212_v28, 0.0  ;;  %vm222_vm7 = vcmp.ge.f32.partialorder %v213_v29, 0.0 }
  0x1b   : > { %344 = vst [vmem:[%s448_s24] sm:$0xff] %v343_v37   ;;  %v237_v43 = vsel %vm219_vm4, %v210_v26, %v228_v40  ;;  %v230_v44 = vmul.f32 0.2, %v212_v28  ;;  %v231_v45 = vmul.f32 0.2, %v213_v29  ;;  %v188_v46 = vunpack.c.l.bf16 %v179_v36 }
  0x1c   : > { %363 = vst [vmem:[%s448_s24 + $0x8] sm:$0xff] %v348_v41   ;;  %v238_v47 = vsel %vm220_vm5, %v211_v27, %v229_v42 }
  0x1d   : > { %v353_v48 = vpack.c.bf16 %v238_v47, %v237_v43  ;;  %v239_v49 = vsel %vm221_vm6, %v212_v28, %v230_v44  ;;  %v240_v50 = vsel %vm222_vm7, %v213_v29, %v231_v45  ;;  %v201_v51 = vmul.f32 %v426_v0, %v188_v46 }
  0x1e   : > { %v358_v52 = vpack.c.bf16 %v240_v50, %v239_v49 }
  0x1f   : > { %364 = vst [vmem:[%s448_s24 + $0x10] sm:$0xff] %v353_v48   ;;  %v214_v53 = vadd.f32 %v376_v6, %v201_v51 }
  0x20   : > { %365 = vst [vmem:[%s448_s24 + $0x18] sm:$0xff] %v358_v52  }
  0x21   : > { %vm223_vm8 = vcmp.ge.f32.partialorder %v214_v53, 0.0  ;;  %v232_v54 = vmul.f32 0.2, %v214_v53 }
  0x23   : > { %v241_v55 = vsel %vm223_vm8, %v214_v53, %v232_v54 }
  0x24   : > { %v250_v56 = vpack.c.bf16 %v241_v55, %v241_v55 }
  0x26   : > { %259 = vst [vmem:[%s448_s24 + $0x20] sm:$0xf] %v250_v56 }
  0x27 PF: > { %s13_s12 = sadd.s32 1, %s383_s12  }
  0x28   : > { %p10_p4 = scmp.ge.s32.totalorder %s13_s12, 4  }
  0x2a   :  { %12 = sbr.rel (!%p10_p4) target bundleno = 1 (0x1), region = 62 }

// kernel: _lambda_.8
= control target key start
LH: loop header
LB: loop body
LE: loop exit
PB: predicated region body
PF: predicated region fallthrough
CT: control target
= control target key end

     0   :  { %s7962_s12 = smov 0   ;;  %s7964_s13 = smov 0   ;;  %s9476_s0 = inlined_call_operand.vmem [shape: bf16[2,4,290,6], index: 0, kind: input, shape index: {}]   ;;  %s9477_s1 = inlined_call_operand.vmem [shape: bf16[16,6,128], index: 1, kind: input, shape index: {}]   ;;  %s9478_s2 = inlined_call_operand.vmem [shape: f32[1,128], index: 2, kind: input, shape index: {}]   ;;  %s9479_s3 = inlined_call_operand.vmem [shape: bf16[2,272,128], index: 3, kind: output, shape index: {}]  }
   0x1   :  { %s7966_s14 = smov 0  }
   0x2 LB: > { %s25_s15 = sadd.s32 1, %s7936_s13  ;;  %p6160_p0 = scmp.ge.s32.totalorder %s7940_s14, 1  ;;  %s7940_s14 = sphi %s7966_s14, %s13_s14   ;;  %s7936_s13 = sphi %s7964_s13, %s9481_s13   ;;  %s7932_s12 = sphi %s7962_s12, %s9480_s12  }
   0x3   : > { %p27_p1 = scmp.ge.s32.totalorder %s25_s15, 2  ;;  %p168_p2 = scmp.lt.s32.totalorder %s7940_s14, 3 }
   0x5   : > { %s9483_s15 = smov (%p27_p1, %s25_s15), 0  ;;  %p169_p3 = pnand %p6160_p0, %p168_p2 }
   0x6   : > { %p202_p4 = scmp.lt.s32.totalorder (!%p169_p3), %s7932_s12, 1 }
   0x7   : > { %172 = sbr.rel (%p169_p3) target bundleno = 1251 (0x4e3), region = 32 }
   0xc   : > { %v6197_v0 = vld [vmem:[%s9477_s1 + $0x4] sm:$0x7]  ;;  %vm432_vm0 = vcmask 1042432   ;;  %v257_v1 = vld [vmem:[%s9477_s1] sm:$0x7]  ;;  %s9485_s12 = smov (!%p202_p4, %s7932_s12), 1 }
   0xd   : > { %v434_v2 = vsel %vm432_vm0, %v6197_v0, 0  ;;  %v667_v3 = vsel %vm432_vm0, %v257_v1, 0  ;;  %v6368_v4 = vld [vmem:[%s9477_s1 + $0x8] sm:$0x7]  ;;  %v6489_v6 = vld [vmem:[%s9477_s1 + $0xc] sm:$0x7] }
   0xe   : > { %443 = vmatpush.bf16.msra.mxu0 %v434_v2  ;;  %676 = vmatpush.bf16.msra.mxu1 %v667_v3  ;;  %v1081_v5 = vsel %vm432_vm0, %v6368_v4, 0  ;;  %v1528_v7 = vsel %vm432_vm0, %v6489_v6, 0  ;;  %v6850_v8 = vld [vmem:[%s9477_s1 + $0x18] sm:$0x7]  ;;  %v6609_v9 = vld [vmem:[%s9477_s1 + $0x10] sm:$0x7] }
   0xf   : > { %1090 = vmatpush.bf16.msra.mxu2 %v1081_v5  ;;  %s7884_s28 = smul.u32 592, %s9485_s12  ;;  %1537 = vmatpush.bf16.msra.mxu3 %v1528_v7  ;;  %v2583_v10 = vsel %vm432_vm0, %v6850_v8, 0  ;;  %v1832_v11 = vsel %vm432_vm0, %v6609_v9, 0  ;;  %v6971_v12 = vld [vmem:[%s9477_s1 + $0x1c] sm:$0x7]  ;;  %vm380_vm1 = vcmask 48128  }
  0x10   : > { %v3030_v13 = vsel %vm432_vm0, %v6971_v12, 0  ;;  %v6729_v14 = vld [vmem:[%s9477_s1 + $0x14] sm:$0x7]  ;;  %vm888_vm2 = vsmask.f32 7424  ;;  %vm4060_vm3 = vcmask 1046528  }
  0x11   : > { %s8017_s8 = scalar_lea.vmem %s9476_s0, %s7884_s28  ;;  %v2136_v15 = vsel %vm432_vm0, %v6729_v14, 0  ;;  %s7885_s4 = smul.u32 136, %s9485_s12 }
  0x12   : > { %1841 = vmatpush.bf16.msrb.mxu0 %v1832_v11  ;;  %v7584_v16 = vld [vmem:[%s8017_s8 + $0x94] sm:$0xff]  ;;  %v7567_v17 = vld [vmem:[%s8017_s8] sm:$0xff]  ;;  %2145 = vmatpush.bf16.msrb.mxu1 %v2136_v15  ;;  %v7602_v19 = vld [vmem:[%s8017_s8 + $0x8] sm:$0xff] }
  0x13   : > { %2592 = vmatpush.bf16.msrb.mxu2 %v2583_v10  ;;  %3039 = vmatpush.bf16.msrb.mxu3 %v3030_v13  ;;  %v7601_v18 = vld [vmem:[%s8017_s8] sm:$0xff]  ;;  %v7618_v20 = vld [vmem:[%s8017_s8 + $0x94] sm:$0xff]  ;;  %v897_v24 = vshll.u32 %v7602_v19, 16  ;;  %v7568_v39 = vld [vmem:[%s8017_s8 + $0x8] sm:$0xff]  ;;  %v901_v40 = vshrl.u32 %v7602_v19, 16  ;;  %s9260_s12 = scalar_lea.vmem %s9479_s3, %s7885_s4 }
  0x14   : > { %v7619_v21 = vld [vmem:[%s8017_s8 + $0x9c] sm:$0xff]  ;;  %6266 = vmatmul.msk.bf16.vlgmr.msra.gmra.mxu0 %vm380_vm1, %v7584_v16  ;;  %6351 = vmatmul.msk.bf16.vlgmr.msra.gmra.mxu1 %vm380_vm1, %v7567_v17  ;;  %v890_v22 = vshrl.u32 %v7601_v18, 16  ;;  %v892_v23 = vshll.u32 %v7601_v18, 16  ;;  %v1337_v25 = vshrl.u32 %v7618_v20, 16  ;;  %v1339_v26 = vshll.u32 %v7618_v20, 16  ;;  %v7603_v36 = vld [vmem:[%s8017_s8 + $0x10] sm:$0xff] }
  0x15   : > { %v1344_v27 = vshll.u32 %v7619_v21, 16  ;;  %v899_v29 = vrot.slane %v897_v24, 1  ;;  %v7620_v37 = vld [vmem:[%s8017_s8 + $0xa4] sm:$0xff]  ;;  %v7585_v38 = vld [vmem:[%s8017_s8 + $0x9c] sm:$0xff]  ;;  %v905_v41 = vshll.u32 %v7603_v36, 16  ;;  %v1348_v42 = vshrl.u32 %v7619_v21, 16 }
  0x16   : > { %v894_v28 = vrot.slane %v892_v23, 1  ;;  %v1341_v30 = vrot.slane %v1339_v26, 1  ;;  %v1352_v43 = vshll.u32 %v7620_v37, 16  ;;  %v7604_v50 = vld [vmem:[%s8017_s8 + $0x18] sm:$0xff]  ;;  %v7621_v51 = vld [vmem:[%s8017_s8 + $0xac] sm:$0xff]  ;;  %v7586_v52 = vld [vmem:[%s8017_s8 + $0xa4] sm:$0xff] }
  0x17   : > { %v1346_v31 = vrot.slane %v1344_v27, 1  ;;  %v903_v44 = vor.u32 %v901_v40, %v899_v29  ;;  %v907_v45 = vrot.slane %v905_v41, 1  ;;  %v7569_v53 = vld [vmem:[%s8017_s8 + $0x10] sm:$0xff]  ;;  %v909_v54 = vshrl.u32 %v7603_v36, 16  ;;  %v7605_v0 = vld [vmem:[%s8017_s8 + $0x20] sm:$0xff]  ;;  %v7570_v3 = vld [vmem:[%s8017_s8 + $0x18] sm:$0xff] }
  0x18   : > { %v895_v32 = vor.u32 %v894_v28, %v890_v22  ;;  %v1342_v33 = vor.u32 %v1341_v30, %v1337_v25  ;;  %v1354_v47 = vrot.slane %v1352_v43, 1  ;;  %v913_v55 = vshll.u32 %v7604_v50, 16  ;;  %v7622_v1 = vld [vmem:[%s8017_s8 + $0xb4] sm:$0xff]  ;;  %v7587_v2 = vld [vmem:[%s8017_s8 + $0xac] sm:$0xff]  ;;  %v7623_v15 = vld [vmem:[%s8017_s8 + $0xbc] sm:$0xff] }
  0x19   : > { %v1350_v46 = vor.u32 %v1348_v42, %v1346_v31  ;;  %v908_v48 = vsel %vm888_vm2, %v903_v44, %v907_v45  ;;  %v1356_v56 = vshrl.u32 %v7620_v37, 16  ;;  %v1360_v57 = vshll.u32 %v7621_v51, 16  ;;  %v7606_v14 = vld [vmem:[%s8017_s8 + $0x28] sm:$0xff]  ;;  %v7588_v16 = vld [vmem:[%s8017_s8 + $0xb4] sm:$0xff]  ;;  %v7571_v17 = vld [vmem:[%s8017_s8 + $0x20] sm:$0xff] }
  0x1a   : > { %v900_v34 = vsel %vm888_vm2, %v895_v32, %v899_v29  ;;  %v1347_v35 = vsel %vm888_vm2, %v1342_v33, %v1346_v31  ;;  %v911_v58 = vor.u32 %v909_v54, %v907_v45  ;;  %v915_v59 = vrot.slane %v913_v55, 1  ;;  %v7607_v28 = vld [vmem:[%s8017_s8 + $0x30] sm:$0xff]  ;;  %v7624_v29 = vld [vmem:[%s8017_s8 + $0xc4] sm:$0xff]  ;;  %v7589_v30 = vld [vmem:[%s8017_s8 + $0xbc] sm:$0xff] }
  0x1b   : > { %6437 = vmatmul.msk.bf16.vlgmr.msra.gmra.mxu2 %vm380_vm1, %v900_v34  ;;  %6558 = vmatmul.msk.bf16.vlgmr.msra.gmra.mxu3 %vm380_vm1, %v1347_v35  ;;  %v1355_v49 = vsel %vm888_vm2, %v1350_v46, %v1354_v47  ;;  %v1358_v60 = vor.u32 %v1356_v56, %v1354_v47  ;;  %v1362_v61 = vrot.slane %v1360_v57, 1  ;;  %v917_v4 = vshrl.u32 %v7604_v50, 16  ;;  %v7572_v31 = vld [vmem:[%s8017_s8 + $0x28] sm:$0xff]  ;;  %v7608_v42 = vld [vmem:[%s8017_s8 + $0x38] sm:$0xff]  ;;  %v7573_v45 = vld [vmem:[%s8017_s8 + $0x30] sm:$0xff] }
  0x1c   : > { %v916_v62 = vsel %vm888_vm2, %v911_v58, %v915_v59  ;;  %v921_v5 = vshll.u32 %v7605_v0, 16  ;;  %v1364_v6 = vshrl.u32 %v7621_v51, 16  ;;  %v1368_v7 = vshll.u32 %v7622_v1, 16  ;;  %v7625_v43 = vld [vmem:[%s8017_s8 + $0xcc] sm:$0xff]  ;;  %v7590_v44 = vld [vmem:[%s8017_s8 + $0xc4] sm:$0xff]  ;;  %v7626_v57 = vld [vmem:[%s8017_s8 + $0xd4] sm:$0xff] }
  0x1d   : > { %v1363_v63 = vsel %vm888_vm2, %v1358_v60, %v1362_v61  ;;  %v919_v8 = vor.u32 %v917_v4, %v915_v59  ;;  %v925_v18 = vshrl.u32 %v7605_v0, 16  ;;  %v929_v19 = vshll.u32 %v7606_v14, 16  ;;  %v7609_v56 = vld [vmem:[%s8017_s8 + $0x40] sm:$0xff]  ;;  %v7591_v58 = vld [vmem:[%s8017_s8 + $0xcc] sm:$0xff]  ;;  %v7574_v59 = vld [vmem:[%s8017_s8 + $0x38] sm:$0xff] }
  0x1e   : > { %v923_v9 = vrot.slane %v921_v5, 1  ;;  %v1366_v10 = vor.u32 %v1364_v6, %v1362_v61  ;;  %v1370_v11 = vrot.slane %v1368_v7, 1  ;;  %v1372_v20 = vshrl.u32 %v7622_v1, 16  ;;  %v7610_v6 = vld [vmem:[%s8017_s8 + $0x48] sm:$0xff]  ;;  %v7627_v7 = vld [vmem:[%s8017_s8 + $0xdc] sm:$0xff] }
  0x1f   : > { %v1376_v21 = vshll.u32 %v7623_v15, 16  ;;  %v931_v23 = vrot.slane %v929_v19, 1  ;;  %v933_v32 = vshrl.u32 %v7606_v14, 16  ;;  %v937_v33 = vshll.u32 %v7607_v28, 16 }
  0x20   : > { %v924_v12 = vsel %vm888_vm2, %v919_v8, %v923_v9  ;;  %v1371_v13 = vsel %vm888_vm2, %v1366_v10, %v1370_v11  ;;  %v927_v22 = vor.u32 %v925_v18, %v923_v9  ;;  %v1374_v24 = vor.u32 %v1372_v20, %v1370_v11  ;;  %v7592_v8 = vld [vmem:[%s8017_s8 + $0xd4] sm:$0xff]  ;;  %v7575_v9 = vld [vmem:[%s8017_s8 + $0x40] sm:$0xff] }
  0x21   : > { %v1378_v25 = vrot.slane %v1376_v21, 1  ;;  %v1380_v34 = vshrl.u32 %v7623_v15, 16  ;;  %v1384_v35 = vshll.u32 %v7624_v29, 16  ;;  %v935_v36 = vor.u32 %v933_v32, %v931_v23  ;;  %v7576_v32 = vld [vmem:[%s8017_s8 + $0x48] sm:$0xff] }
  0x22   : > { %v932_v26 = vsel %vm888_vm2, %v927_v22, %v931_v23  ;;  %v939_v37 = vrot.slane %v937_v33, 1  ;;  %v941_v46 = vshrl.u32 %v7607_v28, 16  ;;  %v945_v47 = vshll.u32 %v7608_v42, 16 }
  0x23   : > { %v1379_v27 = vsel %vm888_vm2, %v1374_v24, %v1378_v25  ;;  %v949_v60 = vshrl.u32 %v7608_v42, 16  ;;  %v953_v61 = vshll.u32 %v7609_v56, 16  ;;  %v957_v10 = vshrl.u32 %v7609_v56, 16 }
  0x24   : > { %6267 = vmatmul.msk.bf16.gmra.mxu0 %vm380_vm1, %v7585_v38  ;;  %6352 = vmatmul.msk.bf16.gmra.mxu1 %vm380_vm1, %v7568_v39  ;;  %v1382_v38 = vor.u32 %v1380_v34, %v1378_v25  ;;  %v1386_v39 = vrot.slane %v1384_v35, 1  ;;  %v940_v40 = vsel %vm888_vm2, %v935_v36, %v939_v37  ;;  %v943_v50 = vor.u32 %v941_v46, %v939_v37 }
  0x25   : > { %v947_v51 = vrot.slane %v945_v47, 1  ;;  %v955_v1 = vrot.slane %v953_v61, 1  ;;  %v961_v11 = vshll.u32 %v7610_v6, 16  ;;  %v1404_v14 = vshrl.u32 %v7626_v57, 16 }
  0x26   : > { %v1387_v41 = vsel %vm888_vm2, %v1382_v38, %v1386_v39  ;;  %v1408_v15 = vshll.u32 %v7627_v7, 16  ;;  %v965_v33 = vshrl.u32 %v7610_v6, 16  ;;  %v1412_v38 = vshrl.u32 %v7627_v7, 16 }
  0x27   : > { %v948_v54 = vsel %vm888_vm2, %v943_v50, %v947_v51  ;;  %v951_v0 = vor.u32 %v949_v60, %v947_v51  ;;  %v963_v18 = vrot.slane %v961_v11, 1  ;;  %v7577_v60 = vld [vmem:[%s8017_s8 + $0x50] sm:$0xff] }
  0x28   : > { %v1410_v20 = vrot.slane %v1408_v15, 1 }
  0x29   : > { %v956_v4 = vsel %vm888_vm2, %v951_v0, %v955_v1 }
  0x2b   : > { %6438 = vmatmul.msk.bf16.gmra.mxu2 %vm380_vm1, %v908_v48  ;;  %6559 = vmatmul.msk.bf16.gmra.mxu3 %vm380_vm1, %v1355_v49  ;;  %v1388_v48 = vshrl.u32 %v7624_v29, 16  ;;  %v1392_v49 = vshll.u32 %v7625_v43, 16 }
  0x34   : > { %6268 = vmatmul.msk.bf16.gmra.mxu0 %vm380_vm1, %v7586_v52  ;;  %6353 = vmatmul.msk.bf16.gmra.mxu1 %vm380_vm1, %v7569_v53  ;;  %v1390_v52 = vor.u32 %v1388_v48, %v1386_v39  ;;  %v1394_v53 = vrot.slane %v1392_v49, 1 }
  0x36   : > { %v1395_v55 = vsel %vm888_vm2, %v1390_v52, %v1394_v53 }
  0x3b   : > { %6439 = vmatmul.msk.bf16.gmra.mxu2 %vm380_vm1, %v916_v62  ;;  %6560 = vmatmul.msk.bf16.gmra.mxu3 %vm380_vm1, %v1363_v63  ;;  %v1396_v62 = vshrl.u32 %v7625_v43, 16  ;;  %v1400_v63 = vshll.u32 %v7626_v57, 16  ;;  %v1414_v43 = vor.u32 %v1412_v38, %v1410_v20 }
  0x44   : > { %6269 = vmatmul.msk.bf16.gmra.mxu0 %vm380_vm1, %v7587_v2  ;;  %6354 = vmatmul.msk.bf16.gmra.mxu1 %vm380_vm1, %v7570_v3  ;;  %v1398_v2 = vor.u32 %v1396_v62, %v1394_v53  ;;  %v1402_v3 = vrot.slane %v1400_v63, 1 }
  0x46   : > { %v1403_v5 = vsel %vm888_vm2, %v1398_v2, %v1402_v3  ;;  %v1406_v19 = vor.u32 %v1404_v14, %v1402_v3 }
  0x48   : > { %v1411_v24 = vsel %vm888_vm2, %v1406_v19, %v1410_v20  ;;  %v7630_v19 = vld [vmem:[%s8017_s8 + $0xf4] sm:$0xff] }
  0x4b   : > { %6440 = vmatmul.msk.bf16.gmra.mxu2 %vm380_vm1, %v924_v12  ;;  %6561 = vmatmul.msk.bf16.gmra.mxu3 %vm380_vm1, %v1371_v13 }
  0x54   : > { %6270 = vmatmul.msk.bf16.gmra.mxu0 %vm380_vm1, %v7588_v16  ;;  %6355 = vmatmul.msk.bf16.gmra.mxu1 %vm380_vm1, %v7571_v17  ;;  %v959_v17 = vor.u32 %v957_v10, %v955_v1 }
  0x56   : > { %v964_v21 = vsel %vm888_vm2, %v959_v17, %v963_v18 }
  0x5b   : > { %6441 = vmatmul.msk.bf16.gmra.mxu2 %vm380_vm1, %v932_v26  ;;  %6562 = vmatmul.msk.bf16.gmra.mxu3 %vm380_vm1, %v1379_v27  ;;  %v7611_v26 = vld [vmem:[%s8017_s8 + $0x50] sm:$0xff]  ;;  %v7628_v27 = vld [vmem:[%s8017_s8 + $0xe4] sm:$0xff] }
  0x5c   : > { %v969_v34 = vshll.u32 %v7611_v26, 16  ;;  %v1416_v39 = vshll.u32 %v7628_v27, 16  ;;  %v973_v61 = vshrl.u32 %v7611_v26, 16  ;;  %v1420_v2 = vshrl.u32 %v7628_v27, 16 }
  0x5e   : > { %v971_v42 = vrot.slane %v969_v34, 1 }
  0x64   : > { %6271 = vmatmul.msk.bf16.gmra.mxu0 %vm380_vm1, %v7589_v30  ;;  %6356 = vmatmul.msk.bf16.gmra.mxu1 %vm380_vm1, %v7572_v31  ;;  %v7593_v31 = vld [vmem:[%s8017_s8 + $0xdc] sm:$0xff] }
  0x6b   : > { %6442 = vmatmul.msk.bf16.gmra.mxu2 %vm380_vm1, %v940_v40  ;;  %6563 = vmatmul.msk.bf16.gmra.mxu3 %vm380_vm1, %v1387_v41  ;;  %v967_v41 = vor.u32 %v965_v33, %v963_v18  ;;  %v7613_v18 = vld [vmem:[%s8017_s8 + $0x60] sm:$0xff] }
  0x6c   : > { %v985_v26 = vshll.u32 %v7613_v18, 16 }
  0x6d   : > { %v972_v48 = vsel %vm888_vm2, %v967_v41, %v971_v42 }
  0x6e   : > { %v987_v34 = vrot.slane %v985_v26, 1 }
  0x74   : > { %6272 = vmatmul.msk.bf16.gmra.mxu0 %vm380_vm1, %v7590_v44  ;;  %6357 = vmatmul.msk.bf16.gmra.mxu1 %vm380_vm1, %v7573_v45  ;;  %v1418_v44 = vrot.slane %v1416_v39, 1 }
  0x76   : > { %v1419_v52 = vsel %vm888_vm2, %v1414_v43, %v1418_v44  ;;  %v1422_v7 = vor.u32 %v1420_v2, %v1418_v44 }
  0x7b   : > { %6443 = vmatmul.msk.bf16.gmra.mxu2 %vm380_vm1, %v948_v54  ;;  %6564 = vmatmul.msk.bf16.gmra.mxu3 %vm380_vm1, %v1395_v55  ;;  %v7612_v54 = vld [vmem:[%s8017_s8 + $0x58] sm:$0xff]  ;;  %v7629_v55 = vld [vmem:[%s8017_s8 + $0xec] sm:$0xff] }
  0x7c   : > { %v977_v62 = vshll.u32 %v7612_v54, 16  ;;  %v1424_v3 = vshll.u32 %v7629_v55, 16 }
  0x7e   : > { %v979_v6 = vrot.slane %v977_v62, 1 }
  0x84   : > { %6273 = vmatmul.msk.bf16.gmra.mxu0 %vm380_vm1, %v7591_v58  ;;  %6358 = vmatmul.msk.bf16.gmra.mxu1 %vm380_vm1, %v7574_v59  ;;  %v7594_v59 = vld [vmem:[%s8017_s8 + $0xe4] sm:$0xff] }
  0x8b   : > { %6444 = vmatmul.msk.bf16.gmra.mxu2 %vm380_vm1, %v956_v4  ;;  %6565 = vmatmul.msk.bf16.gmra.mxu3 %vm380_vm1, %v1403_v5  ;;  %v975_v5 = vor.u32 %v973_v61, %v971_v42 }
  0x91   : > { %v445_v12 = vpop.f32.mrf.mxu0  ;;  %v678_v13 = vpop.f32.mrf.mxu1 }
  0x92   : > { %v679_v16 = vadd.f32 %v678_v13, %v445_v12  ;;  %v980_v12 = vsel %vm888_vm2, %v975_v5, %v979_v6 }
  0x94   : > { %6274 = vmatmul.msk.bf16.gmra.mxu0 %vm380_vm1, %v7592_v8  ;;  %6359 = vmatmul.msk.bf16.gmra.mxu1 %vm380_vm1, %v7575_v9  ;;  %v1426_v8 = vrot.slane %v1424_v3, 1 }
  0x99   : > { %v447_v22 = vpop.f32.mrf.mxu0  ;;  %v680_v23 = vpop.f32.mrf.mxu1 }
  0x9a   : > { %v681_v25 = vadd.f32 %v680_v23, %v447_v22  ;;  %v7595_v23 = vld [vmem:[%s8017_s8 + $0xec] sm:$0xff] }
  0x9b   : > { %6445 = vmatmul.msk.bf16.gmra.mxu2 %vm380_vm1, %v964_v21  ;;  %6566 = vmatmul.msk.bf16.gmra.mxu3 %vm380_vm1, %v1411_v24  ;;  %v7578_v24 = vld [vmem:[%s8017_s8 + $0x58] sm:$0xff] }
  0x9e   : > { %v1092_v28 = vpop.f32.mrf.mxu2  ;;  %v1539_v30 = vpop.f32.mrf.mxu3 }
  0x9f   : > { %v1177_v29 = vadd.f32 %v1092_v28, %v679_v16  ;;  %v1427_v16 = vsel %vm888_vm2, %v1422_v7, %v1426_v8 }
  0xa1   : > { %v8116_v35 = vadd.f32 %v1539_v30, %v1177_v29  ;;  %v450_v36 = vpop.f32.mrf.mxu0  ;;  %v683_v37 = vpop.f32.mrf.mxu1  ;;  %v1428_v30 = vshrl.u32 %v7629_v55, 16  ;;  %v989_v55 = vshrl.u32 %v7613_v18, 16 }
  0xa2   : > { %v684_v40 = vadd.f32 %v683_v37, %v450_v36 }
  0xa3   : > { %v1430_v36 = vor.u32 %v1428_v30, %v1426_v8 }
  0xa4   : > { %6275 = vmatmul.msk.bf16.gmra.mxu0 %vm380_vm1, %v7593_v31  ;;  %6360 = vmatmul.msk.bf16.gmra.mxu1 %vm380_vm1, %v7576_v32  ;;  %v1432_v31 = vshll.u32 %v7630_v19, 16 }
  0xa6   : > { %v1094_v45 = vpop.f32.mrf.mxu2  ;;  %v1541_v47 = vpop.f32.mrf.mxu3  ;;  %v1434_v37 = vrot.slane %v1432_v31, 1 }
  0xa7   : > { %v1178_v46 = vadd.f32 %v1094_v45, %v681_v25  ;;  %v981_v25 = vshrl.u32 %v7612_v54, 16  ;;  %v7579_v54 = vld [vmem:[%s8017_s8 + $0x60] sm:$0xff] }
  0xa8   : > { %v1435_v45 = vsel %vm888_vm2, %v1430_v36, %v1434_v37 }
  0xa9   : > { %v8121_v49 = vadd.f32 %v1541_v47, %v1178_v46  ;;  %v452_v50 = vpop.f32.mrf.mxu0  ;;  %v685_v51 = vpop.f32.mrf.mxu1  ;;  %v983_v33 = vor.u32 %v981_v25, %v979_v6  ;;  %v7614_v47 = vld [vmem:[%s8017_s8 + $0x68] sm:$0xff] }
  0xaa   : > { %v686_v53 = vadd.f32 %v685_v51, %v452_v50 }
  0xab   : > { %6446 = vmatmul.msk.bf16.gmra.mxu2 %vm380_vm1, %v972_v48  ;;  %6567 = vmatmul.msk.bf16.gmra.mxu3 %vm380_vm1, %v1419_v52  ;;  %v988_v41 = vsel %vm888_vm2, %v983_v33, %v987_v34  ;;  %v7631_v48 = vld [vmem:[%s8017_s8 + $0xfc] sm:$0xff] }
  0xac   : > { %v1440_v61 = vshll.u32 %v7631_v48, 16  ;;  %v1444_v26 = vshrl.u32 %v7631_v48, 16 }
  0xae   : > { %v1097_v56 = vpop.f32.mrf.mxu2  ;;  %v1544_v58 = vpop.f32.mrf.mxu3  ;;  %v1442_v3 = vrot.slane %v1440_v61, 1 }
  0xaf   : > { %v1179_v57 = vadd.f32 %v1097_v56, %v684_v40  ;;  %v993_v56 = vshll.u32 %v7614_v47, 16 }
  0xb1   : > { %v8130_v63 = vadd.f32 %v1544_v58, %v1179_v57  ;;  %v455_v0 = vpop.f32.mrf.mxu0  ;;  %v688_v1 = vpop.f32.mrf.mxu1 }
  0xb2   : > { %v689_v4 = vadd.f32 %v688_v1, %v455_v0  ;;  %v991_v0 = vor.u32 %v989_v55, %v987_v34  ;;  %v995_v1 = vrot.slane %v993_v56, 1 }
  0xb4   : > { %6276 = vmatmul.msk.bf16.gmra.mxu0 %vm380_vm1, %v7594_v59  ;;  %6361 = vmatmul.msk.bf16.gmra.mxu1 %vm380_vm1, %v7577_v60  ;;  %v1436_v60 = vshrl.u32 %v7630_v19, 16  ;;  %v996_v7 = vsel %vm888_vm2, %v991_v0, %v995_v1  ;;  %v7597_v19 = vld [vmem:[%s8017_s8 + $0xfc] sm:$0xff] }
  0xb6   : > { %v1099_v9 = vpop.f32.mrf.mxu2  ;;  %v1546_v11 = vpop.f32.mrf.mxu3  ;;  %v1438_v2 = vor.u32 %v1436_v60, %v1434_v37 }
  0xb7   : > { %v1180_v10 = vadd.f32 %v1099_v9, %v686_v53  ;;  %v7596_v53 = vld [vmem:[%s8017_s8 + $0xf4] sm:$0xff] }
  0xb9   : > { %v8135_v13 = vadd.f32 %v1546_v11, %v1180_v10  ;;  %v457_v14 = vpop.f32.mrf.mxu0  ;;  %v690_v15 = vpop.f32.mrf.mxu1  ;;  %v1443_v11 = vsel %vm888_vm2, %v1438_v2, %v1442_v3 }
  0xba   : > { %v691_v17 = vadd.f32 %v690_v15, %v457_v14  ;;  %v7615_v14 = vld [vmem:[%s8017_s8 + $0x70] sm:$0xff]  ;;  %v7632_v15 = vld [vmem:[%s8017_s8 + $0x104] sm:$0xff] }
  0xbb   : > { %6447 = vmatmul.msk.bf16.gmra.mxu2 %vm380_vm1, %v980_v12  ;;  %6568 = vmatmul.msk.bf16.gmra.mxu3 %vm380_vm1, %v1427_v16 }
  0xbe   : > { %v1102_v20 = vpop.f32.mrf.mxu2  ;;  %v1549_v22 = vpop.f32.mrf.mxu3 }
  0xbf   : > { %v1181_v21 = vadd.f32 %v1102_v20, %v689_v4  ;;  %v7580_v20 = vld [vmem:[%s8017_s8 + $0x68] sm:$0xff] }
  0xc1   : > { %v8144_v27 = vadd.f32 %v1549_v22, %v1181_v21  ;;  %v460_v28 = vpop.f32.mrf.mxu0  ;;  %v693_v29 = vpop.f32.mrf.mxu1  ;;  %v997_v21 = vshrl.u32 %v7614_v47, 16  ;;  %v1001_v22 = vshll.u32 %v7615_v14, 16 }
  0xc2   : > { %v694_v32 = vadd.f32 %v693_v29, %v460_v28  ;;  %v1448_v28 = vshll.u32 %v7632_v15, 16 }
  0xc3   : > { %v999_v30 = vor.u32 %v997_v21, %v995_v1  ;;  %v1003_v31 = vrot.slane %v1001_v22, 1 }
  0xc4   : > { %6277 = vmatmul.msk.bf16.gmra.mxu0 %vm380_vm1, %v7595_v23  ;;  %6362 = vmatmul.msk.bf16.gmra.mxu1 %vm380_vm1, %v7578_v24  ;;  %v1450_v33 = vrot.slane %v1448_v28, 1 }
  0xc6   : > { %v1104_v38 = vpop.f32.mrf.mxu2  ;;  %v1551_v40 = vpop.f32.mrf.mxu3 }
  0xc7   : > { %v1182_v39 = vadd.f32 %v1104_v38, %v691_v17  ;;  %v1004_v38 = vsel %vm888_vm2, %v999_v30, %v1003_v31 }
  0xc9   : > { %v8149_v42 = vadd.f32 %v1551_v40, %v1182_v39  ;;  %v462_v43 = vpop.f32.mrf.mxu0  ;;  %v695_v44 = vpop.f32.mrf.mxu1 }
  0xca   : > { %v696_v46 = vadd.f32 %v695_v44, %v462_v43 }
  0xcb   : > { %6448 = vmatmul.msk.bf16.gmra.mxu2 %vm380_vm1, %v988_v41  ;;  %6569 = vmatmul.msk.bf16.gmra.mxu3 %vm380_vm1, %v1435_v45  ;;  %v7616_v45 = vld [vmem:[%s8017_s8 + $0x78] sm:$0xff] }
  0xcc   : > { %v1013_v21 = vshrl.u32 %v7616_v45, 16 }
  0xce   : > { %v1107_v50 = vpop.f32.mrf.mxu2  ;;  %v1554_v52 = vpop.f32.mrf.mxu3 }
  0xcf   : > { %v1183_v51 = vadd.f32 %v1107_v50, %v694_v32  ;;  %v1446_v32 = vor.u32 %v1444_v26, %v1442_v3 }
  0xd1   : > { %v8158_v57 = vadd.f32 %v1554_v52, %v1183_v51  ;;  %v465_v58 = vpop.f32.mrf.mxu0  ;;  %v698_v59 = vpop.f32.mrf.mxu1  ;;  %v1451_v43 = vsel %vm888_vm2, %v1446_v32, %v1450_v33  ;;  %v7598_v51 = vld [vmem:[%s8017_s8 + $0x104] sm:$0xff]  ;;  %v7581_v52 = vld [vmem:[%s8017_s8 + $0x70] sm:$0xff] }
  0xd2   : > { %v699_v62 = vadd.f32 %v698_v59, %v465_v58  ;;  %v1452_v59 = vshrl.u32 %v7632_v15, 16  ;;  %v8200_v15 = vld [vmem:[%s8017_s8 + $0x114] sm:$0xff] }
  0xd4   : > { %6278 = vmatmul.msk.bf16.gmra.mxu0 %vm380_vm1, %v7596_v53  ;;  %6363 = vmatmul.msk.bf16.gmra.mxu1 %vm380_vm1, %v7579_v54  ;;  %v1005_v53 = vshrl.u32 %v7615_v14, 16  ;;  %v1009_v54 = vshll.u32 %v7616_v45, 16  ;;  %v1454_v1 = vor.u32 %v1452_v59, %v1450_v33  ;;  %v8197_v14 = vld [vmem:[%s8017_s8 + $0x80] sm:$0xff] }
  0xd5   : > { %v1017_v22 = vshll.u32 %v8197_v14, 16 }
  0xd6   : > { %v1109_v4 = vpop.f32.mrf.mxu2  ;;  %v1556_v6 = vpop.f32.mrf.mxu3  ;;  %v1011_v0 = vrot.slane %v1009_v54, 1  ;;  %v7057_v54 = vld [vmem:[%s9477_s1 + $0x20] sm:$0x7] }
  0xd7   : > { %v1184_v5 = vadd.f32 %v1109_v4, %v696_v46  ;;  %v7633_v46 = vld [vmem:[%s8017_s8 + $0x10c] sm:$0xff]  ;;  %v1019_v32 = vrot.slane %v1017_v22, 1 }
  0xd8   : > { %v1456_v60 = vshll.u32 %v7633_v46, 16  ;;  %v1460_v28 = vshrl.u32 %v7633_v46, 16 }
  0xd9   : > { %v8163_v8 = vadd.f32 %v1556_v6, %v1184_v5  ;;  %v467_v9 = vpop.f32.mrf.mxu0  ;;  %v700_v10 = vpop.f32.mrf.mxu1 }
  0xda   : > { %v701_v12 = vadd.f32 %v700_v10, %v467_v9  ;;  %v1458_v2 = vrot.slane %v1456_v60, 1  ;;  %v3477_v60 = vsel %vm432_vm0, %v7057_v54, 0 }
  0xdb   : > { %6449 = vmatmul.msk.bf16.gmra.mxu2 %vm380_vm1, %v996_v7  ;;  %6570 = vmatmul.msk.bf16.gmra.mxu3 %vm380_vm1, %v1443_v11 }
  0xdc   : > { %v1459_v11 = vsel %vm888_vm2, %v1454_v1, %v1458_v2  ;;  %v1462_v33 = vor.u32 %v1460_v28, %v1458_v2  ;;  %3486 = vmatpush.bf16.msra.mxu0 %v3477_v60  ;;  %v7600_v2 = vld [vmem:[%s8017_s8 + $0x114] sm:$0xff]  ;;  %v7669_v28 = vld [vmem:[%s8017_s8 + $0x128] sm:$0xff] }
  0xde   : > { %v1112_v16 = vpop.f32.mrf.mxu2  ;;  %v1559_v18 = vpop.f32.mrf.mxu3 }
  0xdf   : > { %v1185_v17 = vadd.f32 %v1112_v16, %v699_v62  ;;  %v1007_v62 = vor.u32 %v1005_v53, %v1003_v31  ;;  %v1015_v31 = vor.u32 %v1013_v21, %v1011_v0  ;;  %v7256_v53 = vld [vmem:[%s9477_s1 + $0x28] sm:$0x7] }
  0xe0   : > { %v4148_v59 = vsel %vm432_vm0, %v7256_v53, 0 }
  0xe1   : > { %v8172_v23 = vadd.f32 %v1559_v18, %v1185_v17  ;;  %v470_v24 = vpop.f32.mrf.mxu0  ;;  %v703_v25 = vpop.f32.mrf.mxu1  ;;  %v1012_v6 = vsel %vm888_vm2, %v1007_v62, %v1011_v0  ;;  %4157 = vmatpush.bf16.msra.mxu2 %v4148_v59 }
  0xe2   : > { %v704_v29 = vadd.f32 %v703_v25, %v470_v24 }
  0xe4   : > { %6279 = vmatmul.msk.bf16.gmra.mxu0 %vm380_vm1, %v7597_v19  ;;  %6364 = vmatmul.msk.bf16.gmra.mxu1 %vm380_vm1, %v7580_v20  ;;  %v7599_v19 = vld [vmem:[%s8017_s8 + $0x10c] sm:$0xff]  ;;  %v7582_v20 = vld [vmem:[%s8017_s8 + $0x78] sm:$0xff] }
  0xe6   : > { %v1114_v34 = vpop.f32.mrf.mxu2  ;;  %v1561_v37 = vpop.f32.mrf.mxu3 }
  0xe7   : > { %v1186_v36 = vadd.f32 %v1114_v34, %v701_v12 }
  0xe9   : > { %v8177_v39 = vadd.f32 %v1561_v37, %v1186_v36  ;;  %v472_v40 = vpop.f32.mrf.mxu0  ;;  %v705_v41 = vpop.f32.mrf.mxu1  ;;  %v797_v36 = vld [vmem:[%s8017_s8 + $0x88] sm:$0x1] }
  0xea   : > { %v706_v44 = vadd.f32 %v705_v41, %v472_v40 }
  0xeb   : > { %6450 = vmatmul.msk.bf16.gmra.mxu2 %vm380_vm1, %v1004_v38  ;;  %6571 = vmatmul.msk.bf16.gmra.mxu3 %vm380_vm1, %v1451_v43  ;;  %v6488_v38 = vld [vmem:[%s8017_s8 + $0x11c] sm:$0x1]  ;;  %v1020_v43 = vsel %vm888_vm2, %v1015_v31, %v1019_v32 }
  0xee   : > { %v1117_v47 = vpop.f32.mrf.mxu2  ;;  %v1564_v50 = vpop.f32.mrf.mxu3 }
  0xef   : > { %v1187_v48 = vadd.f32 %v1117_v47, %v704_v29  ;;  %v1464_v29 = vshll.u32 %v8200_v15, 16 }
  0xf1   : > { %v8186_v55 = vadd.f32 %v1564_v50, %v1187_v48  ;;  %v475_v56 = vpop.f32.mrf.mxu0  ;;  %v708_v58 = vpop.f32.mrf.mxu1  ;;  %v1466_v34 = vrot.slane %v1464_v29, 1  ;;  %v1317_v50 = vunpack.c.l.b16 %v6488_v38  ;;  %v7687_v38 = vld [vmem:[%s8017_s8 + $0x1c4] sm:$0xff] }
  0xf2   : > { %v709_v61 = vadd.f32 %v708_v58, %v475_v56  ;;  %v7275_v56 = vld [vmem:[%s9477_s1 + $0x2c] sm:$0x7]  ;;  %v2846_v59 = vshll.u32 %v7687_v38, 16 }
  0xf3   : > { %v1467_v48 = vsel %vm888_vm2, %v1462_v33, %v1466_v34  ;;  %v1335_v58 = vpack.c.b16 %v1317_v50, %v1317_v50 }
  0xf4   : > { %6280 = vmatmul.msk.bf16.gmra.mxu0 %vm380_vm1, %v7598_v51  ;;  %6365 = vmatmul.msk.bf16.gmra.mxu1 %vm380_vm1, %v7581_v52 }
  0xf6   : > { %v1119_v3 = vpop.f32.mrf.mxu2  ;;  %v1566_v5 = vpop.f32.mrf.mxu3 }
  0xf7   : > { %v1188_v4 = vadd.f32 %v1119_v3, %v706_v44  ;;  %v869_v44 = vunpack.c.l.b16 %v797_v36  ;;  %v7583_v3 = vld [vmem:[%s8017_s8 + $0x80] sm:$0xff] }
  0xf9   : > { %v8191_v7 = vadd.f32 %v1566_v5, %v1188_v4  ;;  %v477_v9 = vpop.f32.mrf.mxu0  ;;  %v710_v10 = vpop.f32.mrf.mxu1  ;;  %v887_v52 = vpack.c.b16 %v869_v44, %v869_v44  ;;  %v1021_v4 = vshrl.u32 %v8197_v14, 16 }
  0xfa   : > { %v711_v12 = vadd.f32 %v710_v10, %v477_v9 }
  0xfb   : > { %6451 = vmatmul.msk.bf16.gmra.mxu2 %vm380_vm1, %v1012_v6  ;;  %6572 = vmatmul.msk.bf16.gmra.mxu3 %vm380_vm1, %v1459_v11  ;;  %v1025_v5 = vshll.u32 %v887_v52, 16  ;;  %v1468_v11 = vshrl.u32 %v8200_v15, 16  ;;  %v1023_v14 = vor.u32 %v1021_v4, %v1019_v32  ;;  %v7686_v32 = vld [vmem:[%s8017_s8 + $0x1bc] sm:$0xff] }
  0xfe   : > { %v1122_v16 = vpop.f32.mrf.mxu2  ;;  %v1569_v18 = vpop.f32.mrf.mxu3 }
  0xff   : > { %v1189_v17 = vadd.f32 %v1122_v16, %v709_v61  ;;  %v4371_v61 = vsel %vm432_vm0, %v7275_v56, 0  ;;  %v7174_v16 = vld [vmem:[%s9477_s1 + $0x24] sm:$0x7]  ;;  %v2839_v56 = vshrl.u32 %v7686_v32, 16 }
 0x100   : > { %4380 = vmatpush.bf16.msra.mxu3 %v4371_v61 }
 0x101   : > { %v8205_v24 = vadd.f32 %v1569_v18, %v1189_v17  ;;  %v480_v25 = vpop.f32.mrf.mxu0  ;;  %v713_v26 = vpop.f32.mrf.mxu1  ;;  %v3924_v18 = vsel %vm432_vm0, %v7174_v16, 0 }
 0x102   : > { %v714_v30 = vadd.f32 %v713_v26, %v480_v25  ;;  %3933 = vmatpush.bf16.msra.mxu1 %v3924_v18  ;;  %v7688_v18 = vld [vmem:[%s8017_s8 + $0x1cc] sm:$0xff] }
 0x104   : > { %6281 = vmatmul.msk.bf16.gmra.mxu0 %vm380_vm1, %v7599_v19  ;;  %6366 = vmatmul.msk.bf16.gmra.mxu1 %vm380_vm1, %v7582_v20  ;;  %v1027_v19 = vrot.slane %v1025_v5, 1  ;;  %v1470_v20 = vor.u32 %v1468_v11, %v1466_v34  ;;  %v7670_v34 = vld [vmem:[%s8017_s8 + $0x130] sm:$0xff] }
 0x106   : > { %v1124_v37 = vpop.f32.mrf.mxu2  ;;  %v1571_v41 = vpop.f32.mrf.mxu3  ;;  %v1028_v26 = vsel %vm888_vm2, %v1023_v14, %v1027_v19 }
 0x107   : > { %v1190_v40 = vadd.f32 %v1124_v37, %v711_v12  ;;  %v1472_v12 = vshll.u32 %v1335_v58, 16  ;;  %v2394_v37 = vshll.u32 %v7669_v28, 16 }
 0x109   : > { %v8213_v45 = vadd.f32 %v1571_v41, %v1190_v40  ;;  %v482_v46 = vpop.f32.mrf.mxu0  ;;  %v715_v47 = vpop.f32.mrf.mxu1  ;;  %v1474_v15 = vrot.slane %v1472_v12, 1  ;;  %v2841_v40 = vshll.u32 %v7686_v32, 16  ;;  %v2396_v50 = vrot.slane %v2394_v37, 1 }
 0x10a   : > { %v716_v51 = vadd.f32 %v715_v47, %v482_v46  ;;  %v7635_v46 = vld [vmem:[%s8017_s8 + $0x128] sm:$0xff]  ;;  %v7652_v47 = vld [vmem:[%s8017_s8 + $0x1bc] sm:$0xff] }
 0x10b   : > { %6452 = vmatmul.msk.bf16.gmra.mxu2 %vm380_vm1, %v1020_v43  ;;  %6573 = vmatmul.msk.bf16.gmra.mxu3 %vm380_vm1, %v1467_v48  ;;  %v1475_v33 = vsel %vm888_vm2, %v1470_v20, %v1474_v15  ;;  %v2392_v48 = vshrl.u32 %v7669_v28, 16  ;;  %v2843_v58 = vrot.slane %v2841_v40, 1  ;;  %v7636_v15 = vld [vmem:[%s8017_s8 + $0x130] sm:$0xff] }
 0x10d   : > { %v2397_v61 = vor.u32 %v2396_v50, %v2392_v48 }
 0x10e   : > { %v1127_v62 = vpop.f32.mrf.mxu2  ;;  %v1574_v1 = vpop.f32.mrf.mxu3 }
 0x10f   : > { %v1191_v0 = vadd.f32 %v1127_v62, %v714_v30 }
 0x111   : > { %v8233_v6 = vadd.f32 %v1574_v1, %v1191_v0  ;;  %v485_v9 = vpop.f32.mrf.mxu0  ;;  %v718_v10 = vpop.f32.mrf.mxu1  ;;  %v2844_v0 = vor.u32 %v2843_v58, %v2839_v56  ;;  %v2848_v1 = vrot.slane %v2846_v59, 1 }
 0x112   : > { %v719_v17 = vadd.f32 %v718_v10, %v485_v9 }
 0x113   : > { %v2849_v12 = vsel %vm888_vm2, %v2844_v0, %v2848_v1 }
 0x114   : > { %6282 = vmatmul.msk.bf16.gmra.mxu0 %vm380_vm1, %v7600_v2  ;;  %6367 = vmatmul.msk.bf16.gmra.mxu1 %vm380_vm1, %v7583_v3 }
 0x116   : > { %v1129_v21 = vpop.f32.mrf.mxu2  ;;  %v1576_v25 = vpop.f32.mrf.mxu3 }
 0x117   : > { %v1192_v22 = vadd.f32 %v1129_v21, %v716_v51  ;;  %v2399_v51 = vshll.u32 %v7670_v34, 16  ;;  %v7653_v21 = vld [vmem:[%s8017_s8 + $0x1c4] sm:$0xff] }
 0x119   : > { %v8244_v29 = vadd.f32 %v1576_v25, %v1192_v22  ;;  %v487_v30 = vpop.f32.mrf.mxu0  ;;  %v720_v31 = vpop.f32.mrf.mxu1  ;;  %v2401_v62 = vrot.slane %v2399_v51, 1  ;;  %v2403_v22 = vshrl.u32 %v7670_v34, 16 }
 0x11a   : > { %v721_v36 = vadd.f32 %v720_v31, %v487_v30  ;;  %v2850_v31 = vshrl.u32 %v7687_v38, 16 }
 0x11b   : > { %6453 = vmatmul.msk.bf16.gmra.mxu2 %vm380_vm1, %v1028_v26  ;;  %6574 = vmatmul.msk.bf16.gmra.mxu3 %vm380_vm1, %v1475_v33  ;;  %v2402_v5 = vsel %vm888_vm2, %v2397_v61, %v2401_v62  ;;  %v2854_v33 = vshll.u32 %v7688_v18, 16  ;;  %v7654_v61 = vld [vmem:[%s8017_s8 + $0x1cc] sm:$0xff] }
 0x11c   : > { %v2852_v40 = vor.u32 %v2850_v31, %v2848_v1  ;;  %v7690_v31 = vld [vmem:[%s8017_s8 + $0x1dc] sm:$0xff] }
 0x11e   : > { %v1132_v41 = vpop.f32.mrf.mxu2  ;;  %v1579_v44 = vpop.f32.mrf.mxu3 }
 0x11f   : > { %v1193_v43 = vadd.f32 %v1132_v41, %v719_v17  ;;  %v7671_v17 = vld [vmem:[%s8017_s8 + $0x138] sm:$0xff]  ;;  %v2856_v41 = vrot.slane %v2854_v33, 1 }
 0x120   : > { %v2407_v25 = vshll.u32 %v7671_v17, 16 }
 0x121   : > { %v8254_v52 = vadd.f32 %v1579_v44, %v1193_v43  ;;  %v490_v53 = vpop.f32.mrf.mxu0  ;;  %v723_v54 = vpop.f32.mrf.mxu1  ;;  %v2857_v50 = vsel %vm888_vm2, %v2852_v40, %v2856_v41  ;;  %v7655_v40 = vld [vmem:[%s8017_s8 + $0x1d4] sm:$0xff] }
 0x122   : > { %v724_v60 = vadd.f32 %v723_v54, %v490_v53  ;;  %v2409_v37 = vrot.slane %v2407_v25, 1  ;;  %v7672_v53 = vld [vmem:[%s8017_s8 + $0x140] sm:$0xff]  ;;  %v7689_v54 = vld [vmem:[%s8017_s8 + $0x1d4] sm:$0xff] }
 0x123   : > { %v2415_v0 = vshll.u32 %v7672_v53, 16 }
 0x124   : > { %6678 = vmatmul.msk.bf16.vlgmr.msrb.gmra.mxu0 %vm380_vm1, %v7635_v46  ;;  %6798 = vmatmul.msk.bf16.vlgmr.msrb.gmra.mxu1 %vm380_vm1, %v7652_v47 }
 0x126   : > { %v1134_v2 = vpop.f32.mrf.mxu2  ;;  %v1581_v4 = vpop.f32.mrf.mxu3 }
 0x127   : > { %v1194_v3 = vadd.f32 %v1134_v2, %v721_v36  ;;  %v2405_v36 = vor.u32 %v2403_v22, %v2401_v62  ;;  %v2411_v62 = vshrl.u32 %v7671_v17, 16 }
 0x129   : > { %v8259_v9 = vadd.f32 %v1581_v4, %v1194_v3  ;;  %v492_v10 = vpop.f32.mrf.mxu0  ;;  %v725_v11 = vpop.f32.mrf.mxu1  ;;  %v2410_v46 = vsel %vm888_vm2, %v2405_v36, %v2409_v37  ;;  %v2858_v4 = vshrl.u32 %v7688_v18, 16 }
 0x12a   : > { %v726_v16 = vadd.f32 %v725_v11, %v492_v10  ;;  %v2413_v11 = vor.u32 %v2411_v62, %v2409_v37  ;;  %v7638_v37 = vld [vmem:[%s8017_s8 + $0x140] sm:$0xff] }
 0x12b   : > { %6919 = vmatmul.msk.bf16.vlgmr.msrb.gmra.mxu2 %vm380_vm1, %v2402_v5  ;;  %7040 = vmatmul.msk.bf16.vlgmr.msrb.gmra.mxu3 %vm380_vm1, %v2849_v12  ;;  %v2862_v5 = vshll.u32 %v7689_v54, 16  ;;  %v2417_v12 = vrot.slane %v2415_v0, 1 }
 0x12e   : > { %v1137_v14 = vpop.f32.mrf.mxu2  ;;  %v1584_v20 = vpop.f32.mrf.mxu3 }
 0x12f   : > { %v1195_v19 = vadd.f32 %v1137_v14, %v724_v60  ;;  %v7637_v60 = vld [vmem:[%s8017_s8 + $0x138] sm:$0xff]  ;;  %v2864_v14 = vrot.slane %v2862_v5, 1  ;;  %v7674_v5 = vld [vmem:[%s8017_s8 + $0x150] sm:$0xff] }
 0x131   : > { %v8268_v26 = vadd.f32 %v1584_v20, %v1195_v19  ;;  %v495_v28 = vpop.f32.mrf.mxu0  ;;  %v728_v30 = vpop.f32.mrf.mxu1 }
 0x132   : > { %v729_v32 = vadd.f32 %v728_v30, %v495_v28  ;;  %v7673_v30 = vld [vmem:[%s8017_s8 + $0x148] sm:$0xff] }
 0x134   : > { %6679 = vmatmul.msk.bf16.gmra.mxu0 %vm380_vm1, %v7636_v15  ;;  %6799 = vmatmul.msk.bf16.gmra.mxu1 %vm380_vm1, %v7653_v21  ;;  %v2418_v15 = vsel %vm888_vm2, %v2413_v11, %v2417_v12 }
 0x136   : > { %v1139_v43 = vpop.f32.mrf.mxu2  ;;  %v1586_v44 = vpop.f32.mrf.mxu3 }
 0x137   : > { %v1196_v34 = vadd.f32 %v1139_v43, %v726_v16  ;;  %v2860_v16 = vor.u32 %v2858_v4, %v2856_v41  ;;  %v2419_v41 = vshrl.u32 %v7672_v53, 16  ;;  %v2423_v43 = vshll.u32 %v7673_v30, 16 }
 0x139   : > { %v8273_v38 = vadd.f32 %v1586_v44, %v1196_v34  ;;  %v497_v47 = vpop.f32.mrf.mxu0  ;;  %v730_v48 = vpop.f32.mrf.mxu1  ;;  %v2865_v25 = vsel %vm888_vm2, %v2860_v16, %v2864_v14 }
 0x13a   : > { %v731_v51 = vadd.f32 %v730_v48, %v497_v47  ;;  %v2866_v47 = vshrl.u32 %v7689_v54, 16  ;;  %v2870_v48 = vshll.u32 %v7690_v31, 16 }
 0x13b   : > { %6920 = vmatmul.msk.bf16.gmra.mxu2 %vm380_vm1, %v2410_v46  ;;  %7041 = vmatmul.msk.bf16.gmra.mxu3 %vm380_vm1, %v2857_v50 }
 0x13e   : > { %v1142_v56 = vpop.f32.mrf.mxu2  ;;  %v1589_v59 = vpop.f32.mrf.mxu3 }
 0x13f   : > { %v1197_v58 = vadd.f32 %v1142_v56, %v729_v32  ;;  %v2425_v56 = vrot.slane %v2423_v43, 1 }
 0x141   : > { %v8282_v1 = vadd.f32 %v1589_v59, %v1197_v58  ;;  %v500_v2 = vpop.f32.mrf.mxu0  ;;  %v733_v3 = vpop.f32.mrf.mxu1  ;;  %v2868_v58 = vor.u32 %v2866_v47, %v2864_v14  ;;  %v2872_v59 = vrot.slane %v2870_v48, 1  ;;  %v7639_v14 = vld [vmem:[%s8017_s8 + $0x148] sm:$0xff] }
 0x142   : > { %v734_v10 = vadd.f32 %v733_v3, %v500_v2 }
 0x143   : > { %v2873_v3 = vsel %vm888_vm2, %v2868_v58, %v2872_v59 }
 0x144   : > { %6680 = vmatmul.msk.bf16.gmra.mxu0 %vm380_vm1, %v7637_v60  ;;  %6800 = vmatmul.msk.bf16.gmra.mxu1 %vm380_vm1, %v7654_v61 }
 0x146   : > { %v1144_v19 = vpop.f32.mrf.mxu2  ;;  %v1591_v20 = vpop.f32.mrf.mxu3 }
 0x147   : > { %v1198_v17 = vadd.f32 %v1144_v19, %v731_v51  ;;  %v2421_v51 = vor.u32 %v2419_v41, %v2417_v12  ;;  %v7656_v19 = vld [vmem:[%s8017_s8 + $0x1dc] sm:$0xff] }
 0x149   : > { %v8287_v18 = vadd.f32 %v1591_v20, %v1198_v17  ;;  %v502_v21 = vpop.f32.mrf.mxu0  ;;  %v735_v22 = vpop.f32.mrf.mxu1  ;;  %v2426_v62 = vsel %vm888_vm2, %v2421_v51, %v2425_v56  ;;  %v2427_v17 = vshrl.u32 %v7673_v30, 16  ;;  %v2431_v20 = vshll.u32 %v7674_v5, 16  ;;  %v7675_v51 = vld [vmem:[%s8017_s8 + $0x158] sm:$0xff] }
 0x14a   : > { %v736_v28 = vadd.f32 %v735_v22, %v502_v21 }
 0x14b   : > { %6921 = vmatmul.msk.bf16.gmra.mxu2 %vm380_vm1, %v2418_v15  ;;  %7042 = vmatmul.msk.bf16.gmra.mxu3 %vm380_vm1, %v2865_v25  ;;  %v2874_v25 = vshrl.u32 %v7690_v31, 16 }
 0x14e   : > { %v1147_v33 = vpop.f32.mrf.mxu2  ;;  %v1594_v36 = vpop.f32.mrf.mxu3 }
 0x14f   : > { %v1199_v32 = vadd.f32 %v1147_v33, %v734_v10  ;;  %v7691_v10 = vld [vmem:[%s8017_s8 + $0x1e4] sm:$0xff] }
 0x151   : > { %v8296_v34 = vadd.f32 %v1594_v36, %v1199_v32  ;;  %v505_v44 = vpop.f32.mrf.mxu0  ;;  %v738_v46 = vpop.f32.mrf.mxu1  ;;  %v2429_v32 = vor.u32 %v2427_v17, %v2425_v56  ;;  %v2433_v36 = vrot.slane %v2431_v20, 1  ;;  %v7692_v56 = vld [vmem:[%s8017_s8 + $0x1ec] sm:$0xff] }
 0x152   : > { %v739_v50 = vadd.f32 %v738_v46, %v505_v44 }
 0x153   : > { %v2434_v44 = vsel %vm888_vm2, %v2429_v32, %v2433_v36 }
 0x154   : > { %6681 = vmatmul.msk.bf16.gmra.mxu0 %vm380_vm1, %v7638_v37  ;;  %6801 = vmatmul.msk.bf16.gmra.mxu1 %vm380_vm1, %v7655_v40  ;;  %v2876_v37 = vor.u32 %v2874_v25, %v2872_v59 }
 0x156   : > { %v1149_v60 = vpop.f32.mrf.mxu2  ;;  %v1596_v61 = vpop.f32.mrf.mxu3 }
 0x157   : > { %v1200_v53 = vadd.f32 %v1149_v60, %v736_v28  ;;  %v2878_v28 = vshll.u32 %v7691_v10, 16 }
 0x159   : > { %v8301_v54 = vadd.f32 %v1596_v61, %v1200_v53  ;;  %v507_v0 = vpop.f32.mrf.mxu0  ;;  %v740_v2 = vpop.f32.mrf.mxu1  ;;  %v2880_v40 = vrot.slane %v2878_v28, 1  ;;  %v7640_v53 = vld [vmem:[%s8017_s8 + $0x150] sm:$0xff]  ;;  %v7657_v61 = vld [vmem:[%s8017_s8 + $0x1e4] sm:$0xff] }
 0x15a   : > { %v741_v4 = vadd.f32 %v740_v2, %v507_v0  ;;  %v2439_v0 = vshll.u32 %v7675_v51, 16 }
 0x15b   : > { %6922 = vmatmul.msk.bf16.gmra.mxu2 %vm380_vm1, %v2426_v62  ;;  %7043 = vmatmul.msk.bf16.gmra.mxu3 %vm380_vm1, %v2873_v3  ;;  %v2881_v48 = vsel %vm888_vm2, %v2876_v37, %v2880_v40  ;;  %v2435_v62 = vshrl.u32 %v7674_v5, 16 }
 0x15e   : > { %v1152_v11 = vpop.f32.mrf.mxu2  ;;  %v1599_v16 = vpop.f32.mrf.mxu3 }
 0x15f   : > { %v1201_v12 = vadd.f32 %v1152_v11, %v739_v50  ;;  %v2882_v11 = vshrl.u32 %v7691_v10, 16 }
 0x161   : > { %v8310_v15 = vadd.f32 %v1599_v16, %v1201_v12  ;;  %v510_v21 = vpop.f32.mrf.mxu0  ;;  %v743_v22 = vpop.f32.mrf.mxu1  ;;  %v2886_v12 = vshll.u32 %v7692_v56, 16  ;;  %v2884_v17 = vor.u32 %v2882_v11, %v2880_v40  ;;  %v7693_v40 = vld [vmem:[%s8017_s8 + $0x1f4] sm:$0xff] }
 0x162   : > { %v744_v33 = vadd.f32 %v743_v22, %v510_v21 }
 0x163   : > { %v2888_v20 = vrot.slane %v2886_v12, 1 }
 0x164   : > { %6682 = vmatmul.msk.bf16.gmra.mxu0 %vm380_vm1, %v7639_v14  ;;  %6802 = vmatmul.msk.bf16.gmra.mxu1 %vm380_vm1, %v7656_v19  ;;  %v2437_v14 = vor.u32 %v2435_v62, %v2433_v36  ;;  %v2441_v19 = vrot.slane %v2439_v0, 1  ;;  %v7676_v36 = vld [vmem:[%s8017_s8 + $0x160] sm:$0xff] }
 0x165   : > { %v2889_v32 = vsel %vm888_vm2, %v2884_v17, %v2888_v20 }
 0x166   : > { %v1154_v41 = vpop.f32.mrf.mxu2  ;;  %v1601_v43 = vpop.f32.mrf.mxu3  ;;  %v2442_v25 = vsel %vm888_vm2, %v2437_v14, %v2441_v19 }
 0x167   : > { %v1202_v30 = vadd.f32 %v1154_v41, %v741_v4 }
 0x169   : > { %v8315_v31 = vadd.f32 %v1601_v43, %v1202_v30  ;;  %v512_v46 = vpop.f32.mrf.mxu0  ;;  %v745_v47 = vpop.f32.mrf.mxu1 }
 0x16a   : > { %v746_v50 = vadd.f32 %v745_v47, %v512_v46  ;;  %v7658_v46 = vld [vmem:[%s8017_s8 + $0x1ec] sm:$0xff]  ;;  %v2443_v47 = vshrl.u32 %v7675_v51, 16 }
 0x16b   : > { %6923 = vmatmul.msk.bf16.gmra.mxu2 %vm380_vm1, %v2434_v44  ;;  %7044 = vmatmul.msk.bf16.gmra.mxu3 %vm380_vm1, %v2881_v48  ;;  %v7641_v44 = vld [vmem:[%s8017_s8 + $0x158] sm:$0xff]  ;;  %v2447_v48 = vshll.u32 %v7676_v36, 16 }
 0x16c   : > { %v2445_v62 = vor.u32 %v2443_v47, %v2441_v19  ;;  %v7677_v19 = vld [vmem:[%s8017_s8 + $0x168] sm:$0xff] }
 0x16d   : > { %v2449_v0 = vrot.slane %v2447_v48, 1 }
 0x16e   : > { %v1157_v58 = vpop.f32.mrf.mxu2  ;;  %v1604_v60 = vpop.f32.mrf.mxu3 }
 0x16f   : > { %v1203_v59 = vadd.f32 %v1157_v58, %v744_v33 }
 0x171   : > { %v8324_v2 = vadd.f32 %v1604_v60, %v1203_v59  ;;  %v515_v3 = vpop.f32.mrf.mxu0  ;;  %v748_v4 = vpop.f32.mrf.mxu1  ;;  %v2890_v60 = vshrl.u32 %v7692_v56, 16 }
 0x172   : > { %v749_v16 = vadd.f32 %v748_v4, %v515_v3 }
 0x173   : > { %v2892_v3 = vor.u32 %v2890_v60, %v2888_v20  ;;  %v7694_v20 = vld [vmem:[%s8017_s8 + $0x1fc] sm:$0xff] }
 0x174   : > { %6683 = vmatmul.msk.bf16.gmra.mxu0 %vm380_vm1, %v7640_v53  ;;  %6803 = vmatmul.msk.bf16.gmra.mxu1 %vm380_vm1, %v7657_v61  ;;  %v2894_v53 = vshll.u32 %v7693_v40, 16  ;;  %v2902_v47 = vshll.u32 %v7694_v20, 16 }
 0x176   : > { %v1159_v21 = vpop.f32.mrf.mxu2  ;;  %v1606_v22 = vpop.f32.mrf.mxu3  ;;  %v2896_v4 = vrot.slane %v2894_v53, 1  ;;  %v2904_v53 = vrot.slane %v2902_v47, 1 }
 0x177   : > { %v1204_v5 = vadd.f32 %v1159_v21, %v746_v50 }
 0x178   : > { %v2897_v21 = vsel %vm888_vm2, %v2892_v3, %v2896_v4 }
 0x179   : > { %v8329_v10 = vadd.f32 %v1606_v22, %v1204_v5  ;;  %v517_v28 = vpop.f32.mrf.mxu0  ;;  %v750_v33 = vpop.f32.mrf.mxu1 }
 0x17a   : > { %v751_v37 = vadd.f32 %v750_v33, %v517_v28  ;;  %v7642_v33 = vld [vmem:[%s8017_s8 + $0x160] sm:$0xff] }
 0x17b   : > { %6924 = vmatmul.msk.bf16.gmra.mxu2 %vm380_vm1, %v2442_v25  ;;  %7045 = vmatmul.msk.bf16.gmra.mxu3 %vm380_vm1, %v2889_v32  ;;  %v7659_v32 = vld [vmem:[%s8017_s8 + $0x1f4] sm:$0xff] }
 0x17e   : > { %v1162_v41 = vpop.f32.mrf.mxu2  ;;  %v1609_v43 = vpop.f32.mrf.mxu3 }
 0x17f   : > { %v1205_v30 = vadd.f32 %v1162_v41, %v749_v16  ;;  %v2450_v16 = vsel %vm888_vm2, %v2445_v62, %v2449_v0  ;;  %v2455_v41 = vshll.u32 %v7677_v19, 16 }
 0x181   : > { %v8338_v50 = vadd.f32 %v1609_v43, %v1205_v30  ;;  %v520_v58 = vpop.f32.mrf.mxu0  ;;  %v753_v59 = vpop.f32.mrf.mxu1 }
 0x182   : > { %v754_v61 = vadd.f32 %v753_v59, %v520_v58  ;;  %v2457_v59 = vrot.slane %v2455_v41, 1  ;;  %v2906_v41 = vshrl.u32 %v7694_v20, 16 }
 0x184   : > { %6684 = vmatmul.msk.bf16.gmra.mxu0 %vm380_vm1, %v7641_v44  ;;  %6804 = vmatmul.msk.bf16.gmra.mxu1 %vm380_vm1, %v7658_v46  ;;  %v2898_v46 = vshrl.u32 %v7693_v40, 16 }
 0x186   : > { %v1164_v11 = vpop.f32.mrf.mxu2  ;;  %v1611_v12 = vpop.f32.mrf.mxu3  ;;  %v2900_v60 = vor.u32 %v2898_v46, %v2896_v4  ;;  %v7695_v4 = vld [vmem:[%s8017_s8 + $0x204] sm:$0xff] }
 0x187   : > { %v1206_v51 = vadd.f32 %v1164_v11, %v751_v37  ;;  %v2451_v37 = vshrl.u32 %v7676_v36, 16 }
 0x189   : > { %v8343_v56 = vadd.f32 %v1611_v12, %v1206_v51  ;;  %v522_v14 = vpop.f32.mrf.mxu0  ;;  %v755_v17 = vpop.f32.mrf.mxu1  ;;  %v2453_v58 = vor.u32 %v2451_v37, %v2449_v0  ;;  %v2905_v12 = vsel %vm888_vm2, %v2900_v60, %v2904_v53  ;;  %v7678_v0 = vld [vmem:[%s8017_s8 + $0x170] sm:$0xff] }
 0x18a   : > { %v756_v5 = vadd.f32 %v755_v17, %v522_v14 }
 0x18b   : > { %6925 = vmatmul.msk.bf16.gmra.mxu2 %vm380_vm1, %v2450_v16  ;;  %7046 = vmatmul.msk.bf16.gmra.mxu3 %vm380_vm1, %v2897_v21  ;;  %v2458_v3 = vsel %vm888_vm2, %v2453_v58, %v2457_v59  ;;  %v2908_v58 = vor.u32 %v2906_v41, %v2904_v53  ;;  %v7679_v53 = vld [vmem:[%s8017_s8 + $0x178] sm:$0xff]  ;;  %v2914_v41 = vshrl.u32 %v7695_v4, 16 }
 0x18e   : > { %v1167_v22 = vpop.f32.mrf.mxu2  ;;  %v1614_v28 = vpop.f32.mrf.mxu3 }
 0x18f   : > { %v1207_v25 = vadd.f32 %v1167_v22, %v754_v61  ;;  %v7660_v22 = vld [vmem:[%s8017_s8 + $0x1fc] sm:$0xff] }
 0x191   : > { %v8352_v30 = vadd.f32 %v1614_v28, %v1207_v25  ;;  %v525_v43 = vpop.f32.mrf.mxu0  ;;  %v758_v44 = vpop.f32.mrf.mxu1  ;;  %v2459_v25 = vshrl.u32 %v7677_v19, 16  ;;  %v2463_v28 = vshll.u32 %v7678_v0, 16 }
 0x192   : > { %v759_v48 = vadd.f32 %v758_v44, %v525_v43  ;;  %v2910_v43 = vshll.u32 %v7695_v4, 16 }
 0x193   : > { %v2461_v47 = vor.u32 %v2459_v25, %v2457_v59  ;;  %v2471_v25 = vshll.u32 %v7679_v53, 16 }
 0x194   : > { %6685 = vmatmul.msk.bf16.gmra.mxu0 %vm380_vm1, %v7642_v33  ;;  %6805 = vmatmul.msk.bf16.gmra.mxu1 %vm380_vm1, %v7659_v32  ;;  %v2912_v19 = vrot.slane %v2910_v43, 1 }
 0x196   : > { %v1169_v61 = vpop.f32.mrf.mxu2  ;;  %v1616_v62 = vpop.f32.mrf.mxu3 }
 0x197   : > { %v1208_v36 = vadd.f32 %v1169_v61, %v756_v5  ;;  %v7643_v5 = vld [vmem:[%s8017_s8 + $0x168] sm:$0xff] }
 0x199   : > { %v8357_v40 = vadd.f32 %v1616_v62, %v1208_v36  ;;  %v527_v11 = vpop.f32.mrf.mxu0  ;;  %v760_v51 = vpop.f32.mrf.mxu1 }
 0x19a   : > { %v761_v16 = vadd.f32 %v760_v51, %v527_v11  ;;  %v2913_v11 = vsel %vm888_vm2, %v2908_v58, %v2912_v19  ;;  %v2916_v58 = vor.u32 %v2914_v41, %v2912_v19  ;;  %v7680_v19 = vld [vmem:[%s8017_s8 + $0x180] sm:$0xff] }
 0x19b   : > { %6926 = vmatmul.msk.bf16.gmra.mxu2 %vm380_vm1, %v2458_v3  ;;  %7047 = vmatmul.msk.bf16.gmra.mxu3 %vm380_vm1, %v2905_v12  ;;  %v7696_v12 = vld [vmem:[%s8017_s8 + $0x20c] sm:$0xff] }
 0x19c   : > { %v2922_v41 = vshrl.u32 %v7696_v12, 16 }
 0x19e   : > { %v1172_v14 = vpop.f32.mrf.mxu2  ;;  %v1619_v21 = vpop.f32.mrf.mxu3 }
 0x19f   : > { %v1209_v17 = vadd.f32 %v1172_v14, %v759_v48  ;;  %v2465_v48 = vrot.slane %v2463_v28, 1 }
 0x1a1   : > { %v8366_v33 = vadd.f32 %v1619_v21, %v1209_v17  ;;  %v1843_v32 = vpop.f32.mrf.mxu0  ;;  %v2147_v37 = vpop.f32.mrf.mxu1  ;;  %v2466_v20 = vsel %vm888_vm2, %v2461_v47, %v2465_v48  ;;  %v7644_v21 = vld [vmem:[%s8017_s8 + $0x170] sm:$0xff] }
 0x1a2   : > { %v1928_v44 = vadd.f32 %v1843_v32, %v8116_v35 }
 0x1a4   : > { %v2232_v46 = vadd.f32 %v2147_v37, %v1928_v44  ;;  %6686 = vmatmul.msk.bf16.gmra.mxu0 %vm380_vm1, %v7643_v5  ;;  %6806 = vmatmul.msk.bf16.gmra.mxu1 %vm380_vm1, %v7660_v22  ;;  %v7661_v5 = vld [vmem:[%s8017_s8 + $0x204] sm:$0xff]  ;;  %v2467_v22 = vshrl.u32 %v7678_v0, 16 }
 0x1a6   : > { %v1174_v60 = vpop.f32.mrf.mxu2  ;;  %v1621_v36 = vpop.f32.mrf.mxu3  ;;  %v2469_v47 = vor.u32 %v2467_v22, %v2465_v48  ;;  %v2479_v22 = vshll.u32 %v7680_v19, 16 }
 0x1a7   : > { %v1210_v61 = vadd.f32 %v1174_v60, %v761_v16 }
 0x1a9   : > { %v8372_v62 = vadd.f32 %v1621_v36, %v1210_v61  ;;  %v1845_v35 = vpop.f32.mrf.mxu0  ;;  %v2149_v3 = vpop.f32.mrf.mxu1 }
 0x1aa   : > { %v1929_v59 = vadd.f32 %v1845_v35, %v8121_v49  ;;  %v2918_v49 = vshll.u32 %v7696_v12, 16 }
 0x1ab   : > { %6927 = vmatmul.msk.bf16.gmra.mxu2 %vm380_vm1, %v2466_v20  ;;  %7048 = vmatmul.msk.bf16.gmra.mxu3 %vm380_vm1, %v2913_v11 }
 0x1ac   : > { %v2233_v51 = vadd.f32 %v2149_v3, %v1929_v59  ;;  %v2920_v0 = vrot.slane %v2918_v49, 1  ;;  %v7697_v59 = vld [vmem:[%s8017_s8 + $0x214] sm:$0xff] }
 0x1ae   : > { %v2594_v16 = vpop.f32.mrf.mxu2  ;;  %v3041_v17 = vpop.f32.mrf.mxu3  ;;  %v2921_v3 = vsel %vm888_vm2, %v2916_v58, %v2920_v0  ;;  %v2924_v58 = vor.u32 %v2922_v41, %v2920_v0  ;;  %v7681_v0 = vld [vmem:[%s8017_s8 + $0x188] sm:$0xff]  ;;  %v2930_v41 = vshrl.u32 %v7697_v59, 16 }
 0x1af   : > { %v2679_v14 = vadd.f32 %v2594_v16, %v2232_v46  ;;  %v2473_v46 = vrot.slane %v2471_v25, 1 }
 0x1b1   : > { %v8382_v28 = vadd.f32 %v3041_v17, %v2679_v14  ;;  %v1848_v32 = vpop.f32.mrf.mxu0  ;;  %v2152_v37 = vpop.f32.mrf.mxu1  ;;  %v2474_v4 = vsel %vm888_vm2, %v2469_v47, %v2473_v46  ;;  %v7645_v17 = vld [vmem:[%s8017_s8 + $0x178] sm:$0xff] }
 0x1b2   : > { %v1930_v43 = vadd.f32 %v1848_v32, %v8130_v63 }
 0x1b4   : > { %v2234_v44 = vadd.f32 %v2152_v37, %v1930_v43  ;;  %6687 = vmatmul.msk.bf16.gmra.mxu0 %vm380_vm1, %v7644_v21  ;;  %6807 = vmatmul.msk.bf16.gmra.mxu1 %vm380_vm1, %v7661_v5  ;;  %v7662_v21 = vld [vmem:[%s8017_s8 + $0x20c] sm:$0xff]  ;;  %v2475_v5 = vshrl.u32 %v7679_v53, 16 }
 0x1b6   : > { %v2596_v60 = vpop.f32.mrf.mxu2  ;;  %v3043_v36 = vpop.f32.mrf.mxu3  ;;  %v2477_v47 = vor.u32 %v2475_v5, %v2473_v46  ;;  %v2487_v5 = vshll.u32 %v7681_v0, 16 }
 0x1b7   : > { %v2680_v61 = vadd.f32 %v2596_v60, %v2233_v51 }
 0x1b9   : > { %v8388_v20 = vadd.f32 %v3043_v36, %v2680_v61  ;;  %v1850_v63 = vpop.f32.mrf.mxu0  ;;  %v2154_v35 = vpop.f32.mrf.mxu1 }
 0x1ba   : > { %v1931_v48 = vadd.f32 %v1850_v63, %v8135_v13  ;;  %v2926_v13 = vshll.u32 %v7697_v59, 16 }
 0x1bb   : > { %6928 = vmatmul.msk.bf16.gmra.mxu2 %vm380_vm1, %v2474_v4  ;;  %7049 = vmatmul.msk.bf16.gmra.mxu3 %vm380_vm1, %v2921_v3 }
 0x1bc   : > { %v2235_v11 = vadd.f32 %v2154_v35, %v1931_v48  ;;  %v2928_v53 = vrot.slane %v2926_v13, 1  ;;  %v7698_v48 = vld [vmem:[%s8017_s8 + $0x21c] sm:$0xff] }
 0x1be   : > { %v2599_v51 = vpop.f32.mrf.mxu2  ;;  %v3046_v14 = vpop.f32.mrf.mxu3  ;;  %v2929_v35 = vsel %vm888_vm2, %v2924_v58, %v2928_v53  ;;  %v2932_v58 = vor.u32 %v2930_v41, %v2928_v53  ;;  %v7682_v53 = vld [vmem:[%s8017_s8 + $0x190] sm:$0xff]  ;;  %v2938_v41 = vshrl.u32 %v7698_v48, 16 }
 0x1bf   : > { %v2681_v16 = vadd.f32 %v2599_v51, %v2234_v44  ;;  %v2481_v44 = vrot.slane %v2479_v22, 1 }
 0x1c1   : > { %v8398_v25 = vadd.f32 %v3046_v14, %v2681_v16  ;;  %v1853_v32 = vpop.f32.mrf.mxu0  ;;  %v2157_v37 = vpop.f32.mrf.mxu1  ;;  %v2482_v12 = vsel %vm888_vm2, %v2477_v47, %v2481_v44  ;;  %v7646_v14 = vld [vmem:[%s8017_s8 + $0x180] sm:$0xff] }
 0x1c2   : > { %v1932_v49 = vadd.f32 %v1853_v32, %v8144_v27 }
 0x1c4   : > { %v2236_v43 = vadd.f32 %v2157_v37, %v1932_v49  ;;  %6688 = vmatmul.msk.bf16.gmra.mxu0 %vm380_vm1, %v7645_v17  ;;  %6808 = vmatmul.msk.bf16.gmra.mxu1 %vm380_vm1, %v7662_v21  ;;  %v7663_v17 = vld [vmem:[%s8017_s8 + $0x214] sm:$0xff]  ;;  %v2483_v21 = vshrl.u32 %v7680_v19, 16 }
 0x1c6   : > { %v2601_v60 = vpop.f32.mrf.mxu2  ;;  %v3048_v36 = vpop.f32.mrf.mxu3  ;;  %v2485_v47 = vor.u32 %v2483_v21, %v2481_v44  ;;  %v2495_v21 = vshll.u32 %v7682_v53, 16 }
 0x1c7   : > { %v2682_v61 = vadd.f32 %v2601_v60, %v2235_v11 }
 0x1c9   : > { %v8404_v4 = vadd.f32 %v3048_v36, %v2682_v61  ;;  %v1855_v27 = vpop.f32.mrf.mxu0  ;;  %v2159_v63 = vpop.f32.mrf.mxu1 }
 0x1ca   : > { %v1933_v46 = vadd.f32 %v1855_v27, %v8149_v42  ;;  %v2934_v42 = vshll.u32 %v7698_v48, 16 }
 0x1cb   : > { %6929 = vmatmul.msk.bf16.gmra.mxu2 %vm380_vm1, %v2482_v12  ;;  %7050 = vmatmul.msk.bf16.gmra.mxu3 %vm380_vm1, %v2929_v35 }
 0x1cc   : > { %v2237_v3 = vadd.f32 %v2159_v63, %v1933_v46  ;;  %v2936_v19 = vrot.slane %v2934_v42, 1  ;;  %v7699_v46 = vld [vmem:[%s8017_s8 + $0x224] sm:$0xff] }
 0x1ce   : > { %v2604_v11 = vpop.f32.mrf.mxu2  ;;  %v3051_v16 = vpop.f32.mrf.mxu3  ;;  %v2937_v63 = vsel %vm888_vm2, %v2932_v58, %v2936_v19  ;;  %v2940_v58 = vor.u32 %v2938_v41, %v2936_v19  ;;  %v7683_v19 = vld [vmem:[%s8017_s8 + $0x198] sm:$0xff]  ;;  %v2946_v41 = vshrl.u32 %v7699_v46, 16 }
 0x1cf   : > { %v2683_v51 = vadd.f32 %v2604_v11, %v2236_v43  ;;  %v2489_v43 = vrot.slane %v2487_v5, 1 }
 0x1d1   : > { %v8414_v22 = vadd.f32 %v3051_v16, %v2683_v51  ;;  %v1858_v32 = vpop.f32.mrf.mxu0  ;;  %v2162_v37 = vpop.f32.mrf.mxu1  ;;  %v2490_v59 = vsel %vm888_vm2, %v2485_v47, %v2489_v43  ;;  %v7647_v16 = vld [vmem:[%s8017_s8 + $0x188] sm:$0xff] }
 0x1d2   : > { %v1934_v13 = vadd.f32 %v1858_v32, %v8158_v57 }
 0x1d4   : > { %v2238_v49 = vadd.f32 %v2162_v37, %v1934_v13  ;;  %6689 = vmatmul.msk.bf16.gmra.mxu0 %vm380_vm1, %v7646_v14  ;;  %6809 = vmatmul.msk.bf16.gmra.mxu1 %vm380_vm1, %v7663_v17  ;;  %v7664_v14 = vld [vmem:[%s8017_s8 + $0x21c] sm:$0xff]  ;;  %v2491_v17 = vshrl.u32 %v7681_v0, 16 }
 0x1d6   : > { %v2606_v60 = vpop.f32.mrf.mxu2  ;;  %v3053_v36 = vpop.f32.mrf.mxu3  ;;  %v2493_v47 = vor.u32 %v2491_v17, %v2489_v43  ;;  %v2503_v17 = vshll.u32 %v7683_v19, 16 }
 0x1d7   : > { %v2684_v61 = vadd.f32 %v2606_v60, %v2237_v3 }
 0x1d9   : > { %v8420_v12 = vadd.f32 %v3053_v36, %v2684_v61  ;;  %v1860_v57 = vpop.f32.mrf.mxu0  ;;  %v2164_v27 = vpop.f32.mrf.mxu1 }
 0x1da   : > { %v1935_v44 = vadd.f32 %v1860_v57, %v8163_v8  ;;  %v2942_v8 = vshll.u32 %v7699_v46, 16 }
 0x1db   : > { %6930 = vmatmul.msk.bf16.gmra.mxu2 %vm380_vm1, %v2490_v59  ;;  %7051 = vmatmul.msk.bf16.gmra.mxu3 %vm380_vm1, %v2937_v63 }
 0x1dc   : > { %v2239_v35 = vadd.f32 %v2164_v27, %v1935_v44  ;;  %v2944_v0 = vrot.slane %v2942_v8, 1  ;;  %v7700_v44 = vld [vmem:[%s8017_s8 + $0x22c] sm:$0xff] }
 0x1de   : > { %v2609_v3 = vpop.f32.mrf.mxu2  ;;  %v3056_v51 = vpop.f32.mrf.mxu3  ;;  %v2945_v27 = vsel %vm888_vm2, %v2940_v58, %v2944_v0  ;;  %v2948_v58 = vor.u32 %v2946_v41, %v2944_v0  ;;  %v7684_v0 = vld [vmem:[%s8017_s8 + $0x1a0] sm:$0xff]  ;;  %v2954_v41 = vshrl.u32 %v7700_v44, 16 }
 0x1df   : > { %v2685_v11 = vadd.f32 %v2609_v3, %v2238_v49  ;;  %v2497_v49 = vrot.slane %v2495_v21, 1 }
 0x1e1   : > { %v8430_v5 = vadd.f32 %v3056_v51, %v2685_v11  ;;  %v1863_v32 = vpop.f32.mrf.mxu0  ;;  %v2167_v37 = vpop.f32.mrf.mxu1  ;;  %v2498_v48 = vsel %vm888_vm2, %v2493_v47, %v2497_v49  ;;  %v7648_v51 = vld [vmem:[%s8017_s8 + $0x190] sm:$0xff] }
 0x1e2   : > { %v1936_v42 = vadd.f32 %v1863_v32, %v8172_v23 }
 0x1e4   : > { %v2240_v13 = vadd.f32 %v2167_v37, %v1936_v42  ;;  %6690 = vmatmul.msk.bf16.gmra.mxu0 %vm380_vm1, %v7647_v16  ;;  %6810 = vmatmul.msk.bf16.gmra.mxu1 %vm380_vm1, %v7664_v14  ;;  %v7665_v16 = vld [vmem:[%s8017_s8 + $0x224] sm:$0xff]  ;;  %v2499_v14 = vshrl.u32 %v7682_v53, 16 }
 0x1e6   : > { %v2611_v60 = vpop.f32.mrf.mxu2  ;;  %v3058_v36 = vpop.f32.mrf.mxu3  ;;  %v2501_v47 = vor.u32 %v2499_v14, %v2497_v49  ;;  %v2511_v14 = vshll.u32 %v7684_v0, 16 }
 0x1e7   : > { %v2686_v61 = vadd.f32 %v2611_v60, %v2239_v35 }
 0x1e9   : > { %v8436_v59 = vadd.f32 %v3058_v36, %v2686_v61  ;;  %v1865_v23 = vpop.f32.mrf.mxu0  ;;  %v2169_v57 = vpop.f32.mrf.mxu1 }
 0x1ea   : > { %v1937_v43 = vadd.f32 %v1865_v23, %v8177_v39  ;;  %v2950_v39 = vshll.u32 %v7700_v44, 16 }
 0x1eb   : > { %6931 = vmatmul.msk.bf16.gmra.mxu2 %vm380_vm1, %v2498_v48  ;;  %7052 = vmatmul.msk.bf16.gmra.mxu3 %vm380_vm1, %v2945_v27 }
 0x1ec   : > { %v2241_v63 = vadd.f32 %v2169_v57, %v1937_v43  ;;  %v2952_v53 = vrot.slane %v2950_v39, 1  ;;  %v7701_v43 = vld [vmem:[%s8017_s8 + $0x234] sm:$0xff] }
 0x1ee   : > { %v2614_v35 = vpop.f32.mrf.mxu2  ;;  %v3061_v11 = vpop.f32.mrf.mxu3  ;;  %v2953_v57 = vsel %vm888_vm2, %v2948_v58, %v2952_v53  ;;  %v2956_v58 = vor.u32 %v2954_v41, %v2952_v53  ;;  %v8475_v53 = vld [vmem:[%s8017_s8 + $0x1a8] sm:$0xff] }
 0x1ef   : > { %v2687_v3 = vadd.f32 %v2614_v35, %v2240_v13  ;;  %v2505_v13 = vrot.slane %v2503_v17, 1 }
 0x1f1   : > { %v8446_v21 = vadd.f32 %v3061_v11, %v2687_v3  ;;  %v1868_v32 = vpop.f32.mrf.mxu0  ;;  %v2172_v37 = vpop.f32.mrf.mxu1  ;;  %v2506_v46 = vsel %vm888_vm2, %v2501_v47, %v2505_v13  ;;  %v7649_v11 = vld [vmem:[%s8017_s8 + $0x198] sm:$0xff] }
 0x1f2   : > { %v1938_v8 = vadd.f32 %v1868_v32, %v8186_v55 }
 0x1f4   : > { %v2242_v42 = vadd.f32 %v2172_v37, %v1938_v8  ;;  %6691 = vmatmul.msk.bf16.gmra.mxu0 %vm380_vm1, %v7648_v51  ;;  %6811 = vmatmul.msk.bf16.gmra.mxu1 %vm380_vm1, %v7665_v16  ;;  %v7666_v51 = vld [vmem:[%s8017_s8 + $0x22c] sm:$0xff]  ;;  %v2507_v16 = vshrl.u32 %v7683_v19, 16 }
 0x1f6   : > { %v2616_v60 = vpop.f32.mrf.mxu2  ;;  %v3063_v36 = vpop.f32.mrf.mxu3  ;;  %v2509_v47 = vor.u32 %v2507_v16, %v2505_v13  ;;  %v2519_v16 = vshll.u32 %v8475_v53, 16 }
 0x1f7   : > { %v2688_v61 = vadd.f32 %v2616_v60, %v2241_v63 }
 0x1f9   : > { %v8452_v48 = vadd.f32 %v3063_v36, %v2688_v61  ;;  %v1870_v55 = vpop.f32.mrf.mxu0  ;;  %v2174_v23 = vpop.f32.mrf.mxu1 }
 0x1fa   : > { %v1939_v49 = vadd.f32 %v1870_v55, %v8191_v7  ;;  %v2958_v7 = vshll.u32 %v7701_v43, 16 }
 0x1fb   : > { %6932 = vmatmul.msk.bf16.gmra.mxu2 %vm380_vm1, %v2506_v46  ;;  %7053 = vmatmul.msk.bf16.gmra.mxu3 %vm380_vm1, %v2953_v57 }
 0x1fc   : > { %v2243_v27 = vadd.f32 %v2174_v23, %v1939_v49  ;;  %v2960_v19 = vrot.slane %v2958_v7, 1  ;;  %v8478_v49 = vld [vmem:[%s8017_s8 + $0x23c] sm:$0xff] }
 0x1fd   : > { %v2966_v41 = vshll.u32 %v8478_v49, 16 }
 0x1fe   : > { %v2619_v63 = vpop.f32.mrf.mxu2  ;;  %v3066_v3 = vpop.f32.mrf.mxu3  ;;  %v2961_v23 = vsel %vm888_vm2, %v2956_v58, %v2960_v19 }
 0x1ff   : > { %v2689_v35 = vadd.f32 %v2619_v63, %v2242_v42  ;;  %v2513_v42 = vrot.slane %v2511_v14, 1 }
 0x201   : > { %v8462_v17 = vadd.f32 %v3066_v3, %v2689_v35  ;;  %v1873_v32 = vpop.f32.mrf.mxu0  ;;  %v2177_v37 = vpop.f32.mrf.mxu1  ;;  %v2514_v44 = vsel %vm888_vm2, %v2509_v47, %v2513_v42  ;;  %v7650_v3 = vld [vmem:[%s8017_s8 + $0x1a0] sm:$0xff]  ;;  %v6849_v47 = vld [vmem:[%s8017_s8 + $0x1b0] sm:$0x1] }
 0x202   : > { %v1940_v39 = vadd.f32 %v1873_v32, %v8205_v24 }
 0x204   : > { %v2244_v8 = vadd.f32 %v2177_v37, %v1940_v39  ;;  %6692 = vmatmul.msk.bf16.gmra.mxu0 %vm380_vm1, %v7649_v11  ;;  %6812 = vmatmul.msk.bf16.gmra.mxu1 %vm380_vm1, %v7666_v51  ;;  %v7667_v11 = vld [vmem:[%s8017_s8 + $0x234] sm:$0xff]  ;;  %v2515_v51 = vshrl.u32 %v7684_v0, 16  ;;  %v2962_v37 = vshrl.u32 %v7701_v43, 16  ;;  %v2521_v0 = vrot.slane %v2519_v16, 1  ;;  %v7328_v16 = vld [vmem:[%s9477_s1 + $0x30] sm:$0x7] }
 0x206   : > { %v2621_v60 = vpop.f32.mrf.mxu2  ;;  %v3068_v36 = vpop.f32.mrf.mxu3  ;;  %v2964_v58 = vor.u32 %v2962_v37, %v2960_v19 }
 0x207   : > { %v2690_v61 = vadd.f32 %v2621_v60, %v2243_v27  ;;  %v2968_v60 = vrot.slane %v2966_v41, 1 }
 0x209   : > { %v8468_v46 = vadd.f32 %v3068_v36, %v2690_v61  ;;  %v1875_v24 = vpop.f32.mrf.mxu0  ;;  %v2179_v55 = vpop.f32.mrf.mxu1  ;;  %v6970_v61 = vld [vmem:[%s8017_s8 + $0x244] sm:$0x1] }
 0x20a   : > { %v1941_v13 = vadd.f32 %v1875_v24, %v8213_v45  ;;  %v2372_v24 = vunpack.c.l.b16 %v6849_v47  ;;  %v2523_v47 = vshrl.u32 %v8475_v53, 16 }
 0x20b   : > { %6933 = vmatmul.msk.bf16.gmra.mxu2 %vm380_vm1, %v2514_v44  ;;  %7054 = vmatmul.msk.bf16.gmra.mxu3 %vm380_vm1, %v2961_v23 }
 0x20c   : > { %v2245_v57 = vadd.f32 %v2179_v55, %v1941_v13 }
 0x20e   : > { %v2624_v27 = vpop.f32.mrf.mxu2  ;;  %v3071_v35 = vpop.f32.mrf.mxu3 }
 0x20f   : > { %v2691_v63 = vadd.f32 %v2624_v27, %v2244_v8  ;;  %v2517_v8 = vor.u32 %v2515_v51, %v2513_v42  ;;  %v2969_v42 = vsel %vm888_vm2, %v2964_v58, %v2968_v60  ;;  %v7528_v51 = vld [vmem:[%s9477_s1 + $0x38] sm:$0x7] }
 0x211   : > { %v8483_v45 = vadd.f32 %v3071_v35, %v2691_v63  ;;  %v1878_v14 = vpop.f32.mrf.mxu0  ;;  %v2182_v32 = vpop.f32.mrf.mxu1  ;;  %v2522_v55 = vsel %vm888_vm2, %v2517_v8, %v2521_v0  ;;  %v8496_v63 = vld [vmem:[%s8017_s8 + $0x9c] sm:$0xff]  }
 0x212   : > { %v1942_v7 = vadd.f32 %v1878_v14, %v8233_v6  ;;  %v2819_v6 = vunpack.c.l.b16 %v6970_v61  ;;  %v8499_v35 = vld [vmem:[%s8017_s8 + $0x9c] sm:$0xf0]  ;;  %v5488_v14 = vsel %vm432_vm0, %v7528_v51, 0  ;;  %v7651_v61 = vld [vmem:[%s8017_s8 + $0x1a8] sm:$0xff]  ;;  %v8531_v51 = vld [vmem:[%s8017_s8 + $0x10] sm:$0xff] }
 0x213   : > { %5497 = vmatpush.bf16.msrb.mxu2 %v5488_v14 }
 0x214   : > { %v2246_v39 = vadd.f32 %v2182_v32, %v1942_v7  ;;  %6693 = vmatmul.msk.bf16.gmra.mxu0 %vm380_vm1, %v7650_v3  ;;  %6813 = vmatmul.msk.bf16.gmra.mxu1 %vm380_vm1, %v7667_v11  ;;  %v2837_v11 = vpack.c.b16 %v2819_v6, %v2819_v6  ;;  %v4818_v32 = vsel %vm432_vm0, %v7328_v16, 0 }
 0x215   : > { %4827 = vmatpush.bf16.msrb.mxu0 %v4818_v32 }
 0x216   : > { %v2626_v36 = vpop.f32.mrf.mxu2  ;;  %v3073_v43 = vpop.f32.mrf.mxu3 }
 0x217   : > { %v2692_v44 = vadd.f32 %v2626_v36, %v2245_v57  ;;  %v2390_v57 = vpack.c.b16 %v2372_v24, %v2372_v24  ;;  %v7668_v36 = vld [vmem:[%s8017_s8 + $0x23c] sm:$0xff] }
 0x219   : > { %v8492_v23 = vadd.f32 %v3073_v43, %v2692_v44  ;;  %v1880_v13 = vpop.f32.mrf.mxu0  ;;  %v2184_v27 = vpop.f32.mrf.mxu1  ;;  %v2527_v58 = vshll.u32 %v2390_v57, 16  ;;  %v2970_v44 = vshrl.u32 %v8478_v49, 16  ;;  %v2974_v43 = vshll.u32 %v2837_v11, 16 }
 0x21a   : > { %v1943_v19 = vadd.f32 %v1880_v13, %v8244_v29  ;;  %v7547_v29 = vld [vmem:[%s9477_s1 + $0x3c] sm:$0x7]  ;;  %v7860_v13 = vld [vmem:[%s8017_s8 + $0x8] sm:$0xff]  }
 0x21b   : > { %6934 = vmatmul.msk.bf16.gmra.mxu2 %vm380_vm1, %v2522_v55  ;;  %7055 = vmatmul.msk.bf16.gmra.mxu3 %vm380_vm1, %v2969_v42  ;;  %v5711_v37 = vsel %vm432_vm0, %v7547_v29, 0  ;;  %v2525_v42 = vor.u32 %v2523_v47, %v2521_v0  ;;  %v2972_v57 = vor.u32 %v2970_v44, %v2968_v60  ;;  %v2976_v11 = vrot.slane %v2974_v43, 1  ;;  %v8534_v29 = vld [vmem:[%s8017_s8 + $0xa4] sm:$0xff]  ;;  %v7913_v43 = vld [vmem:[%s8017_s8 + $0x9c] sm:$0xe] }
 0x21c   : > { %v2247_v3 = vadd.f32 %v2184_v27, %v1943_v19  ;;  %5720 = vmatpush.bf16.msrb.mxu3 %v5711_v37  ;;  %v2529_v19 = vrot.slane %v2527_v58, 1  ;;  %v3288_v16 = vshll.u32 %v7860_v13, 16 }
 0x21e   : > { %v2629_v41 = vpop.f32.mrf.mxu2  ;;  %v3076_v8 = vpop.f32.mrf.mxu3  ;;  %v2530_v37 = vsel %vm888_vm2, %v2525_v42, %v2529_v19  ;;  %v3290_v60 = vrot.slane %v3288_v16, 1 }
 0x21f   : > { %v2693_v7 = vadd.f32 %v2629_v41, %v2246_v39  ;;  %v7445_v39 = vld [vmem:[%s9477_s1 + $0x34] sm:$0x7]  ;;  %v2977_v41 = vsel %vm888_vm2, %v2972_v57, %v2976_v11 }
 0x220   : > { %v5265_v27 = vsel %vm432_vm0, %v7445_v39, 0  ;;  %v7862_v39 = vld [vmem:[%s8017_s8 + $0x8] sm:$0xe] }
 0x221   : > { %v8520_v24 = vadd.f32 %v3076_v8, %v2693_v7  ;;  %v1883_v55 = vpop.f32.mrf.mxu0  ;;  %v2187_v6 = vpop.f32.mrf.mxu1  ;;  %5274 = vmatpush.bf16.msrb.mxu1 %v5265_v27  ;;  %v3286_v7 = vshrl.u32 %v7860_v13, 16  ;;  %v3293_v8 = vshll.u32 %v8531_v51, 16  ;;  %v7861_v13 = vld [vmem:[%s8017_s8 + $0x8] sm:$0xf0] }
 0x222   : > { %v1944_v53 = vadd.f32 %v1883_v55, %v8254_v52  ;;  %v3735_v52 = vshll.u32 %v8496_v63, 16  ;;  %v7863_v16 = vor.u32 %v7862_v39, %v7861_v13 }
 0x223   : > { %v3295_v27 = vrot.slane %v3293_v8, 1  ;;  %v4285_v8 = vrot.slane %v8534_v29, 1 }
 0x224   : > { %v2248_v49 = vadd.f32 %v2187_v6, %v1944_v53  ;;  %6694 = vmatmul.msk.bf16.gmra.mxu0 %vm380_vm1, %v7651_v61  ;;  %6814 = vmatmul.msk.bf16.gmra.mxu1 %vm380_vm1, %v7668_v36  ;;  %v3733_v36 = vshrl.u32 %v8496_v63, 16  ;;  %v3737_v44 = vrot.slane %v3735_v52, 1  ;;  %v3291_v53 = vor.u32 %v3290_v60, %v3286_v7 }
 0x225   : > { %v7914_v52 = vor.u32 %v7913_v43, %v8499_v35  ;;  %v4061_v7 = vrot.slane %v7863_v16, 1 }
 0x226   : > { %v2631_v14 = vpop.f32.mrf.mxu2  ;;  %v3078_v0 = vpop.f32.mrf.mxu3  ;;  %v3738_v42 = vor.u32 %v3737_v44, %v3733_v36 }
 0x227   : > { %v2694_v32 = vadd.f32 %v2631_v14, %v2247_v3  ;;  %v3740_v3 = vshll.u32 %v8534_v29, 16  ;;  %v4284_v35 = vrot.slane %v7914_v52, 1 }
 0x229   : > { %v8540_v47 = vadd.f32 %v3078_v0, %v2694_v32  ;;  %v1885_v58 = vpop.f32.mrf.mxu0  ;;  %v2189_v61 = vpop.f32.mrf.mxu1  ;;  %v3742_v19 = vrot.slane %v3740_v3, 1  ;;  %v3296_v0 = vsel %vm888_vm2, %v3291_v53, %v3295_v27  ;;  %v4286_v43 = vsel %vm4060_vm3, %v4284_v35, %v4285_v8 }
 0x22a   : > { %v1945_v55 = vadd.f32 %v1885_v58, %v8259_v9  ;;  %v8561_v58 = vld [vmem:[%s8017_s8 + $0x18] sm:$0xff] }
 0x22b   : > { %6935 = vmatmul.msk.bf16.gmra.mxu2 %vm380_vm1, %v2530_v37  ;;  %7056 = vmatmul.msk.bf16.gmra.mxu3 %vm380_vm1, %v2977_v41  ;;  %v3743_v37 = vsel %vm888_vm2, %v3738_v42, %v3742_v19  ;;  %v3301_v42 = vshll.u32 %v8561_v58, 16 }
 0x22c   : > { %v2249_v6 = vadd.f32 %v2189_v61, %v1945_v55  ;;  %v8564_v61 = vld [vmem:[%s8017_s8 + $0xac] sm:$0xff]  ;;  %v3297_v55 = vshrl.u32 %v8531_v51, 16 }
 0x22d   : > { %v3303_v52 = vrot.slane %v3301_v42, 1 }
 0x22e   : > { %v2634_v57 = vpop.f32.mrf.mxu2  ;;  %v3081_v63 = vpop.f32.mrf.mxu3  ;;  %v3299_v16 = vor.u32 %v3297_v55, %v3295_v27  ;;  %v4064_v27 = vrot.slane %v8561_v58, 1 }
 0x22f   : > { %v2695_v11 = vadd.f32 %v2634_v57, %v2248_v49  ;;  %v4062_v49 = vrot.slane %v8531_v51, 1  ;;  %v3744_v57 = vshrl.u32 %v8534_v29, 16 }
 0x231   : > { %v8551_v9 = vadd.f32 %v3081_v63, %v2695_v11  ;;  %v1888_v14 = vpop.f32.mrf.mxu0  ;;  %v2192_v32 = vpop.f32.mrf.mxu1  ;;  %v3748_v11 = vshll.u32 %v8564_v61, 16  ;;  %v3746_v51 = vor.u32 %v3744_v57, %v3742_v19  ;;  %v4287_v19 = vrot.slane %v8564_v61, 1 }
 0x232   : > { %v1946_v41 = vadd.f32 %v1888_v14, %v8268_v26  ;;  %v4063_v26 = vsel %vm4060_vm3, %v4061_v7, %v4062_v49 }
 0x233   : > { %v3750_v14 = vrot.slane %v3748_v11, 1 }
 0x234   : > { %v2250_v60 = vadd.f32 %v2192_v32, %v1946_v41  ;;  %7122 = vmatmul.msk.bf16.vlgmr.msra.gmra.mxu0 %vm380_vm1, %v3296_v0  ;;  %7239 = vmatmul.msk.bf16.vlgmr.msra.gmra.mxu1 %vm380_vm1, %v3743_v37 }
 0x235   : > { %v3751_v35 = vsel %vm888_vm2, %v3746_v51, %v3750_v14 }
 0x236   : > { %v2636_v36 = vpop.f32.mrf.mxu2  ;;  %v3083_v3 = vpop.f32.mrf.mxu3 }
 0x237   : > { %v2696_v44 = vadd.f32 %v2636_v36, %v2249_v6 }
 0x239   : > { %v8569_v13 = vadd.f32 %v3083_v3, %v2696_v44  ;;  %v1890_v39 = vpop.f32.mrf.mxu0  ;;  %v2194_v53 = vpop.f32.mrf.mxu1  ;;  %v8590_v3 = vld [vmem:[%s8017_s8 + $0xb4] sm:$0xff] }
 0x23a   : > { %v1947_v63 = vadd.f32 %v1890_v39, %v8273_v38  ;;  %v3304_v38 = vsel %vm888_vm2, %v3299_v16, %v3303_v52  ;;  %v4065_v39 = vsel %vm4060_vm3, %v4062_v49, %v4064_v27  ;;  %v3752_v16 = vshrl.u32 %v8564_v61, 16 }
 0x23b   : > { %7257 = vmatmul.msk.bf16.vlgmr.msra.gmra.mxu2 %vm380_vm1, %v4063_v26  ;;  %7276 = vmatmul.msk.bf16.vlgmr.msra.gmra.mxu3 %vm380_vm1, %v4286_v43  ;;  %v3756_v51 = vshll.u32 %v8590_v3, 16 }
 0x23c   : > { %v2251_v6 = vadd.f32 %v2194_v53, %v1947_v63  ;;  %v3305_v53 = vshrl.u32 %v8561_v58, 16  ;;  %v3754_v58 = vor.u32 %v3752_v16, %v3750_v14  ;;  %v4289_v14 = vrot.slane %v8590_v3, 1 }
 0x23e   : > { %v2639_v32 = vpop.f32.mrf.mxu2  ;;  %v3086_v37 = vpop.f32.mrf.mxu3  ;;  %v3307_v49 = vor.u32 %v3305_v53, %v3303_v52 }
 0x23f   : > { %v2697_v0 = vadd.f32 %v2639_v32, %v2250_v60  ;;  %v8587_v60 = vld [vmem:[%s8017_s8 + $0x20] sm:$0xff] }
 0x240   : > { %v3309_v63 = vshll.u32 %v8587_v60, 16  ;;  %v4066_v52 = vrot.slane %v8587_v60, 1 }
 0x241   : > { %v8577_v41 = vadd.f32 %v3086_v37, %v2697_v0  ;;  %v1893_v29 = vpop.f32.mrf.mxu0  ;;  %v2197_v7 = vpop.f32.mrf.mxu1  ;;  %v3758_v0 = vrot.slane %v3756_v51, 1 }
 0x242   : > { %v1948_v36 = vadd.f32 %v1893_v29, %v8282_v1  ;;  %v4288_v1 = vsel %vm4060_vm3, %v4285_v8, %v4287_v19  ;;  %v3311_v8 = vrot.slane %v3309_v63, 1 }
 0x244   : > { %v2252_v44 = vadd.f32 %v2197_v7, %v1948_v36  ;;  %7123 = vmatmul.msk.bf16.gmra.mxu0 %vm380_vm1, %v3304_v38  ;;  %7240 = vmatmul.msk.bf16.gmra.mxu1 %vm380_vm1, %v3751_v35  ;;  %v3759_v36 = vsel %vm888_vm2, %v3754_v58, %v3758_v0 }
 0x246   : > { %v2641_v26 = vpop.f32.mrf.mxu2  ;;  %v3088_v55 = vpop.f32.mrf.mxu3 }
 0x247   : > { %v2698_v43 = vadd.f32 %v2641_v26, %v2251_v6 }
 0x249   : > { %v8595_v42 = vadd.f32 %v3088_v55, %v2698_v43  ;;  %v1895_v57 = vpop.f32.mrf.mxu0  ;;  %v2199_v11 = vpop.f32.mrf.mxu1  ;;  %v8616_v55 = vld [vmem:[%s8017_s8 + $0xbc] sm:$0xff] }
 0x24a   : > { %v1949_v32 = vadd.f32 %v1895_v57, %v8287_v18  ;;  %v3312_v18 = vsel %vm888_vm2, %v3307_v49, %v3311_v8  ;;  %v4067_v57 = vsel %vm4060_vm3, %v4064_v27, %v4066_v52  ;;  %v3760_v49 = vshrl.u32 %v8590_v3, 16 }
 0x24b   : > { %7258 = vmatmul.msk.bf16.gmra.mxu2 %vm380_vm1, %v4065_v39  ;;  %7277 = vmatmul.msk.bf16.gmra.mxu3 %vm380_vm1, %v4288_v1  ;;  %v3764_v58 = vshll.u32 %v8616_v55, 16 }
 0x24c   : > { %v2253_v6 = vadd.f32 %v2199_v11, %v1949_v32  ;;  %v3313_v11 = vshrl.u32 %v8587_v60, 16  ;;  %v3762_v60 = vor.u32 %v3760_v49, %v3758_v0  ;;  %v4291_v0 = vrot.slane %v8616_v55, 1 }
 0x24e   : > { %v2644_v37 = vpop.f32.mrf.mxu2  ;;  %v3091_v7 = vpop.f32.mrf.mxu3  ;;  %v3315_v27 = vor.u32 %v3313_v11, %v3311_v8 }
 0x24f   : > { %v2699_v29 = vadd.f32 %v2644_v37, %v2252_v44  ;;  %v8613_v44 = vld [vmem:[%s8017_s8 + $0x28] sm:$0xff] }
 0x250   : > { %v3317_v32 = vshll.u32 %v8613_v44, 16  ;;  %v4068_v8 = vrot.slane %v8613_v44, 1 }
 0x251   : > { %v8603_v38 = vadd.f32 %v3091_v7, %v2699_v29  ;;  %v1898_v61 = vpop.f32.mrf.mxu0  ;;  %v2202_v35 = vpop.f32.mrf.mxu1  ;;  %v3766_v29 = vrot.slane %v3764_v58, 1 }
 0x252   : > { %v1950_v26 = vadd.f32 %v1898_v61, %v8296_v34  ;;  %v4290_v34 = vsel %vm4060_vm3, %v4287_v19, %v4289_v14  ;;  %v3319_v19 = vrot.slane %v3317_v32, 1 }
 0x254   : > { %v2254_v43 = vadd.f32 %v2202_v35, %v1950_v26  ;;  %7124 = vmatmul.msk.bf16.gmra.mxu0 %vm380_vm1, %v3312_v18  ;;  %7241 = vmatmul.msk.bf16.gmra.mxu1 %vm380_vm1, %v3759_v36  ;;  %v3767_v26 = vsel %vm888_vm2, %v3762_v60, %v3766_v29 }
 0x256   : > { %v2646_v39 = vpop.f32.mrf.mxu2  ;;  %v3093_v53 = vpop.f32.mrf.mxu3 }
 0x257   : > { %v2700_v1 = vadd.f32 %v2646_v39, %v2253_v6 }
 0x259   : > { %v8621_v63 = vadd.f32 %v3093_v53, %v2700_v1  ;;  %v1900_v16 = vpop.f32.mrf.mxu0  ;;  %v2204_v51 = vpop.f32.mrf.mxu1  ;;  %v8642_v53 = vld [vmem:[%s8017_s8 + $0xc4] sm:$0xff] }
 0x25a   : > { %v1951_v37 = vadd.f32 %v1900_v16, %v8301_v54  ;;  %v3320_v54 = vsel %vm888_vm2, %v3315_v27, %v3319_v19  ;;  %v4069_v16 = vsel %vm4060_vm3, %v4066_v52, %v4068_v8  ;;  %v3768_v27 = vshrl.u32 %v8616_v55, 16 }
 0x25b   : > { %7259 = vmatmul.msk.bf16.gmra.mxu2 %vm380_vm1, %v4067_v57  ;;  %7278 = vmatmul.msk.bf16.gmra.mxu3 %vm380_vm1, %v4290_v34  ;;  %v3772_v60 = vshll.u32 %v8642_v53, 16 }
 0x25c   : > { %v2255_v6 = vadd.f32 %v2204_v51, %v1951_v37  ;;  %v3321_v51 = vshrl.u32 %v8613_v44, 16  ;;  %v3770_v44 = vor.u32 %v3768_v27, %v3766_v29  ;;  %v4293_v29 = vrot.slane %v8642_v53, 1 }
 0x25e   : > { %v2649_v7 = vpop.f32.mrf.mxu2  ;;  %v3096_v35 = vpop.f32.mrf.mxu3  ;;  %v3323_v52 = vor.u32 %v3321_v51, %v3319_v19 }
 0x25f   : > { %v2701_v61 = vadd.f32 %v2649_v7, %v2254_v43  ;;  %v8639_v43 = vld [vmem:[%s8017_s8 + $0x30] sm:$0xff] }
 0x260   : > { %v3325_v37 = vshll.u32 %v8639_v43, 16  ;;  %v4070_v19 = vrot.slane %v8639_v43, 1 }
 0x261   : > { %v8629_v18 = vadd.f32 %v3096_v35, %v2701_v61  ;;  %v1903_v3 = vpop.f32.mrf.mxu0  ;;  %v2207_v36 = vpop.f32.mrf.mxu1  ;;  %v3774_v61 = vrot.slane %v3772_v60, 1 }
 0x262   : > { %v1952_v39 = vadd.f32 %v1903_v3, %v8310_v15  ;;  %v4292_v15 = vsel %vm4060_vm3, %v4289_v14, %v4291_v0  ;;  %v3327_v14 = vrot.slane %v3325_v37, 1 }
 0x264   : > { %v2256_v1 = vadd.f32 %v2207_v36, %v1952_v39  ;;  %7125 = vmatmul.msk.bf16.gmra.mxu0 %vm380_vm1, %v3320_v54  ;;  %7242 = vmatmul.msk.bf16.gmra.mxu1 %vm380_vm1, %v3767_v26  ;;  %v3775_v39 = vsel %vm888_vm2, %v3770_v44, %v3774_v61 }
 0x266   : > { %v2651_v57 = vpop.f32.mrf.mxu2  ;;  %v3098_v11 = vpop.f32.mrf.mxu3 }
 0x267   : > { %v2702_v34 = vadd.f32 %v2651_v57, %v2255_v6 }
 0x269   : > { %v8647_v32 = vadd.f32 %v3098_v11, %v2702_v34  ;;  %v1905_v49 = vpop.f32.mrf.mxu0  ;;  %v2209_v58 = vpop.f32.mrf.mxu1  ;;  %v8668_v11 = vld [vmem:[%s8017_s8 + $0xcc] sm:$0xff] }
 0x26a   : > { %v1953_v7 = vadd.f32 %v1905_v49, %v8315_v31  ;;  %v3328_v31 = vsel %vm888_vm2, %v3323_v52, %v3327_v14  ;;  %v4071_v49 = vsel %vm4060_vm3, %v4068_v8, %v4070_v19  ;;  %v3776_v52 = vshrl.u32 %v8642_v53, 16 }
 0x26b   : > { %7260 = vmatmul.msk.bf16.gmra.mxu2 %vm380_vm1, %v4069_v16  ;;  %7279 = vmatmul.msk.bf16.gmra.mxu3 %vm380_vm1, %v4292_v15  ;;  %v3780_v44 = vshll.u32 %v8668_v11, 16 }
 0x26c   : > { %v2257_v6 = vadd.f32 %v2209_v58, %v1953_v7  ;;  %v3329_v58 = vshrl.u32 %v8639_v43, 16  ;;  %v3778_v43 = vor.u32 %v3776_v52, %v3774_v61  ;;  %v4295_v61 = vrot.slane %v8668_v11, 1 }
 0x26e   : > { %v2654_v35 = vpop.f32.mrf.mxu2  ;;  %v3101_v36 = vpop.f32.mrf.mxu3  ;;  %v3331_v8 = vor.u32 %v3329_v58, %v3327_v14 }
 0x26f   : > { %v2703_v3 = vadd.f32 %v2654_v35, %v2256_v1  ;;  %v8665_v1 = vld [vmem:[%s8017_s8 + $0x38] sm:$0xff] }
 0x270   : > { %v3333_v7 = vshll.u32 %v8665_v1, 16  ;;  %v4072_v14 = vrot.slane %v8665_v1, 1 }
 0x271   : > { %v8655_v54 = vadd.f32 %v3101_v36, %v2703_v3  ;;  %v1908_v55 = vpop.f32.mrf.mxu0  ;;  %v2212_v26 = vpop.f32.mrf.mxu1  ;;  %v3782_v3 = vrot.slane %v3780_v44, 1 }
 0x272   : > { %v1954_v57 = vadd.f32 %v1908_v55, %v8324_v2  ;;  %v4294_v2 = vsel %vm4060_vm3, %v4291_v0, %v4293_v29  ;;  %v3335_v0 = vrot.slane %v3333_v7, 1 }
 0x274   : > { %v2258_v34 = vadd.f32 %v2212_v26, %v1954_v57  ;;  %7126 = vmatmul.msk.bf16.gmra.mxu0 %vm380_vm1, %v3328_v31  ;;  %7243 = vmatmul.msk.bf16.gmra.mxu1 %vm380_vm1, %v3775_v39  ;;  %v3783_v57 = vsel %vm888_vm2, %v3778_v43, %v3782_v3 }
 0x276   : > { %v2656_v16 = vpop.f32.mrf.mxu2  ;;  %v3103_v51 = vpop.f32.mrf.mxu3 }
 0x277   : > { %v2704_v15 = vadd.f32 %v2656_v16, %v2257_v6 }
 0x279   : > { %v8673_v37 = vadd.f32 %v3103_v51, %v2704_v15  ;;  %v1910_v27 = vpop.f32.mrf.mxu0  ;;  %v2214_v60 = vpop.f32.mrf.mxu1  ;;  %v8694_v51 = vld [vmem:[%s8017_s8 + $0xd4] sm:$0xff] }
 0x27a   : > { %v1955_v35 = vadd.f32 %v1910_v27, %v8329_v10  ;;  %v3336_v10 = vsel %vm888_vm2, %v3331_v8, %v3335_v0  ;;  %v4073_v27 = vsel %vm4060_vm3, %v4070_v19, %v4072_v14  ;;  %v3784_v8 = vshrl.u32 %v8668_v11, 16 }
 0x27b   : > { %7261 = vmatmul.msk.bf16.gmra.mxu2 %vm380_vm1, %v4071_v49  ;;  %7280 = vmatmul.msk.bf16.gmra.mxu3 %vm380_vm1, %v4294_v2  ;;  %v3788_v43 = vshll.u32 %v8694_v51, 16 }
 0x27c   : > { %v2259_v6 = vadd.f32 %v2214_v60, %v1955_v35  ;;  %v3337_v60 = vshrl.u32 %v8665_v1, 16  ;;  %v3786_v1 = vor.u32 %v3784_v8, %v3782_v3  ;;  %v4297_v3 = vrot.slane %v8694_v51, 1 }
 0x27e   : > { %v2659_v36 = vpop.f32.mrf.mxu2  ;;  %v3106_v26 = vpop.f32.mrf.mxu3  ;;  %v3339_v19 = vor.u32 %v3337_v60, %v3335_v0 }
 0x27f   : > { %v2705_v55 = vadd.f32 %v2659_v36, %v2258_v34  ;;  %v8691_v34 = vld [vmem:[%s8017_s8 + $0x40] sm:$0xff] }
 0x280   : > { %v3341_v35 = vshll.u32 %v8691_v34, 16  ;;  %v4074_v0 = vrot.slane %v8691_v34, 1 }
 0x281   : > { %v8681_v31 = vadd.f32 %v3106_v26, %v2705_v55  ;;  %v1913_v53 = vpop.f32.mrf.mxu0  ;;  %v2217_v39 = vpop.f32.mrf.mxu1  ;;  %v3790_v55 = vrot.slane %v3788_v43, 1 }
 0x282   : > { %v1956_v16 = vadd.f32 %v1913_v53, %v8338_v50  ;;  %v4296_v50 = vsel %vm4060_vm3, %v4293_v29, %v4295_v61  ;;  %v3343_v29 = vrot.slane %v3341_v35, 1 }
 0x284   : > { %v2260_v15 = vadd.f32 %v2217_v39, %v1956_v16  ;;  %7127 = vmatmul.msk.bf16.gmra.mxu0 %vm380_vm1, %v3336_v10  ;;  %7244 = vmatmul.msk.bf16.gmra.mxu1 %vm380_vm1, %v3783_v57  ;;  %v3791_v16 = vsel %vm888_vm2, %v3786_v1, %v3790_v55 }
 0x286   : > { %v2661_v49 = vpop.f32.mrf.mxu2  ;;  %v3108_v58 = vpop.f32.mrf.mxu3 }
 0x287   : > { %v2706_v2 = vadd.f32 %v2661_v49, %v2259_v6 }
 0x289   : > { %v8699_v7 = vadd.f32 %v3108_v58, %v2706_v2  ;;  %v1915_v52 = vpop.f32.mrf.mxu0  ;;  %v2219_v44 = vpop.f32.mrf.mxu1  ;;  %v8720_v58 = vld [vmem:[%s8017_s8 + $0xdc] sm:$0xff] }
 0x28a   : > { %v1957_v36 = vadd.f32 %v1915_v52, %v8343_v56  ;;  %v3344_v56 = vsel %vm888_vm2, %v3339_v19, %v3343_v29  ;;  %v4075_v52 = vsel %vm4060_vm3, %v4072_v14, %v4074_v0  ;;  %v3792_v19 = vshrl.u32 %v8694_v51, 16 }
 0x28b   : > { %7262 = vmatmul.msk.bf16.gmra.mxu2 %vm380_vm1, %v4073_v27  ;;  %7281 = vmatmul.msk.bf16.gmra.mxu3 %vm380_vm1, %v4296_v50  ;;  %v3796_v1 = vshll.u32 %v8720_v58, 16 }
 0x28c   : > { %v2261_v6 = vadd.f32 %v2219_v44, %v1957_v36  ;;  %v3345_v44 = vshrl.u32 %v8691_v34, 16  ;;  %v3794_v34 = vor.u32 %v3792_v19, %v3790_v55  ;;  %v4299_v55 = vrot.slane %v8720_v58, 1 }
 0x28e   : > { %v2664_v26 = vpop.f32.mrf.mxu2  ;;  %v3111_v39 = vpop.f32.mrf.mxu3  ;;  %v3347_v14 = vor.u32 %v3345_v44, %v3343_v29 }
 0x28f   : > { %v2707_v53 = vadd.f32 %v2664_v26, %v2260_v15  ;;  %v8717_v15 = vld [vmem:[%s8017_s8 + $0x48] sm:$0xff] }
 0x290   : > { %v3349_v36 = vshll.u32 %v8717_v15, 16  ;;  %v4076_v29 = vrot.slane %v8717_v15, 1 }
 0x291   : > { %v8707_v10 = vadd.f32 %v3111_v39, %v2707_v53  ;;  %v1918_v11 = vpop.f32.mrf.mxu0  ;;  %v2222_v57 = vpop.f32.mrf.mxu1  ;;  %v3798_v53 = vrot.slane %v3796_v1, 1 }
 0x292   : > { %v1958_v49 = vadd.f32 %v1918_v11, %v8352_v30  ;;  %v4298_v30 = vsel %vm4060_vm3, %v4295_v61, %v4297_v3  ;;  %v3351_v61 = vrot.slane %v3349_v36, 1 }
 0x294   : > { %v2262_v2 = vadd.f32 %v2222_v57, %v1958_v49  ;;  %7128 = vmatmul.msk.bf16.gmra.mxu0 %vm380_vm1, %v3344_v56  ;;  %7245 = vmatmul.msk.bf16.gmra.mxu1 %vm380_vm1, %v3791_v16  ;;  %v3799_v49 = vsel %vm888_vm2, %v3794_v34, %v3798_v53 }
 0x296   : > { %v2666_v27 = vpop.f32.mrf.mxu2  ;;  %v3113_v60 = vpop.f32.mrf.mxu3 }
 0x297   : > { %v2708_v50 = vadd.f32 %v2666_v27, %v2261_v6 }
 0x299   : > { %v8725_v35 = vadd.f32 %v3113_v60, %v2708_v50  ;;  %v1920_v8 = vpop.f32.mrf.mxu0  ;;  %v2224_v43 = vpop.f32.mrf.mxu1  ;;  %v8746_v60 = vld [vmem:[%s8017_s8 + $0xe4] sm:$0xff] }
 0x29a   : > { %v1959_v26 = vadd.f32 %v1920_v8, %v8357_v40  ;;  %v3352_v40 = vsel %vm888_vm2, %v3347_v14, %v3351_v61  ;;  %v4077_v8 = vsel %vm4060_vm3, %v4074_v0, %v4076_v29  ;;  %v3800_v14 = vshrl.u32 %v8720_v58, 16 }
 0x29b   : > { %7263 = vmatmul.msk.bf16.gmra.mxu2 %vm380_vm1, %v4075_v52  ;;  %7282 = vmatmul.msk.bf16.gmra.mxu3 %vm380_vm1, %v4298_v30  ;;  %v3804_v34 = vshll.u32 %v8746_v60, 16 }
 0x29c   : > { %v2263_v6 = vadd.f32 %v2224_v43, %v1959_v26  ;;  %v3353_v43 = vshrl.u32 %v8717_v15, 16  ;;  %v3802_v15 = vor.u32 %v3800_v14, %v3798_v53  ;;  %v4301_v53 = vrot.slane %v8746_v60, 1 }
 0x29e   : > { %v2669_v39 = vpop.f32.mrf.mxu2  ;;  %v3116_v57 = vpop.f32.mrf.mxu3  ;;  %v3355_v0 = vor.u32 %v3353_v43, %v3351_v61 }
 0x29f   : > { %v2709_v11 = vadd.f32 %v2669_v39, %v2262_v2  ;;  %v8743_v2 = vld [vmem:[%s8017_s8 + $0x50] sm:$0xff] }
 0x2a0   : > { %v3357_v26 = vshll.u32 %v8743_v2, 16  ;;  %v4078_v61 = vrot.slane %v8743_v2, 1 }
 0x2a1   : > { %v8733_v56 = vadd.f32 %v3116_v57, %v2709_v11  ;;  %v1923_v51 = vpop.f32.mrf.mxu0  ;;  %v2227_v16 = vpop.f32.mrf.mxu1  ;;  %v3806_v11 = vrot.slane %v3804_v34, 1 }
 0x2a2   : > { %v1960_v27 = vadd.f32 %v1923_v51, %v8366_v33  ;;  %v4300_v33 = vsel %vm4060_vm3, %v4297_v3, %v4299_v55  ;;  %v3359_v3 = vrot.slane %v3357_v26, 1 }
 0x2a4   : > { %v2264_v50 = vadd.f32 %v2227_v16, %v1960_v27  ;;  %7129 = vmatmul.msk.bf16.gmra.mxu0 %vm380_vm1, %v3352_v40  ;;  %7246 = vmatmul.msk.bf16.gmra.mxu1 %vm380_vm1, %v3799_v49  ;;  %v3807_v27 = vsel %vm888_vm2, %v3802_v15, %v3806_v11 }
 0x2a6   : > { %v2671_v52 = vpop.f32.mrf.mxu2  ;;  %v3118_v44 = vpop.f32.mrf.mxu3 }
 0x2a7   : > { %v2710_v30 = vadd.f32 %v2671_v52, %v2263_v6 }
 0x2a9   : > { %v8751_v36 = vadd.f32 %v3118_v44, %v2710_v30  ;;  %v1925_v19 = vpop.f32.mrf.mxu0  ;;  %v2229_v1 = vpop.f32.mrf.mxu1  ;;  %v8772_v44 = vld [vmem:[%s8017_s8 + $0xec] sm:$0xff] }
 0x2aa   : > { %v1961_v39 = vadd.f32 %v1925_v19, %v8372_v62  ;;  %v3360_v62 = vsel %vm888_vm2, %v3355_v0, %v3359_v3  ;;  %v4079_v19 = vsel %vm4060_vm3, %v4076_v29, %v4078_v61  ;;  %v3808_v0 = vshrl.u32 %v8746_v60, 16 }
 0x2ab   : > { %7264 = vmatmul.msk.bf16.gmra.mxu2 %vm380_vm1, %v4077_v8  ;;  %7283 = vmatmul.msk.bf16.gmra.mxu3 %vm380_vm1, %v4300_v33  ;;  %v3812_v15 = vshll.u32 %v8772_v44, 16 }
 0x2ac   : > { %v2265_v6 = vadd.f32 %v2229_v1, %v1961_v39  ;;  %v3361_v1 = vshrl.u32 %v8743_v2, 16  ;;  %v3810_v2 = vor.u32 %v3808_v0, %v3806_v11  ;;  %v4303_v11 = vrot.slane %v8772_v44, 1 }
 0x2ae   : > { %v2674_v57 = vpop.f32.mrf.mxu2  ;;  %v3121_v16 = vpop.f32.mrf.mxu3  ;;  %v3363_v29 = vor.u32 %v3361_v1, %v3359_v3 }
 0x2af   : > { %v2711_v51 = vadd.f32 %v2674_v57, %v2264_v50  ;;  %v8769_v50 = vld [vmem:[%s8017_s8 + $0x58] sm:$0xff] }
 0x2b0   : > { %v3365_v39 = vshll.u32 %v8769_v50, 16  ;;  %v4080_v3 = vrot.slane %v8769_v50, 1 }
 0x2b1   : > { %v8759_v40 = vadd.f32 %v3121_v16, %v2711_v51  ;;  %v3488_v58 = vpop.f32.mrf.mxu0  ;;  %v3935_v49 = vpop.f32.mrf.mxu1  ;;  %v3814_v51 = vrot.slane %v3812_v15, 1 }
 0x2b2   : > { %v3573_v52 = vadd.f32 %v3488_v58, %v8382_v28  ;;  %v4302_v28 = vsel %vm4060_vm3, %v4299_v55, %v4301_v53  ;;  %v3367_v55 = vrot.slane %v3365_v39, 1 }
 0x2b4   : > { %v4020_v30 = vadd.f32 %v3935_v49, %v3573_v52  ;;  %7130 = vmatmul.msk.bf16.gmra.mxu0 %vm380_vm1, %v3360_v62  ;;  %7247 = vmatmul.msk.bf16.gmra.mxu1 %vm380_vm1, %v3807_v27  ;;  %v3815_v52 = vsel %vm888_vm2, %v3810_v2, %v3814_v51 }
 0x2b6   : > { %v2676_v8 = vpop.f32.mrf.mxu2  ;;  %v3123_v43 = vpop.f32.mrf.mxu3 }
 0x2b7   : > { %v2712_v33 = vadd.f32 %v2676_v8, %v2265_v6 }
 0x2b9   : > { %v8777_v26 = vadd.f32 %v3123_v43, %v2712_v33  ;;  %v3490_v14 = vpop.f32.mrf.mxu0  ;;  %v3937_v34 = vpop.f32.mrf.mxu1  ;;  %v8798_v43 = vld [vmem:[%s8017_s8 + $0xf4] sm:$0xff] }
 0x2ba   : > { %v3574_v57 = vadd.f32 %v3490_v14, %v8388_v20  ;;  %v3368_v20 = vsel %vm888_vm2, %v3363_v29, %v3367_v55  ;;  %v4081_v14 = vsel %vm4060_vm3, %v4078_v61, %v4080_v3  ;;  %v3816_v29 = vshrl.u32 %v8772_v44, 16 }
 0x2bb   : > { %7265 = vmatmul.msk.bf16.gmra.mxu2 %vm380_vm1, %v4079_v19  ;;  %7284 = vmatmul.msk.bf16.gmra.mxu3 %vm380_vm1, %v4302_v28  ;;  %v3820_v2 = vshll.u32 %v8798_v43, 16 }
 0x2bc   : > { %v4021_v6 = vadd.f32 %v3937_v34, %v3574_v57  ;;  %v3369_v34 = vshrl.u32 %v8769_v50, 16  ;;  %v3818_v50 = vor.u32 %v3816_v29, %v3814_v51  ;;  %v4305_v51 = vrot.slane %v8798_v43, 1 }
 0x2be   : > { %v4159_v16 = vpop.f32.mrf.mxu2  ;;  %v4382_v49 = vpop.f32.mrf.mxu3  ;;  %v3371_v61 = vor.u32 %v3369_v34, %v3367_v55 }
 0x2bf   : > { %v4244_v58 = vadd.f32 %v4159_v16, %v4020_v30  ;;  %v8795_v30 = vld [vmem:[%s8017_s8 + $0x60] sm:$0xff] }
 0x2c0   : > { %v3373_v57 = vshll.u32 %v8795_v30, 16  ;;  %v4082_v55 = vrot.slane %v8795_v30, 1 }
 0x2c1   : > { %v8785_v62 = vadd.f32 %v4382_v49, %v4244_v58  ;;  %v3493_v60 = vpop.f32.mrf.mxu0  ;;  %v3940_v27 = vpop.f32.mrf.mxu1  ;;  %v3822_v58 = vrot.slane %v3820_v2, 1 }
 0x2c2   : > { %v3575_v8 = vadd.f32 %v3493_v60, %v8398_v25  ;;  %v4304_v25 = vsel %vm4060_vm3, %v4301_v53, %v4303_v11  ;;  %v3375_v53 = vrot.slane %v3373_v57, 1 }
 0x2c4   : > { %v4022_v33 = vadd.f32 %v3940_v27, %v3575_v8  ;;  %7131 = vmatmul.msk.bf16.gmra.mxu0 %vm380_vm1, %v3368_v20  ;;  %7248 = vmatmul.msk.bf16.gmra.mxu1 %vm380_vm1, %v3815_v52  ;;  %v3823_v8 = vsel %vm888_vm2, %v3818_v50, %v3822_v58 }
 0x2c6   : > { %v4161_v19 = vpop.f32.mrf.mxu2  ;;  %v4384_v1 = vpop.f32.mrf.mxu3 }
 0x2c7   : > { %v4245_v28 = vadd.f32 %v4161_v19, %v4021_v6 }
 0x2c9   : > { %v8803_v39 = vadd.f32 %v4384_v1, %v4245_v28  ;;  %v3495_v0 = vpop.f32.mrf.mxu0  ;;  %v3942_v15 = vpop.f32.mrf.mxu1  ;;  %v8824_v1 = vld [vmem:[%s8017_s8 + $0xfc] sm:$0xff] }
 0x2ca   : > { %v3576_v16 = vadd.f32 %v3495_v0, %v8404_v4  ;;  %v3376_v4 = vsel %vm888_vm2, %v3371_v61, %v3375_v53  ;;  %v4083_v0 = vsel %vm4060_vm3, %v4080_v3, %v4082_v55  ;;  %v3824_v61 = vshrl.u32 %v8798_v43, 16 }
 0x2cb   : > { %7266 = vmatmul.msk.bf16.gmra.mxu2 %vm380_vm1, %v4081_v14  ;;  %7285 = vmatmul.msk.bf16.gmra.mxu3 %vm380_vm1, %v4304_v25  ;;  %v3828_v50 = vshll.u32 %v8824_v1, 16 }
 0x2cc   : > { %v4023_v6 = vadd.f32 %v3942_v15, %v3576_v16  ;;  %v3377_v15 = vshrl.u32 %v8795_v30, 16  ;;  %v3826_v30 = vor.u32 %v3824_v61, %v3822_v58  ;;  %v4307_v58 = vrot.slane %v8824_v1, 1 }
 0x2ce   : > { %v4164_v49 = vpop.f32.mrf.mxu2  ;;  %v4387_v27 = vpop.f32.mrf.mxu3  ;;  %v3379_v3 = vor.u32 %v3377_v15, %v3375_v53 }
 0x2cf   : > { %v4246_v60 = vadd.f32 %v4164_v49, %v4022_v33  ;;  %v8821_v33 = vld [vmem:[%s8017_s8 + $0x68] sm:$0xff] }
 0x2d0   : > { %v3381_v16 = vshll.u32 %v8821_v33, 16  ;;  %v4084_v53 = vrot.slane %v8821_v33, 1 }
 0x2d1   : > { %v8811_v20 = vadd.f32 %v4387_v27, %v4246_v60  ;;  %v3498_v44 = vpop.f32.mrf.mxu0  ;;  %v3945_v52 = vpop.f32.mrf.mxu1  ;;  %v3830_v60 = vrot.slane %v3828_v50, 1 }
 0x2d2   : > { %v3577_v19 = vadd.f32 %v3498_v44, %v8414_v22  ;;  %v4306_v22 = vsel %vm4060_vm3, %v4303_v11, %v4305_v51  ;;  %v3383_v11 = vrot.slane %v3381_v16, 1 }
 0x2d4   : > { %v4024_v28 = vadd.f32 %v3945_v52, %v3577_v19  ;;  %7132 = vmatmul.msk.bf16.gmra.mxu0 %vm380_vm1, %v3376_v4  ;;  %7249 = vmatmul.msk.bf16.gmra.mxu1 %vm380_vm1, %v3823_v8  ;;  %v3831_v19 = vsel %vm888_vm2, %v3826_v30, %v3830_v60 }
 0x2d6   : > { %v4166_v14 = vpop.f32.mrf.mxu2  ;;  %v4389_v34 = vpop.f32.mrf.mxu3 }
 0x2d7   : > { %v4247_v25 = vadd.f32 %v4166_v14, %v4023_v6 }
 0x2d9   : > { %v8829_v57 = vadd.f32 %v4389_v34, %v4247_v25  ;;  %v3500_v29 = vpop.f32.mrf.mxu0  ;;  %v3947_v2 = vpop.f32.mrf.mxu1  ;;  %v8850_v34 = vld [vmem:[%s8017_s8 + $0x104] sm:$0xff] }
 0x2da   : > { %v3578_v49 = vadd.f32 %v3500_v29, %v8420_v12  ;;  %v3384_v12 = vsel %vm888_vm2, %v3379_v3, %v3383_v11  ;;  %v4085_v29 = vsel %vm4060_vm3, %v4082_v55, %v4084_v53  ;;  %v3832_v3 = vshrl.u32 %v8824_v1, 16 }
 0x2db   : > { %7267 = vmatmul.msk.bf16.gmra.mxu2 %vm380_vm1, %v4083_v0  ;;  %7286 = vmatmul.msk.bf16.gmra.mxu3 %vm380_vm1, %v4306_v22  ;;  %v3836_v30 = vshll.u32 %v8850_v34, 16 }
 0x2dc   : > { %v4025_v6 = vadd.f32 %v3947_v2, %v3578_v49  ;;  %v3385_v2 = vshrl.u32 %v8821_v33, 16  ;;  %v3834_v33 = vor.u32 %v3832_v3, %v3830_v60  ;;  %v4309_v60 = vrot.slane %v8850_v34, 1 }
 0x2de   : > { %v4169_v27 = vpop.f32.mrf.mxu2  ;;  %v4392_v52 = vpop.f32.mrf.mxu3  ;;  %v3387_v55 = vor.u32 %v3385_v2, %v3383_v11 }
 0x2df   : > { %v4248_v44 = vadd.f32 %v4169_v27, %v4024_v28  ;;  %v8847_v28 = vld [vmem:[%s8017_s8 + $0x70] sm:$0xff] }
 0x2e0   : > { %v3389_v49 = vshll.u32 %v8847_v28, 16  ;;  %v4086_v11 = vrot.slane %v8847_v28, 1 }
 0x2e1   : > { %v8837_v4 = vadd.f32 %v4392_v52, %v4248_v44  ;;  %v3503_v43 = vpop.f32.mrf.mxu0  ;;  %v3950_v8 = vpop.f32.mrf.mxu1  ;;  %v3838_v44 = vrot.slane %v3836_v30, 1 }
 0x2e2   : > { %v3579_v14 = vadd.f32 %v3503_v43, %v8430_v5  ;;  %v4308_v5 = vsel %vm4060_vm3, %v4305_v51, %v4307_v58  ;;  %v3391_v51 = vrot.slane %v3389_v49, 1 }
 0x2e4   : > { %v4026_v25 = vadd.f32 %v3950_v8, %v3579_v14  ;;  %7133 = vmatmul.msk.bf16.gmra.mxu0 %vm380_vm1, %v3384_v12  ;;  %7250 = vmatmul.msk.bf16.gmra.mxu1 %vm380_vm1, %v3831_v19  ;;  %v3839_v14 = vsel %vm888_vm2, %v3834_v33, %v3838_v44 }
 0x2e6   : > { %v4171_v0 = vpop.f32.mrf.mxu2  ;;  %v4394_v15 = vpop.f32.mrf.mxu3 }
 0x2e7   : > { %v4249_v22 = vadd.f32 %v4171_v0, %v4025_v6 }
 0x2e9   : > { %v8855_v16 = vadd.f32 %v4394_v15, %v4249_v22  ;;  %v3505_v61 = vpop.f32.mrf.mxu0  ;;  %v3952_v50 = vpop.f32.mrf.mxu1  ;;  %v8876_v15 = vld [vmem:[%s8017_s8 + $0x10c] sm:$0xff] }
 0x2ea   : > { %v3580_v27 = vadd.f32 %v3505_v61, %v8436_v59  ;;  %v3392_v59 = vsel %vm888_vm2, %v3387_v55, %v3391_v51  ;;  %v4087_v61 = vsel %vm4060_vm3, %v4084_v53, %v4086_v11  ;;  %v3840_v55 = vshrl.u32 %v8850_v34, 16 }
 0x2eb   : > { %7268 = vmatmul.msk.bf16.gmra.mxu2 %vm380_vm1, %v4085_v29  ;;  %7287 = vmatmul.msk.bf16.gmra.mxu3 %vm380_vm1, %v4308_v5  ;;  %v3844_v33 = vshll.u32 %v8876_v15, 16 }
 0x2ec   : > { %v4027_v6 = vadd.f32 %v3952_v50, %v3580_v27  ;;  %v3393_v50 = vshrl.u32 %v8847_v28, 16  ;;  %v3842_v28 = vor.u32 %v3840_v55, %v3838_v44  ;;  %v4311_v44 = vrot.slane %v8876_v15, 1 }
 0x2ee   : > { %v4174_v52 = vpop.f32.mrf.mxu2  ;;  %v4397_v8 = vpop.f32.mrf.mxu3  ;;  %v3395_v53 = vor.u32 %v3393_v50, %v3391_v51 }
 0x2ef   : > { %v4250_v43 = vadd.f32 %v4174_v52, %v4026_v25  ;;  %v8873_v25 = vld [vmem:[%s8017_s8 + $0x78] sm:$0xff] }
 0x2f0   : > { %v3397_v27 = vshll.u32 %v8873_v25, 16  ;;  %v4088_v51 = vrot.slane %v8873_v25, 1 }
 0x2f1   : > { %v8863_v12 = vadd.f32 %v4397_v8, %v4250_v43  ;;  %v3508_v1 = vpop.f32.mrf.mxu0  ;;  %v3955_v19 = vpop.f32.mrf.mxu1  ;;  %v3846_v43 = vrot.slane %v3844_v33, 1 }
 0x2f2   : > { %v3581_v0 = vadd.f32 %v3508_v1, %v8446_v21  ;;  %v4310_v21 = vsel %vm4060_vm3, %v4307_v58, %v4309_v60  ;;  %v3399_v58 = vrot.slane %v3397_v27, 1 }
 0x2f4   : > { %v4028_v22 = vadd.f32 %v3955_v19, %v3581_v0  ;;  %7134 = vmatmul.msk.bf16.gmra.mxu0 %vm380_vm1, %v3392_v59  ;;  %7251 = vmatmul.msk.bf16.gmra.mxu1 %vm380_vm1, %v3839_v14  ;;  %v3847_v0 = vsel %vm888_vm2, %v3842_v28, %v3846_v43 }
 0x2f6   : > { %v4176_v29 = vpop.f32.mrf.mxu2  ;;  %v4399_v2 = vpop.f32.mrf.mxu3 }
 0x2f7   : > { %v4251_v5 = vadd.f32 %v4176_v29, %v4027_v6 }
 0x2f9   : > { %v8881_v49 = vadd.f32 %v4399_v2, %v4251_v5  ;;  %v3510_v3 = vpop.f32.mrf.mxu0  ;;  %v3957_v30 = vpop.f32.mrf.mxu1  ;;  %v8902_v2 = vld [vmem:[%s8017_s8 + $0x114] sm:$0xff] }
 0x2fa   : > { %v3582_v52 = vadd.f32 %v3510_v3, %v8452_v48  ;;  %v3400_v48 = vsel %vm888_vm2, %v3395_v53, %v3399_v58  ;;  %v4089_v3 = vsel %vm4060_vm3, %v4086_v11, %v4088_v51  ;;  %v3848_v53 = vshrl.u32 %v8876_v15, 16 }
 0x2fb   : > { %7269 = vmatmul.msk.bf16.gmra.mxu2 %vm380_vm1, %v4087_v61  ;;  %7288 = vmatmul.msk.bf16.gmra.mxu3 %vm380_vm1, %v4310_v21  ;;  %v3852_v28 = vshll.u32 %v8902_v2, 16 }
 0x2fc   : > { %v4029_v6 = vadd.f32 %v3957_v30, %v3582_v52  ;;  %v3401_v30 = vshrl.u32 %v8873_v25, 16  ;;  %v3850_v25 = vor.u32 %v3848_v53, %v3846_v43  ;;  %v4313_v43 = vrot.slane %v8902_v2, 1 }
 0x2fe   : > { %v4179_v8 = vpop.f32.mrf.mxu2  ;;  %v4402_v19 = vpop.f32.mrf.mxu3  ;;  %v3403_v11 = vor.u32 %v3401_v30, %v3399_v58 }
 0x2ff   : > { %v4252_v1 = vadd.f32 %v4179_v8, %v4028_v22  ;;  %v8899_v22 = vld [vmem:[%s8017_s8 + $0x80] sm:$0xff] }
 0x300   : > { %v3405_v52 = vshll.u32 %v8899_v22, 16  ;;  %v4090_v58 = vrot.slane %v8899_v22, 1 }
 0x301   : > { %v8889_v59 = vadd.f32 %v4402_v19, %v4252_v1  ;;  %v3513_v34 = vpop.f32.mrf.mxu0  ;;  %v3960_v14 = vpop.f32.mrf.mxu1  ;;  %v3854_v1 = vrot.slane %v3852_v28, 1 }
 0x302   : > { %v3583_v29 = vadd.f32 %v3513_v34, %v8462_v17  ;;  %v4312_v17 = vsel %vm4060_vm3, %v4309_v60, %v4311_v44  ;;  %v3407_v60 = vrot.slane %v3405_v52, 1 }
 0x304   : > { %v4030_v5 = vadd.f32 %v3960_v14, %v3583_v29  ;;  %7135 = vmatmul.msk.bf16.gmra.mxu0 %vm380_vm1, %v3400_v48  ;;  %7252 = vmatmul.msk.bf16.gmra.mxu1 %vm380_vm1, %v3847_v0  ;;  %v3855_v29 = vsel %vm888_vm2, %v3850_v25, %v3854_v1 }
 0x306   : > { %v4181_v61 = vpop.f32.mrf.mxu2  ;;  %v4404_v50 = vpop.f32.mrf.mxu3 }
 0x307   : > { %v4253_v21 = vadd.f32 %v4181_v61, %v4029_v6 }
 0x309   : > { %v8907_v27 = vadd.f32 %v4404_v50, %v4253_v21  ;;  %v3515_v55 = vpop.f32.mrf.mxu0  ;;  %v3962_v33 = vpop.f32.mrf.mxu1  ;;  %v8928_v50 = vld [vmem:[%s8017_s8 + $0x11c] sm:$0xff] }
 0x30a   : > { %v3584_v8 = vadd.f32 %v3515_v55, %v8468_v46  ;;  %v3408_v46 = vsel %vm888_vm2, %v3403_v11, %v3407_v60  ;;  %v4091_v55 = vsel %vm4060_vm3, %v4088_v51, %v4090_v58  ;;  %v3856_v11 = vshrl.u32 %v8902_v2, 16 }
 0x30b   : > { %7270 = vmatmul.msk.bf16.gmra.mxu2 %vm380_vm1, %v4089_v3  ;;  %7289 = vmatmul.msk.bf16.gmra.mxu3 %vm380_vm1, %v4312_v17  ;;  %v3860_v25 = vshll.u32 %v8928_v50, 16 }
 0x30c   : > { %v4031_v6 = vadd.f32 %v3962_v33, %v3584_v8  ;;  %v3409_v33 = vshrl.u32 %v8899_v22, 16 }
 0x30e   : > { %v4184_v19 = vpop.f32.mrf.mxu2  ;;  %v4407_v14 = vpop.f32.mrf.mxu3 }
 0x30f   : > { %v4254_v34 = vadd.f32 %v4184_v19, %v4030_v5  ;;  %v8925_v5 = vld [vmem:[%s8017_s8 + $0x88] sm:$0xff]  ;;  %v3858_v19 = vor.u32 %v3856_v11, %v3854_v1 }
 0x310   : > { %v3413_v8 = vshll.u32 %v8925_v5, 16  ;;  %v4092_v1 = vrot.slane %v8925_v5, 1 }
 0x311   : > { %v8915_v48 = vadd.f32 %v4407_v14, %v4254_v34  ;;  %v3518_v15 = vpop.f32.mrf.mxu0  ;;  %v3965_v0 = vpop.f32.mrf.mxu1  ;;  %v3862_v34 = vrot.slane %v3860_v25, 1  ;;  %v3194_v14 = vld [vmem:[%s8017_s8 + $0x90] sm:$0x1] }
 0x312   : > { %v3585_v61 = vadd.f32 %v3518_v15, %v8483_v45  ;;  %v4314_v45 = vsel %vm4060_vm3, %v4311_v44, %v4313_v43  ;;  %v3411_v44 = vor.u32 %v3409_v33, %v3407_v60  ;;  %v3415_v22 = vrot.slane %v3413_v8, 1 }
 0x313   : > { %v4315_v33 = vrot.slane %v8928_v50, 1  ;;  %v4093_v25 = vsel %vm4060_vm3, %v4090_v58, %v4092_v1 }
 0x314   : > { %v4032_v21 = vadd.f32 %v3965_v0, %v3585_v61  ;;  %7136 = vmatmul.msk.bf16.gmra.mxu0 %vm380_vm1, %v3408_v46  ;;  %7253 = vmatmul.msk.bf16.gmra.mxu1 %vm380_vm1, %v3855_v29  ;;  %v7173_v0 = vld [vmem:[%s8017_s8 + $0x124] sm:$0x1]  ;;  %v3266_v61 = vunpack.c.l.b16 %v3194_v14 }
 0x316   : > { %v4186_v3 = vpop.f32.mrf.mxu2  ;;  %v4409_v30 = vpop.f32.mrf.mxu3 }
 0x317   : > { %v4255_v17 = vadd.f32 %v4186_v3, %v4031_v6 }
 0x319   : > { %v8933_v52 = vadd.f32 %v4409_v30, %v4255_v17  ;;  %v3520_v53 = vpop.f32.mrf.mxu0  ;;  %v3967_v28 = vpop.f32.mrf.mxu1  ;;  %v3863_v30 = vsel %vm888_vm2, %v3858_v19, %v3862_v34 }
 0x31a   : > { %v3586_v6 = vadd.f32 %v3520_v53, %v8492_v23  ;;  %v3416_v23 = vsel %vm888_vm2, %v3411_v44, %v3415_v22 }
 0x31b   : > { %7271 = vmatmul.msk.bf16.gmra.mxu2 %vm380_vm1, %v4091_v55  ;;  %7290 = vmatmul.msk.bf16.gmra.mxu3 %vm380_vm1, %v4314_v45  ;;  %v3713_v55 = vunpack.c.l.b16 %v7173_v0  ;;  %v3864_v0 = vshrl.u32 %v8928_v50, 16 }
 0x31c   : > { %v4033_v51 = vadd.f32 %v3967_v28, %v3586_v6 }
 0x31d   : > { %v3731_v53 = vpack.c.b16 %v3713_v55, %v3713_v55 }
 0x31e   : > { %v4189_v15 = vpop.f32.mrf.mxu2  ;;  %v4412_v29 = vpop.f32.mrf.mxu3 }
 0x31f   : > { %v4256_v46 = vadd.f32 %v4189_v15, %v4032_v21  ;;  %v3284_v21 = vpack.c.b16 %v3266_v61, %v3266_v61  ;;  %v4316_v15 = vsel %vm4060_vm3, %v4313_v43, %v4315_v33  ;;  %v7410_v61 = vld [vmem:[%s8017_s8 + $0x1c4] sm:$0xff]  }
 0x321   : > { %v8943_v2 = vadd.f32 %v4412_v29, %v4256_v46  ;;  %v3523_v3 = vpop.f32.mrf.mxu0  ;;  %v3970_v17 = vpop.f32.mrf.mxu1  ;;  %v3421_v6 = vshll.u32 %v3284_v21, 16  ;;  %v3868_v46 = vshll.u32 %v3731_v53, 16 }
 0x322   : > { %v3587_v60 = vadd.f32 %v3523_v3, %v8520_v24  ;;  %v3417_v24 = vshrl.u32 %v8925_v5, 16  ;;  %v8961_v3 = vld [vmem:[%s8017_s8 + $0x1c4] sm:$0xf0] }
 0x324   : > { %v4034_v45 = vadd.f32 %v3970_v17, %v3587_v60  ;;  %7137 = vmatmul.msk.bf16.gmra.mxu0 %vm380_vm1, %v3416_v23  ;;  %7254 = vmatmul.msk.bf16.gmra.mxu1 %vm380_vm1, %v3863_v30  ;;  %v3419_v5 = vor.u32 %v3417_v24, %v3415_v22  ;;  %v3866_v17 = vor.u32 %v3864_v0, %v3862_v34  ;;  %v3870_v23 = vrot.slane %v3868_v46, 1 }
 0x325   : > { %v4094_v22 = vrot.slane %v3284_v21, 1  ;;  %v4317_v34 = vrot.slane %v3731_v53, 1 }
 0x326   : > { %v4191_v28 = vpop.f32.mrf.mxu2  ;;  %v4414_v11 = vpop.f32.mrf.mxu3 }
 0x327   : > { %v4257_v8 = vadd.f32 %v4191_v28, %v4033_v51  ;;  %v3423_v51 = vrot.slane %v3421_v6, 1 }
 0x329   : > { %v8954_v44 = vadd.f32 %v4414_v11, %v4257_v8  ;;  %v3525_v19 = vpop.f32.mrf.mxu0  ;;  %v3972_v14 = vpop.f32.mrf.mxu1  ;;  %v3424_v28 = vsel %vm888_vm2, %v3419_v5, %v3423_v51  ;;  %v3871_v8 = vsel %vm888_vm2, %v3866_v17, %v3870_v23  ;;  %v7864_v11 = vld [vmem:[%s8017_s8 + $0x130] sm:$0xff]  }
 0x32a   : > { %v3588_v29 = vadd.f32 %v3525_v19, %v8540_v47  ;;  %v4629_v6 = vshll.u32 %v7864_v11, 16  ;;  %v8977_v19 = vld [vmem:[%s8017_s8 + $0x1cc] sm:$0xff]  ;;  %v4627_v21 = vshrl.u32 %v7864_v11, 16 }
 0x32b   : > { %7272 = vmatmul.msk.bf16.gmra.mxu2 %vm380_vm1, %v4093_v25  ;;  %7291 = vmatmul.msk.bf16.gmra.mxu3 %vm380_vm1, %v4316_v15 }
 0x32c   : > { %v4035_v58 = vadd.f32 %v3972_v14, %v3588_v29  ;;  %v5076_v14 = vshll.u32 %v7410_v61, 16  ;;  %v4095_v29 = vsel %vm4060_vm3, %v4092_v1, %v4094_v22  ;;  %v4631_v5 = vrot.slane %v4629_v6, 1 }
 0x32e   : > { %v4194_v43 = vpop.f32.mrf.mxu2  ;;  %v4417_v50 = vpop.f32.mrf.mxu3 }
 0x32f   : > { %v4258_v30 = vadd.f32 %v4194_v43, %v4034_v45  ;;  %v8974_v45 = vld [vmem:[%s8017_s8 + $0x138] sm:$0xff]  ;;  %v5074_v43 = vshrl.u32 %v7410_v61, 16 }
 0x330   : > { %v4634_v53 = vshll.u32 %v8974_v45, 16 }
 0x331   : > { %v8965_v55 = vadd.f32 %v4417_v50, %v4258_v30  ;;  %v3528_v47 = vpop.f32.mrf.mxu0  ;;  %v3975_v60 = vpop.f32.mrf.mxu1  ;;  %v5078_v30 = vrot.slane %v5076_v14, 1  ;;  %v5081_v50 = vshll.u32 %v8977_v19, 16 }
 0x332   : > { %v3589_v25 = vadd.f32 %v3528_v47, %v8551_v9  ;;  %v4318_v9 = vsel %vm4060_vm3, %v4315_v33, %v4317_v34  ;;  %v7865_v33 = vld [vmem:[%s8017_s8 + $0x130] sm:$0xf0] }
 0x333   : > { %v5079_v11 = vor.u32 %v5078_v30, %v5074_v43 }
 0x334   : > { %v4036_v24 = vadd.f32 %v3975_v60, %v3589_v25  ;;  %7138 = vmatmul.msk.bf16.gmra.mxu0 %vm380_vm1, %v3424_v28  ;;  %7255 = vmatmul.msk.bf16.gmra.mxu1 %vm380_vm1, %v3871_v8  ;;  %v7866_v60 = vld [vmem:[%s8017_s8 + $0x130] sm:$0xe]  ;;  %v4632_v28 = vor.u32 %v4631_v5, %v4627_v21  ;;  %v4636_v8 = vrot.slane %v4634_v53, 1  ;;  %v5083_v25 = vrot.slane %v5081_v50, 1 }
 0x335   : > { %v7867_v6 = vor.u32 %v7866_v60, %v7865_v33 }
 0x336   : > { %v4196_v15 = vpop.f32.mrf.mxu2  ;;  %v4419_v46 = vpop.f32.mrf.mxu3 }
 0x337   : > { %v4259_v0 = vadd.f32 %v4196_v15, %v4035_v58  ;;  %v7916_v58 = vld [vmem:[%s8017_s8 + $0x1c4] sm:$0xe]  ;;  %v5401_v21 = vrot.slane %v7867_v6, 1 }
 0x338   : > { %v7917_v14 = vor.u32 %v7916_v58, %v8961_v3  ;;  %v5625_v3 = vrot.slane %v8977_v19, 1 }
 0x339   : > { %v8982_v51 = vadd.f32 %v4419_v46, %v4259_v0  ;;  %v3530_v17 = vpop.f32.mrf.mxu0  ;;  %v3977_v23 = vpop.f32.mrf.mxu1  ;;  %v4637_v46 = vsel %vm888_vm2, %v4632_v28, %v4636_v8 }
 0x33a   : > { %v3590_v47 = vadd.f32 %v3530_v17, %v8569_v13  ;;  %v5624_v53 = vrot.slane %v7917_v14, 1  ;;  %v9002_v17 = vld [vmem:[%s8017_s8 + $0x140] sm:$0xff] }
 0x33b   : > { %7273 = vmatmul.msk.bf16.gmra.mxu2 %vm380_vm1, %v4095_v29  ;;  %7292 = vmatmul.msk.bf16.gmra.mxu3 %vm380_vm1, %v4318_v9  ;;  %v5084_v29 = vsel %vm888_vm2, %v5079_v11, %v5083_v25  ;;  %v4642_v11 = vshll.u32 %v9002_v17, 16 }
 0x33c   : > { %v4037_v1 = vadd.f32 %v3977_v23, %v3590_v47  ;;  %v9005_v23 = vld [vmem:[%s8017_s8 + $0x1d4] sm:$0xff]  ;;  %v5626_v58 = vsel %vm4060_vm3, %v5624_v53, %v5625_v3  ;;  %v4638_v47 = vshrl.u32 %v8974_v45, 16 }
 0x33d   : > { %v4644_v14 = vrot.slane %v4642_v11, 1 }
 0x33e   : > { %v4199_v22 = vpop.f32.mrf.mxu2  ;;  %v4422_v61 = vpop.f32.mrf.mxu3  ;;  %v4640_v6 = vor.u32 %v4638_v47, %v4636_v8  ;;  %v5404_v8 = vrot.slane %v9002_v17, 1 }
 0x33f   : > { %v4260_v34 = vadd.f32 %v4199_v22, %v4036_v24  ;;  %v5402_v24 = vrot.slane %v8974_v45, 1  ;;  %v5085_v22 = vshrl.u32 %v8977_v19, 16 }
 0x341   : > { %v8992_v13 = vadd.f32 %v4422_v61, %v4260_v34  ;;  %v3533_v15 = vpop.f32.mrf.mxu0  ;;  %v3980_v0 = vpop.f32.mrf.mxu1  ;;  %v5089_v34 = vshll.u32 %v9005_v23, 16  ;;  %v5087_v45 = vor.u32 %v5085_v22, %v5083_v25  ;;  %v5627_v25 = vrot.slane %v9005_v23, 1 }
 0x342   : > { %v3591_v9 = vadd.f32 %v3533_v15, %v8577_v41  ;;  %v5403_v41 = vsel %vm4060_vm3, %v5401_v21, %v5402_v24 }
 0x343   : > { %v5091_v15 = vrot.slane %v5089_v34, 1 }
 0x344   : > { %v4038_v5 = vadd.f32 %v3980_v0, %v3591_v9  ;;  %7393 = vmatmul.msk.bf16.vlgmr.msrb.gmra.mxu0 %vm380_vm1, %v4637_v46  ;;  %7510 = vmatmul.msk.bf16.vlgmr.msrb.gmra.mxu1 %vm380_vm1, %v5084_v29 }
 0x345   : > { %v5092_v53 = vsel %vm888_vm2, %v5087_v45, %v5091_v15 }
 0x346   : > { %v4201_v43 = vpop.f32.mrf.mxu2  ;;  %v4424_v50 = vpop.f32.mrf.mxu3 }
 0x347   : > { %v4261_v30 = vadd.f32 %v4201_v43, %v4037_v1 }
 0x349   : > { %v9010_v33 = vadd.f32 %v4424_v50, %v4261_v30  ;;  %v3535_v60 = vpop.f32.mrf.mxu0  ;;  %v3982_v28 = vpop.f32.mrf.mxu1  ;;  %v9031_v50 = vld [vmem:[%s8017_s8 + $0x1dc] sm:$0xff] }
 0x34a   : > { %v3592_v61 = vadd.f32 %v3535_v60, %v8595_v42  ;;  %v4645_v42 = vsel %vm888_vm2, %v4640_v6, %v4644_v14  ;;  %v5405_v60 = vsel %vm4060_vm3, %v5402_v24, %v5404_v8  ;;  %v5093_v6 = vshrl.u32 %v9005_v23, 16 }
 0x34b   : > { %7529 = vmatmul.msk.bf16.vlgmr.msrb.gmra.mxu2 %vm380_vm1, %v5403_v41  ;;  %7548 = vmatmul.msk.bf16.vlgmr.msrb.gmra.mxu3 %vm380_vm1, %v5626_v58  ;;  %v5097_v45 = vshll.u32 %v9031_v50, 16 }
 0x34c   : > { %v4039_v1 = vadd.f32 %v3982_v28, %v3592_v61  ;;  %v4646_v28 = vshrl.u32 %v9002_v17, 16  ;;  %v5095_v17 = vor.u32 %v5093_v6, %v5091_v15  ;;  %v5629_v15 = vrot.slane %v9031_v50, 1 }
 0x34e   : > { %v4204_v0 = vpop.f32.mrf.mxu2  ;;  %v4427_v29 = vpop.f32.mrf.mxu3  ;;  %v4648_v24 = vor.u32 %v4646_v28, %v4644_v14 }
 0x34f   : > { %v4262_v46 = vadd.f32 %v4204_v0, %v4038_v5  ;;  %v9028_v5 = vld [vmem:[%s8017_s8 + $0x148] sm:$0xff] }
 0x350   : > { %v4650_v61 = vshll.u32 %v9028_v5, 16  ;;  %v5406_v14 = vrot.slane %v9028_v5, 1 }
 0x351   : > { %v9018_v9 = vadd.f32 %v4427_v29, %v4262_v46  ;;  %v3538_v19 = vpop.f32.mrf.mxu0  ;;  %v3985_v21 = vpop.f32.mrf.mxu1  ;;  %v5099_v46 = vrot.slane %v5097_v45, 1 }
 0x352   : > { %v3593_v43 = vadd.f32 %v3538_v19, %v8603_v38  ;;  %v5628_v38 = vsel %vm4060_vm3, %v5625_v3, %v5627_v25  ;;  %v4652_v3 = vrot.slane %v4650_v61, 1 }
 0x354   : > { %v4040_v30 = vadd.f32 %v3985_v21, %v3593_v43  ;;  %7394 = vmatmul.msk.bf16.gmra.mxu0 %vm380_vm1, %v4645_v42  ;;  %7511 = vmatmul.msk.bf16.gmra.mxu1 %vm380_vm1, %v5092_v53  ;;  %v5100_v43 = vsel %vm888_vm2, %v5095_v17, %v5099_v46 }
 0x356   : > { %v4206_v41 = vpop.f32.mrf.mxu2  ;;  %v4429_v47 = vpop.f32.mrf.mxu3 }
 0x357   : > { %v4263_v58 = vadd.f32 %v4206_v41, %v4039_v1 }
 0x359   : > { %v9036_v11 = vadd.f32 %v4429_v47, %v4263_v58  ;;  %v3540_v22 = vpop.f32.mrf.mxu0  ;;  %v3987_v34 = vpop.f32.mrf.mxu1  ;;  %v9057_v47 = vld [vmem:[%s8017_s8 + $0x1e4] sm:$0xff] }
 0x35a   : > { %v3594_v0 = vadd.f32 %v3540_v22, %v8621_v63  ;;  %v4653_v63 = vsel %vm888_vm2, %v4648_v24, %v4652_v3  ;;  %v5407_v22 = vsel %vm4060_vm3, %v5404_v8, %v5406_v14  ;;  %v5101_v24 = vshrl.u32 %v9031_v50, 16 }
 0x35b   : > { %7530 = vmatmul.msk.bf16.gmra.mxu2 %vm380_vm1, %v5405_v60  ;;  %7549 = vmatmul.msk.bf16.gmra.mxu3 %vm380_vm1, %v5628_v38  ;;  %v5105_v17 = vshll.u32 %v9057_v47, 16 }
 0x35c   : > { %v4041_v1 = vadd.f32 %v3987_v34, %v3594_v0  ;;  %v4654_v34 = vshrl.u32 %v9028_v5, 16  ;;  %v5103_v5 = vor.u32 %v5101_v24, %v5099_v46  ;;  %v5631_v46 = vrot.slane %v9057_v47, 1 }
 0x35e   : > { %v4209_v29 = vpop.f32.mrf.mxu2  ;;  %v4432_v21 = vpop.f32.mrf.mxu3  ;;  %v4656_v8 = vor.u32 %v4654_v34, %v4652_v3 }
 0x35f   : > { %v4264_v19 = vadd.f32 %v4209_v29, %v4040_v30  ;;  %v9054_v30 = vld [vmem:[%s8017_s8 + $0x150] sm:$0xff] }
 0x360   : > { %v4658_v0 = vshll.u32 %v9054_v30, 16  ;;  %v5408_v3 = vrot.slane %v9054_v30, 1 }
 0x361   : > { %v9044_v42 = vadd.f32 %v4432_v21, %v4264_v19  ;;  %v3543_v23 = vpop.f32.mrf.mxu0  ;;  %v3990_v53 = vpop.f32.mrf.mxu1  ;;  %v5107_v19 = vrot.slane %v5105_v17, 1 }
 0x362   : > { %v3595_v41 = vadd.f32 %v3543_v23, %v8629_v18  ;;  %v5630_v18 = vsel %vm4060_vm3, %v5627_v25, %v5629_v15  ;;  %v4660_v25 = vrot.slane %v4658_v0, 1 }
 0x364   : > { %v4042_v58 = vadd.f32 %v3990_v53, %v3595_v41  ;;  %7395 = vmatmul.msk.bf16.gmra.mxu0 %vm380_vm1, %v4653_v63  ;;  %7512 = vmatmul.msk.bf16.gmra.mxu1 %vm380_vm1, %v5100_v43  ;;  %v5108_v41 = vsel %vm888_vm2, %v5103_v5, %v5107_v19 }
 0x366   : > { %v4211_v60 = vpop.f32.mrf.mxu2  ;;  %v4434_v28 = vpop.f32.mrf.mxu3 }
 0x367   : > { %v4265_v38 = vadd.f32 %v4211_v60, %v4041_v1 }
 0x369   : > { %v9062_v61 = vadd.f32 %v4434_v28, %v4265_v38  ;;  %v3545_v6 = vpop.f32.mrf.mxu0  ;;  %v3992_v45 = vpop.f32.mrf.mxu1  ;;  %v9083_v28 = vld [vmem:[%s8017_s8 + $0x1ec] sm:$0xff] }
 0x36a   : > { %v3596_v29 = vadd.f32 %v3545_v6, %v8647_v32  ;;  %v4661_v32 = vsel %vm888_vm2, %v4656_v8, %v4660_v25  ;;  %v5409_v6 = vsel %vm4060_vm3, %v5406_v14, %v5408_v3  ;;  %v5109_v8 = vshrl.u32 %v9057_v47, 16 }
 0x36b   : > { %7531 = vmatmul.msk.bf16.gmra.mxu2 %vm380_vm1, %v5407_v22  ;;  %7550 = vmatmul.msk.bf16.gmra.mxu3 %vm380_vm1, %v5630_v18  ;;  %v5113_v5 = vshll.u32 %v9083_v28, 16 }
 0x36c   : > { %v4043_v1 = vadd.f32 %v3992_v45, %v3596_v29  ;;  %v4662_v45 = vshrl.u32 %v9054_v30, 16  ;;  %v5111_v30 = vor.u32 %v5109_v8, %v5107_v19  ;;  %v5633_v19 = vrot.slane %v9083_v28, 1 }
 0x36e   : > { %v4214_v21 = vpop.f32.mrf.mxu2  ;;  %v4437_v53 = vpop.f32.mrf.mxu3  ;;  %v4664_v14 = vor.u32 %v4662_v45, %v4660_v25 }
 0x36f   : > { %v4266_v23 = vadd.f32 %v4214_v21, %v4042_v58  ;;  %v9080_v58 = vld [vmem:[%s8017_s8 + $0x158] sm:$0xff] }
 0x370   : > { %v4666_v29 = vshll.u32 %v9080_v58, 16  ;;  %v5410_v25 = vrot.slane %v9080_v58, 1 }
 0x371   : > { %v9070_v63 = vadd.f32 %v4437_v53, %v4266_v23  ;;  %v3548_v50 = vpop.f32.mrf.mxu0  ;;  %v3995_v43 = vpop.f32.mrf.mxu1  ;;  %v5115_v23 = vrot.slane %v5113_v5, 1 }
 0x372   : > { %v3597_v60 = vadd.f32 %v3548_v50, %v8655_v54  ;;  %v5632_v54 = vsel %vm4060_vm3, %v5629_v15, %v5631_v46  ;;  %v4668_v15 = vrot.slane %v4666_v29, 1 }
 0x374   : > { %v4044_v38 = vadd.f32 %v3995_v43, %v3597_v60  ;;  %7396 = vmatmul.msk.bf16.gmra.mxu0 %vm380_vm1, %v4661_v32  ;;  %7513 = vmatmul.msk.bf16.gmra.mxu1 %vm380_vm1, %v5108_v41  ;;  %v5116_v60 = vsel %vm888_vm2, %v5111_v30, %v5115_v23 }
 0x376   : > { %v4216_v22 = vpop.f32.mrf.mxu2  ;;  %v4439_v34 = vpop.f32.mrf.mxu3 }
 0x377   : > { %v4267_v18 = vadd.f32 %v4216_v22, %v4043_v1 }
 0x379   : > { %v9088_v0 = vadd.f32 %v4439_v34, %v4267_v18  ;;  %v3550_v24 = vpop.f32.mrf.mxu0  ;;  %v3997_v17 = vpop.f32.mrf.mxu1  ;;  %v9109_v34 = vld [vmem:[%s8017_s8 + $0x1f4] sm:$0xff] }
 0x37a   : > { %v3598_v21 = vadd.f32 %v3550_v24, %v8673_v37  ;;  %v4669_v37 = vsel %vm888_vm2, %v4664_v14, %v4668_v15  ;;  %v5411_v24 = vsel %vm4060_vm3, %v5408_v3, %v5410_v25  ;;  %v5117_v14 = vshrl.u32 %v9083_v28, 16 }
 0x37b   : > { %7532 = vmatmul.msk.bf16.gmra.mxu2 %vm380_vm1, %v5409_v6  ;;  %7551 = vmatmul.msk.bf16.gmra.mxu3 %vm380_vm1, %v5632_v54  ;;  %v5121_v30 = vshll.u32 %v9109_v34, 16 }
 0x37c   : > { %v4045_v1 = vadd.f32 %v3997_v17, %v3598_v21  ;;  %v4670_v17 = vshrl.u32 %v9080_v58, 16  ;;  %v5119_v58 = vor.u32 %v5117_v14, %v5115_v23  ;;  %v5635_v23 = vrot.slane %v9109_v34, 1 }
 0x37e   : > { %v4219_v53 = vpop.f32.mrf.mxu2  ;;  %v4442_v43 = vpop.f32.mrf.mxu3  ;;  %v4672_v3 = vor.u32 %v4670_v17, %v4668_v15 }
 0x37f   : > { %v4268_v50 = vadd.f32 %v4219_v53, %v4044_v38  ;;  %v9106_v38 = vld [vmem:[%s8017_s8 + $0x160] sm:$0xff] }
 0x380   : > { %v4674_v21 = vshll.u32 %v9106_v38, 16  ;;  %v5412_v15 = vrot.slane %v9106_v38, 1 }
 0x381   : > { %v9096_v32 = vadd.f32 %v4442_v43, %v4268_v50  ;;  %v3553_v47 = vpop.f32.mrf.mxu0  ;;  %v4000_v41 = vpop.f32.mrf.mxu1  ;;  %v5123_v50 = vrot.slane %v5121_v30, 1 }
 0x382   : > { %v3599_v22 = vadd.f32 %v3553_v47, %v8681_v31  ;;  %v5634_v31 = vsel %vm4060_vm3, %v5631_v46, %v5633_v19  ;;  %v4676_v46 = vrot.slane %v4674_v21, 1 }
 0x384   : > { %v4046_v18 = vadd.f32 %v4000_v41, %v3599_v22  ;;  %7397 = vmatmul.msk.bf16.gmra.mxu0 %vm380_vm1, %v4669_v37  ;;  %7514 = vmatmul.msk.bf16.gmra.mxu1 %vm380_vm1, %v5116_v60  ;;  %v5124_v22 = vsel %vm888_vm2, %v5119_v58, %v5123_v50 }
 0x386   : > { %v4221_v6 = vpop.f32.mrf.mxu2  ;;  %v4444_v45 = vpop.f32.mrf.mxu3 }
 0x387   : > { %v4269_v54 = vadd.f32 %v4221_v6, %v4045_v1 }
 0x389   : > { %v9114_v29 = vadd.f32 %v4444_v45, %v4269_v54  ;;  %v3555_v8 = vpop.f32.mrf.mxu0  ;;  %v4002_v5 = vpop.f32.mrf.mxu1  ;;  %v9135_v45 = vld [vmem:[%s8017_s8 + $0x1fc] sm:$0xff] }
 0x38a   : > { %v3600_v53 = vadd.f32 %v3555_v8, %v8699_v7  ;;  %v4677_v7 = vsel %vm888_vm2, %v4672_v3, %v4676_v46  ;;  %v5413_v8 = vsel %vm4060_vm3, %v5410_v25, %v5412_v15  ;;  %v5125_v3 = vshrl.u32 %v9109_v34, 16 }
 0x38b   : > { %7533 = vmatmul.msk.bf16.gmra.mxu2 %vm380_vm1, %v5411_v24  ;;  %7552 = vmatmul.msk.bf16.gmra.mxu3 %vm380_vm1, %v5634_v31  ;;  %v5129_v58 = vshll.u32 %v9135_v45, 16 }
 0x38c   : > { %v4047_v1 = vadd.f32 %v4002_v5, %v3600_v53  ;;  %v4678_v5 = vshrl.u32 %v9106_v38, 16  ;;  %v5127_v38 = vor.u32 %v5125_v3, %v5123_v50  ;;  %v5637_v50 = vrot.slane %v9135_v45, 1 }
 0x38e   : > { %v4224_v43 = vpop.f32.mrf.mxu2  ;;  %v4447_v41 = vpop.f32.mrf.mxu3  ;;  %v4680_v25 = vor.u32 %v4678_v5, %v4676_v46 }
 0x38f   : > { %v4270_v47 = vadd.f32 %v4224_v43, %v4046_v18  ;;  %v9132_v18 = vld [vmem:[%s8017_s8 + $0x168] sm:$0xff] }
 0x390   : > { %v4682_v53 = vshll.u32 %v9132_v18, 16  ;;  %v5414_v46 = vrot.slane %v9132_v18, 1 }
 0x391   : > { %v9122_v37 = vadd.f32 %v4447_v41, %v4270_v47  ;;  %v3558_v28 = vpop.f32.mrf.mxu0  ;;  %v4005_v60 = vpop.f32.mrf.mxu1  ;;  %v5131_v47 = vrot.slane %v5129_v58, 1 }
 0x392   : > { %v3601_v6 = vadd.f32 %v3558_v28, %v8707_v10  ;;  %v5636_v10 = vsel %vm4060_vm3, %v5633_v19, %v5635_v23  ;;  %v4684_v19 = vrot.slane %v4682_v53, 1 }
 0x394   : > { %v4048_v54 = vadd.f32 %v4005_v60, %v3601_v6  ;;  %7398 = vmatmul.msk.bf16.gmra.mxu0 %vm380_vm1, %v4677_v7  ;;  %7515 = vmatmul.msk.bf16.gmra.mxu1 %vm380_vm1, %v5124_v22  ;;  %v5132_v6 = vsel %vm888_vm2, %v5127_v38, %v5131_v47 }
 0x396   : > { %v4226_v24 = vpop.f32.mrf.mxu2  ;;  %v4449_v17 = vpop.f32.mrf.mxu3 }
 0x397   : > { %v4271_v31 = vadd.f32 %v4226_v24, %v4047_v1 }
 0x399   : > { %v9140_v21 = vadd.f32 %v4449_v17, %v4271_v31  ;;  %v3560_v14 = vpop.f32.mrf.mxu0  ;;  %v4007_v30 = vpop.f32.mrf.mxu1  ;;  %v9161_v17 = vld [vmem:[%s8017_s8 + $0x204] sm:$0xff] }
 0x39a   : > { %v3602_v43 = vadd.f32 %v3560_v14, %v8725_v35  ;;  %v4685_v35 = vsel %vm888_vm2, %v4680_v25, %v4684_v19  ;;  %v5415_v14 = vsel %vm4060_vm3, %v5412_v15, %v5414_v46  ;;  %v5133_v25 = vshrl.u32 %v9135_v45, 16 }
 0x39b   : > { %7534 = vmatmul.msk.bf16.gmra.mxu2 %vm380_vm1, %v5413_v8  ;;  %7553 = vmatmul.msk.bf16.gmra.mxu3 %vm380_vm1, %v5636_v10  ;;  %v5137_v38 = vshll.u32 %v9161_v17, 16 }
 0x39c   : > { %v4049_v1 = vadd.f32 %v4007_v30, %v3602_v43  ;;  %v4686_v30 = vshrl.u32 %v9132_v18, 16  ;;  %v5135_v18 = vor.u32 %v5133_v25, %v5131_v47  ;;  %v5639_v47 = vrot.slane %v9161_v17, 1 }
 0x39e   : > { %v4229_v41 = vpop.f32.mrf.mxu2  ;;  %v4452_v60 = vpop.f32.mrf.mxu3  ;;  %v4688_v15 = vor.u32 %v4686_v30, %v4684_v19 }
 0x39f   : > { %v4272_v28 = vadd.f32 %v4229_v41, %v4048_v54  ;;  %v9158_v54 = vld [vmem:[%s8017_s8 + $0x170] sm:$0xff] }
 0x3a0   : > { %v4690_v43 = vshll.u32 %v9158_v54, 16  ;;  %v5416_v19 = vrot.slane %v9158_v54, 1 }
 0x3a1   : > { %v9148_v7 = vadd.f32 %v4452_v60, %v4272_v28  ;;  %v3563_v34 = vpop.f32.mrf.mxu0  ;;  %v4010_v22 = vpop.f32.mrf.mxu1  ;;  %v5139_v28 = vrot.slane %v5137_v38, 1 }
 0x3a2   : > { %v3603_v24 = vadd.f32 %v3563_v34, %v8733_v56  ;;  %v5638_v56 = vsel %vm4060_vm3, %v5635_v23, %v5637_v50  ;;  %v4692_v23 = vrot.slane %v4690_v43, 1 }
 0x3a4   : > { %v4050_v31 = vadd.f32 %v4010_v22, %v3603_v24  ;;  %7399 = vmatmul.msk.bf16.gmra.mxu0 %vm380_vm1, %v4685_v35  ;;  %7516 = vmatmul.msk.bf16.gmra.mxu1 %vm380_vm1, %v5132_v6  ;;  %v5140_v24 = vsel %vm888_vm2, %v5135_v18, %v5139_v28 }
 0x3a6   : > { %v4231_v8 = vpop.f32.mrf.mxu2  ;;  %v4454_v5 = vpop.f32.mrf.mxu3 }
 0x3a7   : > { %v4273_v10 = vadd.f32 %v4231_v8, %v4049_v1 }
 0x3a9   : > { %v9166_v53 = vadd.f32 %v4454_v5, %v4273_v10  ;;  %v3565_v3 = vpop.f32.mrf.mxu0  ;;  %v4012_v58 = vpop.f32.mrf.mxu1  ;;  %v9187_v5 = vld [vmem:[%s8017_s8 + $0x20c] sm:$0xff] }
 0x3aa   : > { %v3604_v41 = vadd.f32 %v3565_v3, %v8751_v36  ;;  %v4693_v36 = vsel %vm888_vm2, %v4688_v15, %v4692_v23  ;;  %v5417_v3 = vsel %vm4060_vm3, %v5414_v46, %v5416_v19  ;;  %v5141_v15 = vshrl.u32 %v9161_v17, 16 }
 0x3ab   : > { %7535 = vmatmul.msk.bf16.gmra.mxu2 %vm380_vm1, %v5415_v14  ;;  %7554 = vmatmul.msk.bf16.gmra.mxu3 %vm380_vm1, %v5638_v56  ;;  %v5145_v18 = vshll.u32 %v9187_v5, 16 }
 0x3ac   : > { %v4051_v1 = vadd.f32 %v4012_v58, %v3604_v41  ;;  %v4694_v58 = vshrl.u32 %v9158_v54, 16  ;;  %v5143_v54 = vor.u32 %v5141_v15, %v5139_v28  ;;  %v5641_v28 = vrot.slane %v9187_v5, 1 }
 0x3ae   : > { %v4234_v60 = vpop.f32.mrf.mxu2  ;;  %v4457_v22 = vpop.f32.mrf.mxu3  ;;  %v4696_v46 = vor.u32 %v4694_v58, %v4692_v23  ;;  %v5642_v58 = vsel %vm4060_vm3, %v5639_v47, %v5641_v28 }
 0x3af   : > { %v4274_v34 = vadd.f32 %v4234_v60, %v4050_v31  ;;  %v9184_v31 = vld [vmem:[%s8017_s8 + $0x178] sm:$0xff] }
 0x3b0   : > { %v4698_v41 = vshll.u32 %v9184_v31, 16  ;;  %v5418_v23 = vrot.slane %v9184_v31, 1 }
 0x3b1   : > { %v9174_v35 = vadd.f32 %v4457_v22, %v4274_v34  ;;  %v3568_v45 = vpop.f32.mrf.mxu0  ;;  %v4015_v6 = vpop.f32.mrf.mxu1  ;;  %v5147_v34 = vrot.slane %v5145_v18, 1 }
 0x3b2   : > { %v3605_v8 = vadd.f32 %v3568_v45, %v8759_v40  ;;  %v5640_v40 = vsel %vm4060_vm3, %v5637_v50, %v5639_v47  ;;  %v4700_v50 = vrot.slane %v4698_v41, 1 }
 0x3b4   : > { %v4052_v10 = vadd.f32 %v4015_v6, %v3605_v8  ;;  %7400 = vmatmul.msk.bf16.gmra.mxu0 %vm380_vm1, %v4693_v36  ;;  %7517 = vmatmul.msk.bf16.gmra.mxu1 %vm380_vm1, %v5140_v24  ;;  %v5148_v8 = vsel %vm888_vm2, %v5143_v54, %v5147_v34 }
 0x3b6   : > { %v4236_v14 = vpop.f32.mrf.mxu2  ;;  %v4459_v30 = vpop.f32.mrf.mxu3 }
 0x3b7   : > { %v4275_v56 = vadd.f32 %v4236_v14, %v4051_v1  ;;  %v9209_v14 = vld [vmem:[%s8017_s8 + $0x180] sm:$0xff] }
 0x3b9   : > { %v9192_v43 = vadd.f32 %v4459_v30, %v4275_v56  ;;  %v3570_v25 = vpop.f32.mrf.mxu0  ;;  %v4017_v38 = vpop.f32.mrf.mxu1 }
 0x3ba   : > { %v3606_v60 = vadd.f32 %v3570_v25, %v8777_v26  ;;  %v4701_v26 = vsel %vm888_vm2, %v4696_v46, %v4700_v50  ;;  %v4702_v25 = vshrl.u32 %v9184_v31, 16  ;;  %v5149_v46 = vshrl.u32 %v9187_v5, 16 }
 0x3bb   : > { %7536 = vmatmul.msk.bf16.gmra.mxu2 %vm380_vm1, %v5417_v3  ;;  %7555 = vmatmul.msk.bf16.gmra.mxu3 %vm380_vm1, %v5640_v40  ;;  %v5419_v40 = vsel %vm4060_vm3, %v5416_v19, %v5418_v23 }
 0x3bc   : > { %v4053_v1 = vadd.f32 %v4017_v38, %v3606_v60  ;;  %v4706_v38 = vshll.u32 %v9209_v14, 16  ;;  %v4704_v19 = vor.u32 %v4702_v25, %v4700_v50  ;;  %v5151_v31 = vor.u32 %v5149_v46, %v5147_v34  ;;  %v9231_v50 = vld [vmem:[%s9478_s2] ss:$0 sm:$0xff] }
 0x3bd   : > { %v5420_v34 = vrot.slane %v9209_v14, 1  ;;  %v4710_v46 = vshrl.u32 %v9209_v14, 16 }
 0x3be   : > { %v4239_v22 = vpop.f32.mrf.mxu2  ;;  %v4462_v6 = vpop.f32.mrf.mxu3 }
 0x3bf   : > { %v4276_v45 = vadd.f32 %v4239_v22, %v4052_v10  ;;  %v9212_v10 = vld [vmem:[%s8017_s8 + $0x214] sm:$0xff] }
 0x3c0   : > { %v5153_v54 = vshll.u32 %v9212_v10, 16 }
 0x3c1   : > { %v9200_v36 = vadd.f32 %v4462_v6, %v4276_v45  ;;  %v4829_v17 = vpop.f32.mrf.mxu0  ;;  %v5276_v24 = vpop.f32.mrf.mxu1 }
 0x3c2   : > { %v4914_v41 = vadd.f32 %v4829_v17, %v8785_v62  ;;  %v5155_v22 = vrot.slane %v5153_v54, 1 }
 0x3c4   : > { %7401 = vmatmul.msk.bf16.gmra.mxu0 %vm380_vm1, %v4701_v26  ;;  %7518 = vmatmul.msk.bf16.gmra.mxu1 %vm380_vm1, %v5148_v8  ;;  %v5361_v47 = vadd.f32 %v5276_v24, %v4914_v41  ;;  %v9237_v24 = vld [vmem:[%s8017_s8 + $0x188] sm:$0xff] }
 0x3c5   : > { %v4714_v54 = vshll.u32 %v9237_v24, 16 }
 0x3c6   : > { %v4241_v56 = vpop.f32.mrf.mxu2  ;;  %v4464_v3 = vpop.f32.mrf.mxu3 }
 0x3c7   : > { %v4277_v30 = vadd.f32 %v4241_v56, %v4053_v1  ;;  %v4708_v1 = vrot.slane %v4706_v38, 1  ;;  %v5156_v56 = vsel %vm888_vm2, %v5151_v31, %v5155_v22 }
 0x3c9   : > { %v9219_v15 = vadd.f32 %v4464_v3, %v4277_v30  ;;  %v4831_v18 = vpop.f32.mrf.mxu0  ;;  %v5278_v60 = vpop.f32.mrf.mxu1  ;;  %v4709_v8 = vsel %vm888_vm2, %v4704_v19, %v4708_v1  ;;  %v5643_v3 = vrot.slane %v9212_v10, 1  ;;  %v5157_v19 = vshrl.u32 %v9212_v10, 16 }
 0x3ca   : > { %v4915_v17 = vadd.f32 %v4831_v18, %v8803_v39  ;;  %v5421_v18 = vsel %vm4060_vm3, %v5418_v23, %v5420_v34  ;;  %v4712_v14 = vor.u32 %v4710_v46, %v4708_v1 }
 0x3cb   : > { %7537 = vmatmul.msk.bf16.gmra.mxu2 %vm380_vm1, %v5419_v40  ;;  %7556 = vmatmul.msk.bf16.gmra.mxu3 %vm380_vm1, %v5642_v58  ;;  %v9241_v40 = vld [vmem:[%s8017_s8 + $0x21c] sm:$0xff] }
 0x3cc   : > { %v5362_v39 = vadd.f32 %v5278_v60, %v4915_v17 }
 0x3ce   : > { %v5499_v45 = vpop.f32.mrf.mxu2  ;;  %v5722_v6 = vpop.f32.mrf.mxu3 }
 0x3cf   : > { %v5584_v62 = vadd.f32 %v5499_v45, %v5361_v47 }
 0x3d1   : > { %v4834_v26 = vpop.f32.mrf.mxu0  ;;  %v5281_v5 = vpop.f32.mrf.mxu1  ;;  %v5807_v30 = vadd.f32 %v5722_v6, %v5584_v62  ;;  %v5644_v62 = vsel %vm4060_vm3, %v5641_v28, %v5643_v3  ;;  %v5161_v6 = vshll.u32 %v9241_v40, 16 }
 0x3d2   : > { %v4916_v60 = vadd.f32 %v4834_v26, %v8811_v20  ;;  %v4716_v20 = vrot.slane %v4714_v54, 1  ;;  %v5159_v26 = vor.u32 %v5157_v19, %v5155_v22  ;;  %v5422_v19 = vrot.slane %v9237_v24, 1 }
 0x3d3   : > { %v5845_v25 = vadd.f32 %v9231_v50, %v5807_v30  ;;  %v5163_v30 = vrot.slane %v5161_v6, 1 }
 0x3d4   : > { %7402 = vmatmul.msk.bf16.gmra.mxu0 %vm380_vm1, %v4709_v8  ;;  %7519 = vmatmul.msk.bf16.gmra.mxu1 %vm380_vm1, %v5156_v56  ;;  %v5363_v8 = vadd.f32 %v5281_v5, %v4916_v60  ;;  %v4717_v46 = vsel %vm888_vm2, %v4712_v14, %v4716_v20  ;;  %v9270_v60 = vld [vmem:[%s8017_s8 + $0x190] sm:$0xff]  ;;  %v5423_v14 = vsel %vm4060_vm3, %v5420_v34, %v5422_v19 }
 0x3d5   : > { %v5913_v17 = vmul.f32 0.2, %v5845_v25  ;;  %vm5879_vm4 = vcmp.ge.f32.partialorder %v5845_v25, 0.0 }
 0x3d6   : > { %v5501_v58 = vpop.f32.mrf.mxu2  ;;  %v5724_v41 = vpop.f32.mrf.mxu3 }
 0x3d7   : > { %v5585_v38 = vadd.f32 %v5501_v58, %v5362_v39  ;;  %v5947_v28 = vsel %vm5879_vm4, %v5845_v25, %v5913_v17  ;;  %v5164_v25 = vsel %vm888_vm2, %v5159_v26, %v5163_v30  ;;  %v4718_v26 = vshrl.u32 %v9237_v24, 16 }
 0x3d9   : > { %v5808_v47 = vadd.f32 %v5724_v41, %v5585_v38  ;;  %v4836_v31 = vpop.f32.mrf.mxu0  ;;  %v5283_v45 = vpop.f32.mrf.mxu1  ;;  %v4720_v24 = vor.u32 %v4718_v26, %v4716_v20  ;;  %v9297_v26 = vld [vmem:[%s8017_s8 + $0x198] sm:$0xff] }
 0x3da   : > { %v4917_v22 = vadd.f32 %v4836_v31, %v8829_v57  ;;  %v9274_v57 = vld [vmem:[%s8017_s8 + $0x224] sm:$0xff] }
 0x3db   : > { %v5846_v23 = vadd.f32 %v9231_v50, %v5808_v47  ;;  %7538 = vmatmul.msk.bf16.gmra.mxu2 %vm380_vm1, %v5421_v18  ;;  %7557 = vmatmul.msk.bf16.gmra.mxu3 %vm380_vm1, %v5644_v62  ;;  %v5645_v62 = vrot.slane %v9241_v40, 1 }
 0x3dc   : > { %v5364_v47 = vadd.f32 %v5283_v45, %v4917_v22 }
 0x3dd   : > { %vm5880_vm5 = vcmp.ge.f32.partialorder %v5846_v23, 0.0  ;;  %v5914_v56 = vmul.f32 0.2, %v5846_v23 }
 0x3de   : > { %v5504_v39 = vpop.f32.mrf.mxu2  ;;  %v5727_v41 = vpop.f32.mrf.mxu3 }
 0x3df   : > { %v5948_v58 = vsel %vm5880_vm5, %v5846_v23, %v5914_v56  ;;  %v5586_v38 = vadd.f32 %v5504_v39, %v5363_v8  ;;  %v4722_v8 = vshll.u32 %v9270_v60, 16  ;;  %v5165_v56 = vshrl.u32 %v9241_v40, 16 }
 0x3e0   : > { %v7778_v1 = vpack.c.bf16 %v5948_v58, %v5947_v28 }
 0x3e1   : > { %v4839_v5 = vpop.f32.mrf.mxu0  ;;  %v5286_v18 = vpop.f32.mrf.mxu1  ;;  %v5809_v54 = vadd.f32 %v5727_v41, %v5586_v38  ;;  %v5646_v38 = vsel %vm4060_vm3, %v5643_v3, %v5645_v62  ;;  %v5169_v41 = vshll.u32 %v9274_v57, 16  ;;  %v4724_v40 = vrot.slane %v4722_v8, 1 }
 0x3e2   : > { %7779 = vst [vmem:[%s9260_s12] sm:$0xff] %v7778_v1   ;;  %v4918_v39 = vadd.f32 %v4839_v5, %v8837_v4  ;;  %v5167_v4 = vor.u32 %v5165_v56, %v5163_v30  ;;  %v5647_v56 = vrot.slane %v9274_v57, 1 }
 0x3e3   : > { %v5847_v6 = vadd.f32 %v9231_v50, %v5809_v54  ;;  %v5171_v10 = vrot.slane %v5169_v41, 1  ;;  %v4725_v20 = vsel %vm888_vm2, %v4720_v24, %v4724_v40  ;;  %v5173_v24 = vshrl.u32 %v9274_v57, 16 }
 0x3e4   : > { %7403 = vmatmul.msk.bf16.gmra.mxu0 %vm380_vm1, %v4717_v46  ;;  %7520 = vmatmul.msk.bf16.gmra.mxu1 %vm380_vm1, %v5164_v25  ;;  %v5365_v22 = vadd.f32 %v5286_v18, %v4918_v39 }
 0x3e5   : > { %v5915_v1 = vmul.f32 0.2, %v5847_v6  ;;  %vm5881_vm6 = vcmp.ge.f32.partialorder %v5847_v6, 0.0  ;;  %v5172_v30 = vsel %vm888_vm2, %v5167_v4, %v5171_v10  ;;  %v5175_v57 = vor.u32 %v5173_v24, %v5171_v10 }
 0x3e6   : > { %v5506_v31 = vpop.f32.mrf.mxu2  ;;  %v5729_v23 = vpop.f32.mrf.mxu3 }
 0x3e7   : > { %v5587_v17 = vadd.f32 %v5506_v31, %v5364_v47  ;;  %v5949_v3 = vsel %vm5881_vm6, %v5847_v6, %v5915_v1  ;;  %v5424_v6 = vrot.slane %v9270_v60, 1  ;;  %v4726_v1 = vshrl.u32 %v9270_v60, 16 }
 0x3e9   : > { %v5810_v45 = vadd.f32 %v5729_v23, %v5587_v17  ;;  %v4841_v28 = vpop.f32.mrf.mxu0  ;;  %v5288_v58 = vpop.f32.mrf.mxu1  ;;  %v5425_v41 = vsel %vm4060_vm3, %v5422_v19, %v5424_v6  ;;  %v4728_v19 = vor.u32 %v4726_v1, %v4724_v40 }
 0x3ea   : > { %v4919_v17 = vadd.f32 %v4841_v28, %v8855_v16  ;;  %v9301_v16 = vld [vmem:[%s8017_s8 + $0x22c] sm:$0xff] }
 0x3eb   : > { %v5848_v34 = vadd.f32 %v9231_v50, %v5810_v45  ;;  %7539 = vmatmul.msk.bf16.gmra.mxu2 %vm380_vm1, %v5423_v14  ;;  %7558 = vmatmul.msk.bf16.gmra.mxu3 %vm380_vm1, %v5646_v38  ;;  %v5649_v1 = vrot.slane %v9301_v16, 1 }
 0x3ec   : > { %v5366_v8 = vadd.f32 %v5288_v58, %v4919_v17 }
 0x3ed   : > { %vm5882_vm7 = vcmp.ge.f32.partialorder %v5848_v34, 0.0  ;;  %v5916_v5 = vmul.f32 0.2, %v5848_v34 }
 0x3ee   : > { %v5509_v46 = vpop.f32.mrf.mxu2  ;;  %v5732_v47 = vpop.f32.mrf.mxu3 }
 0x3ef   : > { %v5950_v25 = vsel %vm5882_vm7, %v5848_v34, %v5916_v5  ;;  %v5588_v54 = vadd.f32 %v5509_v46, %v5365_v22  ;;  %v4730_v34 = vshll.u32 %v9297_v26, 16  ;;  %v5648_v46 = vsel %vm4060_vm3, %v5645_v62, %v5647_v56 }
 0x3f0   : > { %v7783_v31 = vpack.c.bf16 %v5950_v25, %v5949_v3  ;;  %v5177_v3 = vshll.u32 %v9301_v16, 16 }
 0x3f1   : > { %v4844_v23 = vpop.f32.mrf.mxu0  ;;  %v5291_v14 = vpop.f32.mrf.mxu1  ;;  %v5811_v18 = vadd.f32 %v5732_v47, %v5588_v54  ;;  %v4732_v60 = vrot.slane %v4730_v34, 1 }
 0x3f2   : > { %7868 = vst [vmem:[%s9260_s12 + $0x8] sm:$0xff] %v7783_v31   ;;  %v4920_v4 = vadd.f32 %v4844_v23, %v8863_v12  ;;  %v5179_v31 = vrot.slane %v5177_v3, 1 }
 0x3f3   : > { %v5849_v45 = vadd.f32 %v9231_v50, %v5811_v18  ;;  %v4733_v40 = vsel %vm888_vm2, %v4728_v19, %v4732_v60 }
 0x3f4   : > { %7404 = vmatmul.msk.bf16.gmra.mxu0 %vm380_vm1, %v4725_v20  ;;  %7521 = vmatmul.msk.bf16.gmra.mxu1 %vm380_vm1, %v5172_v30  ;;  %v5367_v12 = vadd.f32 %v5291_v14, %v4920_v4  ;;  %v5180_v10 = vsel %vm888_vm2, %v5175_v57, %v5179_v31 }
 0x3f5   : > { %v5917_v25 = vmul.f32 0.2, %v5849_v45  ;;  %vm5883_vm8 = vcmp.ge.f32.partialorder %v5849_v45, 0.0 }
 0x3f6   : > { %v5511_v39 = vpop.f32.mrf.mxu2  ;;  %v5734_v38 = vpop.f32.mrf.mxu3 }
 0x3f7   : > { %v5589_v28 = vadd.f32 %v5511_v39, %v5366_v8  ;;  %v5951_v62 = vsel %vm5883_vm8, %v5849_v45, %v5917_v25  ;;  %v5426_v45 = vrot.slane %v9297_v26, 1  ;;  %v5181_v25 = vshrl.u32 %v9301_v16, 16 }
 0x3f9   : > { %v5812_v58 = vadd.f32 %v5734_v38, %v5589_v28  ;;  %v4846_v22 = vpop.f32.mrf.mxu0  ;;  %v5293_v5 = vpop.f32.mrf.mxu1  ;;  %v9322_v38 = vld [vmem:[%s8017_s8 + $0x1a0] sm:$0xff]  ;;  %v5183_v16 = vor.u32 %v5181_v25, %v5179_v31 }
 0x3fa   : > { %v4921_v8 = vadd.f32 %v4846_v22, %v8881_v49  ;;  %v9326_v49 = vld [vmem:[%s8017_s8 + $0x234] sm:$0xff]  ;;  %v5427_v22 = vsel %vm4060_vm3, %v5424_v6, %v5426_v45  ;;  %v4738_v3 = vshll.u32 %v9322_v38, 16 }
 0x3fb   : > { %v5850_v54 = vadd.f32 %v9231_v50, %v5812_v58  ;;  %7540 = vmatmul.msk.bf16.gmra.mxu2 %vm380_vm1, %v5425_v41  ;;  %7559 = vmatmul.msk.bf16.gmra.mxu3 %vm380_vm1, %v5648_v46  ;;  %v4734_v46 = vshrl.u32 %v9297_v26, 16 }
 0x3fc   : > { %v5368_v41 = vadd.f32 %v5293_v5, %v4921_v8  ;;  %v4740_v26 = vrot.slane %v4738_v3, 1 }
 0x3fd   : > { %vm5884_vm9 = vcmp.ge.f32.partialorder %v5850_v54, 0.0  ;;  %v5918_v47 = vmul.f32 0.2, %v5850_v54  ;;  %v4736_v6 = vor.u32 %v4734_v46, %v4732_v60 }
 0x3fe   : > { %v5514_v17 = vpop.f32.mrf.mxu2  ;;  %v5737_v30 = vpop.f32.mrf.mxu3 }
 0x3ff   : > { %v5952_v23 = vsel %vm5884_vm9, %v5850_v54, %v5918_v47  ;;  %v5590_v20 = vadd.f32 %v5514_v17, %v5367_v12  ;;  %v5650_v12 = vsel %vm4060_vm3, %v5647_v56, %v5649_v1  ;;  %v5185_v47 = vshll.u32 %v9326_v49, 16 }
 0x400   : > { %v7788_v18 = vpack.c.bf16 %v5952_v23, %v5951_v62  ;;  %v4741_v60 = vsel %vm888_vm2, %v4736_v6, %v4740_v26 }
 0x401   : > { %v4849_v39 = vpop.f32.mrf.mxu0  ;;  %v5296_v28 = vpop.f32.mrf.mxu1  ;;  %v5813_v14 = vadd.f32 %v5737_v30, %v5590_v20  ;;  %v5187_v20 = vrot.slane %v5185_v47, 1 }
 0x402   : > { %7869 = vst [vmem:[%s9260_s12 + $0x10] sm:$0xff] %v7788_v18   ;;  %v4922_v54 = vadd.f32 %v4849_v39, %v8889_v59 }
 0x403   : > { %v5851_v24 = vadd.f32 %v9231_v50, %v5813_v14  ;;  %v5188_v31 = vsel %vm888_vm2, %v5183_v16, %v5187_v20 }
 0x404   : > { %7405 = vmatmul.msk.bf16.gmra.mxu0 %vm380_vm1, %v4733_v40  ;;  %7522 = vmatmul.msk.bf16.gmra.mxu1 %vm380_vm1, %v5180_v10  ;;  %v5369_v59 = vadd.f32 %v5296_v28, %v4922_v54 }
 0x405   : > { %v5919_v17 = vmul.f32 0.2, %v5851_v24  ;;  %vm5885_vm10 = vcmp.ge.f32.partialorder %v5851_v24, 0.0 }
 0x406   : > { %v5516_v34 = vpop.f32.mrf.mxu2  ;;  %v5739_v58 = vpop.f32.mrf.mxu3 }
 0x407   : > { %v5591_v4 = vadd.f32 %v5516_v34, %v5368_v41  ;;  %v5953_v56 = vsel %vm5885_vm10, %v5851_v24, %v5919_v17  ;;  %v5428_v34 = vrot.slane %v9322_v38, 1  ;;  %v9347_v24 = vld [vmem:[%s8017_s8 + $0x1a8] sm:$0xff] }
 0x409   : > { %v5814_v5 = vadd.f32 %v5739_v58, %v5591_v4  ;;  %v4851_v19 = vpop.f32.mrf.mxu0  ;;  %v5298_v57 = vpop.f32.mrf.mxu1  ;;  %v5651_v58 = vrot.slane %v9326_v49, 1  ;;  %v5429_v54 = vsel %vm4060_vm3, %v5426_v45, %v5428_v34 }
 0x40a   : > { %v4923_v10 = vadd.f32 %v4851_v19, %v8907_v27  ;;  %v9351_v27 = vld [vmem:[%s8017_s8 + $0x23c] sm:$0xff]  ;;  %v4746_v19 = vshll.u32 %v9347_v24, 16 }
 0x40b   : > { %v5852_v62 = vadd.f32 %v9231_v50, %v5814_v5  ;;  %7541 = vmatmul.msk.bf16.gmra.mxu2 %vm380_vm1, %v5427_v22  ;;  %7560 = vmatmul.msk.bf16.gmra.mxu3 %vm380_vm1, %v5650_v12  ;;  %v4742_v5 = vshrl.u32 %v9322_v38, 16  ;;  %v5189_v12 = vshrl.u32 %v9326_v49, 16  ;;  %v5652_v6 = vsel %vm4060_vm3, %v5649_v1, %v5651_v58 }
 0x40c   : > { %v5370_v4 = vadd.f32 %v5298_v57, %v4923_v10  ;;  %v5193_v16 = vshll.u32 %v9351_v27, 16  ;;  %v4748_v38 = vrot.slane %v4746_v19, 1 }
 0x40d   : > { %vm5886_vm11 = vcmp.ge.f32.partialorder %v5852_v62, 0.0  ;;  %v5920_v23 = vmul.f32 0.2, %v5852_v62  ;;  %v4744_v45 = vor.u32 %v4742_v5, %v4740_v26  ;;  %v5191_v49 = vor.u32 %v5189_v12, %v5187_v20 }
 0x40e   : > { %v5519_v30 = vpop.f32.mrf.mxu2  ;;  %v5742_v39 = vpop.f32.mrf.mxu3  ;;  %v4750_v12 = vshrl.u32 %v9347_v24, 16 }
 0x40f   : > { %v5954_v18 = vsel %vm5886_vm11, %v5852_v62, %v5920_v23  ;;  %v5592_v8 = vadd.f32 %v5519_v30, %v5369_v59  ;;  %v4749_v26 = vsel %vm888_vm2, %v4744_v45, %v4748_v38 }
 0x410   : > { %v7793_v40 = vpack.c.bf16 %v5954_v18, %v5953_v56  ;;  %v5195_v56 = vrot.slane %v5193_v16, 1 }
 0x411   : > { %v4854_v14 = vpop.f32.mrf.mxu0  ;;  %v5301_v41 = vpop.f32.mrf.mxu1  ;;  %v5815_v28 = vadd.f32 %v5742_v39, %v5592_v8 }
 0x412   : > { %7870 = vst [vmem:[%s9260_s12 + $0x18] sm:$0xff] %v7793_v40   ;;  %v4924_v47 = vadd.f32 %v4854_v14, %v8915_v48  ;;  %v5196_v20 = vsel %vm888_vm2, %v5191_v49, %v5195_v56 }
 0x413   : > { %v5853_v46 = vadd.f32 %v9231_v50, %v5815_v28  ;;  %v5430_v28 = vrot.slane %v9347_v24, 1 }
 0x414   : > { %7406 = vmatmul.msk.bf16.gmra.mxu0 %vm380_vm1, %v4741_v60  ;;  %7523 = vmatmul.msk.bf16.gmra.mxu1 %vm380_vm1, %v5188_v31  ;;  %v5371_v48 = vadd.f32 %v5301_v41, %v4924_v47 }
 0x415   : > { %v5921_v59 = vmul.f32 0.2, %v5853_v46  ;;  %vm5887_vm12 = vcmp.ge.f32.partialorder %v5853_v46, 0.0  ;;  %v5431_v19 = vsel %vm4060_vm3, %v5428_v34, %v5430_v28 }
 0x416   : > { %v5521_v22 = vpop.f32.mrf.mxu2  ;;  %v5744_v25 = vpop.f32.mrf.mxu3 }
 0x417   : > { %v5593_v3 = vadd.f32 %v5521_v22, %v5370_v4  ;;  %v5955_v1 = vsel %vm5887_vm12, %v5853_v46, %v5921_v59  ;;  %v9372_v4 = vld [vmem:[%s8017_s8 + $0x1b0] sm:$0xff]  ;;  %v5653_v46 = vrot.slane %v9351_v27, 1 }
 0x418   : > { %v4754_v47 = vshll.u32 %v9372_v4, 16 }
 0x419   : > { %v5816_v57 = vadd.f32 %v5744_v25, %v5593_v3  ;;  %v4856_v17 = vpop.f32.mrf.mxu0  ;;  %v5303_v62 = vpop.f32.mrf.mxu1  ;;  %v5654_v59 = vsel %vm4060_vm3, %v5651_v58, %v5653_v46  ;;  %v7327_v58 = vld [vmem:[%s8017_s8 + $0x1b8] sm:$0x1] }
 0x41a   : > { %v4925_v14 = vadd.f32 %v4856_v17, %v8933_v52  ;;  %v9376_v52 = vld [vmem:[%s8017_s8 + $0x244] sm:$0xff]  ;;  %v4756_v45 = vrot.slane %v4754_v47, 1 }
 0x41b   : > { %v5854_v23 = vadd.f32 %v9231_v50, %v5816_v57  ;;  %7542 = vmatmul.msk.bf16.gmra.mxu2 %vm380_vm1, %v5429_v54  ;;  %7561 = vmatmul.msk.bf16.gmra.mxu3 %vm380_vm1, %v5652_v6  ;;  %v5197_v57 = vshrl.u32 %v9351_v27, 16 }
 0x41c   : > { %v5372_v22 = vadd.f32 %v5303_v62, %v4925_v14 }
 0x41d   : > { %vm5888_vm13 = vcmp.ge.f32.partialorder %v5854_v23, 0.0  ;;  %v5922_v30 = vmul.f32 0.2, %v5854_v23  ;;  %v5199_v49 = vor.u32 %v5197_v57, %v5195_v56 }
 0x41e   : > { %v5524_v18 = vpop.f32.mrf.mxu2  ;;  %v5747_v40 = vpop.f32.mrf.mxu3 }
 0x41f   : > { %v5956_v8 = vsel %vm5888_vm13, %v5854_v23, %v5922_v30  ;;  %v5594_v39 = vadd.f32 %v5524_v18, %v5371_v48  ;;  %v5201_v23 = vshll.u32 %v9376_v52, 16 }
 0x420   : > { %v7798_v10 = vpack.c.bf16 %v5956_v8, %v5955_v1  ;;  %v7444_v8 = vld [vmem:[%s8017_s8 + $0x24c] sm:$0x1] }
 0x421   : > { %v4859_v60 = vpop.f32.mrf.mxu0  ;;  %v5306_v31 = vpop.f32.mrf.mxu1  ;;  %v5817_v41 = vadd.f32 %v5747_v40, %v5594_v39  ;;  %v5203_v18 = vrot.slane %v5201_v23, 1  ;;  %v5205_v23 = vshrl.u32 %v9376_v52, 16 }
 0x422   : > { %7871 = vst [vmem:[%s9260_s12 + $0x20] sm:$0xff] %v7798_v10   ;;  %v4926_v17 = vadd.f32 %v4859_v60, %v8943_v2  ;;  %v4752_v2 = vor.u32 %v4750_v12, %v4748_v38 }
 0x423   : > { %v5855_v25 = vadd.f32 %v9231_v50, %v5817_v41 }
 0x424   : > { %7407 = vmatmul.msk.bf16.gmra.mxu0 %vm380_vm1, %v4749_v26  ;;  %7524 = vmatmul.msk.bf16.gmra.mxu1 %vm380_vm1, %v5196_v20  ;;  %v5373_v48 = vadd.f32 %v5306_v31, %v4926_v17  ;;  %v4607_v26 = vunpack.c.l.b16 %v7327_v58  ;;  %v4757_v56 = vsel %vm888_vm2, %v4752_v2, %v4756_v45  ;;  %v5204_v31 = vsel %vm888_vm2, %v5199_v49, %v5203_v18 }
 0x425   : > { %v5923_v34 = vmul.f32 0.2, %v5855_v25  ;;  %vm5889_vm14 = vcmp.ge.f32.partialorder %v5855_v25, 0.0 }
 0x426   : > { %v5526_v3 = vpop.f32.mrf.mxu2  ;;  %v5749_v5 = vpop.f32.mrf.mxu3 }
 0x427   : > { %v5595_v54 = vadd.f32 %v5526_v3, %v5372_v22  ;;  %v5957_v39 = vsel %vm5889_vm14, %v5855_v25, %v5923_v34  ;;  %v5054_v22 = vunpack.c.l.b16 %v7444_v8  ;;  %v5432_v25 = vrot.slane %v9372_v4, 1 }
 0x429   : > { %v5818_v62 = vadd.f32 %v5749_v5, %v5595_v54  ;;  %v4861_v6 = vpop.f32.mrf.mxu0  ;;  %v5308_v16 = vpop.f32.mrf.mxu1  ;;  %v4625_v54 = vpack.c.b16 %v4607_v26, %v4607_v26 }
 0x42a   : > { %v4927_v20 = vadd.f32 %v4861_v6, %v8954_v44  ;;  %v5072_v44 = vpack.c.b16 %v5054_v22, %v5054_v22  ;;  %v4758_v6 = vshrl.u32 %v9372_v4, 16 }
 0x42b   : > { %v5856_v24 = vadd.f32 %v9231_v50, %v5818_v62  ;;  %7543 = vmatmul.msk.bf16.gmra.mxu2 %vm380_vm1, %v5431_v19  ;;  %7562 = vmatmul.msk.bf16.gmra.mxu3 %vm380_vm1, %v5654_v59  ;;  %v5655_v19 = vrot.slane %v9376_v52, 1  ;;  %v5433_v62 = vsel %vm4060_vm3, %v5430_v28, %v5432_v25  ;;  %v4762_v59 = vshll.u32 %v4625_v54, 16 }
 0x42c   : > { %v5374_v5 = vadd.f32 %v5308_v16, %v4927_v20  ;;  %v4760_v28 = vor.u32 %v4758_v6, %v4756_v45  ;;  %v5207_v52 = vor.u32 %v5205_v23, %v5203_v18 }
 0x42d   : > { %vm5890_vm15 = vcmp.ge.f32.partialorder %v5856_v24, 0.0  ;;  %v5924_v30 = vmul.f32 0.2, %v5856_v24  ;;  %v5656_v49 = vsel %vm4060_vm3, %v5653_v46, %v5655_v19  ;;  %v4764_v4 = vrot.slane %v4762_v59, 1 }
 0x42e   : > { %v5529_v1 = vpop.f32.mrf.mxu2  ;;  %v5752_v14 = vpop.f32.mrf.mxu3 }
 0x42f   : > { %v5958_v40 = vsel %vm5890_vm15, %v5856_v24, %v5924_v30  ;;  %v5596_v10 = vadd.f32 %v5529_v1, %v5373_v48  ;;  %v5209_v48 = vshll.u32 %v5072_v44, 16 }
 0x430   : > { %v7803_v60 = vpack.c.bf16 %v5958_v40, %v5957_v39 }
 0x431   : > { %v4864_v41 = vpop.f32.mrf.mxu0  ;;  %v5311_v38 = vpop.f32.mrf.mxu1  ;;  %v5819_v3 = vadd.f32 %v5752_v14, %v5596_v10  ;;  %v5211_v8 = vrot.slane %v5209_v48, 1 }
 0x432   : > { %7872 = vst [vmem:[%s9260_s12 + $0x28] sm:$0xff] %v7803_v60   ;;  %v4928_v34 = vadd.f32 %v4864_v41, %v8965_v55  ;;  %v4765_v41 = vsel %vm888_vm2, %v4760_v28, %v4764_v4 }
 0x433   : > { %v5857_v47 = vadd.f32 %v9231_v50, %v5819_v3  ;;  %v5212_v45 = vsel %vm888_vm2, %v5207_v52, %v5211_v8 }
 0x434   : > { %7408 = vmatmul.msk.bf16.gmra.mxu0 %vm380_vm1, %v4757_v56  ;;  %7525 = vmatmul.msk.bf16.gmra.mxu1 %vm380_vm1, %v5204_v31  ;;  %v5375_v55 = vadd.f32 %v5311_v38, %v4928_v34  ;;  %v5434_v38 = vrot.slane %v4625_v54, 1  ;;  %v5657_v31 = vrot.slane %v5072_v44, 1 }
 0x435   : > { %v5925_v30 = vmul.f32 0.2, %v5857_v47  ;;  %vm5891_vm0 = vcmp.ge.f32.partialorder %v5857_v47, 0.0 }
 0x436   : > { %v5531_v12 = vpop.f32.mrf.mxu2  ;;  %v5754_v17 = vpop.f32.mrf.mxu3  ;;  %v5658_v6 = vsel %vm4060_vm3, %v5655_v19, %v5657_v31 }
 0x437   : > { %v5597_v57 = vadd.f32 %v5531_v12, %v5374_v5  ;;  %v5959_v39 = vsel %vm5891_vm0, %v5857_v47, %v5925_v30  ;;  %v5435_v12 = vsel %vm4060_vm3, %v5432_v25, %v5434_v38 }
 0x439   : > { %v5820_v24 = vadd.f32 %v5754_v17, %v5597_v57  ;;  %v4866_v2 = vpop.f32.mrf.mxu0  ;;  %v5313_v16 = vpop.f32.mrf.mxu1 }
 0x43a   : > { %v4929_v60 = vadd.f32 %v4866_v2, %v8982_v51 }
 0x43b   : > { %v5858_v58 = vadd.f32 %v9231_v50, %v5820_v24  ;;  %7544 = vmatmul.msk.bf16.gmra.mxu2 %vm380_vm1, %v5433_v62  ;;  %7563 = vmatmul.msk.bf16.gmra.mxu3 %vm380_vm1, %v5656_v49 }
 0x43c   : > { %v5376_v56 = vadd.f32 %v5313_v16, %v4929_v60 }
 0x43d   : > { %vm5892_vm4 = vcmp.ge.f32.partialorder %v5858_v58, 0.0  ;;  %v5926_v1 = vmul.f32 0.2, %v5858_v58 }
 0x43e   : > { %v5534_v27 = vpop.f32.mrf.mxu2  ;;  %v5757_v10 = vpop.f32.mrf.mxu3 }
 0x43f   : > { %v5960_v46 = vsel %vm5892_vm4, %v5858_v58, %v5926_v1  ;;  %v5598_v40 = vadd.f32 %v5534_v27, %v5375_v55 }
 0x440   : > { %v7808_v14 = vpack.c.bf16 %v5960_v46, %v5959_v39 }
 0x441   : > { %v4869_v26 = vpop.f32.mrf.mxu0  ;;  %v5316_v20 = vpop.f32.mrf.mxu1  ;;  %v5821_v18 = vadd.f32 %v5757_v10, %v5598_v40 }
 0x442   : > { %7873 = vst [vmem:[%s9260_s12 + $0x30] sm:$0xff] %v7808_v14   ;;  %v4930_v47 = vadd.f32 %v4869_v26, %v8992_v13 }
 0x443   : > { %v5859_v3 = vadd.f32 %v9231_v50, %v5821_v18 }
 0x444   : > { %7409 = vmatmul.msk.bf16.gmra.mxu0 %vm380_vm1, %v4765_v41  ;;  %7526 = vmatmul.msk.bf16.gmra.mxu1 %vm380_vm1, %v5212_v45  ;;  %v5377_v54 = vadd.f32 %v5316_v20, %v4930_v47 }
 0x445   : > { %v5927_v59 = vmul.f32 0.2, %v5859_v3  ;;  %vm5893_vm2 = vcmp.ge.f32.partialorder %v5859_v3, 0.0 }
 0x446   : > { %v5536_v22 = vpop.f32.mrf.mxu2  ;;  %v5759_v51 = vpop.f32.mrf.mxu3 }
 0x447   : > { %v5599_v5 = vadd.f32 %v5536_v22, %v5376_v56  ;;  %v5961_v34 = vsel %vm5893_vm2, %v5859_v3, %v5927_v59 }
 0x449   : > { %v5822_v57 = vadd.f32 %v5759_v51, %v5599_v5  ;;  %v4871_v17 = vpop.f32.mrf.mxu0  ;;  %v5318_v62 = vpop.f32.mrf.mxu1 }
 0x44a   : > { %v4931_v19 = vadd.f32 %v4871_v17, %v9010_v33 }
 0x44b   : > { %v5860_v23 = vadd.f32 %v9231_v50, %v5822_v57  ;;  %7545 = vmatmul.msk.bf16.gmra.mxu2 %vm380_vm1, %v5435_v12  ;;  %7564 = vmatmul.msk.bf16.gmra.mxu3 %vm380_vm1, %v5658_v6 }
 0x44c   : > { %v5378_v58 = vadd.f32 %v5318_v62, %v4931_v19 }
 0x44d   : > { %vm5894_vm5 = vcmp.ge.f32.partialorder %v5860_v23, 0.0  ;;  %v5928_v44 = vmul.f32 0.2, %v5860_v23 }
 0x44e   : > { %v5539_v25 = vpop.f32.mrf.mxu2  ;;  %v5762_v2 = vpop.f32.mrf.mxu3 }
 0x44f   : > { %v5962_v13 = vsel %vm5894_vm5, %v5860_v23, %v5928_v44  ;;  %v5600_v24 = vadd.f32 %v5539_v25, %v5377_v54 }
 0x450   : > { %v7813_v16 = vpack.c.bf16 %v5962_v13, %v5961_v34 }
 0x451   : > { %v4874_v49 = vpop.f32.mrf.mxu0  ;;  %v5321_v48 = vpop.f32.mrf.mxu1  ;;  %v5823_v30 = vadd.f32 %v5762_v2, %v5600_v24 }
 0x452   : > { %7874 = vst [vmem:[%s9260_s12 + $0x38] sm:$0xff] %v7813_v16   ;;  %v4932_v1 = vadd.f32 %v4874_v49, %v9018_v9 }
 0x453   : > { %v5861_v4 = vadd.f32 %v9231_v50, %v5823_v30 }
 0x454   : > { %v5379_v33 = vadd.f32 %v5321_v48, %v4932_v1 }
 0x455   : > { %v5929_v46 = vmul.f32 0.2, %v5861_v4  ;;  %vm5895_vm1 = vcmp.ge.f32.partialorder %v5861_v4, 0.0 }
 0x456   : > { %v5541_v28 = vpop.f32.mrf.mxu2  ;;  %v5764_v55 = vpop.f32.mrf.mxu3 }
 0x457   : > { %v5601_v52 = vadd.f32 %v5541_v28, %v5378_v58  ;;  %v5963_v60 = vsel %vm5895_vm1, %v5861_v4, %v5929_v46 }
 0x459   : > { %v5824_v8 = vadd.f32 %v5764_v55, %v5601_v52  ;;  %v4876_v27 = vpop.f32.mrf.mxu0  ;;  %v5323_v39 = vpop.f32.mrf.mxu1 }
 0x45a   : > { %v4933_v18 = vadd.f32 %v4876_v27, %v9036_v11 }
 0x45b   : > { %v5862_v40 = vadd.f32 %v9231_v50, %v5824_v8 }
 0x45c   : > { %v5380_v31 = vadd.f32 %v5323_v39, %v4933_v18 }
 0x45d   : > { %vm5896_vm3 = vcmp.ge.f32.partialorder %v5862_v40, 0.0  ;;  %v5930_v10 = vmul.f32 0.2, %v5862_v40 }
 0x45e   : > { %v5544_v14 = vpop.f32.mrf.mxu2  ;;  %v5767_v41 = vpop.f32.mrf.mxu3 }
 0x45f   : > { %v5964_v26 = vsel %vm5896_vm3, %v5862_v40, %v5930_v10  ;;  %v5602_v20 = vadd.f32 %v5544_v14, %v5379_v33 }
 0x460   : > { %v7818_v45 = vpack.c.bf16 %v5964_v26, %v5963_v60 }
 0x461   : > { %v4879_v9 = vpop.f32.mrf.mxu0  ;;  %v5326_v38 = vpop.f32.mrf.mxu1  ;;  %v5825_v56 = vadd.f32 %v5767_v41, %v5602_v20 }
 0x462   : > { %7875 = vst [vmem:[%s9260_s12 + $0x40] sm:$0xff] %v7818_v45   ;;  %v4934_v12 = vadd.f32 %v4879_v9, %v9044_v42 }
 0x463   : > { %v5863_v3 = vadd.f32 %v9231_v50, %v5825_v56 }
 0x464   : > { %v5381_v11 = vadd.f32 %v5326_v38, %v4934_v12 }
 0x465   : > { %v5931_v62 = vmul.f32 0.2, %v5863_v3  ;;  %vm5897_vm6 = vcmp.ge.f32.partialorder %v5863_v3, 0.0 }
 0x466   : > { %v5546_v22 = vpop.f32.mrf.mxu2  ;;  %v5769_v51 = vpop.f32.mrf.mxu3 }
 0x467   : > { %v5603_v5 = vadd.f32 %v5546_v22, %v5380_v31  ;;  %v5965_v54 = vsel %vm5897_vm6, %v5863_v3, %v5931_v62 }
 0x469   : > { %v5826_v47 = vadd.f32 %v5769_v51, %v5603_v5  ;;  %v4881_v57 = vpop.f32.mrf.mxu0  ;;  %v5328_v17 = vpop.f32.mrf.mxu1 }
 0x46a   : > { %v4935_v24 = vadd.f32 %v4881_v57, %v9062_v61 }
 0x46b   : > { %v5864_v6 = vadd.f32 %v9231_v50, %v5826_v47 }
 0x46c   : > { %v5382_v19 = vadd.f32 %v5328_v17, %v4935_v24 }
 0x46d   : > { %vm5898_vm7 = vcmp.ge.f32.partialorder %v5864_v6, 0.0  ;;  %v5932_v59 = vmul.f32 0.2, %v5864_v6 }
 0x46e   : > { %v5549_v23 = vpop.f32.mrf.mxu2  ;;  %v5772_v34 = vpop.f32.mrf.mxu3 }
 0x46f   : > { %v5966_v44 = vsel %vm5898_vm7, %v5864_v6, %v5932_v59  ;;  %v5604_v25 = vadd.f32 %v5549_v23, %v5381_v11 }
 0x470   : > { %v7823_v13 = vpack.c.bf16 %v5966_v44, %v5965_v54 }
 0x471   : > { %v4884_v42 = vpop.f32.mrf.mxu0  ;;  %v5331_v2 = vpop.f32.mrf.mxu1  ;;  %v5827_v16 = vadd.f32 %v5772_v34, %v5604_v25 }
 0x472   : > { %7876 = vst [vmem:[%s9260_s12 + $0x48] sm:$0xff] %v7823_v13   ;;  %v4936_v28 = vadd.f32 %v4884_v42, %v9070_v63 }
 0x473   : > { %v5865_v48 = vadd.f32 %v9231_v50, %v5827_v16 }
 0x474   : > { %v5383_v61 = vadd.f32 %v5331_v2, %v4936_v28 }
 0x475   : > { %v5933_v1 = vmul.f32 0.2, %v5865_v48  ;;  %vm5899_vm8 = vcmp.ge.f32.partialorder %v5865_v48, 0.0 }
 0x476   : > { %v5551_v49 = vpop.f32.mrf.mxu2  ;;  %v5774_v58 = vpop.f32.mrf.mxu3 }
 0x477   : > { %v5605_v30 = vadd.f32 %v5551_v49, %v5382_v19  ;;  %v5967_v46 = vsel %vm5899_vm8, %v5865_v48, %v5933_v1 }
 0x479   : > { %v5828_v4 = vadd.f32 %v5774_v58, %v5605_v30  ;;  %v4886_v52 = vpop.f32.mrf.mxu0  ;;  %v5333_v55 = vpop.f32.mrf.mxu1 }
 0x47a   : > { %v4937_v60 = vadd.f32 %v4886_v52, %v9088_v0 }
 0x47b   : > { %v5866_v8 = vadd.f32 %v9231_v50, %v5828_v4 }
 0x47c   : > { %v5384_v41 = vadd.f32 %v5333_v55, %v4937_v60 }
 0x47d   : > { %vm5900_vm9 = vcmp.ge.f32.partialorder %v5866_v8, 0.0  ;;  %v5934_v27 = vmul.f32 0.2, %v5866_v8 }
 0x47e   : > { %v5554_v39 = vpop.f32.mrf.mxu2  ;;  %v5777_v10 = vpop.f32.mrf.mxu3 }
 0x47f   : > { %v5968_v40 = vsel %vm5900_vm9, %v5866_v8, %v5934_v27  ;;  %v5606_v33 = vadd.f32 %v5554_v39, %v5383_v61 }
 0x480   : > { %v7828_v14 = vpack.c.bf16 %v5968_v40, %v5967_v46 }
 0x481   : > { %v4889_v63 = vpop.f32.mrf.mxu0  ;;  %v5336_v26 = vpop.f32.mrf.mxu1  ;;  %v5829_v20 = vadd.f32 %v5777_v10, %v5606_v33 }
 0x482   : > { %7877 = vst [vmem:[%s9260_s12 + $0x50] sm:$0xff] %v7828_v14   ;;  %v4938_v56 = vadd.f32 %v4889_v63, %v9096_v32 }
 0x483   : > { %v5867_v18 = vadd.f32 %v9231_v50, %v5829_v20 }
 0x484   : > { %v5385_v0 = vadd.f32 %v5336_v26, %v4938_v56 }
 0x485   : > { %v5935_v5 = vmul.f32 0.2, %v5867_v18  ;;  %vm5901_vm10 = vcmp.ge.f32.partialorder %v5867_v18, 0.0 }
 0x486   : > { %v5556_v45 = vpop.f32.mrf.mxu2  ;;  %v5779_v38 = vpop.f32.mrf.mxu3 }
 0x487   : > { %v5607_v9 = vadd.f32 %v5556_v45, %v5384_v41  ;;  %v5969_v57 = vsel %vm5901_vm10, %v5867_v18, %v5935_v5 }
 0x489   : > { %v5830_v31 = vadd.f32 %v5779_v38, %v5607_v9  ;;  %v4891_v22 = vpop.f32.mrf.mxu0  ;;  %v5338_v3 = vpop.f32.mrf.mxu1 }
 0x48a   : > { %v4939_v59 = vadd.f32 %v4891_v22, %v9114_v29 }
 0x48b   : > { %v5868_v51 = vadd.f32 %v9231_v50, %v5830_v31 }
 0x48c   : > { %v5386_v44 = vadd.f32 %v5338_v3, %v4939_v59 }
 0x48d   : > { %vm5902_vm11 = vcmp.ge.f32.partialorder %v5868_v51, 0.0  ;;  %v5936_v12 = vmul.f32 0.2, %v5868_v51 }
 0x48e   : > { %v5559_v47 = vpop.f32.mrf.mxu2  ;;  %v5782_v6 = vpop.f32.mrf.mxu3 }
 0x48f   : > { %v5970_v17 = vsel %vm5902_vm11, %v5868_v51, %v5936_v12  ;;  %v5608_v62 = vadd.f32 %v5559_v47, %v5385_v0 }
 0x490   : > { %v7833_v11 = vpack.c.bf16 %v5970_v17, %v5969_v57 }
 0x491   : > { %v4894_v32 = vpop.f32.mrf.mxu0  ;;  %v5341_v23 = vpop.f32.mrf.mxu1  ;;  %v5831_v54 = vadd.f32 %v5782_v6, %v5608_v62 }
 0x492   : > { %7878 = vst [vmem:[%s9260_s12 + $0x58] sm:$0xff] %v7833_v11   ;;  %v4940_v42 = vadd.f32 %v4894_v32, %v9122_v37 }
 0x493   : > { %v5869_v34 = vadd.f32 %v9231_v50, %v5831_v54 }
 0x494   : > { %v5387_v29 = vadd.f32 %v5341_v23, %v4940_v42 }
 0x495   : > { %v5937_v49 = vmul.f32 0.2, %v5869_v34  ;;  %vm5903_vm12 = vcmp.ge.f32.partialorder %v5869_v34, 0.0 }
 0x496   : > { %v5561_v25 = vpop.f32.mrf.mxu2  ;;  %v5784_v24 = vpop.f32.mrf.mxu3 }
 0x497   : > { %v5609_v13 = vadd.f32 %v5561_v25, %v5386_v44  ;;  %v5971_v28 = vsel %vm5903_vm12, %v5869_v34, %v5937_v49 }
 0x499   : > { %v5832_v2 = vadd.f32 %v5784_v24, %v5609_v13  ;;  %v4896_v16 = vpop.f32.mrf.mxu0  ;;  %v5343_v19 = vpop.f32.mrf.mxu1 }
 0x49a   : > { %v4941_v8 = vadd.f32 %v4896_v16, %v9140_v21 }
 0x49b   : > { %v5870_v48 = vadd.f32 %v9231_v50, %v5832_v2 }
 0x49c   : > { %v5388_v39 = vadd.f32 %v5343_v19, %v4941_v8 }
 0x49d   : > { %vm5904_vm13 = vcmp.ge.f32.partialorder %v5870_v48, 0.0  ;;  %v5938_v30 = vmul.f32 0.2, %v5870_v48 }
 0x49e   : > { %v5564_v58 = vpop.f32.mrf.mxu2  ;;  %v5787_v55 = vpop.f32.mrf.mxu3 }
 0x49f   : > { %v5972_v4 = vsel %vm5904_vm13, %v5870_v48, %v5938_v30  ;;  %v5610_v52 = vadd.f32 %v5564_v58, %v5387_v29 }
 0x4a0   : > { %v7838_v1 = vpack.c.bf16 %v5972_v4, %v5971_v28 }
 0x4a1   : > { %v4899_v37 = vpop.f32.mrf.mxu0  ;;  %v5346_v61 = vpop.f32.mrf.mxu1  ;;  %v5833_v27 = vadd.f32 %v5787_v55, %v5610_v52 }
 0x4a2   : > { %7879 = vst [vmem:[%s9260_s12 + $0x60] sm:$0xff] %v7838_v1   ;;  %v4942_v14 = vadd.f32 %v4899_v37, %v9148_v7 }
 0x4a3   : > { %v5871_v40 = vadd.f32 %v9231_v50, %v5833_v27 }
 0x4a4   : > { %v5389_v21 = vadd.f32 %v5346_v61, %v4942_v14 }
 0x4a5   : > { %v5939_v20 = vmul.f32 0.2, %v5871_v40  ;;  %vm5905_vm14 = vcmp.ge.f32.partialorder %v5871_v40, 0.0 }
 0x4a6   : > { %v5566_v46 = vpop.f32.mrf.mxu2  ;;  %v5789_v10 = vpop.f32.mrf.mxu3 }
 0x4a7   : > { %v5611_v33 = vadd.f32 %v5566_v46, %v5388_v39  ;;  %v5973_v9 = vsel %vm5905_vm14, %v5871_v40, %v5939_v20 }
 0x4a9   : > { %v5834_v60 = vadd.f32 %v5789_v10, %v5611_v33  ;;  %v4901_v63 = vpop.f32.mrf.mxu0  ;;  %v5348_v26 = vpop.f32.mrf.mxu1 }
 0x4aa   : > { %v4943_v3 = vadd.f32 %v4901_v63, %v9166_v53 }
 0x4ab   : > { %v5872_v41 = vadd.f32 %v9231_v50, %v5834_v60  ;;  %v7911_v50 = vld [vmem:[%s9478_s2] ss:$0 sm:$0xff] }
 0x4ac   : > { %v5390_v0 = vadd.f32 %v5348_v26, %v4943_v3 }
 0x4ad   : > { %vm5906_vm15 = vcmp.ge.f32.partialorder %v5872_v41, 0.0  ;;  %v5940_v45 = vmul.f32 0.2, %v5872_v41 }
 0x4ae   : > { %v5569_v18 = vpop.f32.mrf.mxu2  ;;  %v5792_v31 = vpop.f32.mrf.mxu3 }
 0x4af   : > { %v5974_v38 = vsel %vm5906_vm15, %v5872_v41, %v5940_v45  ;;  %v5612_v56 = vadd.f32 %v5569_v18, %v5389_v21 }
 0x4b0   : > { %v7843_v22 = vpack.c.bf16 %v5974_v38, %v5973_v9 }
 0x4b1   : > { %v4904_v7 = vpop.f32.mrf.mxu0  ;;  %v5835_v5 = vadd.f32 %v5792_v31, %v5612_v56  ;;  %v5351_v51 = vpop.f32.mrf.mxu1 }
 0x4b2   : > { %7880 = vst [vmem:[%s9260_s12 + $0x68] sm:$0xff] %v7843_v22   ;;  %v4944_v62 = vadd.f32 %v4904_v7, %v9174_v35 }
 0x4b3   : > { %v5873_v47 = vadd.f32 %v7911_v50, %v5835_v5 }
 0x4b4   : > { %v5391_v32 = vadd.f32 %v5351_v51, %v4944_v62 }
 0x4b5   : > { %v5941_v59 = vmul.f32 0.2, %v5873_v47  ;;  %vm5907_vm0 = vcmp.ge.f32.partialorder %v5873_v47, 0.0 }
 0x4b6   : > { %v5571_v12 = vpop.f32.mrf.mxu2  ;;  %v5794_v17 = vpop.f32.mrf.mxu3 }
 0x4b7   : > { %v5613_v57 = vadd.f32 %v5571_v12, %v5390_v0  ;;  %v5975_v25 = vsel %vm5907_vm0, %v5873_v47, %v5941_v59 }
 0x4b9   : > { %v5836_v6 = vadd.f32 %v5794_v17, %v5613_v57  ;;  %v4906_v11 = vpop.f32.mrf.mxu0  ;;  %v5353_v54 = vpop.f32.mrf.mxu1 }
 0x4ba   : > { %v4945_v2 = vadd.f32 %v4906_v11, %v9192_v43 }
 0x4bb   : > { %v5874_v53 = vadd.f32 %v7911_v50, %v5836_v6 }
 0x4bc   : > { %v5392_v19 = vadd.f32 %v5353_v54, %v4945_v2 }
 0x4bd   : > { %vm5908_vm4 = vcmp.ge.f32.partialorder %v5874_v53, 0.0  ;;  %v5942_v23 = vmul.f32 0.2, %v5874_v53 }
 0x4be   : > { %v5574_v44 = vpop.f32.mrf.mxu2  ;;  %v5797_v24 = vpop.f32.mrf.mxu3 }
 0x4bf   : > { %v5976_v34 = vsel %vm5908_vm4, %v5874_v53, %v5942_v23  ;;  %v5614_v13 = vadd.f32 %v5574_v44, %v5391_v32 }
 0x4c0   : > { %v7848_v42 = vpack.c.bf16 %v5976_v34, %v5975_v25 }
 0x4c1   : > { %v5837_v35 = vadd.f32 %v5797_v24, %v5614_v13  ;;  %v4909_v16 = vpop.f32.mrf.mxu0  ;;  %v5356_v58 = vpop.f32.mrf.mxu1 }
 0x4c2   : > { %7881 = vst [vmem:[%s9260_s12 + $0x70] sm:$0xff] %v7848_v42   ;;  %v4946_v28 = vadd.f32 %v4909_v16, %v9200_v36 }
 0x4c3   : > { %v5875_v48 = vadd.f32 %v7911_v50, %v5837_v35 }
 0x4c4   : > { %v5393_v1 = vadd.f32 %v5356_v58, %v4946_v28 }
 0x4c5   : > { %v5943_v52 = vmul.f32 0.2, %v5875_v48  ;;  %vm5909_vm2 = vcmp.ge.f32.partialorder %v5875_v48, 0.0 }
 0x4c6   : > { %v5576_v49 = vpop.f32.mrf.mxu2  ;;  %v5799_v30 = vpop.f32.mrf.mxu3 }
 0x4c7   : > { %v5615_v29 = vadd.f32 %v5576_v49, %v5392_v19  ;;  %v5977_v61 = vsel %vm5909_vm2, %v5875_v48, %v5943_v52 }
 0x4c9   : > { %v5838_v4 = vadd.f32 %v5799_v30, %v5615_v29  ;;  %v4911_v43 = vpop.f32.mrf.mxu0  ;;  %v5358_v10 = vpop.f32.mrf.mxu1 }
 0x4ca   : > { %v4947_v33 = vadd.f32 %v4911_v43, %v9219_v15 }
 0x4cb   : > { %v5876_v55 = vadd.f32 %v7911_v50, %v5838_v4 }
 0x4cc   : > { %v5394_v14 = vadd.f32 %v5358_v10, %v4947_v33 }
 0x4cd   : > { %vm5910_vm5 = vcmp.ge.f32.partialorder %v5876_v55, 0.0  ;;  %v5944_v8 = vmul.f32 0.2, %v5876_v55 }
 0x4ce   : > { %v5579_v37 = vpop.f32.mrf.mxu2  ;;  %v5802_v46 = vpop.f32.mrf.mxu3 }
 0x4cf   : > { %v5978_v27 = vsel %vm5910_vm5, %v5876_v55, %v5944_v8  ;;  %v5616_v39 = vadd.f32 %v5579_v37, %v5393_v1 }
 0x4d0   : > { %v7853_v40 = vpack.c.bf16 %v5978_v27, %v5977_v61 }
 0x4d1   : > { %v5839_v36 = vadd.f32 %v5802_v46, %v5616_v39 }
 0x4d2   : > { %7882 = vst [vmem:[%s9260_s12 + $0x78] sm:$0xff] %v7853_v40  }
 0x4d3   : > { %v5877_v63 = vadd.f32 %v7911_v50, %v5839_v36 }
 0x4d5   : > { %v5945_v21 = vmul.f32 0.2, %v5877_v63  ;;  %vm5911_vm1 = vcmp.ge.f32.partialorder %v5877_v63, 0.0 }
 0x4d6   : > { %v5581_v60 = vpop.f32.mrf.mxu2  ;;  %v5804_v20 = vpop.f32.mrf.mxu3 }
 0x4d7   : > { %v5617_v26 = vadd.f32 %v5581_v60, %v5394_v14  ;;  %v5979_v9 = vsel %vm5911_vm1, %v5877_v63, %v5945_v21 }
 0x4d9   : > { %v5840_v41 = vadd.f32 %v5804_v20, %v5617_v26 }
 0x4db   : > { %v5878_v45 = vadd.f32 %v7911_v50, %v5840_v41 }
 0x4dd   : > { %vm5912_vm3 = vcmp.ge.f32.partialorder %v5878_v45, 0.0  ;;  %v5946_v18 = vmul.f32 0.2, %v5878_v45 }
 0x4df   : > { %v5980_v38 = vsel %vm5912_vm3, %v5878_v45, %v5946_v18 }
 0x4e0   : > { %v7858_v56 = vpack.c.bf16 %v5980_v38, %v5979_v9 }
 0x4e2   : > { %7883 = vst [vmem:[%s9260_s12 + $0x80] sm:$0xff] %v7858_v56  }
 0x4e3 PF: > { %s13_s14 = sadd.s32 1, %s7940_s14   ;;  %s9480_s12 = smov %s7936_s13 }
 0x4e4   : > { %p10_p5 = scmp.ge.s32.totalorder %s13_s14, 4   ;;  %s9481_s13 = smov %s9483_s15 }
 0x4e6   :  { %12 = sbr.rel (!%p10_p5) target bundleno = 2 (0x2), region = 86 }

// kernel: _lambda_.12
= control target key start
LH: loop header
LB: loop body
LE: loop exit
PB: predicated region body
PF: predicated region fallthrough
CT: control target
= control target key end

     0   :  { %s318_s12 = smov 0   ;;  %s341_s0 = inlined_call_operand.vmem [shape: bf16[2,20,128], index: 0, kind: input, shape index: {}]   ;;  %s342_s1 = inlined_call_operand.vmem [shape: f32[1,128], index: 1, kind: input, shape index: {}]   ;;  %s343_s2 = inlined_call_operand.vmem [shape: f32[1,128], index: 2, kind: input, shape index: {}]   ;;  %s344_s3 = inlined_call_operand.vmem [shape: bf16[2,20,128], index: 3, kind: output, shape index: {}]  }
   0x1 LB: > { %s261_s13 = sadd.s32 4294967295, %s296_s12   ;;  %p265_p0 = scmp.ge.s32.totalorder %s296_s12, 1  ;;  %s296_s12 = sphi %s318_s12, %s13_s12  }
   0x2   : > { %p137_p1 = scmp.lt.s32.totalorder %s296_s12, 3 }
   0x4   : > { %p138_p2 = pnand %p265_p0, %p137_p1 }
   0x5   : > { %p161_p3 = scmp.lt.s32.totalorder (!%p138_p2), %s261_s13, 1 }
   0x6   : > { %141 = sbr.rel (%p138_p2) target bundleno = 29 (0x1d), region = 32 }
   0xb   : > { %s346_s13 = smov (!%p161_p3, %s261_s13), 1  ;;  %v288_v0 = vld [vmem:[%s342_s1] ss:$0 sm:$0xff] }
   0xc   : > { %s279_s14 = smul.u32 12, %s346_s13  ;;  %v289_v6 = vld [vmem:[%s343_s2] ss:$0 sm:$0xff] }
   0xe   : > { %s165_s17 = scalar_lea.vmem %s341_s0, %s279_s14  ;;  %s170_s24 = scalar_lea.vmem %s344_s3, %s279_s14 }
   0xf   : > { %v271_v1 = vld [vmem:[%s165_s17] sm:$0xff]   ;;  %v173_v2 = vld [vmem:[%s165_s17 + $0x8] sm:$0x3] }
  0x10   : > { %v272_v3 = vunpack.c.l.bf16 %v271_v1  ;;  %v273_v4 = vunpack.c.h.bf16 %v271_v1  ;;  %v176_v5 = vunpack.c.l.bf16 %v173_v2 }
  0x12   : > { %v181_v7 = vmul.f32 %v288_v0, %v272_v3  ;;  %v182_v8 = vmul.f32 %v288_v0, %v273_v4  ;;  %v183_v9 = vmul.f32 %v288_v0, %v176_v5 }
  0x14   : > { %v188_v10 = vadd.f32 %v289_v6, %v181_v7  ;;  %v189_v11 = vadd.f32 %v289_v6, %v182_v8  ;;  %v190_v12 = vadd.f32 %v289_v6, %v183_v9 }
  0x16   : > { %vm191_vm0 = vcmp.ge.f32.partialorder %v188_v10, 0.0  ;;  %vm192_vm1 = vcmp.ge.f32.partialorder %v189_v11, 0.0  ;;  %v194_v13 = vmul.f32 0.2, %v188_v10  ;;  %v195_v14 = vmul.f32 0.2, %v189_v11 }
  0x17   : > { %vm193_vm2 = vcmp.ge.f32.partialorder %v190_v12, 0.0  ;;  %v196_v15 = vmul.f32 0.2, %v190_v12 }
  0x18   : > { %v197_v16 = vsel %vm191_vm0, %v188_v10, %v194_v13  ;;  %v198_v17 = vsel %vm192_vm1, %v189_v11, %v195_v14 }
  0x19   : > { %v277_v18 = vpack.c.bf16 %v198_v17, %v197_v16  ;;  %v199_v19 = vsel %vm193_vm2, %v190_v12, %v196_v15 }
  0x1a   : > { %v202_v20 = vpack.c.bf16 %v199_v19, %v199_v19 }
  0x1b   : > { %278 = vst [vmem:[%s170_s24] sm:$0xff] %v277_v18  }
  0x1c   : > { %205 = vst [vmem:[%s170_s24 + $0x8] sm:$0x3] %v202_v20 }
  0x1d PF: > { %s13_s12 = sadd.s32 1, %s296_s12  }
  0x1e   : > { %p10_p4 = scmp.ge.s32.totalorder %s13_s12, 4  }
  0x20   :  { %12 = sbr.rel (!%p10_p4) target bundleno = 1 (0x1), region = 62 }

// kernel: _lambda_.9
= control target key start
LH: loop header
LB: loop body
LE: loop exit
PB: predicated region body
PF: predicated region fallthrough
CT: control target
= control target key end

     0   :  { %s4433_s15 = smov 0   ;;  %s4435_s16 = smov 0   ;;  %s5234_s0 = inlined_call_operand.vmem [shape: bf16[2,4,82,128], index: 0, kind: input, shape index: {}]   ;;  %s5235_s1 = inlined_call_operand.vmem [shape: bf16[16,128,128], index: 1, kind: input, shape index: {}]   ;;  %s5236_s2 = inlined_call_operand.vmem [shape: f32[72,1], index: 2, kind: input, shape index: {}]   ;;  %s5237_s3 = inlined_call_operand.vmem [shape: bf16[2,72,128], index: 3, kind: output, shape index: {0}]   ;;  %s5238_s4 = inlined_call_operand.vmem [shape: f32[2,8,128], index: 4, kind: output, shape index: {1}]  }
   0x1   :  { %s4437_s17 = smov 0  }
   0x2 LB: > { %s27_s18 = sadd.s32 1, %s4401_s16  ;;  %p3072_p0 = scmp.ge.s32.totalorder %s4405_s17, 1  ;;  %s4405_s17 = sphi %s4437_s17, %s15_s17   ;;  %s4401_s16 = sphi %s4435_s16, %s5240_s16   ;;  %s4397_s15 = sphi %s4433_s15, %s5239_s15  }
   0x3   : > { %p29_p1 = scmp.ge.s32.totalorder %s27_s18, 2  ;;  %p190_p2 = scmp.lt.s32.totalorder %s4405_s17, 3 }
   0x5   : > { %s5242_s18 = smov (%p29_p1, %s27_s18), 0  ;;  %p191_p3 = pnand %p3072_p0, %p190_p2 }
   0x6   : > { %p230_p4 = scmp.lt.s32.totalorder (!%p191_p3), %s4397_s15, 1 }
   0x7   : > { %194 = sbr.rel (%p191_p3) target bundleno = 504 (0x1f8), region = 32 }
   0xc   : > { %v4151_v0 = vld [vmem:[%s5235_s1 + $0x78] sm:$0xff]  ;;  %v4150_v4 = vld [vmem:[%s5235_s1 + $0x70] sm:$0xff]  ;;  %s5244_s15 = smov (!%p230_p4, %s4397_s15), 1  ;;  %v4149_v8 = vld [vmem:[%s5235_s1 + $0x68] sm:$0xff]  ;;  %vm576_vm0 = vsmask.f32 7424 }
   0xd   : > { %v4139_v1 = vld [vmem:[%s5235_s1 + $0x38] sm:$0xff]  ;;  %382 = vmatpush.bf16.msra.mxu0 %v4151_v0  ;;  %v4138_v5 = vld [vmem:[%s5235_s1 + $0x30] sm:$0xff]  ;;  %v4137_v9 = vld [vmem:[%s5235_s1 + $0x28] sm:$0xff]  ;;  %s4347_s21 = smul.u32 176, %s5244_s15  ;;  %vm1952_vm1 = vcmask 1046528   ;;  %s3075_s25 = sshll.u32 %s5244_s15, 3 }
   0xe   : > { %v4164_v2 = vld [vmem:[%s5235_s1 + $0xb8] sm:$0xff]  ;;  %491 = vmatpush.bf16.msra.mxu1 %v4139_v1  ;;  %v4163_v6 = vld [vmem:[%s5235_s1 + $0xb0] sm:$0xff]  ;;  %v4162_v10 = vld [vmem:[%s5235_s1 + $0xa8] sm:$0xff]  ;;  %s253_s28 = scalar_lea.vmem %s5238_s4, %s3075_s25 }
   0xf   : > { %v4177_v3 = vld [vmem:[%s5235_s1 + $0xf8] sm:$0xff]  ;;  %669 = vmatpush.bf16.msra.mxu2 %v4164_v2  ;;  %v4176_v7 = vld [vmem:[%s5235_s1 + $0xf0] sm:$0xff]  ;;  %v4175_v11 = vld [vmem:[%s5235_s1 + $0xe8] sm:$0xff]  ;;  %s4505_s6 = scalar_lea.vmem %s5234_s0, %s4347_s21  ;;  %s4348_s21 = smul.u32 36, %s5244_s15 }
  0x10   : > { %855 = vmatpush.bf16.msra.mxu3 %v4177_v3  ;;  %v4148_v12 = vld [vmem:[%s5235_s1 + $0x60] sm:$0xff]  ;;  %v4147_v16 = vld [vmem:[%s5235_s1 + $0x58] sm:$0xff]  ;;  %v4165_v21 = vld [vmem:[%s4505_s6 + $0x2c] sm:$0xff] }
  0x11   : > { %383 = vmatpush.bf16.msra.mxu0 %v4150_v4  ;;  %v4136_v13 = vld [vmem:[%s5235_s1 + $0x20] sm:$0xff]  ;;  %v4135_v17 = vld [vmem:[%s5235_s1 + $0x18] sm:$0xff]  ;;  %v4146_v22 = vld [vmem:[%s5235_s1 + $0x50] sm:$0xff]  ;;  %v766_v29 = vshll.u32 %v4165_v21, 16  ;;  %v764_v37 = vshrl.u32 %v4165_v21, 16  ;;  %s5208_s24 = scalar_lea.vmem %s5237_s3, %s4348_s21 }
  0x12   : > { %492 = vmatpush.bf16.msra.mxu1 %v4138_v5  ;;  %v4161_v14 = vld [vmem:[%s5235_s1 + $0xa0] sm:$0xff]  ;;  %v4160_v18 = vld [vmem:[%s5235_s1 + $0x98] sm:$0xff]  ;;  %v4134_v23 = vld [vmem:[%s5235_s1 + $0x10] sm:$0xff] }
  0x13   : > { %670 = vmatpush.bf16.msra.mxu2 %v4163_v6  ;;  %v4174_v15 = vld [vmem:[%s5235_s1 + $0xe0] sm:$0xff]  ;;  %v4173_v19 = vld [vmem:[%s5235_s1 + $0xd8] sm:$0xff]  ;;  %v4528_v24 = vld [vmem:[%s4505_s6 + $0x8] sm:$0xff]  ;;  %v768_v38 = vrot.slane %v766_v29, 1 }
  0x14   : > { %856 = vmatpush.bf16.msra.mxu3 %v4176_v7  ;;  %v4152_v20 = vld [vmem:[%s4505_s6] sm:$0xff]  ;;  %v4159_v25 = vld [vmem:[%s5235_s1 + $0x90] sm:$0xff]  ;;  %v4145_v30 = vld [vmem:[%s5235_s1 + $0x48] sm:$0xff]  ;;  %v585_v33 = vshll.u32 %v4528_v24, 16  ;;  %v589_v0 = vshrl.u32 %v4528_v24, 16 }
  0x15   : > { %384 = vmatpush.bf16.msra.mxu0 %v4149_v8  ;;  %v4172_v26 = vld [vmem:[%s5235_s1 + $0xd0] sm:$0xff]  ;;  %v580_v27 = vshll.u32 %v4152_v20, 16  ;;  %v4133_v31 = vld [vmem:[%s5235_s1 + $0x8] sm:$0xff]  ;;  %v578_v32 = vshrl.u32 %v4152_v20, 16  ;;  %v4144_v40 = vld [vmem:[%s5235_s1 + $0x40] sm:$0xff]  ;;  %v769_v46 = vor.u32 %v768_v38, %v764_v37 }
  0x16   : > { %493 = vmatpush.bf16.msra.mxu1 %v4137_v9  ;;  %v4537_v28 = vld [vmem:[%s4505_s6 + $0x34] sm:$0xff]  ;;  %v4158_v34 = vld [vmem:[%s5235_s1 + $0x88] sm:$0xff]  ;;  %v4132_v41 = vld [vmem:[%s5235_s1] sm:$0xff]  ;;  %v587_v45 = vrot.slane %v585_v33, 1 }
  0x17   : > { %671 = vmatpush.bf16.msra.mxu2 %v4162_v10  ;;  %v4171_v35 = vld [vmem:[%s5235_s1 + $0xc8] sm:$0xff]  ;;  %v582_v36 = vrot.slane %v580_v27, 1  ;;  %v771_v39 = vshll.u32 %v4537_v28, 16  ;;  %v4157_v42 = vld [vmem:[%s5235_s1 + $0x80] sm:$0xff]  ;;  %v4214_v48 = vld [vmem:[%s5235_s1 + $0x1b8] sm:$0xff]  ;;  %v775_v2 = vshrl.u32 %v4537_v28, 16 }
  0x18   : > { %857 = vmatpush.bf16.msra.mxu3 %v4175_v11  ;;  %v4170_v43 = vld [vmem:[%s5235_s1 + $0xc0] sm:$0xff]  ;;  %v4189_v49 = vld [vmem:[%s5235_s1 + $0x138] sm:$0xff]  ;;  %v4140_v50 = vld [vmem:[%s4505_s6 + $0x2c] sm:$0xff]  ;;  %v591_v8 = vor.u32 %v589_v0, %v587_v45 }
  0x19   : > { %385 = vmatpush.bf16.msra.mxu0 %v4148_v12  ;;  %v583_v44 = vor.u32 %v582_v36, %v578_v32  ;;  %v773_v47 = vrot.slane %v771_v39, 1  ;;  %v4128_v51 = vld [vmem:[%s4505_s6] sm:$0xff]  ;;  %v4227_v54 = vld [vmem:[%s5235_s1 + $0x1f8] sm:$0xff]  ;;  %v4213_v56 = vld [vmem:[%s5235_s1 + $0x1b0] sm:$0xff] }
  0x1a   : > { %494 = vmatpush.bf16.msra.mxu1 %v4136_v13  ;;  %v4201_v55 = vld [vmem:[%s5235_s1 + $0x178] sm:$0xff]  ;;  %v4188_v57 = vld [vmem:[%s5235_s1 + $0x130] sm:$0xff]  ;;  %v4212_v62 = vld [vmem:[%s5235_s1 + $0x1a8] sm:$0xff] }
  0x1b   : > { %672 = vmatpush.bf16.msra.mxu2 %v4161_v14  ;;  %v588_v52 = vsel %vm576_vm0, %v583_v44, %v587_v45  ;;  %v774_v53 = vsel %vm576_vm0, %v769_v46, %v773_v47  ;;  %v4226_v58 = vld [vmem:[%s5235_s1 + $0x1f0] sm:$0xff]  ;;  %v4597_v61 = vld [vmem:[%s4505_s6 + $0x3c] sm:$0xff]  ;;  %v4187_v63 = vld [vmem:[%s5235_s1 + $0x128] sm:$0xff]  ;;  %v777_v10 = vor.u32 %v775_v2, %v773_v47 }
  0x1c   : > { %858 = vmatpush.bf16.msra.mxu3 %v4174_v15  ;;  %v4200_v59 = vld [vmem:[%s5235_s1 + $0x170] sm:$0xff]  ;;  %v779_v3 = vshll.u32 %v4597_v61, 16  ;;  %v4225_v4 = vld [vmem:[%s5235_s1 + $0x1e8] sm:$0xff]  ;;  %v4211_v6 = vld [vmem:[%s5235_s1 + $0x1a0] sm:$0xff]  ;;  %v783_v32 = vshrl.u32 %v4597_v61, 16 }
  0x1d   : > { %386 = vmatpush.bf16.msra.mxu0 %v4147_v16  ;;  %v4594_v60 = vld [vmem:[%s4505_s6 + $0x10] sm:$0xff]  ;;  %v4199_v5 = vld [vmem:[%s5235_s1 + $0x168] sm:$0xff]  ;;  %v4186_v7 = vld [vmem:[%s5235_s1 + $0x120] sm:$0xff] }
  0x1e   : > { %495 = vmatpush.bf16.msra.mxu1 %v4135_v17  ;;  %v593_v1 = vshll.u32 %v4594_v60, 16  ;;  %v781_v11 = vrot.slane %v779_v3, 1  ;;  %v4224_v12 = vld [vmem:[%s5235_s1 + $0x1e0] sm:$0xff]  ;;  %v4210_v14 = vld [vmem:[%s5235_s1 + $0x198] sm:$0xff]  ;;  %v4129_v17 = vld [vmem:[%s4505_s6 + $0x8] sm:$0xff] }
  0x1f   : > { %673 = vmatpush.bf16.msra.mxu2 %v4160_v18  ;;  %v4198_v13 = vld [vmem:[%s5235_s1 + $0x160] sm:$0xff]  ;;  %v4185_v15 = vld [vmem:[%s5235_s1 + $0x118] sm:$0xff]  ;;  %v4184_v24 = vld [vmem:[%s5235_s1 + $0x110] sm:$0xff] }
  0x20   : > { %859 = vmatpush.bf16.msra.mxu3 %v4173_v19  ;;  %v595_v9 = vrot.slane %v593_v1, 1  ;;  %v4141_v16 = vld [vmem:[%s4505_s6 + $0x34] sm:$0xff]  ;;  %v782_v19 = vsel %vm576_vm0, %v777_v10, %v781_v11  ;;  %v4208_v28 = vld [vmem:[%s5235_s1 + $0x188] sm:$0xff]  ;;  %v785_v37 = vor.u32 %v783_v32, %v781_v11  ;;  %v4142_v39 = vld [vmem:[%s4505_s6 + $0x3c] sm:$0xff] }
  0x21   : > { %387 = vmatpush.bf16.msra.mxu0 %v4146_v22  ;;  %v4223_v20 = vld [vmem:[%s5235_s1 + $0x1d8] sm:$0xff]  ;;  %v4196_v27 = vld [vmem:[%s5235_s1 + $0x150] sm:$0xff]  ;;  %v4183_v29 = vld [vmem:[%s5235_s1 + $0x108] sm:$0xff] }
  0x22   : > { %496 = vmatpush.bf16.msra.mxu1 %v4134_v23  ;;  %v596_v18 = vsel %vm576_vm0, %v591_v8, %v595_v9  ;;  %v4197_v21 = vld [vmem:[%s5235_s1 + $0x158] sm:$0xff]  ;;  %v4209_v23 = vld [vmem:[%s5235_s1 + $0x190] sm:$0xff]  ;;  %v4156_v44 = vld [vmem:[%s4505_s6 + $0x20] sm:$0x10] }
  0x23   : > { %674 = vmatpush.bf16.msra.mxu2 %v4159_v25  ;;  %v4155_v22 = vld [vmem:[%s4505_s6 + $0x18] sm:$0xff]  ;;  %v4168_v25 = vld [vmem:[%s4505_s6 + $0x44] sm:$0xff]  ;;  %v3309_v45 = vld [vmem:[%s4505_s6 + $0x4c] sm:$0xf] }
  0x24   : > { %860 = vmatpush.bf16.msra.mxu3 %v4172_v26  ;;  %v4222_v26 = vld [vmem:[%s5235_s1 + $0x1d0] sm:$0xff]  ;;  %v787_v33 = vshll.u32 %v4168_v25, 16  ;;  %v4195_v47 = vld [vmem:[%s5235_s1 + $0x148] sm:$0xff]  ;;  %v4259_v2 = vld [vmem:[%s5235_s1 + $0x2b8] sm:$0xff] }
  0x25   : > { %388 = vmatpush.bf16.msra.mxu0 %v4145_v30  ;;  %v597_v30 = vshrl.u32 %v4594_v60, 16  ;;  %v4169_v46 = vld [vmem:[%s4505_s6 + $0x4c] sm:$0x10]  ;;  %v4239_v3 = vld [vmem:[%s5235_s1 + $0x238] sm:$0xff]  ;;  %v3084_v10 = vld [vmem:[%s4505_s6 + $0x4c] sm:$0xf] }
  0x26   : > { %497 = vmatpush.bf16.msra.mxu1 %v4133_v31  ;;  %v601_v31 = vshll.u32 %v4155_v22, 16  ;;  %v789_v38 = vrot.slane %v787_v33, 1  ;;  %v4266_v8 = vld [vmem:[%s5235_s1 + $0x2f0] sm:$0xff]  ;;  %v262_v11 = vld [vmem:[%s4505_s6 + $0x20] sm:$0xf] }
  0x27   : > { %675 = vmatpush.bf16.msra.mxu2 %v4158_v34  ;;  %v4221_v34 = vld [vmem:[%s5235_s1 + $0x1c8] sm:$0xff] }
  0x28   : > { %861 = vmatpush.bf16.msra.mxu3 %v4171_v35  ;;  %v599_v35 = vor.u32 %v597_v30, %v595_v9  ;;  %v603_v36 = vrot.slane %v601_v31, 1  ;;  %v4250_v9 = vld [vmem:[%s5235_s1 + $0x270] sm:$0xff]  ;;  %v4256_v30 = vld [vmem:[%s5235_s1 + $0x2a0] sm:$0xff] }
  0x29   : > { %389 = vmatpush.bf16.msra.mxu0 %v4144_v40  ;;  %v4130_v40 = vld [vmem:[%s4505_s6 + $0x10] sm:$0xff] }
  0x2a   : > { %498 = vmatpush.bf16.msra.mxu1 %v4132_v41  ;;  %v604_v41 = vsel %vm576_vm0, %v599_v35, %v603_v36 }
  0x2b   : > { %676 = vmatpush.bf16.msra.mxu2 %v4157_v42  ;;  %v790_v42 = vsel %vm576_vm0, %v785_v37, %v789_v38 }
  0x2c   : > { %862 = vmatpush.bf16.msra.mxu3 %v4170_v43  ;;  %390 = vmatmul.bf16.vlgmr.msra.gmra.mxu0 %v4140_v50  ;;  %v3231_v43 = vld [vmem:[%s4505_s6 + $0x20] sm:$0xf] }
  0x2d   : > { %1000 = vmatpush.bf16.msrb.mxu0 %v4189_v49  ;;  %499 = vmatmul.bf16.vlgmr.msra.gmra.mxu1 %v4128_v51  ;;  %v4182_v49 = vld [vmem:[%s5235_s1 + $0x100] sm:$0xff]  ;;  %v3232_v50 = vor.u32 %v4156_v44, %v3231_v43  ;;  %v3310_v51 = vor.u32 %v4169_v46, %v3309_v45 }
  0x2e   : > { %677 = vmatmul.bf16.vlgmr.msra.gmra.mxu2 %v588_v52  ;;  %1145 = vmatpush.bf16.msrb.mxu1 %v4201_v55  ;;  %v4220_v52 = vld [vmem:[%s5235_s1 + $0x1c0] sm:$0xff] }
  0x2f   : > { %1331 = vmatpush.bf16.msrb.mxu2 %v4214_v48  ;;  %863 = vmatmul.bf16.vlgmr.msra.gmra.mxu3 %v774_v53  ;;  %v4207_v48 = vld [vmem:[%s5235_s1 + $0x180] sm:$0xff]  ;;  %v609_v55 = vshll.u32 %v3232_v50, 16 }
  0x30   : > { %1517 = vmatpush.bf16.msrb.mxu3 %v4227_v54  ;;  %v4194_v53 = vld [vmem:[%s5235_s1 + $0x140] sm:$0xff]  ;;  %v605_v54 = vshrl.u32 %v4155_v22, 16 }
  0x31   : > { %1001 = vmatpush.bf16.msrb.mxu0 %v4188_v57  ;;  %v795_v57 = vshll.u32 %v3310_v51, 16  ;;  %v4236_v45 = vld [vmem:[%s5235_s1 + $0x220] sm:$0xff] }
  0x32   : > { %1146 = vmatpush.bf16.msrb.mxu1 %v4200_v59  ;;  %v611_v59 = vrot.slane %v609_v55, 1  ;;  %v4264_v46 = vld [vmem:[%s5235_s1 + $0x2e0] sm:$0xff] }
  0x33   : > { %1332 = vmatpush.bf16.msrb.mxu2 %v4213_v56  ;;  %v791_v56 = vshrl.u32 %v4168_v25, 16  ;;  %v797_v61 = vrot.slane %v795_v57, 1  ;;  %v4265_v25 = vld [vmem:[%s5235_s1 + $0x2e8] sm:$0xff] }
  0x34   : > { %1518 = vmatpush.bf16.msrb.mxu3 %v4226_v58  ;;  %v607_v58 = vor.u32 %v605_v54, %v603_v36 }
  0x35   : > { %1002 = vmatpush.bf16.msrb.mxu0 %v4187_v63  ;;  %v793_v60 = vor.u32 %v791_v56, %v789_v38  ;;  %v4131_v63 = vld [vmem:[%s4505_s6 + $0x18] sm:$0xff] }
  0x36   : > { %1147 = vmatpush.bf16.msrb.mxu1 %v4199_v5  ;;  %v612_v0 = vsel %vm576_vm0, %v607_v58, %v611_v59  ;;  %v4251_v5 = vld [vmem:[%s5235_s1 + $0x278] sm:$0xff] }
  0x37   : > { %1333 = vmatpush.bf16.msrb.mxu2 %v4212_v62  ;;  %v4143_v62 = vld [vmem:[%s4505_s6 + $0x44] sm:$0xff]  ;;  %v798_v1 = vsel %vm576_vm0, %v793_v60, %v797_v61 }
  0x38   : > { %1519 = vmatpush.bf16.msrb.mxu3 %v4225_v4  ;;  %v4267_v4 = vld [vmem:[%s5235_s1 + $0x2f8] sm:$0xff] }
  0x39   : > { %1003 = vmatpush.bf16.msrb.mxu0 %v4186_v7  ;;  %v4238_v7 = vld [vmem:[%s5235_s1 + $0x230] sm:$0xff] }
  0x3a   : > { %1148 = vmatpush.bf16.msrb.mxu1 %v4198_v13  ;;  %v432_v13 = vunpack.c.l.b16 %v262_v11  ;;  %v4246_v11 = vld [vmem:[%s5235_s1 + $0x250] sm:$0xff] }
  0x3b   : > { %1334 = vmatpush.bf16.msrb.mxu2 %v4211_v6  ;;  %v4258_v6 = vld [vmem:[%s5235_s1 + $0x2b0] sm:$0xff] }
  0x3c   : > { %1520 = vmatpush.bf16.msrb.mxu3 %v4224_v12  ;;  %395 = vmatmul.bf16.gmra.mxu0 %v4141_v16  ;;  %v323_v12 = vunpack.c.l.b16 %v3084_v10  ;;  %v4262_v10 = vld [vmem:[%s5235_s1 + $0x2d0] sm:$0xff] }
  0x3d   : > { %1004 = vmatpush.bf16.msrb.mxu0 %v4185_v15  ;;  %504 = vmatmul.bf16.gmra.mxu1 %v4129_v17  ;;  %v799_v15 = vshrl.u32 %v3310_v51, 16  ;;  %v437_v17 = vpack.c.b16 %v432_v13, %v432_v13  ;;  %v4235_v51 = vld [vmem:[%s5235_s1 + $0x218] sm:$0xff] }
  0x3e   : > { %682 = vmatmul.bf16.gmra.mxu2 %v596_v18  ;;  %1149 = vmatpush.bf16.msrb.mxu1 %v4197_v21  ;;  %v328_v16 = vpack.c.b16 %v323_v12, %v323_v12  ;;  %v4215_v21 = vld [vmem:[%s4505_s6 + $0x84] sm:$0xff] }
  0x3f   : > { %1335 = vmatpush.bf16.msrb.mxu2 %v4210_v14  ;;  %868 = vmatmul.bf16.gmra.mxu3 %v782_v19  ;;  %v613_v14 = vshrl.u32 %v3232_v50, 16  ;;  %v801_v19 = vor.u32 %v799_v15, %v797_v61  ;;  %v4255_v50 = vld [vmem:[%s5235_s1 + $0x298] sm:$0xff] }
  0x40   : > { %1521 = vmatpush.bf16.msrb.mxu3 %v4223_v20  ;;  %v4202_v20 = vld [vmem:[%s4505_s6 + $0x58] sm:$0xff] }
  0x41   : > { %1005 = vmatpush.bf16.msrb.mxu0 %v4184_v24  ;;  %v615_v18 = vor.u32 %v613_v14, %v611_v59  ;;  %v1242_v22 = vshll.u32 %v4202_v20, 16  ;;  %v4237_v24 = vld [vmem:[%s5235_s1 + $0x228] sm:$0xff]  ;;  %v1240_v31 = vshrl.u32 %v4202_v20, 16 }
  0x42   : > { %1150 = vmatpush.bf16.msrb.mxu1 %v4196_v27  ;;  %v4216_v27 = vld [vmem:[%s4505_s6 + $0x8c] sm:$0xff] }
  0x43   : > { %1336 = vmatpush.bf16.msrb.mxu2 %v4209_v23  ;;  %v4257_v23 = vld [vmem:[%s5235_s1 + $0x2a8] sm:$0xff]  ;;  %v1244_v32 = vrot.slane %v1242_v22, 1  ;;  %v1433_v36 = vshll.u32 %v4216_v27, 16  ;;  %v1437_v56 = vshrl.u32 %v4216_v27, 16  ;;  %v3611_v22 = vld [vmem:[%s4505_s6 + $0xa4] sm:$0xf] }
  0x44   : > { %1522 = vmatpush.bf16.msrb.mxu3 %v4222_v26  ;;  %v4203_v26 = vld [vmem:[%s4505_s6 + $0x60] sm:$0xff]  ;;  %v4245_v27 = vld [vmem:[%s5235_s1 + $0x248] sm:$0xff] }
  0x45   : > { %1006 = vmatpush.bf16.msrb.mxu0 %v4183_v29  ;;  %v4249_v29 = vld [vmem:[%s5235_s1 + $0x268] sm:$0xff]  ;;  %v1247_v33 = vshll.u32 %v4203_v26, 16  ;;  %v1245_v37 = vor.u32 %v1244_v32, %v1240_v31  ;;  %v1251_v54 = vshrl.u32 %v4203_v26, 16 }
  0x46   : > { %1151 = vmatpush.bf16.msrb.mxu1 %v4195_v47  ;;  %v4248_v47 = vld [vmem:[%s5235_s1 + $0x260] sm:$0xff]  ;;  %v4261_v26 = vld [vmem:[%s5235_s1 + $0x2c8] sm:$0xff] }
  0x47   : > { %1337 = vmatpush.bf16.msrb.mxu2 %v4208_v28  ;;  %v1428_v28 = vshll.u32 %v4215_v21, 16  ;;  %v1249_v38 = vrot.slane %v1247_v33, 1 }
  0x48   : > { %1523 = vmatpush.bf16.msrb.mxu3 %v4221_v34  ;;  %v1426_v34 = vshrl.u32 %v4215_v21, 16  ;;  %v4206_v21 = vld [vmem:[%s4505_s6 + $0x78] sm:$0x10] }
  0x49   : > { %1007 = vmatpush.bf16.msrb.mxu0 %v4182_v49  ;;  %v1430_v35 = vrot.slane %v1428_v28, 1  ;;  %v1250_v43 = vsel %vm576_vm0, %v1245_v37, %v1249_v38  ;;  %v4217_v49 = vld [vmem:[%s4505_s6 + $0x94] sm:$0xff]  ;;  %v1253_v58 = vor.u32 %v1251_v54, %v1249_v38  ;;  %v4244_v37 = vld [vmem:[%s5235_s1 + $0x240] sm:$0xff] }
  0x4a   : > { %1152 = vmatpush.bf16.msrb.mxu1 %v4194_v53  ;;  %v4247_v53 = vld [vmem:[%s5235_s1 + $0x258] sm:$0xff]  ;;  %v1441_v57 = vshll.u32 %v4217_v49, 16 }
  0x4b   : > { %1338 = vmatpush.bf16.msrb.mxu2 %v4207_v48  ;;  %v4204_v48 = vld [vmem:[%s4505_s6 + $0x68] sm:$0xff] }
  0x4c   : > { %400 = vmatmul.bf16.gmra.mxu0 %v4142_v39  ;;  %1524 = vmatpush.bf16.msrb.mxu3 %v4220_v52  ;;  %v1431_v39 = vor.u32 %v1430_v35, %v1426_v34  ;;  %v4263_v52 = vld [vmem:[%s5235_s1 + $0x2d8] sm:$0xff]  ;;  %v1255_v55 = vshll.u32 %v4204_v48, 16  ;;  %v1443_v61 = vrot.slane %v1441_v57, 1  ;;  %v4252_v34 = vld [vmem:[%s5235_s1 + $0x280] sm:$0xff] }
  0x4d   : > { %509 = vmatmul.bf16.gmra.mxu1 %v4130_v40  ;;  %1703 = vmatpush.bf16.msra.mxu0 %v4239_v3  ;;  %v1435_v40 = vrot.slane %v1433_v36, 1  ;;  %v4205_v3 = vld [vmem:[%s4505_s6 + $0x70] sm:$0xff]  ;;  %v4232_v35 = vld [vmem:[%s5235_s1 + $0x200] sm:$0xff]  ;;  %v3351_v57 = vld [vmem:[%s4505_s6 + $0x78] sm:$0xf] }
  0x4e   : > { %687 = vmatmul.bf16.gmra.mxu2 %v604_v41  ;;  %1889 = vmatpush.bf16.msra.mxu1 %v4251_v5  ;;  %v4178_v41 = vld [vmem:[%s4505_s6 + $0x58] sm:$0xff]  ;;  %v1257_v59 = vrot.slane %v1255_v55, 1  ;;  %v1259_v5 = vshrl.u32 %v4204_v48, 16  ;;  %v4260_v36 = vld [vmem:[%s5235_s1 + $0x2c0] sm:$0xff] }
  0x4f   : > { %873 = vmatmul.bf16.gmra.mxu3 %v790_v42  ;;  %2015 = vmatpush.bf16.msra.mxu2 %v4259_v2  ;;  %v4190_v42 = vld [vmem:[%s4505_s6 + $0x84] sm:$0xff]  ;;  %v1436_v44 = vsel %vm576_vm0, %v1431_v39, %v1435_v40  ;;  %v1439_v60 = vor.u32 %v1437_v56, %v1435_v40  ;;  %v4254_v2 = vld [vmem:[%s5235_s1 + $0x290] sm:$0xff] }
  0x50   : > { %2140 = vmatpush.bf16.msra.mxu3 %v4267_v4  ;;  %v4218_v4 = vld [vmem:[%s4505_s6 + $0x9c] sm:$0xff]  ;;  %v1261_v12 = vor.u32 %v1259_v5, %v1257_v59 }
  0x51   : > { %1704 = vmatpush.bf16.msra.mxu0 %v4238_v7  ;;  %v1445_v7 = vshrl.u32 %v4217_v49, 16  ;;  %v1453_v32 = vshrl.u32 %v4218_v4, 16  ;;  %v4299_v49 = vld [vmem:[%s5235_s1 + $0x3b8] sm:$0xff] }
  0x52   : > { %1890 = vmatpush.bf16.msra.mxu1 %v4250_v9  ;;  %v4234_v9 = vld [vmem:[%s5235_s1 + $0x210] sm:$0xff] }
  0x53   : > { %2016 = vmatpush.bf16.msra.mxu2 %v4258_v6  ;;  %v1263_v6 = vshll.u32 %v4205_v3, 16  ;;  %v1447_v14 = vor.u32 %v1445_v7, %v1443_v61 }
  0x54   : > { %2141 = vmatpush.bf16.msra.mxu3 %v4266_v8  ;;  %v1449_v8 = vshll.u32 %v4218_v4, 16 }
  0x55   : > { %1705 = vmatpush.bf16.msra.mxu0 %v4237_v24  ;;  %v1265_v13 = vrot.slane %v1263_v6, 1  ;;  %v4253_v24 = vld [vmem:[%s5235_s1 + $0x288] sm:$0xff] }
  0x56   : > { %1891 = vmatpush.bf16.msra.mxu1 %v4249_v29  ;;  %v1451_v15 = vrot.slane %v1449_v8, 1 }
  0x57   : > { %2017 = vmatpush.bf16.msra.mxu2 %v4257_v23  ;;  %v4219_v23 = vld [vmem:[%s4505_s6 + $0xa4] sm:$0x10] }
  0x58   : > { %2142 = vmatpush.bf16.msra.mxu3 %v4265_v25  ;;  %v1452_v20 = vsel %vm576_vm0, %v1447_v14, %v1451_v15  ;;  %v4233_v25 = vld [vmem:[%s5235_s1 + $0x208] sm:$0xff]  ;;  %v4807_v29 = vor.u32 %v4219_v23, %v3611_v22  ;;  %v1455_v40 = vor.u32 %v1453_v32, %v1451_v15  ;;  %v4336_v15 = vld [vmem:[%s4505_s6 + $0x30] sm:$0xff]   ;;  %v4869_v23 = vld [vmem:[%s4505_s6 + $0x38] sm:$0xff] }
  0x59   : > { %1706 = vmatpush.bf16.msra.mxu0 %v4236_v45 }
  0x5a   : > { %1892 = vmatpush.bf16.msra.mxu1 %v4248_v47  ;;  %v1457_v33 = vshll.u32 %v4807_v29, 16  ;;  %v1461_v4 = vshrl.u32 %v4807_v29, 16 }
  0x5b   : > { %2018 = vmatpush.bf16.msra.mxu2 %v4256_v30  ;;  %v1267_v30 = vshrl.u32 %v4205_v3, 16 }
  0x5c   : > { %405 = vmatmul.bf16.gmra.mxu0 %v4143_v62  ;;  %2143 = vmatpush.bf16.msra.mxu3 %v4264_v46  ;;  %v4179_v62 = vld [vmem:[%s4505_s6 + $0x60] sm:$0xff] }
  0x5d   : > { %514 = vmatmul.bf16.gmra.mxu1 %v4131_v63  ;;  %1707 = vmatpush.bf16.msra.mxu0 %v4235_v51  ;;  %v4191_v63 = vld [vmem:[%s4505_s6 + $0x8c] sm:$0xff]  ;;  %v1269_v38 = vor.u32 %v1267_v30, %v1265_v13  ;;  %v4307_v51 = vld [vmem:[%s5235_s1 + $0x3f8] sm:$0xff] }
  0x5e   : > { %692 = vmatmul.bf16.gmra.mxu2 %v612_v0  ;;  %1893 = vmatpush.bf16.msra.mxu1 %v4247_v53  ;;  %v1258_v0 = vsel %vm576_vm0, %v1253_v58, %v1257_v59  ;;  %v3424_v58 = vld [vmem:[%s4505_s6 + $0xa4] sm:$0xf] }
  0x5f   : > { %878 = vmatmul.bf16.gmra.mxu3 %v798_v1  ;;  %2019 = vmatpush.bf16.msra.mxu2 %v4255_v50  ;;  %v1444_v1 = vsel %vm576_vm0, %v1439_v60, %v1443_v61  ;;  %v4279_v50 = vld [vmem:[%s5235_s1 + $0x338] sm:$0xff]  ;;  %v1559_v59 = vld [vmem:[%s4505_s6 + $0x4] sm:$0xff]  }
  0x60   : > { %2144 = vmatpush.bf16.msra.mxu3 %v4263_v52  ;;  %v4840_v60 = vld [vmem:[%s4505_s6 + $0x4] sm:$0xf0]  ;;  %v1614_v22 = vshll.u32 %v1559_v59, 16  ;;  %v1612_v29 = vshrl.u32 %v1559_v59, 16 }
  0x61   : > { %1708 = vmatpush.bf16.msra.mxu0 %v4234_v9 }
  0x62   : > { %1894 = vmatpush.bf16.msra.mxu1 %v4246_v11  ;;  %v1616_v30 = vrot.slane %v1614_v22, 1  ;;  %v4275_v22 = vld [vmem:[%s5235_s1 + $0x318] sm:$0xff] }
  0x63   : > { %2020 = vmatpush.bf16.msra.mxu2 %v4254_v2  ;;  %v1086_v2 = vunpack.c.l.b16 %v3424_v58 }
  0x64   : > { %2145 = vmatpush.bf16.msra.mxu3 %v4262_v10 }
  0x65   : > { %1709 = vmatpush.bf16.msra.mxu0 %v4233_v25  ;;  %v1091_v8 = vpack.c.b16 %v1086_v2, %v1086_v2  ;;  %v4337_v25 = vld [vmem:[%s4505_s6 + $0x30] sm:$0xf0]  ;;  %v4296_v2 = vld [vmem:[%s5235_s1 + $0x3a0] sm:$0xff] }
  0x66   : > { %1895 = vmatpush.bf16.msra.mxu1 %v4245_v27 }
  0x67   : > { %2021 = vmatpush.bf16.msra.mxu2 %v4253_v24  ;;  %v1800_v24 = vshll.u32 %v4336_v15, 16 }
  0x68   : > { %2146 = vmatpush.bf16.msra.mxu3 %v4261_v26  ;;  %v4338_v26 = vld [vmem:[%s4505_s6 + $0x30] sm:$0xe] }
  0x69   : > { %1710 = vmatpush.bf16.msra.mxu0 %v4232_v35  ;;  %v1798_v35 = vshrl.u32 %v4336_v15, 16  ;;  %v1809_v15 = vshrl.u32 %v4869_v23, 16 }
  0x6a   : > { %1896 = vmatpush.bf16.msra.mxu1 %v4244_v37  ;;  %v1805_v37 = vshll.u32 %v4869_v23, 16 }
  0x6b   : > { %2022 = vmatpush.bf16.msra.mxu2 %v4252_v34 }
  0x6c   : > { %410 = vmatmul.bf16.gmra.mxu0 %v328_v16  ;;  %v4180_v16 = vld [vmem:[%s4505_s6 + $0x68] sm:$0xff]  ;;  %2147 = vmatpush.bf16.msra.mxu3 %v4260_v36  ;;  %v1802_v36 = vrot.slane %v1800_v24, 1  ;;  %v4303_v24 = vld [vmem:[%s5235_s1 + $0x3d8] sm:$0xff] }
  0x6d   : > { %519 = vmatmul.bf16.gmra.mxu1 %v437_v17  ;;  %v4192_v17 = vld [vmem:[%s4505_s6 + $0x94] sm:$0xff] }
  0x6e   : > { %697 = vmatmul.bf16.gmra.mxu2 %v615_v18  ;;  %v3533_v18 = vld [vmem:[%s4505_s6 + $0x78] sm:$0xf] }
  0x6f   : > { %883 = vmatmul.bf16.gmra.mxu3 %v801_v19  ;;  %v1266_v19 = vsel %vm576_vm0, %v1261_v12, %v1265_v13  ;;  %v4805_v28 = vor.u32 %v4206_v21, %v3533_v18  ;;  %v4278_v18 = vld [vmem:[%s5235_s1 + $0x330] sm:$0xff] }
  0x70   : > { %v4866_v21 = vld [vmem:[%s4505_s6 + $0xc] sm:$0xff] }
  0x71   : > { %v1271_v31 = vshll.u32 %v4805_v28, 16  ;;  %v1275_v3 = vshrl.u32 %v4805_v28, 16 }
  0x73   : > { %v1273_v39 = vrot.slane %v1271_v31, 1  ;;  %v1619_v31 = vshll.u32 %v4866_v21, 16 }
  0x75   : > { %v1274_v47 = vsel %vm576_vm0, %v1269_v38, %v1273_v39  ;;  %v1277_v12 = vor.u32 %v1275_v3, %v1273_v39  ;;  %v4906_v3 = vld [vmem:[%s4505_s6 + $0x14] sm:$0xff] }
  0x7c   : > { %1008 = vmatmul.bf16.vlgmr.msrb.gmra.mxu0 %v4178_v41  ;;  %v1459_v41 = vrot.slane %v1457_v33, 1 }
  0x7d   : > { %1153 = vmatmul.bf16.vlgmr.msrb.gmra.mxu1 %v4190_v42  ;;  %v4181_v42 = vld [vmem:[%s4505_s6 + $0x70] sm:$0xff]  ;;  %2326 = vmatpush.bf16.msrb.mxu0 %v4279_v50 }
  0x7e   : > { %1339 = vmatmul.bf16.vlgmr.msrb.gmra.mxu2 %v1250_v43  ;;  %v4193_v43 = vld [vmem:[%s4505_s6 + $0x9c] sm:$0xff]  ;;  %v1460_v48 = vsel %vm576_vm0, %v1455_v40, %v1459_v41  ;;  %v1463_v13 = vor.u32 %v1461_v4, %v1459_v41  ;;  %v4339_v40 = vor.u32 %v4338_v26, %v4337_v25 }
  0x7f   : > { %1525 = vmatmul.bf16.vlgmr.msrb.gmra.mxu3 %v1436_v44  ;;  %2637 = vmatpush.bf16.msrb.mxu2 %v4299_v49  ;;  %v1807_v49 = vrot.slane %v1805_v37, 1  ;;  %v4909_v4 = vld [vmem:[%s4505_s6 + $0x40] sm:$0xff] }
  0x80   : > { %2762 = vmatpush.bf16.msrb.mxu3 %v4307_v51  ;;  %v1954_v51 = vrot.slane %v4866_v21, 1 }
  0x81   : > { %2327 = vmatpush.bf16.msrb.mxu0 %v4278_v18 }
  0x8c   : > { %1013 = vmatmul.bf16.gmra.mxu0 %v4179_v62 }
  0x8d   : > { %1158 = vmatmul.bf16.gmra.mxu1 %v4191_v63  ;;  %v4291_v63 = vld [vmem:[%s5235_s1 + $0x378] sm:$0xff] }
  0x8e   : > { %1344 = vmatmul.bf16.gmra.mxu2 %v1258_v0  ;;  %v4298_v0 = vld [vmem:[%s5235_s1 + $0x3b0] sm:$0xff]  ;;  %2512 = vmatpush.bf16.msrb.mxu1 %v4291_v63 }
  0x8f   : > { %1530 = vmatmul.bf16.gmra.mxu3 %v1444_v1  ;;  %v941_v1 = vunpack.c.l.b16 %v3351_v57  ;;  %2638 = vmatpush.bf16.msrb.mxu2 %v4298_v0 }
  0x91   : > { %v946_v7 = vpack.c.b16 %v941_v1, %v941_v1 }
  0x9c   : > { %1018 = vmatmul.bf16.gmra.mxu0 %v4180_v16  ;;  %v4378_v16 = vld [vmem:[%s4505_s6 + $0x4] sm:$0xe] }
  0x9d   : > { %1163 = vmatmul.bf16.gmra.mxu1 %v4192_v17  ;;  %v4379_v39 = vor.u32 %v4378_v16, %v4840_v60  ;;  %v1813_v16 = vshll.u32 %v4909_v4, 16 }
  0x9e   : > { %1349 = vmatmul.bf16.gmra.mxu2 %v1266_v19  ;;  %v4306_v19 = vld [vmem:[%s5235_s1 + $0x3f0] sm:$0xff] }
  0x9f   : > { %1535 = vmatmul.bf16.gmra.mxu3 %v1452_v20  ;;  %v4290_v20 = vld [vmem:[%s5235_s1 + $0x370] sm:$0xff]  ;;  %v1953_v50 = vrot.slane %v4379_v39, 1 }
  0xa0   : > { %2763 = vmatpush.bf16.msrb.mxu3 %v4306_v19  ;;  %2513 = vmatpush.bf16.msrb.mxu1 %v4290_v20  ;;  %v4295_v20 = vld [vmem:[%s5235_s1 + $0x398] sm:$0xff] }
  0xa1   : > { %v1955_v63 = vsel %vm1952_vm1, %v1953_v50, %v1954_v51 }
  0xa9   : > { %v391_v44 = vpop.f32.mrf.mxu0 }
  0xaa   : > { %v500_v45 = vpop.f32.mrf.mxu1 }
  0xab   : > { %v501_v46 = vadd.f32 %v500_v45, %v391_v44  ;;  %v4305_v44 = vld [vmem:[%s5235_s1 + $0x3e8] sm:$0xff] }
  0xac   : > { %1023 = vmatmul.bf16.gmra.mxu0 %v4181_v42  ;;  %v4297_v42 = vld [vmem:[%s5235_s1 + $0x3a8] sm:$0xff]  ;;  %2764 = vmatpush.bf16.msrb.mxu3 %v4305_v44  ;;  %v4951_v44 = vld [vmem:[%s4505_s6 + $0x1c] sm:$0xff] }
  0xad   : > { %1168 = vmatmul.bf16.gmra.mxu1 %v4193_v43  ;;  %v4277_v43 = vld [vmem:[%s5235_s1 + $0x328] sm:$0xff]  ;;  %2639 = vmatpush.bf16.msrb.mxu2 %v4297_v42 }
  0xae   : > { %1354 = vmatmul.bf16.gmra.mxu2 %v1274_v47  ;;  %v4289_v45 = vld [vmem:[%s5235_s1 + $0x368] sm:$0xff]  ;;  %v1621_v47 = vrot.slane %v1619_v31, 1  ;;  %2328 = vmatpush.bf16.msrb.mxu0 %v4277_v43 }
  0xaf   : > { %1540 = vmatmul.bf16.gmra.mxu3 %v1460_v48  ;;  %v1803_v48 = vor.u32 %v1802_v36, %v1798_v35  ;;  %2514 = vmatpush.bf16.msrb.mxu1 %v4289_v45  ;;  %v4954_v45 = vld [vmem:[%s4505_s6 + $0x48] sm:$0xff] }
  0xb1   : > { %v678_v52 = vpop.f32.mrf.mxu2  ;;  %v393_v55 = vpop.f32.mrf.mxu0  ;;  %v1808_v60 = vsel %vm576_vm0, %v1803_v48, %v1807_v49  ;;  %2640 = vmatpush.bf16.msrb.mxu2 %v4296_v2  ;;  %v2083_v2 = vrot.slane %v4954_v45, 1 }
  0xb2   : > { %v864_v53 = vpop.f32.mrf.mxu3  ;;  %v702_v54 = vadd.f32 %v678_v52, %v501_v46  ;;  %v502_v56 = vpop.f32.mrf.mxu1  ;;  %v1617_v46 = vor.u32 %v1616_v30, %v1612_v29  ;;  %v2078_v52 = vrot.slane %v4339_v40, 1  ;;  %v1956_v29 = vrot.slane %v4906_v3, 1 }
  0xb3   : > { %v503_v61 = vadd.f32 %v502_v56, %v393_v55  ;;  %v2081_v30 = vrot.slane %v4909_v4, 1 }
  0xb4   : > { %v4842_v62 = vadd.f32 %v864_v53, %v702_v54  ;;  %v2079_v53 = vrot.slane %v4869_v23, 1  ;;  %v1622_v59 = vsel %vm576_vm0, %v1617_v46, %v1621_v47  ;;  %v1957_v40 = vsel %vm1952_vm1, %v1954_v51, %v1956_v29 }
  0xb5   : > { %2641 = vmatpush.bf16.msrb.mxu2 %v4295_v20  ;;  %v1635_v51 = vshll.u32 %v4951_v44, 16  ;;  %v4293_v20 = vld [vmem:[%s5235_s1 + $0x388] sm:$0xff] }
  0xb6   : > { %v2080_v0 = vsel %vm1952_vm1, %v2078_v52, %v2079_v53  ;;  %v2082_v42 = vsel %vm1952_vm1, %v2079_v53, %v2081_v30  ;;  %v1817_v52 = vshrl.u32 %v4909_v4, 16  ;;  %v1821_v53 = vshll.u32 %v4954_v45, 16 }
  0xb9   : > { %v680_v5 = vpop.f32.mrf.mxu2  ;;  %v396_v10 = vpop.f32.mrf.mxu0 }
  0xba   : > { %v866_v6 = vpop.f32.mrf.mxu3  ;;  %v703_v9 = vadd.f32 %v680_v5, %v503_v61  ;;  %v505_v11 = vpop.f32.mrf.mxu1  ;;  %v4276_v5 = vld [vmem:[%s5235_s1 + $0x320] sm:$0xff] }
  0xbb   : > { %v506_v14 = vadd.f32 %v505_v11, %v396_v10  ;;  %2329 = vmatpush.bf16.msrb.mxu0 %v4276_v5  ;;  %v1623_v10 = vshrl.u32 %v4866_v21, 16  ;;  %v4294_v21 = vld [vmem:[%s5235_s1 + $0x390] sm:$0xff] }
  0xbc   : > { %v4854_v17 = vadd.f32 %v866_v6, %v703_v9  ;;  %1028 = vmatmul.bf16.gmra.mxu0 %v946_v7  ;;  %v4304_v6 = vld [vmem:[%s5235_s1 + $0x3e0] sm:$0xff]  ;;  %2642 = vmatpush.bf16.msrb.mxu2 %v4294_v21 }
  0xbd   : > { %1173 = vmatmul.bf16.gmra.mxu1 %v1091_v8  ;;  %v4288_v7 = vld [vmem:[%s5235_s1 + $0x360] sm:$0xff]  ;;  %2765 = vmatpush.bf16.msrb.mxu3 %v4304_v6  ;;  %v1625_v25 = vor.u32 %v1623_v10, %v1621_v47  ;;  %v1631_v47 = vshrl.u32 %v4906_v3, 16 }
  0xbe   : > { %1359 = vmatmul.bf16.gmra.mxu2 %v1277_v12  ;;  %2515 = vmatpush.bf16.msrb.mxu1 %v4288_v7  ;;  %v3675_v10 = vld [vmem:[%s4505_s6 + $0x24] sm:$0xf] }
  0xbf   : > { %1545 = vmatmul.bf16.gmra.mxu3 %v1463_v13  ;;  %2330 = vmatpush.bf16.msrb.mxu0 %v4275_v22  ;;  %v4273_v22 = vld [vmem:[%s5235_s1 + $0x308] sm:$0xff] }
  0xc0   : > { %2643 = vmatpush.bf16.msrb.mxu2 %v4293_v20  ;;  %v4381_v20 = vld [vmem:[%s4505_s6 + $0x5c] sm:$0xe] }
  0xc1   : > { %v683_v27 = vpop.f32.mrf.mxu2  ;;  %v398_v33 = vpop.f32.mrf.mxu0  ;;  %2766 = vmatpush.bf16.msrb.mxu3 %v4303_v24  ;;  %v4301_v24 = vld [vmem:[%s5235_s1 + $0x3c8] sm:$0xff] }
  0xc2   : > { %v869_v28 = vpop.f32.mrf.mxu3  ;;  %v704_v32 = vadd.f32 %v683_v27, %v506_v14  ;;  %v507_v34 = vpop.f32.mrf.mxu1  ;;  %v1627_v14 = vshll.u32 %v4906_v3, 16  ;;  %v1811_v27 = vor.u32 %v1809_v15, %v1807_v49  ;;  %v3749_v15 = vld [vmem:[%s4505_s6 + $0x50] sm:$0xf] }
  0xc3   : > { %v508_v38 = vadd.f32 %v507_v34, %v398_v33  ;;  %v4287_v33 = vld [vmem:[%s5235_s1 + $0x358] sm:$0xff] }
  0xc4   : > { %v4876_v41 = vadd.f32 %v869_v28, %v704_v32  ;;  %v1629_v26 = vrot.slane %v1627_v14, 1  ;;  %v1815_v28 = vrot.slane %v1813_v16, 1  ;;  %2516 = vmatpush.bf16.msrb.mxu1 %v4287_v33  ;;  %v4231_v14 = vld [vmem:[%s4505_s6 + $0x24] sm:$0x10]  ;;  %v4243_v16 = vld [vmem:[%s4505_s6 + $0x50] sm:$0x10] }
  0xc6   : > { %v1630_v37 = vsel %vm576_vm0, %v1625_v25, %v1629_v26  ;;  %v4999_v25 = vor.u32 %v4231_v14, %v3675_v10 }
  0xc9   : > { %v685_v54 = vpop.f32.mrf.mxu2  ;;  %v401_v57 = vpop.f32.mrf.mxu0 }
  0xca   : > { %v871_v55 = vpop.f32.mrf.mxu3  ;;  %v705_v56 = vadd.f32 %v685_v54, %v508_v38  ;;  %v510_v58 = vpop.f32.mrf.mxu1  ;;  %v1816_v38 = vsel %vm576_vm0, %v1811_v27, %v1815_v28  ;;  %v4285_v27 = vld [vmem:[%s5235_s1 + $0x348] sm:$0xff] }
  0xcb   : > { %v511_v61 = vadd.f32 %v510_v58, %v401_v57  ;;  %v4302_v57 = vld [vmem:[%s5235_s1 + $0x3d0] sm:$0xff] }
  0xcc   : > { %v4900_v1 = vadd.f32 %v871_v55, %v705_v56  ;;  %1711 = vmatmul.bf16.vlgmr.msra.gmra.mxu0 %v1622_v59  ;;  %v4274_v56 = vld [vmem:[%s5235_s1 + $0x310] sm:$0xff]  ;;  %v1633_v59 = vor.u32 %v1631_v47, %v1629_v26  ;;  %2767 = vmatpush.bf16.msrb.mxu3 %v4302_v57  ;;  %v5001_v26 = vor.u32 %v4243_v16, %v3749_v15  ;;  %v4284_v47 = vld [vmem:[%s5235_s1 + $0x340] sm:$0xff]  ;;  %v4340_v16 = vld [vmem:[%s4505_s6 + $0x88] sm:$0xff]  }
  0xcd   : > { %1897 = vmatmul.bf16.vlgmr.msra.gmra.mxu1 %v1808_v60  ;;  %v4286_v58 = vld [vmem:[%s5235_s1 + $0x350] sm:$0xff]  ;;  %v1637_v60 = vrot.slane %v1635_v51, 1  ;;  %2331 = vmatpush.bf16.msrb.mxu0 %v4274_v56 }
  0xce   : > { %2023 = vmatmul.bf16.vlgmr.msra.gmra.mxu2 %v1955_v63  ;;  %v1823_v63 = vrot.slane %v1821_v53, 1  ;;  %2517 = vmatpush.bf16.msrb.mxu1 %v4286_v58 }
  0xcf   : > { %2148 = vmatmul.bf16.vlgmr.msra.gmra.mxu3 %v2080_v0  ;;  %v1958_v0 = vrot.slane %v4951_v44, 1 }
  0xd0   : > { %2768 = vmatpush.bf16.msrb.mxu3 %v4301_v24  ;;  %v5048_v24 = vld [vmem:[%s4505_s6 + $0x64] sm:$0xff] }
  0xd1   : > { %v688_v8 = vpop.f32.mrf.mxu2  ;;  %v403_v12 = vpop.f32.mrf.mxu0  ;;  %2332 = vmatpush.bf16.msrb.mxu0 %v4273_v22 }
  0xd2   : > { %v874_v9 = vpop.f32.mrf.mxu3  ;;  %v706_v11 = vadd.f32 %v688_v8, %v511_v61  ;;  %v512_v13 = vpop.f32.mrf.mxu1  ;;  %v1819_v61 = vor.u32 %v1817_v52, %v1815_v28  ;;  %v1638_v8 = vsel %vm576_vm0, %v1633_v59, %v1637_v60  ;;  %2518 = vmatpush.bf16.msrb.mxu1 %v4285_v27  ;;  %v2423_v27 = vshll.u32 %v4340_v16, 16 }
  0xd3   : > { %v513_v18 = vadd.f32 %v512_v13, %v403_v12  ;;  %v1959_v12 = vsel %vm1952_vm1, %v1956_v29, %v1958_v0  ;;  %v2084_v13 = vsel %vm1952_vm1, %v2081_v30, %v2083_v2  ;;  %v1639_v30 = vshrl.u32 %v4951_v44, 16 }
  0xd4   : > { %v4924_v19 = vadd.f32 %v874_v9, %v706_v11  ;;  %v1824_v9 = vsel %vm576_vm0, %v1819_v61, %v1823_v63 }
  0xd6   : > { %2519 = vmatpush.bf16.msrb.mxu1 %v4284_v47 }
  0xd9   : > { %v690_v31 = vpop.f32.mrf.mxu2  ;;  %v406_v35 = vpop.f32.mrf.mxu0 }
  0xda   : > { %v876_v32 = vpop.f32.mrf.mxu3  ;;  %v707_v34 = vadd.f32 %v690_v31, %v513_v18  ;;  %v515_v36 = vpop.f32.mrf.mxu1 }
  0xdb   : > { %v516_v39 = vadd.f32 %v515_v36, %v406_v35  ;;  %v1825_v35 = vshrl.u32 %v4954_v45, 16  ;;  %v1829_v36 = vshll.u32 %v5001_v26, 16  ;;  %v1647_v45 = vshrl.u32 %v4999_v25, 16 }
  0xdc   : > { %v4948_v43 = vadd.f32 %v876_v32, %v707_v34  ;;  %1716 = vmatmul.bf16.gmra.mxu0 %v1630_v37  ;;  %v1643_v34 = vshll.u32 %v4999_v25, 16 }
  0xdd   : > { %1902 = vmatmul.bf16.gmra.mxu1 %v1816_v38  ;;  %v4292_v38 = vld [vmem:[%s5235_s1 + $0x380] sm:$0xff] }
  0xde   : > { %2028 = vmatmul.bf16.gmra.mxu2 %v1957_v40  ;;  %v4300_v40 = vld [vmem:[%s5235_s1 + $0x3c0] sm:$0xff]  ;;  %v1645_v21 = vrot.slane %v1643_v34, 1 }
  0xdf   : > { %2153 = vmatmul.bf16.gmra.mxu3 %v2082_v42  ;;  %v1641_v42 = vor.u32 %v1639_v30, %v1637_v60  ;;  %2644 = vmatpush.bf16.msrb.mxu2 %v4292_v38  ;;  %v4342_v30 = vld [vmem:[%s4505_s6 + $0x88] sm:$0xe] }
  0xe0   : > { %2769 = vmatpush.bf16.msrb.mxu3 %v4300_v40  ;;  %v1649_v10 = vor.u32 %v1647_v45, %v1645_v21 }
  0xe1   : > { %v693_v46 = vpop.f32.mrf.mxu2  ;;  %v408_v49 = vpop.f32.mrf.mxu0 }
  0xe2   : > { %v879_v23 = vpop.f32.mrf.mxu3  ;;  %v708_v48 = vadd.f32 %v693_v46, %v516_v39  ;;  %v517_v50 = vpop.f32.mrf.mxu1  ;;  %v4272_v39 = vld [vmem:[%s5235_s1 + $0x300] sm:$0xff]  ;;  %v1827_v46 = vor.u32 %v1825_v35, %v1823_v63  ;;  %v2242_v35 = vshll.u32 %v5048_v24, 16 }
  0xe3   : > { %v518_v54 = vadd.f32 %v517_v50, %v408_v49  ;;  %v2085_v49 = vrot.slane %v5001_v26, 1  ;;  %2333 = vmatpush.bf16.msrb.mxu0 %v4272_v39 }
  0xe4   : > { %v4963_v55 = vadd.f32 %v879_v23, %v708_v48  ;;  %v1831_v23 = vrot.slane %v1829_v36, 1  ;;  %v1960_v48 = vrot.slane %v4999_v25, 1 }
  0xe5   : > { %v2086_v59 = vsel %vm1952_vm1, %v2083_v2, %v2085_v49 }
  0xe6   : > { %v1832_v56 = vsel %vm576_vm0, %v1827_v46, %v1831_v23  ;;  %v1961_v58 = vsel %vm1952_vm1, %v1958_v0, %v1960_v48 }
  0xe9   : > { %v695_v3 = vpop.f32.mrf.mxu2  ;;  %v411_v6 = vpop.f32.mrf.mxu0 }
  0xea   : > { %v881_v4 = vpop.f32.mrf.mxu3  ;;  %v709_v5 = vadd.f32 %v695_v3, %v518_v54  ;;  %v520_v7 = vpop.f32.mrf.mxu1  ;;  %v1646_v54 = vsel %vm576_vm0, %v1641_v42, %v1645_v21  ;;  %v2421_v42 = vshrl.u32 %v4340_v16, 16  ;;  %v2425_v21 = vrot.slane %v2423_v27, 1 }
  0xeb   : > { %v521_v11 = vadd.f32 %v520_v7, %v411_v6  ;;  %v4380_v6 = vld [vmem:[%s4505_s6 + $0x5c] sm:$0xf0]  ;;  %v1833_v7 = vshrl.u32 %v5001_v26, 16  ;;  %v5051_v26 = vld [vmem:[%s4505_s6 + $0x90] sm:$0xff] }
  0xec   : > { %v4988_v18 = vadd.f32 %v881_v4, %v709_v5  ;;  %1721 = vmatmul.bf16.gmra.mxu0 %v1638_v8  ;;  %v2428_v46 = vshll.u32 %v5051_v26, 16  ;;  %v4382_v47 = vor.u32 %v4381_v20, %v4380_v6 }
  0xed   : > { %1907 = vmatmul.bf16.gmra.mxu1 %v1824_v9 }
  0xee   : > { %2033 = vmatmul.bf16.gmra.mxu2 %v1959_v12 }
  0xef   : > { %2158 = vmatmul.bf16.gmra.mxu3 %v2084_v13 }
  0xf1   : > { %v698_v28 = vpop.f32.mrf.mxu2  ;;  %v413_v32 = vpop.f32.mrf.mxu0 }
  0xf2   : > { %v884_v29 = vpop.f32.mrf.mxu3  ;;  %v710_v31 = vadd.f32 %v698_v28, %v521_v11  ;;  %v522_v33 = vpop.f32.mrf.mxu1  ;;  %v1835_v11 = vor.u32 %v1833_v7, %v1831_v23  ;;  %v4407_v28 = vmov 0  }
  0xf3   : > { %4374 = vset.pattern.permute.xlu0 %v4407_v28  ;;  %4375 = vset.pattern.permute.xlu1 %v4407_v28 }
  0xf4   : > { %v5010_v37 = vadd.f32 %v884_v29, %v710_v31  ;;  %v4341_v29 = vld [vmem:[%s4505_s6 + $0x88] sm:$0xf0]  ;;  %4376 = vset.pattern.permute.xlu2 %v4407_v28 }
  0xf9   : > { %v700_v50 = vpop.f32.mrf.mxu2  ;;  %v1009_v52 = vpop.f32.mrf.mxu0 }
  0xfa   : > { %v886_v51 = vpop.f32.mrf.mxu3  ;;  %v1154_v53 = vpop.f32.mrf.mxu1  ;;  %v1033_v57 = vadd.f32 %v1009_v52, %v4842_v62  ;;  %v3880_v62 = vld [vmem:[%s4505_s6 + $0x5c] sm:$0xff]   ;;  %v2244_v52 = vrot.slane %v2242_v35, 1 }
  0xfb   : > { %v2237_v25 = vshll.u32 %v3880_v62, 16  ;;  %v2235_v33 = vshrl.u32 %v3880_v62, 16 }
  0xfc   : > { %v1178_v60 = vadd.f32 %v1154_v53, %v1033_v57  ;;  %1726 = vmatmul.bf16.gmra.mxu0 %v1646_v54  ;;  %v2426_v53 = vor.u32 %v2425_v21, %v2421_v42  ;;  %v2430_v54 = vrot.slane %v2428_v46, 1  ;;  %v2576_v57 = vrot.slane %v5048_v24, 1 }
  0xfd   : > { %1912 = vmatmul.bf16.gmra.mxu1 %v1832_v56  ;;  %v2239_v34 = vrot.slane %v2237_v25, 1  ;;  %v2575_v56 = vrot.slane %v4382_v47, 1  ;;  %v2432_v25 = vshrl.u32 %v5051_v26, 16 }
  0xfe   : > { %2038 = vmatmul.bf16.gmra.mxu2 %v1961_v58  ;;  %v2431_v6 = vsel %vm576_vm0, %v2426_v53, %v2430_v54  ;;  %v5114_v53 = vld [vmem:[%s4505_s6 + $0xa0] sm:$0xff] }
  0xff   : > { %2163 = vmatmul.bf16.gmra.mxu3 %v2086_v59  ;;  %v2240_v51 = vor.u32 %v2239_v34, %v2235_v33  ;;  %v2701_v59 = vrot.slane %v5051_v26, 1  ;;  %v2577_v45 = vsel %vm1952_vm1, %v2575_v56, %v2576_v57  ;;  %v2825_v26 = vld [vmem:[%s5236_s2 + $0x18] sm:$0xff] }
 0x100   : > { %vm2834_vm5 = vcmp.ne.f32.partialorder %v2825_v26, 0.0 }
 0x101   : > { %v1340_v61 = vpop.f32.mrf.mxu2  ;;  %v1011_v4 = vpop.f32.mrf.mxu0  ;;  %v2245_v62 = vsel %vm576_vm0, %v2240_v51, %v2244_v52 }
 0x102   : > { %v1526_v63 = vpop.f32.mrf.mxu3  ;;  %v1364_v3 = vadd.f32 %v1340_v61, %v1178_v60  ;;  %v1156_v5 = vpop.f32.mrf.mxu1  ;;  %v1034_v44 = vadd.f32 %v1011_v4, %v4854_v17  ;;  %v2823_v60 = vld [vmem:[%s5236_s2 + $0x8] sm:$0xff] }
 0x103   : > { %vm2832_vm3 = vcmp.ne.f32.partialorder %v2823_v60, 0.0 }
 0x104   : > { %v5038_v0 = vadd.f32 %v1526_v63, %v1364_v3  ;;  %v1179_v2 = vadd.f32 %v1156_v5, %v1034_v44  ;;  %v2841_v63 = vsel %vm2832_vm3, 1, %v4407_v28 }
 0x109   : > { %v1342_v8 = vpop.f32.mrf.mxu2  ;;  %v1014_v13 = vpop.f32.mrf.mxu0 }
 0x10a   : > { %v1528_v9 = vpop.f32.mrf.mxu3  ;;  %v1365_v12 = vadd.f32 %v1342_v8, %v1179_v2  ;;  %v1159_v14 = vpop.f32.mrf.mxu1  ;;  %v1035_v15 = vadd.f32 %v1014_v13, %v4876_v41  ;;  %v2822_v41 = vld [vmem:[%s5236_s2] sm:$0xff]  ;;  %v2246_v13 = vshrl.u32 %v5048_v24, 16  ;;  %v2434_v24 = vor.u32 %v2432_v25, %v2430_v54  ;;  %v3994_v25 = vld [vmem:[%s4505_s6 + $0xa8] sm:$0xf] }
 0x10b   : > { %vm2831_vm2 = vcmp.ne.f32.partialorder %v2822_v41, 0.0 }
 0x10c   : > { %v5044_v17 = vadd.f32 %v1528_v9, %v1365_v12  ;;  %v1180_v22 = vadd.f32 %v1159_v14, %v1035_v15  ;;  %1731 = vmatmul.bf16.gmra.mxu0 %v1649_v10  ;;  %v2840_v36 = vsel %vm2831_vm2, 1, %v4407_v28  ;;  %v5081_v9 = vld [vmem:[%s4505_s6 + $0x6c] sm:$0xff]  ;;  %v5084_v10 = vld [vmem:[%s4505_s6 + $0x98] sm:$0xff] }
 0x10d   : > { %1917 = vmatmul.bf16.gmra.mxu1 %v1835_v11  ;;  %2850 = vperm.xlu0 %4374, %v2840_v36   ;;  %v2824_v11 = vld [vmem:[%s5236_s2 + $0x10] sm:$0xff]  ;;  %v2436_v27 = vshll.u32 %v5084_v10, 16  ;;  %v2578_v34 = vrot.slane %v5081_v9, 1  ;;  %v2703_v35 = vrot.slane %v5084_v10, 1 }
 0x10e   : > { %2043 = vmatmul.bf16.gmra.mxu2 %v1960_v48  ;;  %v4343_v48 = vor.u32 %v4342_v30, %v4341_v29  ;;  %vm2833_vm4 = vcmp.ne.f32.partialorder %v2824_v11, 0.0 }
 0x10f   : > { %2168 = vmatmul.bf16.gmra.mxu3 %v2085_v49  ;;  %v2842_v14 = vsel %vm2833_vm4, 1, %v4407_v28  ;;  %v2438_v33 = vrot.slane %v2436_v27, 1  ;;  %v2579_v47 = vsel %vm1952_vm1, %v2576_v57, %v2578_v34  ;;  %v4283_v27 = vld [vmem:[%s4505_s6 + $0xa8] sm:$0x10] }
 0x110   : > { %v2700_v58 = vrot.slane %v4343_v48, 1  ;;  %2856 = vperm.xlu1 %4375, %v2842_v14   ;;  %v2704_v48 = vsel %vm1952_vm1, %v2701_v59, %v2703_v35  ;;  %v3920_v14 = vld [vmem:[%s4505_s6 + $0x7c] sm:$0xf] }
 0x111   : > { %v1345_v31 = vpop.f32.mrf.mxu2  ;;  %v1016_v39 = vpop.f32.mrf.mxu0  ;;  %v2439_v46 = vsel %vm576_vm0, %v2434_v24, %v2438_v33  ;;  %v5145_v24 = vor.u32 %v4283_v27, %v3994_v25 }
 0x112   : > { %v1531_v32 = vpop.f32.mrf.mxu3  ;;  %v1366_v38 = vadd.f32 %v1345_v31, %v1180_v22  ;;  %v1161_v40 = vpop.f32.mrf.mxu1  ;;  %v1036_v23 = vadd.f32 %v1016_v39, %v4900_v1  ;;  %v2702_v2 = vsel %vm1952_vm1, %v2700_v58, %v2701_v59  ;;  %v2250_v22 = vshll.u32 %v5081_v9, 16 }
 0x113   : > { %v2248_v31 = vor.u32 %v2246_v13, %v2244_v52  ;;  %v5111_v52 = vld [vmem:[%s4505_s6 + $0x74] sm:$0xff]  ;;  %v2254_v58 = vshrl.u32 %v5081_v9, 16 }
 0x114   : > { %v5065_v49 = vadd.f32 %v1531_v32, %v1366_v38  ;;  %v1181_v50 = vadd.f32 %v1161_v40, %v1036_v23  ;;  %v2252_v32 = vrot.slane %v2250_v22, 1  ;;  %v2258_v59 = vshll.u32 %v5111_v52, 16 }
 0x115   : > { %2853 = vperm.xlu0 %4374, %v2841_v63   ;;  %v2262_v26 = vshrl.u32 %v5111_v52, 16 }
 0x116   : > { %v2253_v21 = vsel %vm576_vm0, %v2248_v31, %v2252_v32 }
 0x119   : > { %v1347_v1 = vpop.f32.mrf.mxu2  ;;  %v1019_v4 = vpop.f32.mrf.mxu0 }
 0x11a   : > { %v1533_v61 = vpop.f32.mrf.mxu3  ;;  %v1367_v3 = vadd.f32 %v1347_v1, %v1181_v50  ;;  %v1164_v5 = vpop.f32.mrf.mxu1  ;;  %v1037_v44 = vadd.f32 %v1019_v4, %v4924_v19  ;;  %v2440_v1 = vshrl.u32 %v5084_v10, 16 }
 0x11c   : > { %v5078_v7 = vadd.f32 %v1533_v61, %v1367_v3  ;;  %v1182_v8 = vadd.f32 %v1164_v5, %v1037_v44  ;;  %2334 = vmatmul.bf16.vlgmr.msrb.gmra.mxu0 %v2245_v62  ;;  %v2444_v61 = vshll.u32 %v5114_v53, 16  ;;  %v2256_v5 = vor.u32 %v2254_v58, %v2252_v32  ;;  %v2829_v32 = vld [vmem:[%s5236_s2 + $0x38] sm:$0xff] }
 0x11d   : > { %2520 = vmatmul.bf16.vlgmr.msrb.gmra.mxu1 %v2431_v6  ;;  %v2260_v62 = vrot.slane %v2258_v59, 1  ;;  %v2442_v6 = vor.u32 %v2440_v1, %v2438_v33  ;;  %vm2838_vm7 = vcmp.ne.f32.partialorder %v2829_v32, 0.0 }
 0x11e   : > { %2645 = vmatmul.bf16.vlgmr.msrb.gmra.mxu2 %v2577_v45  ;;  %v2446_v44 = vrot.slane %v2444_v61, 1  ;;  %v2580_v45 = vrot.slane %v5111_v52, 1  ;;  %v2847_v33 = vsel %vm2838_vm7, 1, %v4407_v28  ;;  %v2826_v52 = vld [vmem:[%s5236_s2 + $0x20] sm:$0xff] }
 0x11f   : > { %2770 = vmatmul.bf16.vlgmr.msrb.gmra.mxu3 %v2702_v2  ;;  %v2705_v2 = vrot.slane %v5114_v53, 1  ;;  %vm2835_vm8 = vcmp.ne.f32.partialorder %v2826_v52, 0.0 }
 0x120   : > { %v2447_v13 = vsel %vm576_vm0, %v2442_v6, %v2446_v44 }
 0x121   : > { %v1350_v19 = vpop.f32.mrf.mxu2  ;;  %v1021_v16 = vpop.f32.mrf.mxu0  ;;  %v2706_v22 = vsel %vm1952_vm1, %v2703_v35, %v2705_v2 }
 0x122   : > { %v1536_v12 = vpop.f32.mrf.mxu3  ;;  %v1368_v15 = vadd.f32 %v1350_v19, %v1182_v8  ;;  %v1166_v20 = vpop.f32.mrf.mxu1  ;;  %v1038_v41 = vadd.f32 %v1021_v16, %v4948_v43  ;;  %v2843_v43 = vsel %vm2834_vm5, 1, %v4407_v28 }
 0x123   : > { %2859 = vperm.xlu1 %4375, %v2843_v43  }
 0x124   : > { %v5095_v29 = vadd.f32 %v1536_v12, %v1368_v15  ;;  %v1183_v30 = vadd.f32 %v1166_v20, %v1038_v41  ;;  %v2261_v12 = vsel %vm576_vm0, %v2256_v5, %v2260_v62  ;;  %v4271_v15 = vld [vmem:[%s4505_s6 + $0x7c] sm:$0x10]  ;;  %v2581_v20 = vsel %vm1952_vm1, %v2578_v34, %v2580_v45  ;;  %v2827_v5 = vld [vmem:[%s5236_s2 + $0x28] sm:$0xff] }
 0x125   : > { %vm2836_vm9 = vcmp.ne.f32.partialorder %v2827_v5, 0.0 }
 0x129   : > { %v1352_v36 = vpop.f32.mrf.mxu2  ;;  %v1024_v40 = vpop.f32.mrf.mxu0 }
 0x12a   : > { %v1538_v38 = vpop.f32.mrf.mxu3  ;;  %v1369_v39 = vadd.f32 %v1352_v36, %v1183_v30  ;;  %v1169_v42 = vpop.f32.mrf.mxu1  ;;  %v1039_v23 = vadd.f32 %v1024_v40, %v4963_v55  ;;  %v2448_v40 = vshrl.u32 %v5114_v53, 16  ;;  %v2844_v53 = vsel %vm2835_vm8, 1, %v4407_v28 }
 0x12b   : > { %2871 = vperm.xlu1 %4375, %v2847_v33   ;;  %2862 = vperm.xlu2 %4376, %v2844_v53  }
 0x12c   : > { %v5108_v50 = vadd.f32 %v1538_v38, %v1369_v39  ;;  %v1184_v51 = vadd.f32 %v1169_v42, %v1039_v23  ;;  %2339 = vmatmul.bf16.gmra.mxu0 %v2253_v21  ;;  %v2452_v42 = vshll.u32 %v5145_v24, 16 }
 0x12d   : > { %2525 = vmatmul.bf16.gmra.mxu1 %v2439_v46  ;;  %v2264_v46 = vor.u32 %v2262_v26, %v2260_v62 }
 0x12e   : > { %2650 = vmatmul.bf16.gmra.mxu2 %v2579_v47  ;;  %v2450_v47 = vor.u32 %v2448_v40, %v2446_v44  ;;  %v2845_v44 = vsel %vm2836_vm9, 1, %v4407_v28 }
 0x12f   : > { %2775 = vmatmul.bf16.gmra.mxu3 %v2704_v48  ;;  %v2454_v48 = vrot.slane %v2452_v42, 1 }
 0x131   : > { %v1355_v54 = vpop.f32.mrf.mxu2  ;;  %v1026_v60 = vpop.f32.mrf.mxu0  ;;  %v2455_v59 = vsel %vm576_vm0, %v2450_v47, %v2454_v48 }
 0x132   : > { %v1541_v56 = vpop.f32.mrf.mxu3  ;;  %v1370_v55 = vadd.f32 %v1355_v54, %v1184_v51  ;;  %v1171_v57 = vpop.f32.mrf.mxu1  ;;  %v1040_v63 = vadd.f32 %v1026_v60, %v4988_v18  ;;  %v2828_v18 = vld [vmem:[%s5236_s2 + $0x30] sm:$0xff]  ;;  %v2707_v54 = vrot.slane %v5145_v24, 1 }
 0x133   : > { %vm2837_vm6 = vcmp.ne.f32.partialorder %v2828_v18, 0.0  ;;  %2865 = vperm.xlu2 %4376, %v2845_v44  }
 0x134   : > { %v5121_v3 = vadd.f32 %v1541_v56, %v1370_v55  ;;  %v1185_v4 = vadd.f32 %v1171_v57, %v1040_v63  ;;  %v2846_v41 = vsel %vm2837_vm6, 1, %v4407_v28  ;;  %v2708_v63 = vsel %vm1952_vm1, %v2705_v2, %v2707_v54 }
 0x135   : > { %2868 = vperm.xlu0 %4374, %v2846_v41  }
 0x139   : > { %v1357_v8 = vpop.f32.mrf.mxu2  ;;  %v1029_v11 = vpop.f32.mrf.mxu0 }
 0x13a   : > { %v1543_v9 = vpop.f32.mrf.mxu3  ;;  %v1371_v10 = vadd.f32 %v1357_v8, %v1185_v4  ;;  %v1174_v19 = vpop.f32.mrf.mxu1  ;;  %v1041_v16 = vadd.f32 %v1029_v11, %v5010_v37  ;;  %v5143_v37 = vor.u32 %v4271_v15, %v3920_v14  ;;  %v2456_v11 = vshrl.u32 %v5145_v24, 16 }
 0x13c   : > { %v5138_v30 = vadd.f32 %v1543_v9, %v1371_v10  ;;  %v1186_v31 = vadd.f32 %v1174_v19, %v1041_v16  ;;  %2344 = vmatmul.bf16.gmra.mxu0 %v2261_v12  ;;  %v2266_v39 = vshll.u32 %v5143_v37, 16  ;;  %v2582_v51 = vrot.slane %v5143_v37, 1  ;;  %v2830_v19 = vld [vmem:[%s5236_s2 + $0x40] sm:$0xff] }
 0x13d   : > { %2530 = vmatmul.bf16.gmra.mxu1 %v2447_v13  ;;  %v2270_v10 = vshrl.u32 %v5143_v37, 16  ;;  %vm2839_vm10 = vcmp.ne.f32.partialorder %v2830_v19, 0.0  ;;  %v2458_v15 = vor.u32 %v2456_v11, %v2454_v48 }
 0x13e   : > { %2655 = vmatmul.bf16.gmra.mxu2 %v2581_v20  ;;  %v2268_v23 = vrot.slane %v2266_v39, 1  ;;  %v2583_v61 = vsel %vm1952_vm1, %v2580_v45, %v2582_v51  ;;  %v2848_v16 = vsel %vm2839_vm10, 1, %v4407_v28 }
 0x13f   : > { %2780 = vmatmul.bf16.gmra.mxu3 %v2706_v22  ;;  %2874 = vperm.xlu2 %4376, %v2848_v16  }
 0x140   : > { %v2269_v57 = vsel %vm576_vm0, %v2264_v46, %v2268_v23  ;;  %v2272_v14 = vor.u32 %v2270_v10, %v2268_v23 }
 0x141   : > { %v1360_v34 = vpop.f32.mrf.mxu2  ;;  %v1031_v38 = vpop.f32.mrf.mxu0 }
 0x142   : > { %v1546_v35 = vpop.f32.mrf.mxu3  ;;  %v1372_v36 = vadd.f32 %v1360_v34, %v1186_v31  ;;  %v1176_v43 = vpop.f32.mrf.mxu1 }
 0x144   : > { %v5152_v21 = vadd.f32 %v1546_v35, %v1372_v36 }
 0x149   : > { %v1362_v56 = vpop.f32.mrf.mxu2  ;;  %v1712_v55 = vpop.f32.mrf.mxu0 }
 0x14a   : > { %v1548_v58 = vpop.f32.mrf.mxu3  ;;  %v1898_v60 = vpop.f32.mrf.mxu1  ;;  %v1736_v1 = vadd.f32 %v1712_v55, %v5038_v0 }
 0x14c   : > { %v1922_v4 = vadd.f32 %v1898_v60, %v1736_v1  ;;  %2349 = vmatmul.bf16.gmra.mxu0 %v2269_v57 }
 0x14d   : > { %2535 = vmatmul.bf16.gmra.mxu1 %v2455_v59 }
 0x14e   : > { %2660 = vmatmul.bf16.gmra.mxu2 %v2583_v61 }
 0x14f   : > { %2785 = vmatmul.bf16.gmra.mxu3 %v2708_v63 }
 0x151   : > { %v2024_v62 = vpop.f32.mrf.mxu2  ;;  %v1714_v0 = vpop.f32.mrf.mxu0 }
 0x152   : > { %v2149_v6 = vpop.f32.mrf.mxu3  ;;  %v2048_v8 = vadd.f32 %v2024_v62, %v1922_v4  ;;  %v1900_v9 = vpop.f32.mrf.mxu1  ;;  %v1737_v45 = vadd.f32 %v1714_v0, %v5044_v17 }
 0x154   : > { %v5170_v2 = vadd.f32 %v2149_v6, %v2048_v8  ;;  %v1923_v18 = vadd.f32 %v1900_v9, %v1737_v45 }
 0x159   : > { %v2026_v12 = vpop.f32.mrf.mxu2  ;;  %v1717_v17 = vpop.f32.mrf.mxu0 }
 0x15a   : > { %v2151_v13 = vpop.f32.mrf.mxu3  ;;  %v2049_v20 = vadd.f32 %v2026_v12, %v1923_v18  ;;  %v1903_v22 = vpop.f32.mrf.mxu1  ;;  %v1738_v25 = vadd.f32 %v1717_v17, %v5065_v49 }
 0x15c   : > { %v5179_v27 = vadd.f32 %v2151_v13, %v2049_v20  ;;  %v1924_v41 = vadd.f32 %v1903_v22, %v1738_v25  ;;  %2354 = vmatmul.bf16.gmra.mxu0 %v2272_v14 }
 0x15d   : > { %2540 = vmatmul.bf16.gmra.mxu1 %v2458_v15 }
 0x15e   : > { %2665 = vmatmul.bf16.gmra.mxu2 %v2582_v51 }
 0x15f   : > { %2790 = vmatmul.bf16.gmra.mxu3 %v2707_v54 }
 0x161   : > { %v2029_v31 = vpop.f32.mrf.mxu2  ;;  %v1719_v24 = vpop.f32.mrf.mxu0 }
 0x162   : > { %v2154_v32 = vpop.f32.mrf.mxu3  ;;  %v2050_v37 = vadd.f32 %v2029_v31, %v1924_v41  ;;  %v1905_v33 = vpop.f32.mrf.mxu1  ;;  %v1739_v28 = vadd.f32 %v1719_v24, %v5078_v7 }
 0x164   : > { %v5182_v34 = vadd.f32 %v2154_v32, %v2050_v37  ;;  %v1925_v35 = vadd.f32 %v1905_v33, %v1739_v28 }
 0x169   : > { %v2031_v26 = vpop.f32.mrf.mxu2  ;;  %v1722_v38 = vpop.f32.mrf.mxu0 }
 0x16a   : > { %v2156_v36 = vpop.f32.mrf.mxu3  ;;  %v2051_v49 = vadd.f32 %v2031_v26, %v1925_v35  ;;  %v1908_v43 = vpop.f32.mrf.mxu1  ;;  %v1740_v39 = vadd.f32 %v1722_v38, %v5095_v29 }
 0x16c   : > { %v5185_v40 = vadd.f32 %v2156_v36, %v2051_v49  ;;  %v1926_v42 = vadd.f32 %v1908_v43, %v1740_v39 }
 0x171   : > { %v2034_v46 = vpop.f32.mrf.mxu2  ;;  %v1724_v48 = vpop.f32.mrf.mxu0 }
 0x172   : > { %v2159_v23 = vpop.f32.mrf.mxu3  ;;  %v2052_v47 = vadd.f32 %v2034_v46, %v1926_v42  ;;  %v1910_v51 = vpop.f32.mrf.mxu1  ;;  %v1741_v7 = vadd.f32 %v1724_v48, %v5108_v50 }
 0x174   : > { %v5188_v54 = vadd.f32 %v2159_v23, %v2052_v47  ;;  %v1927_v52 = vadd.f32 %v1910_v51, %v1741_v7 }
 0x179   : > { %v2036_v56 = vpop.f32.mrf.mxu2  ;;  %v1727_v55 = vpop.f32.mrf.mxu0 }
 0x17a   : > { %v2161_v58 = vpop.f32.mrf.mxu3  ;;  %v2053_v53 = vadd.f32 %v2036_v56, %v1927_v52  ;;  %v1913_v60 = vpop.f32.mrf.mxu1  ;;  %v1742_v29 = vadd.f32 %v1727_v55, %v5121_v3 }
 0x17c   : > { %v5191_v57 = vadd.f32 %v2161_v58, %v2053_v53  ;;  %v1928_v59 = vadd.f32 %v1913_v60, %v1742_v29 }
 0x17f   : > { %v2851_v25 = vpop.permute.xlu0 %2850 }
 0x180   : > { %vm2876_vm11 = vcmp.eq.s32.totalorder %v2851_v25, 1 }
 0x181   : > { %v2039_v1 = vpop.f32.mrf.mxu2  ;;  %v1729_v4 = vpop.f32.mrf.mxu0 }
 0x182   : > { %v2164_v61 = vpop.f32.mrf.mxu3  ;;  %v2054_v63 = vadd.f32 %v2039_v1, %v1928_v59  ;;  %v1915_v5 = vpop.f32.mrf.mxu1  ;;  %v1743_v50 = vadd.f32 %v1729_v4, %v5138_v30 }
 0x183   : > { %v2857_v47 = vpop.permute.xlu1 %2856 }
 0x184   : > { %v5194_v62 = vadd.f32 %v2164_v61, %v2054_v63  ;;  %v1929_v6 = vadd.f32 %v1915_v5, %v1743_v50  ;;  %vm2878_vm13 = vcmp.eq.s32.totalorder %v2857_v47, 1 }
 0x187   : > { %v2854_v26 = vpop.permute.xlu0 %2853 }
 0x188   : > { %vm2877_vm12 = vcmp.eq.s32.totalorder %v2854_v26, 1 }
 0x189   : > { %v2041_v44 = vpop.f32.mrf.mxu2  ;;  %v1732_v9 = vpop.f32.mrf.mxu0 }
 0x18a   : > { %v2166_v8 = vpop.f32.mrf.mxu3  ;;  %v2055_v0 = vadd.f32 %v2041_v44, %v1929_v6  ;;  %v1918_v45 = vpop.f32.mrf.mxu1  ;;  %v1744_v3 = vadd.f32 %v1732_v9, %v5152_v21 }
 0x18c   : > { %v5197_v18 = vadd.f32 %v2166_v8, %v2055_v0  ;;  %v1930_v10 = vadd.f32 %v1918_v45, %v1744_v3 }
 0x191   : > { %v2044_v11 = vpop.f32.mrf.mxu2  ;;  %v1734_v13 = vpop.f32.mrf.mxu0 }
 0x192   : > { %v2169_v19 = vpop.f32.mrf.mxu3  ;;  %v2056_v12 = vadd.f32 %v2044_v11, %v1930_v10  ;;  %v1920_v14 = vpop.f32.mrf.mxu1 }
 0x194   : > { %v5199_v15 = vadd.f32 %v2169_v19, %v2056_v12  ;;  %v2863_v19 = vpop.permute.xlu2 %2862 }
 0x195   : > { %v2860_v5 = vpop.permute.xlu1 %2859  ;;  %vm2880_vm15 = vcmp.eq.s32.totalorder %v2863_v19, 1 }
 0x196   : > { %vm2879_vm14 = vcmp.eq.s32.totalorder %v2860_v5, 1 }
 0x199   : > { %v2046_v30 = vpop.f32.mrf.mxu2  ;;  %v2335_v20 = vpop.f32.mrf.mxu0 }
 0x19a   : > { %v2171_v16 = vpop.f32.mrf.mxu3  ;;  %v2521_v17 = vpop.f32.mrf.mxu1  ;;  %v2359_v22 = vadd.f32 %v2335_v20, %v5170_v2 }
 0x19c   : > { %v2545_v31 = vadd.f32 %v2521_v17, %v2359_v22 }
 0x1a1   : > { %v2646_v41 = vpop.f32.mrf.mxu2  ;;  %v2337_v32 = vpop.f32.mrf.mxu0 }
 0x1a2   : > { %v2771_v21 = vpop.f32.mrf.mxu3  ;;  %v2523_v37 = vpop.f32.mrf.mxu1  ;;  %v2670_v24 = vadd.f32 %v2646_v41, %v2545_v31  ;;  %v2360_v33 = vadd.f32 %v2337_v32, %v5179_v27 }
 0x1a4   : > { %v2795_v28 = vadd.f32 %v2771_v21, %v2670_v24  ;;  %v2546_v35 = vadd.f32 %v2523_v37, %v2360_v33  ;;  %v2866_v37 = vpop.permute.xlu2 %2865 }
 0x1a5   : > { %vm2881_vm0 = vcmp.eq.s32.totalorder %v2866_v37, 1 }
 0x1a6   : > { %v2885_v2 = vsel %vm2876_vm11, %v2795_v28, 0.0 }
 0x1a7   : > { %v2909_v48 = vmul.f32 %v2885_v2, %v2885_v2 }
 0x1a9   : > { %v2648_v36 = vpop.f32.mrf.mxu2  ;;  %v2340_v43 = vpop.f32.mrf.mxu0 }
 0x1aa   : > { %v2773_v49 = vpop.f32.mrf.mxu3  ;;  %v2671_v38 = vadd.f32 %v2648_v36, %v2546_v35  ;;  %v2526_v39 = vpop.f32.mrf.mxu1  ;;  %v2361_v46 = vadd.f32 %v2340_v43, %v5182_v34 }
 0x1ac   : > { %v2796_v42 = vadd.f32 %v2773_v49, %v2671_v38  ;;  %v2547_v52 = vadd.f32 %v2526_v39, %v2361_v46  ;;  %v2869_v46 = vpop.permute.xlu0 %2868 }
 0x1ad   : > { %vm2882_vm1 = vcmp.eq.s32.totalorder %v2869_v46, 1 }
 0x1ae   : > { %v4319_v27 = vpack.c.bf16 %v2796_v42, %v2795_v28  ;;  %v2886_v23 = vsel %vm2877_vm12, %v2796_v42, 0.0 }
 0x1af   : > { %v2894_v51 = vadd.f32 %v2886_v23, %v2885_v2  ;;  %v2910_v7 = vmul.f32 %v2886_v23, %v2886_v23 }
 0x1b0   : > { %4320 = vst [vmem:[%s5208_s24] sm:$0xff] %v4319_v27  }
 0x1b1   : > { %v2918_v56 = vadd.f32 %v2910_v7, %v2909_v48  ;;  %v2651_v58 = vpop.f32.mrf.mxu2  ;;  %v2342_v60 = vpop.f32.mrf.mxu0 }
 0x1b2   : > { %v2776_v53 = vpop.f32.mrf.mxu3  ;;  %v2672_v55 = vadd.f32 %v2651_v58, %v2547_v52  ;;  %v2528_v34 = vpop.f32.mrf.mxu1  ;;  %v2362_v59 = vadd.f32 %v2342_v60, %v5185_v40 }
 0x1b4   : > { %v2797_v29 = vadd.f32 %v2776_v53, %v2672_v55  ;;  %v2548_v4 = vadd.f32 %v2528_v34, %v2362_v59  ;;  %v2872_v55 = vpop.permute.xlu1 %2871 }
 0x1b5   : > { %vm2883_vm2 = vcmp.eq.s32.totalorder %v2872_v55, 1 }
 0x1b6   : > { %v2887_v1 = vsel %vm2878_vm13, %v2797_v29, 0.0 }
 0x1b7   : > { %v2895_v61 = vadd.f32 %v2894_v51, %v2887_v1  ;;  %v2911_v63 = vmul.f32 %v2887_v1, %v2887_v1 }
 0x1b9   : > { %v2919_v50 = vadd.f32 %v2918_v56, %v2911_v63  ;;  %v2653_v6 = vpop.f32.mrf.mxu2  ;;  %v2345_v0 = vpop.f32.mrf.mxu0 }
 0x1ba   : > { %v2778_v44 = vpop.f32.mrf.mxu3  ;;  %v2673_v8 = vadd.f32 %v2653_v6, %v2548_v4  ;;  %v2531_v9 = vpop.f32.mrf.mxu1  ;;  %v2363_v3 = vadd.f32 %v2345_v0, %v5188_v54 }
 0x1bc   : > { %v2798_v45 = vadd.f32 %v2778_v44, %v2673_v8  ;;  %v2549_v13 = vadd.f32 %v2531_v9, %v2363_v3  ;;  %v2875_v8 = vpop.permute.xlu2 %2874 }
 0x1bd   : > { %vm2884_vm3 = vcmp.eq.s32.totalorder %v2875_v8, 1 }
 0x1be   : > { %v4324_v10 = vpack.c.bf16 %v2798_v45, %v2797_v29  ;;  %v2888_v11 = vsel %vm2879_vm14, %v2798_v45, 0.0 }
 0x1bf   : > { %v2896_v40 = vadd.f32 %v2895_v61, %v2888_v11  ;;  %v2912_v12 = vmul.f32 %v2888_v11, %v2888_v11 }
 0x1c0   : > { %4344 = vst [vmem:[%s5208_s24 + $0x8] sm:$0xff] %v4324_v10  }
 0x1c1   : > { %v2920_v14 = vadd.f32 %v2919_v50, %v2912_v12  ;;  %v2656_v30 = vpop.f32.mrf.mxu2  ;;  %v2347_v17 = vpop.f32.mrf.mxu0 }
 0x1c2   : > { %v2781_v16 = vpop.f32.mrf.mxu3  ;;  %v2674_v20 = vadd.f32 %v2656_v30, %v2549_v13  ;;  %v2533_v22 = vpop.f32.mrf.mxu1  ;;  %v2364_v41 = vadd.f32 %v2347_v17, %v5191_v57 }
 0x1c4   : > { %v2799_v25 = vadd.f32 %v2781_v16, %v2674_v20  ;;  %v2550_v32 = vadd.f32 %v2533_v22, %v2364_v41 }
 0x1c6   : > { %v2889_v21 = vsel %vm2880_vm15, %v2799_v25, 0.0 }
 0x1c7   : > { %v2897_v31 = vadd.f32 %v2896_v40, %v2889_v21  ;;  %v2913_v54 = vmul.f32 %v2889_v21, %v2889_v21 }
 0x1c9   : > { %v2921_v24 = vadd.f32 %v2920_v14, %v2913_v54  ;;  %v2658_v33 = vpop.f32.mrf.mxu2  ;;  %v2350_v26 = vpop.f32.mrf.mxu0 }
 0x1ca   : > { %v2783_v28 = vpop.f32.mrf.mxu3  ;;  %v2675_v35 = vadd.f32 %v2658_v33, %v2550_v32  ;;  %v2536_v36 = vpop.f32.mrf.mxu1  ;;  %v2365_v38 = vadd.f32 %v2350_v26, %v5194_v62 }
 0x1cc   : > { %v2800_v49 = vadd.f32 %v2783_v28, %v2675_v35  ;;  %v2551_v42 = vadd.f32 %v2536_v36, %v2365_v38 }
 0x1ce   : > { %v4329_v43 = vpack.c.bf16 %v2800_v49, %v2799_v25  ;;  %v2890_v39 = vsel %vm2881_vm0, %v2800_v49, 0.0 }
 0x1cf   : > { %v2898_v2 = vadd.f32 %v2897_v31, %v2890_v39  ;;  %v2914_v57 = vmul.f32 %v2890_v39, %v2890_v39 }
 0x1d0   : > { %4345 = vst [vmem:[%s5208_s24 + $0x10] sm:$0xff] %v4329_v43  }
 0x1d1   : > { %v2922_v27 = vadd.f32 %v2921_v24, %v2914_v57  ;;  %v2661_v23 = vpop.f32.mrf.mxu2  ;;  %v2352_v51 = vpop.f32.mrf.mxu0 }
 0x1d2   : > { %v2786_v47 = vpop.f32.mrf.mxu3  ;;  %v2676_v48 = vadd.f32 %v2661_v23, %v2551_v42  ;;  %v2538_v7 = vpop.f32.mrf.mxu1  ;;  %v2366_v56 = vadd.f32 %v2352_v51, %v5197_v18 }
 0x1d4   : > { %v2801_v52 = vadd.f32 %v2786_v47, %v2676_v48  ;;  %v2552_v60 = vadd.f32 %v2538_v7, %v2366_v56 }
 0x1d6   : > { %v2891_v58 = vsel %vm2882_vm1, %v2801_v52, 0.0 }
 0x1d7   : > { %v2899_v53 = vadd.f32 %v2898_v2, %v2891_v58  ;;  %v2915_v62 = vmul.f32 %v2891_v58, %v2891_v58 }
 0x1d9   : > { %v2923_v34 = vadd.f32 %v2922_v27, %v2915_v62  ;;  %v2663_v29 = vpop.f32.mrf.mxu2  ;;  %v2355_v61 = vpop.f32.mrf.mxu0 }
 0x1da   : > { %v2788_v59 = vpop.f32.mrf.mxu3  ;;  %v2677_v1 = vadd.f32 %v2663_v29, %v2552_v60  ;;  %v2541_v63 = vpop.f32.mrf.mxu1  ;;  %v2367_v5 = vadd.f32 %v2355_v61, %v5199_v15 }
 0x1dc   : > { %v2802_v4 = vadd.f32 %v2788_v59, %v2677_v1  ;;  %v2553_v0 = vadd.f32 %v2541_v63, %v2367_v5 }
 0x1de   : > { %v4334_v50 = vpack.c.bf16 %v2802_v4, %v2801_v52  ;;  %v2892_v6 = vsel %vm2883_vm2, %v2802_v4, 0.0 }
 0x1df   : > { %v2900_v18 = vadd.f32 %v2899_v53, %v2892_v6  ;;  %v2916_v44 = vmul.f32 %v2892_v6, %v2892_v6 }
 0x1e0   : > { %4346 = vst [vmem:[%s5208_s24 + $0x18] sm:$0xff] %v4334_v50  }
 0x1e1   : > { %v2924_v9 = vadd.f32 %v2923_v34, %v2916_v44  ;;  %v2666_v45 = vpop.f32.mrf.mxu2  ;;  %v2357_v11 = vpop.f32.mrf.mxu0 }
 0x1e2   : > { %v2791_v3 = vpop.f32.mrf.mxu3  ;;  %v2678_v10 = vadd.f32 %v2666_v45, %v2553_v0  ;;  %v2543_v19 = vpop.f32.mrf.mxu1 }
 0x1e4   : > { %v2803_v40 = vadd.f32 %v2791_v3, %v2678_v10 }
 0x1e6   : > { %v2812_v12 = vpack.c.bf16 %v2803_v40, %v2803_v40  ;;  %v2893_v15 = vsel %vm2884_vm3, %v2803_v40, 0.0 }
 0x1e7   : > { %v2901_v13 = vadd.f32 %v2900_v18, %v2893_v15  ;;  %v2917_v14 = vmul.f32 %v2893_v15, %v2893_v15 }
 0x1e8   : > { %2821 = vst [vmem:[%s5208_s24 + $0x20] sm:$0xf] %v2812_v12 }
 0x1e9   : > { %v2902_v30 = vrot.slane %v2901_v13, 4  ;;  %v2925_v16 = vadd.f32 %v2924_v9, %v2917_v14  ;;  %v2668_v20 = vpop.f32.mrf.mxu2 }
 0x1ea   : > { %v2793_v17 = vpop.f32.mrf.mxu3 }
 0x1eb   : > { %v2903_v22 = vadd.f32 %v2902_v30, %v2901_v13  ;;  %v2926_v25 = vrot.slane %v2925_v16, 4 }
 0x1ed   : > { %v2904_v41 = vrot.slane %v2903_v22, 2  ;;  %v2927_v21 = vadd.f32 %v2926_v25, %v2925_v16 }
 0x1ef   : > { %v2905_v31 = vadd.f32 %v2904_v41, %v2903_v22  ;;  %v2928_v54 = vrot.slane %v2927_v21, 2 }
 0x1f1   : > { %v2906_v32 = vrot.slane %v2905_v31, 1  ;;  %v2929_v37 = vadd.f32 %v2928_v54, %v2927_v21 }
 0x1f3   : > { %v2907_v24 = vadd.f32 %v2906_v32, %v2905_v31  ;;  %v2930_v33 = vrot.slane %v2929_v37, 1 }
 0x1f5   : > { %2908 = vst [vmem:[%s253_s28] sm:$0x1] %v2907_v24  ;;  %v2931_v28 = vadd.f32 %v2930_v33, %v2929_v37 }
 0x1f7   : > { %2932 = vst [vmem:[%s253_s28 + $0x1] sm:$0x1] %v2931_v28 }
 0x1f8 PF: > { %s15_s17 = sadd.s32 1, %s4405_s17   ;;  %s5239_s15 = smov %s4401_s16 }
 0x1f9   : > { %p12_p5 = scmp.ge.s32.totalorder %s15_s17, 4   ;;  %s5240_s16 = smov %s5242_s18 }
 0x1fb   :  { %14 = sbr.rel (!%p12_p5) target bundleno = 2 (0x2), region = 95 }

// kernel: _lambda_.14
= control target key start
LH: loop header
LB: loop body
LE: loop exit
PB: predicated region body
PF: predicated region fallthrough
CT: control target
= control target key end

     0   :  { %s318_s12 = smov 0   ;;  %s341_s0 = inlined_call_operand.vmem [shape: bf16[2,18,128], index: 0, kind: input, shape index: {}]   ;;  %s342_s1 = inlined_call_operand.vmem [shape: f32[1,128], index: 1, kind: input, shape index: {}]   ;;  %s343_s2 = inlined_call_operand.vmem [shape: f32[1,128], index: 2, kind: input, shape index: {}]   ;;  %s344_s3 = inlined_call_operand.vmem [shape: bf16[2,18,128], index: 3, kind: output, shape index: {}]  }
   0x1 LB: > { %s261_s13 = sadd.s32 4294967295, %s296_s12   ;;  %p265_p0 = scmp.ge.s32.totalorder %s296_s12, 1  ;;  %s296_s12 = sphi %s318_s12, %s13_s12  }
   0x2   : > { %p137_p1 = scmp.lt.s32.totalorder %s296_s12, 3 }
   0x4   : > { %p138_p2 = pnand %p265_p0, %p137_p1 }
   0x5   : > { %p161_p3 = scmp.lt.s32.totalorder (!%p138_p2), %s261_s13, 1 }
   0x6   : > { %141 = sbr.rel (%p138_p2) target bundleno = 29 (0x1d), region = 32 }
   0xb   : > { %s346_s13 = smov (!%p161_p3, %s261_s13), 1  ;;  %v288_v0 = vld [vmem:[%s342_s1] ss:$0 sm:$0xff] }
   0xc   : > { %s279_s14 = smul.u32 12, %s346_s13  ;;  %v289_v6 = vld [vmem:[%s343_s2] ss:$0 sm:$0xff] }
   0xe   : > { %s165_s17 = scalar_lea.vmem %s341_s0, %s279_s14  ;;  %s170_s24 = scalar_lea.vmem %s344_s3, %s279_s14 }
   0xf   : > { %v271_v1 = vld [vmem:[%s165_s17] sm:$0xff]   ;;  %v173_v2 = vld [vmem:[%s165_s17 + $0x8] sm:$0x1] }
  0x10   : > { %v272_v3 = vunpack.c.l.bf16 %v271_v1  ;;  %v273_v4 = vunpack.c.h.bf16 %v271_v1  ;;  %v176_v5 = vunpack.c.l.bf16 %v173_v2 }
  0x12   : > { %v181_v7 = vmul.f32 %v288_v0, %v272_v3  ;;  %v182_v8 = vmul.f32 %v288_v0, %v273_v4  ;;  %v183_v9 = vmul.f32 %v288_v0, %v176_v5 }
  0x14   : > { %v188_v10 = vadd.f32 %v289_v6, %v181_v7  ;;  %v189_v11 = vadd.f32 %v289_v6, %v182_v8  ;;  %v190_v12 = vadd.f32 %v289_v6, %v183_v9 }
  0x16   : > { %vm191_vm0 = vcmp.ge.f32.partialorder %v188_v10, 0.0  ;;  %vm192_vm1 = vcmp.ge.f32.partialorder %v189_v11, 0.0  ;;  %v194_v13 = vmul.f32 0.2, %v188_v10  ;;  %v195_v14 = vmul.f32 0.2, %v189_v11 }
  0x17   : > { %vm193_vm2 = vcmp.ge.f32.partialorder %v190_v12, 0.0  ;;  %v196_v15 = vmul.f32 0.2, %v190_v12 }
  0x18   : > { %v197_v16 = vsel %vm191_vm0, %v188_v10, %v194_v13  ;;  %v198_v17 = vsel %vm192_vm1, %v189_v11, %v195_v14 }
  0x19   : > { %v277_v18 = vpack.c.bf16 %v198_v17, %v197_v16  ;;  %v199_v19 = vsel %vm193_vm2, %v190_v12, %v196_v15 }
  0x1a   : > { %v202_v20 = vpack.c.bf16 %v199_v19, %v199_v19 }
  0x1b   : > { %278 = vst [vmem:[%s170_s24] sm:$0xff] %v277_v18  }
  0x1c   : > { %205 = vst [vmem:[%s170_s24 + $0x8] sm:$0x1] %v202_v20 }
  0x1d PF: > { %s13_s12 = sadd.s32 1, %s296_s12  }
  0x1e   : > { %p10_p4 = scmp.ge.s32.totalorder %s13_s12, 4  }
  0x20   :  { %12 = sbr.rel (!%p10_p4) target bundleno = 1 (0x1), region = 62 }

// kernel: _lambda_.11
= control target key start
LH: loop header
LB: loop body
LE: loop exit
PB: predicated region body
PF: predicated region fallthrough
CT: control target
= control target key end

     0   :  { %s3164_s15 = smov 0   ;;  %s3166_s16 = smov 0   ;;  %s3733_s0 = inlined_call_operand.vmem [shape: bf16[2,4,26,128], index: 0, kind: input, shape index: {}]   ;;  %s3734_s1 = inlined_call_operand.vmem [shape: bf16[16,128,128], index: 1, kind: input, shape index: {}]   ;;  %s3735_s2 = inlined_call_operand.vmem [shape: f32[20,1], index: 2, kind: input, shape index: {}]   ;;  %s3736_s3 = inlined_call_operand.vmem [shape: bf16[2,20,128], index: 3, kind: output, shape index: {0}]   ;;  %s3737_s4 = inlined_call_operand.vmem [shape: f32[2,8,128], index: 4, kind: output, shape index: {1}]  }
   0x1   :  { %s3168_s17 = smov 0  }
   0x2 LB: > { %s27_s18 = sadd.s32 1, %s3132_s16  ;;  %p2126_p0 = scmp.ge.s32.totalorder %s3136_s17, 1  ;;  %s3136_s17 = sphi %s3168_s17, %s15_s17   ;;  %s3132_s16 = sphi %s3166_s16, %s3739_s16   ;;  %s3128_s15 = sphi %s3164_s15, %s3738_s15  }
   0x3   : > { %p29_p1 = scmp.ge.s32.totalorder %s27_s18, 2  ;;  %p190_p2 = scmp.lt.s32.totalorder %s3136_s17, 3 }
   0x5   : > { %s3741_s18 = smov (%p29_p1, %s27_s18), 0  ;;  %p191_p3 = pnand %p2126_p0, %p190_p2 }
   0x6   : > { %p230_p4 = scmp.lt.s32.totalorder (!%p191_p3), %s3128_s15, 1 }
   0x7   : > { %194 = sbr.rel (%p191_p3) target bundleno = 313 (0x139), region = 32 }
   0xc   : > { %v2962_v0 = vld [vmem:[%s3734_s1 + $0x78] sm:$0xff]  ;;  %v2961_v4 = vld [vmem:[%s3734_s1 + $0x70] sm:$0xff]  ;;  %s3743_s15 = smov (!%p230_p4, %s3128_s15), 1  ;;  %v2960_v8 = vld [vmem:[%s3734_s1 + $0x68] sm:$0xff]  ;;  %vm467_vm0 = vsmask.f32 7424 }
   0xd   : > { %v2953_v1 = vld [vmem:[%s3734_s1 + $0x38] sm:$0xff]  ;;  %352 = vmatpush.bf16.msra.mxu0 %v2962_v0  ;;  %v2952_v5 = vld [vmem:[%s3734_s1 + $0x30] sm:$0xff]  ;;  %v2951_v9 = vld [vmem:[%s3734_s1 + $0x28] sm:$0xff]  ;;  %s2944_s13 = sshll.u32 %s3743_s15, 6  ;;  %vm1106_vm1 = vsmask.f32 5376 }
   0xe   : > { %v2970_v2 = vld [vmem:[%s3734_s1 + $0xb8] sm:$0xff]  ;;  %428 = vmatpush.bf16.msra.mxu1 %v2953_v1  ;;  %v2969_v6 = vld [vmem:[%s3734_s1 + $0xb0] sm:$0xff]  ;;  %v2968_v10 = vld [vmem:[%s3734_s1 + $0xa8] sm:$0xff]  ;;  %s3224_s24 = scalar_lea.vmem %s3733_s0, %s2944_s13  ;;  %vm1335_vm2 = vcmask 1044480   ;;  %s3086_s5 = smul.u32 12, %s3743_s15  ;;  %vm1964_vm9 = vcmask 1043456  }
   0xf   : > { %v2978_v3 = vld [vmem:[%s3734_s1 + $0xf8] sm:$0xff]  ;;  %533 = vmatpush.bf16.msra.mxu2 %v2970_v2  ;;  %v2977_v7 = vld [vmem:[%s3734_s1 + $0xf0] sm:$0xff]  ;;  %v2976_v11 = vld [vmem:[%s3734_s1 + $0xe8] sm:$0xff]  ;;  %s2130_s9 = sshll.u32 %s3743_s15, 3 }
  0x10   : > { %640 = vmatpush.bf16.msra.mxu3 %v2978_v3  ;;  %v2959_v12 = vld [vmem:[%s3734_s1 + $0x60] sm:$0xff]  ;;  %v446_v16 = vld [vmem:[%s3224_s24 + $0x8] sm:$0x7]  ;;  %v2270_v17 = vld [vmem:[%s3224_s24 + $0x18] sm:$0x7]  ;;  %s246_s8 = scalar_lea.vmem %s3736_s3, %s3086_s5  ;;  %s253_s11 = scalar_lea.vmem %s3737_s4, %s2130_s9 }
  0x11   : > { %353 = vmatpush.bf16.msra.mxu0 %v2961_v4  ;;  %v2950_v13 = vld [vmem:[%s3734_s1 + $0x20] sm:$0xff]  ;;  %v2958_v18 = vld [vmem:[%s3734_s1 + $0x58] sm:$0xff]  ;;  %v2954_v22 = vld [vmem:[%s3224_s24 + $0x10] sm:$0xff]  ;;  %v465_v24 = vunpack.c.l.b16 %v446_v16  ;;  %v573_v25 = vunpack.c.l.b16 %v2270_v17 }
  0x12   : > { %429 = vmatpush.bf16.msra.mxu1 %v2952_v5  ;;  %v2967_v14 = vld [vmem:[%s3734_s1 + $0xa0] sm:$0xff]  ;;  %v2949_v19 = vld [vmem:[%s3734_s1 + $0x18] sm:$0xff]  ;;  %v2957_v26 = vld [vmem:[%s3734_s1 + $0x50] sm:$0xff]  ;;  %v578_v33 = vshll.u32 %v2954_v22, 16  ;;  %v576_v37 = vshrl.u32 %v2954_v22, 16 }
  0x13   : > { %534 = vmatpush.bf16.msra.mxu2 %v2969_v6  ;;  %v2975_v15 = vld [vmem:[%s3734_s1 + $0xe0] sm:$0xff]  ;;  %v2966_v20 = vld [vmem:[%s3734_s1 + $0x98] sm:$0xff]  ;;  %v2948_v27 = vld [vmem:[%s3734_s1 + $0x10] sm:$0xff]  ;;  %v3266_v30 = vpack.c.b16 %v465_v24, %v465_v24  ;;  %v3268_v32 = vpack.c.b16 %v573_v25, %v573_v25 }
  0x14   : > { %641 = vmatpush.bf16.msra.mxu3 %v2977_v7  ;;  %v2974_v21 = vld [vmem:[%s3734_s1 + $0xd8] sm:$0xff]  ;;  %v2945_v23 = vld [vmem:[%s3224_s24] sm:$0xff]  ;;  %v2965_v28 = vld [vmem:[%s3734_s1 + $0x90] sm:$0xff]  ;;  %v580_v42 = vrot.slane %v578_v33, 1 }
  0x15   : > { %354 = vmatpush.bf16.msra.mxu0 %v2960_v8  ;;  %v2973_v29 = vld [vmem:[%s3734_s1 + $0xd0] sm:$0xff]  ;;  %v471_v31 = vshll.u32 %v2945_v23, 16  ;;  %v2956_v34 = vld [vmem:[%s3734_s1 + $0x48] sm:$0xff]  ;;  %v469_v36 = vshrl.u32 %v2945_v23, 16  ;;  %v476_v41 = vshll.u32 %v3266_v30, 16  ;;  %v583_v43 = vshll.u32 %v3268_v32, 16 }
  0x16   : > { %430 = vmatpush.bf16.msra.mxu1 %v2951_v9  ;;  %v2947_v35 = vld [vmem:[%s3734_s1 + $0x8] sm:$0xff]  ;;  %v2955_v44 = vld [vmem:[%s3734_s1 + $0x40] sm:$0xff]  ;;  %v581_v50 = vor.u32 %v580_v42, %v576_v37  ;;  %v3004_v52 = vld [vmem:[%s3734_s1 + $0x1b8] sm:$0xff]  ;;  %v480_v8 = vshrl.u32 %v3266_v30, 16  ;;  %v587_v9 = vshrl.u32 %v3268_v32, 16 }
  0x17   : > { %535 = vmatpush.bf16.msra.mxu2 %v2968_v10  ;;  %v2964_v38 = vld [vmem:[%s3734_s1 + $0x88] sm:$0xff]  ;;  %v473_v40 = vrot.slane %v471_v31, 1  ;;  %v2946_v45 = vld [vmem:[%s3734_s1] sm:$0xff]  ;;  %v478_v49 = vrot.slane %v476_v41, 1  ;;  %v585_v51 = vrot.slane %v583_v43, 1  ;;  %v2987_v53 = vld [vmem:[%s3734_s1 + $0x138] sm:$0xff] }
  0x18   : > { %642 = vmatpush.bf16.msra.mxu3 %v2976_v11  ;;  %v2972_v39 = vld [vmem:[%s3734_s1 + $0xc8] sm:$0xff]  ;;  %v2963_v46 = vld [vmem:[%s3734_s1 + $0x80] sm:$0xff]  ;;  %v2996_v56 = vld [vmem:[%s3734_s1 + $0x178] sm:$0xff] }
  0x19   : > { %355 = vmatpush.bf16.msra.mxu0 %v2959_v12  ;;  %v2971_v47 = vld [vmem:[%s3734_s1 + $0xc0] sm:$0xff]  ;;  %v474_v48 = vor.u32 %v473_v40, %v469_v36  ;;  %v586_v55 = vsel %vm467_vm0, %v581_v50, %v585_v51  ;;  %v3012_v57 = vld [vmem:[%s3734_s1 + $0x1f8] sm:$0xff]  ;;  %v3003_v58 = vld [vmem:[%s3734_s1 + $0x1b0] sm:$0xff] }
  0x1a   : > { %431 = vmatpush.bf16.msra.mxu1 %v2950_v13  ;;  %v2986_v59 = vld [vmem:[%s3734_s1 + $0x130] sm:$0xff]  ;;  %v3002_v62 = vld [vmem:[%s3734_s1 + $0x1a8] sm:$0xff]  ;;  %v2133_v0 = vld [vmem:[%s3224_s24 + $0x18] sm:$0x3] }
  0x1b   : > { %536 = vmatpush.bf16.msra.mxu2 %v2967_v14  ;;  %v479_v54 = vsel %vm467_vm0, %v474_v48, %v478_v49  ;;  %v2995_v60 = vld [vmem:[%s3734_s1 + $0x170] sm:$0xff]  ;;  %v2985_v63 = vld [vmem:[%s3734_s1 + $0x128] sm:$0xff]  ;;  %v3001_v4 = vld [vmem:[%s3734_s1 + $0x1a0] sm:$0xff]  ;;  %v299_v6 = vunpack.c.l.b16 %v2133_v0 }
  0x1c   : > { %643 = vmatpush.bf16.msra.mxu3 %v2975_v15  ;;  %v3011_v61 = vld [vmem:[%s3734_s1 + $0x1f0] sm:$0xff]  ;;  %v256_v1 = vld [vmem:[%s3224_s24 + $0x8] sm:$0x3]  ;;  %v2984_v5 = vld [vmem:[%s3734_s1 + $0x120] sm:$0xff] }
  0x1d   : > { %356 = vmatpush.bf16.msra.mxu0 %v2958_v18  ;;  %v2994_v2 = vld [vmem:[%s3734_s1 + $0x168] sm:$0xff]  ;;  %v375_v7 = vunpack.c.l.b16 %v256_v1  ;;  %v2993_v10 = vld [vmem:[%s3734_s1 + $0x160] sm:$0xff]  ;;  %v3000_v12 = vld [vmem:[%s3734_s1 + $0x198] sm:$0xff]  ;;  %v301_v15 = vpack.c.b16 %v299_v6, %v299_v6  ;;  %v482_v18 = vor.u32 %v480_v8, %v478_v49 }
  0x1e   : > { %432 = vmatpush.bf16.msra.mxu1 %v2949_v19  ;;  %v3010_v3 = vld [vmem:[%s3734_s1 + $0x1e8] sm:$0xff]  ;;  %v3009_v11 = vld [vmem:[%s3734_s1 + $0x1e0] sm:$0xff]  ;;  %v2983_v13 = vld [vmem:[%s3734_s1 + $0x118] sm:$0xff]  ;;  %v589_v19 = vor.u32 %v587_v9, %v585_v51 }
  0x1f   : > { %537 = vmatpush.bf16.msra.mxu2 %v2966_v20  ;;  %v2429_v14 = vld [vmem:[%s3224_s24 + $0x28] sm:$0x7]  ;;  %v377_v16 = vpack.c.b16 %v375_v7, %v375_v7  ;;  %v2478_v17 = vld [vmem:[%s3224_s24 + $0x38] sm:$0x7]  ;;  %v2999_v24 = vld [vmem:[%s3734_s1 + $0x190] sm:$0xff] }
  0x20   : > { %644 = vmatpush.bf16.msra.mxu3 %v2974_v21  ;;  %v2992_v20 = vld [vmem:[%s3734_s1 + $0x158] sm:$0xff]  ;;  %v2982_v25 = vld [vmem:[%s3734_s1 + $0x110] sm:$0xff]  ;;  %v2998_v32 = vld [vmem:[%s3734_s1 + $0x188] sm:$0xff] }
  0x21   : > { %357 = vmatpush.bf16.msra.mxu0 %v2957_v26  ;;  %v3008_v21 = vld [vmem:[%s3734_s1 + $0x1d8] sm:$0xff]  ;;  %v2988_v26 = vld [vmem:[%s3224_s24 + $0x30] sm:$0xff]  ;;  %v2981_v33 = vld [vmem:[%s3734_s1 + $0x108] sm:$0xff] }
  0x22   : > { %433 = vmatpush.bf16.msra.mxu1 %v2948_v27  ;;  %v987_v27 = vunpack.c.l.b16 %v2478_v17  ;;  %v2990_v36 = vld [vmem:[%s3734_s1 + $0x148] sm:$0xff]  ;;  %v2997_v41 = vld [vmem:[%s3734_s1 + $0x180] sm:$0xff]  ;;  %v990_v43 = vshrl.u32 %v2988_v26, 16  ;;  %v2376_v8 = vld [vmem:[%s3224_s24 + $0x38] sm:$0x3] }
  0x23   : > { %538 = vmatpush.bf16.msra.mxu2 %v2965_v28  ;;  %v2991_v28 = vld [vmem:[%s3734_s1 + $0x150] sm:$0xff]  ;;  %v3006_v37 = vld [vmem:[%s3734_s1 + $0x1c8] sm:$0xff]  ;;  %v2980_v42 = vld [vmem:[%s3734_s1 + $0x100] sm:$0xff] }
  0x24   : > { %645 = vmatpush.bf16.msra.mxu3 %v2973_v29  ;;  %v3007_v29 = vld [vmem:[%s3734_s1 + $0x1d0] sm:$0xff]  ;;  %v2989_v48 = vld [vmem:[%s3734_s1 + $0x140] sm:$0xff]  ;;  %v3028_v0 = vld [vmem:[%s3734_s1 + $0x268] sm:$0xff] }
  0x25   : > { %358 = vmatpush.bf16.msra.mxu0 %v2956_v34  ;;  %v992_v34 = vshll.u32 %v2988_v26, 16  ;;  %v3005_v49 = vld [vmem:[%s3734_s1 + $0x1c0] sm:$0xff]  ;;  %v3044_v1 = vld [vmem:[%s3734_s1 + $0x2e8] sm:$0xff] }
  0x26   : > { %434 = vmatpush.bf16.msra.mxu1 %v2947_v35  ;;  %v3389_v35 = vpack.c.b16 %v987_v27, %v987_v27  ;;  %v3018_v6 = vld [vmem:[%s3734_s1 + $0x220] sm:$0xff]  ;;  %v3042_v27 = vld [vmem:[%s3734_s1 + $0x2d8] sm:$0xff] }
  0x27   : > { %539 = vmatpush.bf16.msra.mxu2 %v2964_v38  ;;  %v3027_v7 = vld [vmem:[%s3734_s1 + $0x260] sm:$0xff] }
  0x28   : > { %646 = vmatpush.bf16.msra.mxu3 %v2972_v39  ;;  %v3043_v9 = vld [vmem:[%s3734_s1 + $0x2e0] sm:$0xff] }
  0x29   : > { %359 = vmatpush.bf16.msra.mxu0 %v2955_v44  ;;  %v994_v44 = vrot.slane %v992_v34, 1 }
  0x2a   : > { %435 = vmatpush.bf16.msra.mxu1 %v2946_v45  ;;  %v997_v45 = vshll.u32 %v3389_v35, 16 }
  0x2b   : > { %540 = vmatpush.bf16.msra.mxu2 %v2963_v46  ;;  %v3038_v46 = vld [vmem:[%s3734_s1 + $0x2b8] sm:$0xff] }
  0x2c   : > { %647 = vmatpush.bf16.msra.mxu3 %v2971_v47  ;;  %360 = vmatmul.bf16.vlgmr.msra.gmra.mxu0 %v2954_v22  ;;  %v3365_v22 = vld [vmem:[%s3224_s24 + $0x20] sm:$0xff]  ;;  %v3021_v47 = vld [vmem:[%s3734_s1 + $0x238] sm:$0xff] }
  0x2d   : > { %740 = vmatpush.bf16.msrb.mxu0 %v2987_v53  ;;  %436 = vmatmul.bf16.vlgmr.msra.gmra.mxu1 %v2945_v23  ;;  %v880_v23 = vunpack.c.l.b16 %v2429_v14  ;;  %v885_v30 = vshll.u32 %v3365_v22, 16  ;;  %v883_v38 = vshrl.u32 %v3365_v22, 16  ;;  %v3420_v53 = vrot.slane %v997_v45, 1 }
  0x2e   : > { %541 = vmatmul.bf16.vlgmr.msra.gmra.mxu2 %v479_v54  ;;  %840 = vmatpush.bf16.msrb.mxu1 %v2996_v56  ;;  %v3030_v54 = vld [vmem:[%s3734_s1 + $0x278] sm:$0xff]  ;;  %v3037_v56 = vld [vmem:[%s3734_s1 + $0x2b0] sm:$0xff] }
  0x2f   : > { %947 = vmatpush.bf16.msrb.mxu2 %v3004_v52  ;;  %648 = vmatmul.bf16.vlgmr.msra.gmra.mxu3 %v586_v55  ;;  %v3381_v31 = vpack.c.b16 %v880_v23, %v880_v23  ;;  %v887_v39 = vrot.slane %v885_v30, 1  ;;  %v995_v52 = vor.u32 %v994_v44, %v990_v43  ;;  %v3046_v55 = vld [vmem:[%s3734_s1 + $0x2f8] sm:$0xff]  ;;  %v2683_v43 = vld [vmem:[%s3224_s24 + $0x10] sm:$0x8] }
  0x30   : > { %1054 = vmatpush.bf16.msrb.mxu3 %v3012_v57  ;;  %v3022_v23 = vld [vmem:[%s3224_s24 + $0x18] sm:$0x10] }
  0x31   : > { %741 = vmatpush.bf16.msrb.mxu0 %v2986_v59  ;;  %v890_v40 = vshll.u32 %v3381_v31, 16  ;;  %v888_v50 = vor.u32 %v887_v39, %v883_v38  ;;  %v1000_v59 = vsel %vm467_vm0, %v995_v52, %v3420_v53  ;;  %v894_v17 = vshrl.u32 %v3381_v31, 16  ;;  %v3025_v38 = vld [vmem:[%s3734_s1 + $0x250] sm:$0xff] }
  0x32   : > { %841 = vmatpush.bf16.msrb.mxu1 %v2995_v60  ;;  %v3029_v60 = vld [vmem:[%s3734_s1 + $0x270] sm:$0xff] }
  0x33   : > { %948 = vmatpush.bf16.msrb.mxu2 %v3003_v58  ;;  %v3418_v51 = vrot.slane %v890_v40, 1  ;;  %v3020_v58 = vld [vmem:[%s3734_s1 + $0x230] sm:$0xff]  ;;  %v1314_v40 = vld [vmem:[%s3224_s24] sm:$0x8] }
  0x34   : > { %1055 = vmatpush.bf16.msrb.mxu3 %v3011_v61  ;;  %v3045_v61 = vld [vmem:[%s3734_s1 + $0x2f0] sm:$0xff]  ;;  %v1333_v52 = vunpack.c.l.b16 %v1314_v40 }
  0x35   : > { %742 = vmatpush.bf16.msrb.mxu0 %v2985_v63  ;;  %v893_v57 = vsel %vm467_vm0, %v888_v50, %v3418_v51  ;;  %v3019_v63 = vld [vmem:[%s3734_s1 + $0x228] sm:$0xff]  ;;  %v3041_v39 = vld [vmem:[%s3734_s1 + $0x2d0] sm:$0xff] }
  0x36   : > { %842 = vmatpush.bf16.msrb.mxu1 %v2994_v2  ;;  %v3035_v2 = vld [vmem:[%s3734_s1 + $0x2a0] sm:$0xff]  ;;  %v3628_v40 = vld [vmem:[%s3224_s24 + $0x34] sm:$0xf] }
  0x37   : > { %949 = vmatpush.bf16.msrb.mxu2 %v3002_v62  ;;  %v3036_v62 = vld [vmem:[%s3734_s1 + $0x2a8] sm:$0xff] }
  0x38   : > { %1056 = vmatpush.bf16.msrb.mxu3 %v3010_v3  ;;  %v2321_v3 = vld [vmem:[%s3224_s24 + $0x28] sm:$0x3] }
  0x39   : > { %743 = vmatpush.bf16.msrb.mxu0 %v2984_v5  ;;  %v3463_v5 = vld [vmem:[%s3224_s24 + $0x4] sm:$0xf] }
  0x3a   : > { %843 = vmatpush.bf16.msrb.mxu1 %v2993_v10  ;;  %v2579_v10 = vld [vmem:[%s3224_s24 + $0x10] sm:$0xc] }
  0x3b   : > { %950 = vmatpush.bf16.msrb.mxu2 %v3001_v4  ;;  %v1075_v4 = vld [vmem:[%s3224_s24] sm:$0xc] }
  0x3c   : > { %1057 = vmatpush.bf16.msrb.mxu3 %v3009_v11  ;;  %365 = vmatmul.bf16.gmra.mxu0 %v301_v15  ;;  %v3477_v11 = vld [vmem:[%s3224_s24 + $0x14] sm:$0xf]  ;;  %v1100_v14 = vunpack.c.l.b16 %v1075_v4  ;;  %v1101_v15 = vunpack.c.l.b16 %v3463_v5  ;;  %v3023_v4 = vld [vmem:[%s3734_s1 + $0x240] sm:$0xff]  ;;  %v3064_v5 = vld [vmem:[%s3734_s1 + $0x378] sm:$0xff] }
  0x3d   : > { %744 = vmatpush.bf16.msrb.mxu0 %v2983_v13  ;;  %441 = vmatmul.bf16.gmra.mxu1 %v377_v16  ;;  %v3034_v13 = vld [vmem:[%s3734_s1 + $0x298] sm:$0xff]  ;;  %v787_v16 = vunpack.c.l.b16 %v2376_v8 }
  0x3e   : > { %546 = vmatmul.bf16.gmra.mxu2 %v482_v18  ;;  %844 = vmatpush.bf16.msrb.mxu1 %v2992_v20  ;;  %v1001_v18 = vshrl.u32 %v3389_v35, 16  ;;  %v2545_v20 = vld [vmem:[%s3224_s24 + $0x8] sm:$0xf]  ;;  %v1104_v30 = vpack.c.b16 %v1101_v15, %v1100_v14  ;;  %v3055_v8 = vld [vmem:[%s3734_s1 + $0x338] sm:$0xff] }
  0x3f   : > { %951 = vmatpush.bf16.msrb.mxu2 %v3000_v12  ;;  %653 = vmatmul.bf16.gmra.mxu3 %v589_v19  ;;  %v687_v12 = vunpack.c.l.b16 %v2321_v3  ;;  %v3017_v19 = vld [vmem:[%s3734_s1 + $0x218] sm:$0xff]  ;;  %v789_v31 = vpack.c.b16 %v787_v16, %v787_v16  ;;  %v1334_v3 = vpack.c.b16 %v1101_v15, %v1333_v52  ;;  %v3067_v52 = vld [vmem:[%s3734_s1 + $0x390] sm:$0xff] }
  0x40   : > { %1058 = vmatpush.bf16.msrb.mxu3 %v3008_v21  ;;  %v3013_v21 = vld [vmem:[%s3224_s24 + $0x8] sm:$0x10]  ;;  %v1003_v35 = vor.u32 %v1001_v18, %v3420_v53  ;;  %v1111_v44 = vshll.u32 %v1104_v30, 16 }
  0x41   : > { %745 = vmatpush.bf16.msrb.mxu0 %v2982_v25  ;;  %v1221_v25 = vunpack.c.l.b16 %v3477_v11  ;;  %v3024_v53 = vld [vmem:[%s3734_s1 + $0x248] sm:$0xff]  ;;  %v3071_v11 = vld [vmem:[%s3734_s1 + $0x3b0] sm:$0xff]  ;;  %v1336_v15 = vrot.slane %v1334_v3, 3 }
  0x42   : > { %845 = vmatpush.bf16.msrb.mxu1 %v2991_v28  ;;  %v689_v28 = vpack.c.b16 %v687_v12, %v687_v12  ;;  %v3080_v12 = vld [vmem:[%s3734_s1 + $0x3f8] sm:$0xff] }
  0x43   : > { %952 = vmatpush.bf16.msrb.mxu2 %v2999_v24  ;;  %v1220_v24 = vunpack.c.l.b16 %v2579_v10 }
  0x44   : > { %1059 = vmatpush.bf16.msrb.mxu3 %v3007_v29  ;;  %v3033_v29 = vld [vmem:[%s3734_s1 + $0x290] sm:$0xff] }
  0x45   : > { %746 = vmatpush.bf16.msrb.mxu0 %v2981_v33  ;;  %v3505_v33 = vor.u32 %v3013_v21, %v2545_v20 }
  0x46   : > { %846 = vmatpush.bf16.msrb.mxu1 %v2990_v36  ;;  %v3016_v36 = vld [vmem:[%s3734_s1 + $0x210] sm:$0xff] }
  0x47   : > { %953 = vmatpush.bf16.msrb.mxu2 %v2998_v32  ;;  %v896_v32 = vor.u32 %v894_v17, %v3418_v51  ;;  %v1116_v45 = vshrl.u32 %v3505_v33, 16  ;;  %v1337_v16 = vrot.slane %v3505_v33, 3 }
  0x48   : > { %1060 = vmatpush.bf16.msrb.mxu3 %v3006_v37  ;;  %v1224_v37 = vpack.c.b16 %v1221_v25, %v1220_v24 }
  0x49   : > { %747 = vmatpush.bf16.msrb.mxu0 %v2980_v42  ;;  %v1108_v42 = vshrl.u32 %v1104_v30, 16  ;;  %v3069_v30 = vld [vmem:[%s3734_s1 + $0x3a0] sm:$0xff] }
  0x4a   : > { %847 = vmatpush.bf16.msrb.mxu1 %v2989_v48  ;;  %v3015_v48 = vld [vmem:[%s3734_s1 + $0x208] sm:$0xff]  ;;  %v1230_v50 = vshll.u32 %v1224_v37, 16 }
  0x4b   : > { %954 = vmatpush.bf16.msrb.mxu2 %v2997_v41  ;;  %v3032_v41 = vld [vmem:[%s3734_s1 + $0x288] sm:$0xff] }
  0x4c   : > { %1061 = vmatpush.bf16.msrb.mxu3 %v3005_v49  ;;  %748 = vmatmul.bf16.vlgmr.msrb.gmra.mxu0 %v3365_v22  ;;  %v2601_v22 = vld [vmem:[%s3224_s24 + $0x18] sm:$0xf]  ;;  %v1227_v49 = vshrl.u32 %v1224_v37, 16  ;;  %v3621_v37 = vld [vmem:[%s3224_s24 + $0x24] sm:$0xf] }
  0x4d   : > { %1174 = vmatpush.bf16.msra.mxu0 %v3021_v47  ;;  %848 = vmatmul.bf16.vlgmr.msrb.gmra.mxu1 %v2988_v26  ;;  %v3026_v26 = vld [vmem:[%s3734_s1 + $0x258] sm:$0xff]  ;;  %v3507_v34 = vor.u32 %v3022_v23, %v2601_v22  ;;  %v1338_v22 = vsel %vm1335_vm2, %v1336_v15, %v1337_v16  ;;  %v3054_v23 = vld [vmem:[%s3734_s1 + $0x330] sm:$0xff] }
  0x4e   : > { %1293 = vmatpush.bf16.msra.mxu1 %v3030_v54  ;;  %955 = vmatmul.bf16.vlgmr.msrb.gmra.mxu2 %v893_v57  ;;  %v3040_v54 = vld [vmem:[%s3734_s1 + $0x2c8] sm:$0xff]  ;;  %v1110_v57 = vrot.slane %v1108_v42, 2 }
  0x4f   : > { %1389 = vmatpush.bf16.msra.mxu2 %v3038_v46  ;;  %1062 = vmatmul.bf16.vlgmr.msrb.gmra.mxu3 %v1000_v59  ;;  %v1119_v46 = vshll.u32 %v3505_v33, 16  ;;  %v1235_v47 = vshrl.u32 %v3507_v34, 16  ;;  %v1238_v51 = vshll.u32 %v3507_v34, 16  ;;  %v1118_v59 = vrot.slane %v1116_v45, 2  ;;  %v2754_v42 = vld [vmem:[%s3224_s24 + $0x28] sm:$0xf] }
  0x50   : > { %1484 = vmatpush.bf16.msra.mxu3 %v3046_v55  ;;  %v1429_v55 = vunpack.c.l.b16 %v2683_v43  ;;  %v1432_v18 = vrot.slane %v3507_v34, 3  ;;  %v3047_v43 = vld [vmem:[%s3224_s24 + $0x28] sm:$0x10]  ;;  %v1531_v45 = vunpack.c.l.b16 %v3621_v37  ;;  %v1939_v33 = vld [vmem:[%s3735_s2] sm:$0xff] }
  0x51   : > { %1175 = vmatpush.bf16.msra.mxu0 %v3020_v58  ;;  %v1113_v58 = vrot.slane %v1111_v44, 3  ;;  %v3074_v34 = vld [vmem:[%s3734_s1 + $0x3c8] sm:$0xff]  ;;  %vm1942_vm3 = vcmp.ne.f32.partialorder %v1939_v33, 0.0 }
  0x52   : > { %1294 = vmatpush.bf16.msra.mxu1 %v3029_v60  ;;  %v1121_v60 = vrot.slane %v1119_v46, 3  ;;  %v3051_v46 = vld [vmem:[%s3734_s1 + $0x318] sm:$0xff] }
  0x53   : > { %1390 = vmatpush.bf16.msra.mxu2 %v3037_v56  ;;  %v3031_v56 = vld [vmem:[%s3734_s1 + $0x280] sm:$0xff] }
  0x54   : > { %1485 = vmatpush.bf16.msra.mxu3 %v3045_v61  ;;  %v1237_v61 = vrot.slane %v1235_v47, 2  ;;  %v3564_v10 = vor.u32 %v1121_v60, %v1118_v59  ;;  %v2810_v47 = vld [vmem:[%s3224_s24 + $0x38] sm:$0xf]  ;;  %v2844_v59 = vld [vmem:[%s3224_s24 + $0x20] sm:$0x8]  ;;  %v3075_v60 = vld [vmem:[%s3734_s1 + $0x3d0] sm:$0xff] }
  0x55   : > { %1176 = vmatpush.bf16.msra.mxu0 %v3019_v63  ;;  %v3014_v63 = vld [vmem:[%s3734_s1 + $0x200] sm:$0xff] }
  0x56   : > { %1295 = vmatpush.bf16.msra.mxu1 %v3028_v0  ;;  %v1229_v0 = vrot.slane %v1227_v49, 2 }
  0x57   : > { %1391 = vmatpush.bf16.msra.mxu2 %v3036_v62  ;;  %v3072_v62 = vld [vmem:[%s3734_s1 + $0x3b8] sm:$0xff] }
  0x58   : > { %1486 = vmatpush.bf16.msra.mxu3 %v3044_v1  ;;  %v1232_v1 = vrot.slane %v1230_v50, 3  ;;  %v1650_v50 = vunpack.c.l.b16 %v3628_v40 }
  0x59   : > { %1177 = vmatpush.bf16.msra.mxu0 %v3018_v6  ;;  %v3039_v6 = vld [vmem:[%s3734_s1 + $0x2c0] sm:$0xff] }
  0x5a   : > { %1296 = vmatpush.bf16.msra.mxu1 %v3027_v7  ;;  %v1430_v7 = vpack.c.b16 %v1221_v25, %v1429_v55  ;;  %v3079_v25 = vld [vmem:[%s3734_s1 + $0x3f0] sm:$0xff] }
  0x5b   : > { %1392 = vmatpush.bf16.msra.mxu2 %v3035_v2  ;;  %v1240_v2 = vrot.slane %v1238_v51, 3  ;;  %v3076_v51 = vld [vmem:[%s3734_s1 + $0x3d8] sm:$0xff] }
  0x5c   : > { %1487 = vmatpush.bf16.msra.mxu3 %v3043_v9  ;;  %753 = vmatmul.bf16.gmra.mxu0 %v689_v28  ;;  %v1114_v9 = vor.u32 %v1113_v58, %v1110_v57  ;;  %v1431_v17 = vrot.slane %v1430_v7, 3  ;;  %v3053_v28 = vld [vmem:[%s3734_s1 + $0x328] sm:$0xff]  ;;  %v3050_v57 = vld [vmem:[%s3734_s1 + $0x310] sm:$0xff] }
  0x5d   : > { %1178 = vmatpush.bf16.msra.mxu0 %v3017_v19  ;;  %853 = vmatmul.bf16.gmra.mxu1 %v789_v31  ;;  %v3572_v14 = vor.u32 %v1240_v2, %v1237_v61  ;;  %v3063_v19 = vld [vmem:[%s3734_s1 + $0x370] sm:$0xff]  ;;  %v3061_v31 = vld [vmem:[%s3734_s1 + $0x360] sm:$0xff]  ;;  %v3066_v61 = vld [vmem:[%s3734_s1 + $0x388] sm:$0xff] }
  0x5e   : > { %1297 = vmatpush.bf16.msra.mxu1 %v3026_v26  ;;  %960 = vmatmul.bf16.gmra.mxu2 %v896_v32  ;;  %v1123_v20 = vsel %vm1106_vm1, %v1114_v9, %v3564_v10  ;;  %v1433_v24 = vsel %vm1335_vm2, %v1431_v17, %v1432_v18  ;;  %v3070_v26 = vld [vmem:[%s3734_s1 + $0x3a8] sm:$0xff]  ;;  %v3052_v32 = vld [vmem:[%s3734_s1 + $0x320] sm:$0xff] }
  0x5f   : > { %1393 = vmatpush.bf16.msra.mxu2 %v3034_v13  ;;  %1067 = vmatmul.bf16.gmra.mxu3 %v1003_v35  ;;  %v1233_v13 = vor.u32 %v1232_v1, %v1229_v0  ;;  %v3077_v35 = vld [vmem:[%s3734_s1 + $0x3e0] sm:$0xff]  ;;  %v2893_v1 = vld [vmem:[%s3224_s24 + $0x30] sm:$0x8]  ;;  %v3049_v7 = vld [vmem:[%s3734_s1 + $0x308] sm:$0xff] }
  0x60   : > { %1488 = vmatpush.bf16.msra.mxu3 %v3042_v27  ;;  %v3062_v27 = vld [vmem:[%s3734_s1 + $0x368] sm:$0xff] }
  0x61   : > { %1179 = vmatpush.bf16.msra.mxu0 %v3016_v36  ;;  %v1242_v21 = vsel %vm1106_vm1, %v1233_v13, %v3572_v14  ;;  %v2732_v36 = vld [vmem:[%s3224_s24 + $0x20] sm:$0xc] }
  0x62   : > { %1298 = vmatpush.bf16.msra.mxu1 %v3025_v38  ;;  %v3068_v38 = vld [vmem:[%s3734_s1 + $0x398] sm:$0xff]  ;;  %v1530_v44 = vunpack.c.l.b16 %v2732_v36 }
  0x63   : > { %1394 = vmatpush.bf16.msra.mxu2 %v3033_v29  ;;  %v3078_v29 = vld [vmem:[%s3734_s1 + $0x3e8] sm:$0xff] }
  0x64   : > { %1489 = vmatpush.bf16.msra.mxu3 %v3041_v39  ;;  %v2788_v39 = vld [vmem:[%s3224_s24 + $0x30] sm:$0xc]  ;;  %v1534_v55 = vpack.c.b16 %v1531_v45, %v1530_v44 }
  0x65   : > { %1180 = vmatpush.bf16.msra.mxu0 %v3015_v48  ;;  %v3056_v48 = vld [vmem:[%s3224_s24 + $0x38] sm:$0x10]  ;;  %v1649_v49 = vunpack.c.l.b16 %v2788_v39 }
  0x66   : > { %1299 = vmatpush.bf16.msra.mxu1 %v3024_v53  ;;  %v3059_v53 = vld [vmem:[%s3734_s1 + $0x350] sm:$0xff]  ;;  %v1537_v2 = vshrl.u32 %v1534_v55, 16  ;;  %v1540_v3 = vshll.u32 %v1534_v55, 16 }
  0x67   : > { %1395 = vmatpush.bf16.msra.mxu2 %v3032_v41  ;;  %v3060_v41 = vld [vmem:[%s3734_s1 + $0x358] sm:$0xff]  ;;  %v1653_v58 = vpack.c.b16 %v1650_v50, %v1649_v49 }
  0x68   : > { %1490 = vmatpush.bf16.msra.mxu3 %v3040_v54  ;;  %v3651_v54 = vor.u32 %v3047_v43, %v2754_v42  ;;  %v1539_v17 = vrot.slane %v1537_v2, 2  ;;  %v1941_v43 = vld [vmem:[%s3735_s2 + $0x10] sm:$0xf] }
  0x69   : > { %1181 = vmatpush.bf16.msra.mxu0 %v3014_v63  ;;  %vm1944_vm5 = vcmp.ne.f32.partialorder %v1941_v43, 0.0 }
  0x6a   : > { %1300 = vmatpush.bf16.msra.mxu1 %v3023_v4  ;;  %v1545_v63 = vshrl.u32 %v3651_v54, 16  ;;  %v1548_v0 = vshll.u32 %v3651_v54, 16 }
  0x6b   : > { %1396 = vmatpush.bf16.msra.mxu2 %v3031_v56  ;;  %v3653_v56 = vor.u32 %v3056_v48, %v2810_v47 }
  0x6c   : > { %1491 = vmatpush.bf16.msra.mxu3 %v3039_v6  ;;  %1182 = vmatmul.bf16.vlgmr.msra.gmra.mxu0 %v1123_v20  ;;  %v1762_v6 = vunpack.c.l.b16 %v2844_v59  ;;  %v1547_v13 = vrot.slane %v1545_v63, 2 }
  0x6d   : > { %1603 = vmatpush.bf16.msrb.mxu0 %v3055_v8  ;;  %1301 = vmatmul.bf16.vlgmr.msra.gmra.mxu1 %v1242_v21  ;;  %v1664_v4 = vshrl.u32 %v3653_v56, 16  ;;  %v1656_v8 = vshrl.u32 %v1653_v58, 16  ;;  %v1667_v9 = vshll.u32 %v3653_v56, 16  ;;  %v3048_v21 = vld [vmem:[%s3734_s1 + $0x300] sm:$0xff] }
  0x6e   : > { %1722 = vmatpush.bf16.msrb.mxu1 %v3064_v5  ;;  %1397 = vmatmul.bf16.vlgmr.msra.gmra.mxu2 %v1338_v22  ;;  %v1659_v5 = vshll.u32 %v1653_v58, 16  ;;  %v1763_v20 = vpack.c.b16 %v1531_v45, %v1762_v6 }
  0x6f   : > { %1817 = vmatpush.bf16.msrb.mxu2 %v3072_v62  ;;  %1492 = vmatmul.bf16.vlgmr.msra.gmra.mxu3 %v1433_v24  ;;  %v3058_v62 = vld [vmem:[%s3734_s1 + $0x348] sm:$0xff]  ;;  %v1658_v22 = vrot.slane %v1656_v8, 2  ;;  %v1666_v24 = vrot.slane %v1664_v4, 2 }
  0x70   : > { %1912 = vmatpush.bf16.msrb.mxu3 %v3080_v12  ;;  %v1857_v12 = vunpack.c.l.b16 %v2893_v1 }
  0x71   : > { %1604 = vmatpush.bf16.msrb.mxu0 %v3054_v23  ;;  %v1661_v23 = vrot.slane %v1659_v5, 3 }
  0x72   : > { %1723 = vmatpush.bf16.msrb.mxu1 %v3063_v19  ;;  %v1550_v19 = vrot.slane %v1548_v0, 3 }
  0x73   : > { %1818 = vmatpush.bf16.msrb.mxu2 %v3071_v11  ;;  %v3057_v11 = vld [vmem:[%s3734_s1 + $0x340] sm:$0xff] }
  0x74   : > { %1913 = vmatpush.bf16.msrb.mxu3 %v3079_v25  ;;  %v1669_v25 = vrot.slane %v1667_v9, 3 }
  0x75   : > { %1605 = vmatpush.bf16.msrb.mxu0 %v3053_v28 }
  0x76   : > { %1724 = vmatpush.bf16.msrb.mxu1 %v3062_v27  ;;  %v1858_v27 = vpack.c.b16 %v1650_v50, %v1857_v12 }
  0x77   : > { %1819 = vmatpush.bf16.msrb.mxu2 %v3070_v26  ;;  %v3073_v26 = vld [vmem:[%s3734_s1 + $0x3c0] sm:$0xff] }
  0x78   : > { %1914 = vmatpush.bf16.msrb.mxu3 %v3078_v29  ;;  %v1551_v29 = vor.u32 %v1550_v19, %v1547_v13  ;;  %v1859_v37 = vrot.slane %v1858_v27, 3 }
  0x79   : > { %1606 = vmatpush.bf16.msrb.mxu0 %v3052_v32  ;;  %v1670_v32 = vor.u32 %v1669_v25, %v1666_v24 }
  0x7a   : > { %1725 = vmatpush.bf16.msrb.mxu1 %v3061_v31  ;;  %v1662_v31 = vor.u32 %v1661_v23, %v1658_v22 }
  0x7b   : > { %1820 = vmatpush.bf16.msrb.mxu2 %v3069_v30  ;;  %v1764_v30 = vrot.slane %v1763_v20, 3 }
  0x7c   : > { %1915 = vmatpush.bf16.msrb.mxu3 %v3077_v35  ;;  %1187 = vmatmul.bf16.gmra.mxu0 %v3564_v10  ;;  %v3065_v10 = vld [vmem:[%s3734_s1 + $0x380] sm:$0xff]  ;;  %v1765_v35 = vrot.slane %v3651_v54, 3  ;;  %v1671_v40 = vsel %vm1106_vm1, %v1662_v31, %v1670_v32 }
  0x7d   : > { %1607 = vmatpush.bf16.msrb.mxu0 %v3051_v46  ;;  %1306 = vmatmul.bf16.gmra.mxu1 %v3572_v14  ;;  %v3138_v14 = vmov 0  }
  0x7e   : > { %1726 = vmatpush.bf16.msrb.mxu1 %v3060_v41  ;;  %1402 = vmatmul.bf16.gmra.mxu2 %v1337_v16  ;;  %v1945_v15 = vsel %vm1942_vm3, 1, %v3138_v14  ;;  %v1940_v16 = vld [vmem:[%s3735_s2 + $0x8] sm:$0xff]  ;;  %v1766_v41 = vsel %vm1335_vm2, %v1764_v30, %v1765_v35  ;;  %v1947_v44 = vsel %vm1944_vm5, 1, %v3138_v14 }
  0x7f   : > { %1821 = vmatpush.bf16.msrb.mxu2 %v3068_v38  ;;  %1497 = vmatmul.bf16.gmra.mxu3 %v1432_v18  ;;  %v1542_v18 = vrot.slane %v1540_v3, 3  ;;  %vm1943_vm4 = vcmp.ne.f32.partialorder %v1940_v16, 0.0  ;;  %v1860_v38 = vrot.slane %v3653_v56, 3 }
  0x80   : > { %1916 = vmatpush.bf16.msrb.mxu3 %v3076_v51  ;;  %3112 = vset.pattern.permute.xlu0 %v3138_v14  ;;  %v1946_v36 = vsel %vm1943_vm4, 1, %v3138_v14 }
  0x81   : > { %1608 = vmatpush.bf16.msrb.mxu0 %v3050_v57  ;;  %1949 = vperm.xlu0 %3112, %v1945_v15   ;;  %v1543_v28 = vor.u32 %v1542_v18, %v1539_v17  ;;  %v1861_v42 = vsel %vm1335_vm2, %v1859_v37, %v1860_v38 }
  0x82   : > { %1727 = vmatpush.bf16.msrb.mxu1 %v3059_v53  ;;  %3113 = vset.pattern.permute.xlu1 %v3138_v14 }
  0x83   : > { %1822 = vmatpush.bf16.msrb.mxu2 %v3067_v52  ;;  %v1552_v39 = vsel %vm1106_vm1, %v1543_v28, %v1551_v29  ;;  %1955 = vperm.xlu1 %3113, %v1947_v44  }
  0x84   : > { %1917 = vmatpush.bf16.msrb.mxu3 %v3075_v60 }
  0x85   : > { %1609 = vmatpush.bf16.msrb.mxu0 %v3049_v7 }
  0x86   : > { %1728 = vmatpush.bf16.msrb.mxu1 %v3058_v62 }
  0x87   : > { %1823 = vmatpush.bf16.msrb.mxu2 %v3066_v61 }
  0x88   : > { %1918 = vmatpush.bf16.msrb.mxu3 %v3074_v34 }
  0x89   : > { %1610 = vmatpush.bf16.msrb.mxu0 %v3048_v21  ;;  %1952 = vperm.xlu0 %3112, %v1946_v36  }
  0x8a   : > { %1729 = vmatpush.bf16.msrb.mxu1 %v3057_v11 }
  0x8b   : > { %1824 = vmatpush.bf16.msrb.mxu2 %v3065_v10 }
  0x8c   : > { %1919 = vmatpush.bf16.msrb.mxu3 %v3073_v26  ;;  %1611 = vmatmul.bf16.vlgmr.msrb.gmra.mxu0 %v1552_v39 }
  0x8d   : > { %1730 = vmatmul.bf16.vlgmr.msrb.gmra.mxu1 %v1671_v40 }
  0x8e   : > { %1825 = vmatmul.bf16.vlgmr.msrb.gmra.mxu2 %v1766_v41 }
  0x8f   : > { %1920 = vmatmul.bf16.vlgmr.msrb.gmra.mxu3 %v1861_v42 }
  0x9c   : > { %1616 = vmatmul.bf16.gmra.mxu0 %v1551_v29 }
  0x9d   : > { %1735 = vmatmul.bf16.gmra.mxu1 %v1670_v32 }
  0x9e   : > { %1830 = vmatmul.bf16.gmra.mxu2 %v1765_v35 }
  0x9f   : > { %1925 = vmatmul.bf16.gmra.mxu3 %v1860_v38 }
  0xa9   : > { %v361_v45 = vpop.f32.mrf.mxu0 }
  0xaa   : > { %v437_v46 = vpop.f32.mrf.mxu1 }
  0xab   : > { %v438_v47 = vadd.f32 %v437_v46, %v361_v45 }
  0xb1   : > { %v542_v48 = vpop.f32.mrf.mxu2  ;;  %v363_v51 = vpop.f32.mrf.mxu0 }
  0xb2   : > { %v649_v49 = vpop.f32.mrf.mxu3  ;;  %v551_v50 = vadd.f32 %v542_v48, %v438_v47  ;;  %v439_v52 = vpop.f32.mrf.mxu1 }
  0xb3   : > { %v440_v53 = vadd.f32 %v439_v52, %v363_v51 }
  0xb4   : > { %v658_v54 = vadd.f32 %v649_v49, %v551_v50 }
  0xb9   : > { %v544_v55 = vpop.f32.mrf.mxu2  ;;  %v366_v58 = vpop.f32.mrf.mxu0 }
  0xba   : > { %v651_v56 = vpop.f32.mrf.mxu3  ;;  %v552_v57 = vadd.f32 %v544_v55, %v440_v53  ;;  %v442_v59 = vpop.f32.mrf.mxu1 }
  0xbb   : > { %v443_v60 = vadd.f32 %v442_v59, %v366_v58 }
  0xbc   : > { %v659_v61 = vadd.f32 %v651_v56, %v552_v57 }
  0xc1   : > { %v547_v62 = vpop.f32.mrf.mxu2  ;;  %v368_v1 = vpop.f32.mrf.mxu0 }
  0xc2   : > { %v654_v63 = vpop.f32.mrf.mxu3  ;;  %v553_v0 = vadd.f32 %v547_v62, %v443_v60  ;;  %v444_v2 = vpop.f32.mrf.mxu1 }
  0xc4   : > { %v660_v3 = vadd.f32 %v654_v63, %v553_v0 }
  0xc9   : > { %v549_v4 = vpop.f32.mrf.mxu2  ;;  %v749_v7 = vpop.f32.mrf.mxu0 }
  0xca   : > { %v656_v6 = vpop.f32.mrf.mxu3  ;;  %v849_v8 = vpop.f32.mrf.mxu1  ;;  %v758_v26 = vadd.f32 %v749_v7, %v658_v54 }
  0xcc   : > { %v858_v28 = vadd.f32 %v849_v8, %v758_v26 }
  0xd1   : > { %v956_v5 = vpop.f32.mrf.mxu2  ;;  %v751_v33 = vpop.f32.mrf.mxu0 }
  0xd2   : > { %v1063_v9 = vpop.f32.mrf.mxu3  ;;  %v851_v34 = vpop.f32.mrf.mxu1  ;;  %v965_v32 = vadd.f32 %v956_v5, %v858_v28  ;;  %v759_v35 = vadd.f32 %v751_v33, %v659_v61 }
  0xd4   : > { %v1072_v36 = vadd.f32 %v1063_v9, %v965_v32  ;;  %v859_v37 = vadd.f32 %v851_v34, %v759_v35 }
  0xd9   : > { %v958_v10 = vpop.f32.mrf.mxu2  ;;  %v754_v11 = vpop.f32.mrf.mxu0 }
  0xda   : > { %v1065_v12 = vpop.f32.mrf.mxu3  ;;  %v854_v13 = vpop.f32.mrf.mxu1  ;;  %v966_v39 = vadd.f32 %v958_v10, %v859_v37  ;;  %v760_v44 = vadd.f32 %v754_v11, %v660_v3 }
  0xdc   : > { %v1073_v45 = vadd.f32 %v1065_v12, %v966_v39  ;;  %v860_v47 = vadd.f32 %v854_v13, %v760_v44 }
  0xe1   : > { %v961_v14 = vpop.f32.mrf.mxu2  ;;  %v756_v16 = vpop.f32.mrf.mxu0 }
  0xe2   : > { %v1068_v15 = vpop.f32.mrf.mxu3  ;;  %v856_v17 = vpop.f32.mrf.mxu1  ;;  %v967_v51 = vadd.f32 %v961_v14, %v860_v47 }
  0xe4   : > { %v1074_v57 = vadd.f32 %v1068_v15, %v967_v51 }
  0xe9   : > { %v963_v18 = vpop.f32.mrf.mxu2  ;;  %v1183_v20 = vpop.f32.mrf.mxu0 }
  0xea   : > { %v1070_v19 = vpop.f32.mrf.mxu3  ;;  %v1302_v21 = vpop.f32.mrf.mxu1  ;;  %v1192_v40 = vadd.f32 %v1183_v20, %v1072_v36 }
  0xec   : > { %v1311_v46 = vadd.f32 %v1302_v21, %v1192_v40 }
  0xf1   : > { %v1398_v22 = vpop.f32.mrf.mxu2  ;;  %v1185_v24 = vpop.f32.mrf.mxu0 }
  0xf2   : > { %v1493_v23 = vpop.f32.mrf.mxu3  ;;  %v1304_v25 = vpop.f32.mrf.mxu1  ;;  %v1407_v48 = vadd.f32 %v1398_v22, %v1311_v46  ;;  %v1193_v49 = vadd.f32 %v1185_v24, %v1073_v45 }
  0xf3   : > { %v1950_v60 = vpop.permute.xlu0 %1949 }
  0xf4   : > { %v1502_v55 = vadd.f32 %v1493_v23, %v1407_v48  ;;  %v1312_v56 = vadd.f32 %v1304_v25, %v1193_v49  ;;  %vm1957_vm6 = vcmp.eq.s32.totalorder %v1950_v60, 1 }
  0xf5   : > { %v1956_v24 = vpop.permute.xlu1 %1955 }
  0xf6   : > { %vm1959_vm8 = vcmp.eq.s32.totalorder %v1956_v24, 1 }
  0xf9   : > { %v1400_v27 = vpop.f32.mrf.mxu2  ;;  %v1188_v30 = vpop.f32.mrf.mxu0 }
  0xfa   : > { %v1495_v29 = vpop.f32.mrf.mxu3  ;;  %v1307_v31 = vpop.f32.mrf.mxu1  ;;  %v1408_v58 = vadd.f32 %v1400_v27, %v1312_v56  ;;  %v1194_v61 = vadd.f32 %v1188_v30, %v1074_v57 }
  0xfb   : > { %v1953_v33 = vpop.permute.xlu0 %1952 }
  0xfc   : > { %v1503_v63 = vadd.f32 %v1495_v29, %v1408_v58  ;;  %v1313_v4 = vadd.f32 %v1307_v31, %v1194_v61  ;;  %vm1958_vm7 = vcmp.eq.s32.totalorder %v1953_v33, 1 }
 0x101   : > { %v1403_v38 = vpop.f32.mrf.mxu2  ;;  %v1190_v42 = vpop.f32.mrf.mxu0 }
 0x102   : > { %v1498_v41 = vpop.f32.mrf.mxu3  ;;  %v1309_v43 = vpop.f32.mrf.mxu1  ;;  %v1409_v8 = vadd.f32 %v1403_v38, %v1313_v4 }
 0x104   : > { %v1504_v10 = vadd.f32 %v1498_v41, %v1409_v8 }
 0x109   : > { %v1405_v50 = vpop.f32.mrf.mxu2  ;;  %v1612_v53 = vpop.f32.mrf.mxu0 }
 0x10a   : > { %v1500_v52 = vpop.f32.mrf.mxu3  ;;  %v1731_v54 = vpop.f32.mrf.mxu1  ;;  %v1621_v59 = vadd.f32 %v1612_v53, %v1502_v55 }
 0x10c   : > { %v1740_v0 = vadd.f32 %v1731_v54, %v1621_v59 }
 0x111   : > { %v1826_v62 = vpop.f32.mrf.mxu2  ;;  %v1614_v2 = vpop.f32.mrf.mxu0 }
 0x112   : > { %v1921_v1 = vpop.f32.mrf.mxu3  ;;  %v1733_v3 = vpop.f32.mrf.mxu1  ;;  %v1835_v6 = vadd.f32 %v1826_v62, %v1740_v0  ;;  %v1622_v7 = vadd.f32 %v1614_v2, %v1503_v63 }
 0x114   : > { %v1930_v5 = vadd.f32 %v1921_v1, %v1835_v6  ;;  %v1741_v9 = vadd.f32 %v1733_v3, %v1622_v7 }
 0x116   : > { %v1960_v15 = vsel %vm1957_vm6, %v1930_v5, 0.0 }
 0x117   : > { %v1974_v20 = vmul.f32 %v1960_v15, %v1960_v15 }
 0x119   : > { %v1828_v34 = vpop.f32.mrf.mxu2  ;;  %v1617_v13 = vpop.f32.mrf.mxu0 }
 0x11a   : > { %v1836_v12 = vadd.f32 %v1828_v34, %v1741_v9  ;;  %v1923_v11 = vpop.f32.mrf.mxu3  ;;  %v1736_v14 = vpop.f32.mrf.mxu1  ;;  %v1623_v17 = vadd.f32 %v1617_v13, %v1504_v10 }
 0x11c   : > { %v1931_v16 = vadd.f32 %v1923_v11, %v1836_v12  ;;  %v1742_v23 = vadd.f32 %v1736_v14, %v1623_v17 }
 0x11e   : > { %v3084_v18 = vpack.c.bf16 %v1931_v16, %v1930_v5  ;;  %v1961_v19 = vsel %vm1958_vm7, %v1931_v16, 0.0 }
 0x11f   : > { %v1963_v21 = vadd.f32 %v1961_v19, %v1960_v15  ;;  %v1975_v22 = vmul.f32 %v1961_v19, %v1961_v19 }
 0x120   : > { %3085 = vst [vmem:[%s246_s8] sm:$0xff] %v3084_v18  }
 0x121   : > { %v1977_v25 = vadd.f32 %v1975_v22, %v1974_v20  ;;  %v1831_v26 = vpop.f32.mrf.mxu2  ;;  %v1619_v29 = vpop.f32.mrf.mxu0 }
 0x122   : > { %v1837_v27 = vadd.f32 %v1831_v26, %v1742_v23  ;;  %v1926_v28 = vpop.f32.mrf.mxu3  ;;  %v1738_v30 = vpop.f32.mrf.mxu1 }
 0x124   : > { %v1932_v31 = vadd.f32 %v1926_v28, %v1837_v27 }
 0x126   : > { %v1935_v32 = vpack.c.bf16 %v1932_v31, %v1932_v31  ;;  %v1962_v35 = vsel %vm1959_vm8, %v1932_v31, 0.0 }
 0x127   : > { %v1965_v36 = vsel %vm1964_vm9, %v1962_v35, 0.0  ;;  %v1976_v37 = vmul.f32 %v1962_v35, %v1962_v35 }
 0x128   : > { %1938 = vst [vmem:[%s246_s8 + $0x8] sm:$0x3] %v1935_v32  ;;  %v1966_v38 = vadd.f32 %v1965_v36, %v1963_v21 }
 0x129   : > { %v1978_v39 = vsel %vm1964_vm9, %v1976_v37, 0.0  ;;  %v1833_v40 = vpop.f32.mrf.mxu2 }
 0x12a   : > { %v1967_v41 = vrot.slane %v1966_v38, 4  ;;  %v1979_v42 = vadd.f32 %v1978_v39, %v1977_v25  ;;  %v1928_v43 = vpop.f32.mrf.mxu3 }
 0x12c   : > { %v1968_v44 = vadd.f32 %v1967_v41, %v1966_v38  ;;  %v1980_v45 = vrot.slane %v1979_v42, 4 }
 0x12e   : > { %v1969_v46 = vrot.slane %v1968_v44, 2  ;;  %v1981_v47 = vadd.f32 %v1980_v45, %v1979_v42 }
 0x130   : > { %v1970_v48 = vadd.f32 %v1969_v46, %v1968_v44  ;;  %v1982_v49 = vrot.slane %v1981_v47, 2 }
 0x132   : > { %v1971_v50 = vrot.slane %v1970_v48, 1  ;;  %v1983_v51 = vadd.f32 %v1982_v49, %v1981_v47 }
 0x134   : > { %v1972_v52 = vadd.f32 %v1971_v50, %v1970_v48  ;;  %v1984_v53 = vrot.slane %v1983_v51, 1 }
 0x136   : > { %1973 = vst [vmem:[%s253_s11] sm:$0x1] %v1972_v52  ;;  %v1985_v54 = vadd.f32 %v1984_v53, %v1983_v51 }
 0x138   : > { %1986 = vst [vmem:[%s253_s11 + $0x1] sm:$0x1] %v1985_v54 }
 0x139 PF: > { %s15_s17 = sadd.s32 1, %s3136_s17   ;;  %s3738_s15 = smov %s3132_s16 }
 0x13a   : > { %p12_p5 = scmp.ge.s32.totalorder %s15_s17, 4   ;;  %s3739_s16 = smov %s3741_s18 }
 0x13c   :  { %14 = sbr.rel (!%p12_p5) target bundleno = 2 (0x2), region = 95 }

// kernel: _lambda_.15
= control target key start
LH: loop header
LB: loop body
LE: loop exit
PB: predicated region body
PF: predicated region fallthrough
CT: control target
= control target key end

     0   :  { %s2765_s12 = smov 0   ;;  %s2767_s13 = smov 0   ;;  %s3232_s0 = inlined_call_operand.vmem [shape: bf16[2,1,28,128], index: 0, kind: input, shape index: {}]   ;;  %s3233_s1 = inlined_call_operand.vmem [shape: bf16[16,128,128], index: 1, kind: input, shape index: {}]   ;;  %s3234_s2 = inlined_call_operand.vmem [shape: f32[1,128], index: 2, kind: input, shape index: {}]   ;;  %s3235_s3 = inlined_call_operand.vmem [shape: f32[2,10,128], index: 3, kind: output, shape index: {}]  }
   0x1   :  { %s2769_s14 = smov 0  }
   0x2 LB: > { %s25_s15 = sadd.s32 1, %s2739_s13  ;;  %p1807_p0 = scmp.ge.s32.totalorder %s2743_s14, 1  ;;  %s2743_s14 = sphi %s2769_s14, %s13_s14   ;;  %s2739_s13 = sphi %s2767_s13, %s3237_s13   ;;  %s2735_s12 = sphi %s2765_s12, %s3236_s12  }
   0x3   : > { %p27_p1 = scmp.ge.s32.totalorder %s25_s15, 2  ;;  %p168_p2 = scmp.lt.s32.totalorder %s2743_s14, 3 }
   0x5   : > { %s3239_s15 = smov (%p27_p1, %s25_s15), 0  ;;  %p169_p3 = pnand %p1807_p0, %p168_p2 }
   0x6   : > { %p202_p4 = scmp.lt.s32.totalorder (!%p169_p3), %s2735_s12, 1 }
   0x7   : > { %172 = sbr.rel (%p169_p3) target bundleno = 289 (0x121), region = 32 }
   0xc   : > { %v2583_v0 = vld [vmem:[%s3233_s1 + $0x78] sm:$0xff]  ;;  %v2582_v4 = vld [vmem:[%s3233_s1 + $0x70] sm:$0xff]  ;;  %v2581_v8 = vld [vmem:[%s3233_s1 + $0x68] sm:$0xff]  ;;  %s3241_s12 = smov (!%p202_p4, %s2735_s12), 1  ;;  %vm792_vm0 = vsmask.f32 4352 }
   0xd   : > { %v2575_v1 = vld [vmem:[%s3233_s1 + $0x38] sm:$0xff]  ;;  %319 = vmatpush.bf16.msra.mxu0 %v2583_v0  ;;  %v2574_v5 = vld [vmem:[%s3233_s1 + $0x30] sm:$0xff]  ;;  %v2573_v9 = vld [vmem:[%s3233_s1 + $0x28] sm:$0xff]  ;;  %s2566_s21 = sshll.u32 %s3241_s12, 4 }
   0xe   : > { %v2591_v2 = vld [vmem:[%s3233_s1 + $0xb8] sm:$0xff]  ;;  %385 = vmatpush.bf16.msra.mxu1 %v2575_v1  ;;  %v2590_v6 = vld [vmem:[%s3233_s1 + $0xb0] sm:$0xff]  ;;  %v2589_v10 = vld [vmem:[%s3233_s1 + $0xa8] sm:$0xff]  ;;  %s2839_s28 = scalar_lea.vmem %s3232_s0, %s2566_s21  ;;  %s221_s24 = scalar_lea.vmem %s3235_s3, %s2566_s21 }
   0xf   : > { %v2599_v3 = vld [vmem:[%s3233_s1 + $0xf8] sm:$0xff]  ;;  %470 = vmatpush.bf16.msra.mxu2 %v2591_v2  ;;  %v2598_v7 = vld [vmem:[%s3233_s1 + $0xf0] sm:$0xff]  ;;  %v2597_v11 = vld [vmem:[%s3233_s1 + $0xe8] sm:$0xff] }
  0x10   : > { %564 = vmatpush.bf16.msra.mxu3 %v2599_v3  ;;  %v2580_v12 = vld [vmem:[%s3233_s1 + $0x60] sm:$0xff]  ;;  %v2579_v16 = vld [vmem:[%s3233_s1 + $0x58] sm:$0xff]  ;;  %v2578_v25 = vld [vmem:[%s3233_s1 + $0x50] sm:$0xff] }
  0x11   : > { %320 = vmatpush.bf16.msra.mxu0 %v2582_v4  ;;  %v2572_v13 = vld [vmem:[%s3233_s1 + $0x20] sm:$0xff]  ;;  %v2571_v17 = vld [vmem:[%s3233_s1 + $0x18] sm:$0xff]  ;;  %v2570_v26 = vld [vmem:[%s3233_s1 + $0x10] sm:$0xff] }
  0x12   : > { %386 = vmatpush.bf16.msra.mxu1 %v2574_v5  ;;  %v2588_v14 = vld [vmem:[%s3233_s1 + $0xa0] sm:$0xff]  ;;  %v2587_v18 = vld [vmem:[%s3233_s1 + $0x98] sm:$0xff]  ;;  %v2586_v29 = vld [vmem:[%s3233_s1 + $0x90] sm:$0xff] }
  0x13   : > { %471 = vmatpush.bf16.msra.mxu2 %v2590_v6  ;;  %v2596_v15 = vld [vmem:[%s3233_s1 + $0xe0] sm:$0xff]  ;;  %v2595_v19 = vld [vmem:[%s3233_s1 + $0xd8] sm:$0xff]  ;;  %v2594_v30 = vld [vmem:[%s3233_s1 + $0xd0] sm:$0xff] }
  0x14   : > { %565 = vmatpush.bf16.msra.mxu3 %v2598_v7  ;;  %v2854_v20 = vld [vmem:[%s2839_s28] sm:$0xff]   ;;  %v2577_v33 = vld [vmem:[%s3233_s1 + $0x48] sm:$0xff]  ;;  %v2607_v52 = vld [vmem:[%s3233_s1 + $0x138] sm:$0xff] }
  0x15   : > { %321 = vmatpush.bf16.msra.mxu0 %v2581_v8  ;;  %v240_v21 = vld [vmem:[%s2839_s28 + $0x4] sm:$0x3]  ;;  %v399_v22 = vld [vmem:[%s2839_s28] sm:$0xe]  ;;  %v260_v23 = vunpack.c.l.b16 %v2854_v20  ;;  %v2569_v34 = vld [vmem:[%s3233_s1 + $0x8] sm:$0xff] }
  0x16   : > { %387 = vmatpush.bf16.msra.mxu1 %v2573_v9  ;;  %v261_v24 = vunpack.c.l.b16 %v240_v21  ;;  %v418_v27 = vunpack.c.l.b16 %v399_v22  ;;  %v486_v28 = vld [vmem:[%s2839_s28 + $0x4] sm:$0x7]  ;;  %v2585_v37 = vld [vmem:[%s3233_s1 + $0x88] sm:$0xff]  ;;  %v2615_v53 = vld [vmem:[%s3233_s1 + $0x178] sm:$0xff] }
  0x17   : > { %472 = vmatpush.bf16.msra.mxu2 %v2589_v10  ;;  %v505_v32 = vunpack.c.l.b16 %v486_v28  ;;  %v2593_v38 = vld [vmem:[%s3233_s1 + $0xc8] sm:$0xff]  ;;  %v223_v39 = vld [vmem:[%s2839_s28 + $0x4] sm:$0x1]  ;;  %v2623_v54 = vld [vmem:[%s3233_s1 + $0x1b8] sm:$0xff] }
  0x18   : > { %566 = vmatpush.bf16.msra.mxu3 %v2597_v11  ;;  %v262_v31 = vpack.c.b16 %v261_v24, %v260_v23  ;;  %v2576_v42 = vld [vmem:[%s3233_s1 + $0x40] sm:$0xff]  ;;  %v419_v46 = vpack.c.b16 %v261_v24, %v418_v27  ;;  %v334_v49 = vunpack.c.l.b16 %v223_v39  ;;  %v2631_v55 = vld [vmem:[%s3233_s1 + $0x1f8] sm:$0xff]  ;;  %v2606_v60 = vld [vmem:[%s3233_s1 + $0x130] sm:$0xff] }
  0x19   : > { %322 = vmatpush.bf16.msra.mxu0 %v2580_v12  ;;  %v506_v36 = vpack.c.b16 %v505_v32, %v418_v27  ;;  %v2568_v43 = vld [vmem:[%s3233_s1] sm:$0xff]  ;;  %v2614_v61 = vld [vmem:[%s3233_s1 + $0x170] sm:$0xff]  ;;  %v2605_v0 = vld [vmem:[%s3233_s1 + $0x128] sm:$0xff] }
  0x1a   : > { %388 = vmatpush.bf16.msra.mxu1 %v2572_v13  ;;  %v266_v35 = vshll.u32 %v262_v31, 16  ;;  %v264_v44 = vshrl.u32 %v262_v31, 16  ;;  %v2584_v47 = vld [vmem:[%s3233_s1 + $0x80] sm:$0xff]  ;;  %v420_v57 = vrot.slane %v419_v46, 1  ;;  %v335_v58 = vpack.c.b16 %v334_v49, %v260_v23  ;;  %v2622_v62 = vld [vmem:[%s3233_s1 + $0x1b0] sm:$0xff]  ;;  %v2613_v1 = vld [vmem:[%s3233_s1 + $0x168] sm:$0xff] }
  0x1b   : > { %473 = vmatpush.bf16.msra.mxu2 %v2588_v14  ;;  %v508_v40 = vshrl.u32 %v506_v36, 16  ;;  %v511_v41 = vshll.u32 %v506_v36, 16  ;;  %v2592_v48 = vld [vmem:[%s3233_s1 + $0xc0] sm:$0xff]  ;;  %v2630_v63 = vld [vmem:[%s3233_s1 + $0x1f0] sm:$0xff]  ;;  %v2621_v2 = vld [vmem:[%s3233_s1 + $0x1a8] sm:$0xff] }
  0x1c   : > { %567 = vmatpush.bf16.msra.mxu3 %v2596_v15  ;;  %v268_v45 = vrot.slane %v266_v35, 1  ;;  %v2629_v3 = vld [vmem:[%s3233_s1 + $0x1e8] sm:$0xff]  ;;  %v764_v4 = vld [vmem:[%s2839_s28] sm:$0x8]  ;;  %v2603_v14 = vld [vmem:[%s3233_s1 + $0x118] sm:$0xff] }
  0x1d   : > { %323 = vmatpush.bf16.msra.mxu0 %v2579_v16  ;;  %v510_v50 = vrot.slane %v508_v40, 1  ;;  %v513_v51 = vrot.slane %v511_v41, 2  ;;  %v2935_v5 = vld [vmem:[%s2839_s28 + $0x4] sm:$0xff]   ;;  %v580_v10 = vld [vmem:[%s2839_s28] sm:$0xc]  ;;  %v787_v11 = vunpack.c.l.b16 %v764_v4  ;;  %v2611_v15 = vld [vmem:[%s3233_s1 + $0x158] sm:$0xff] }
  0x1e   : > { %389 = vmatpush.bf16.msra.mxu1 %v2571_v17  ;;  %v269_v56 = vor.u32 %v268_v45, %v264_v44  ;;  %v2604_v6 = vld [vmem:[%s3233_s1 + $0x120] sm:$0xff]  ;;  %v788_v12 = vunpack.c.l.b16 %v2935_v5  ;;  %v766_v13 = vld [vmem:[%s2839_s28 + $0x8] sm:$0x1]  ;;  %v601_v16 = vunpack.c.l.b16 %v580_v10  ;;  %v602_v17 = vunpack.c.h.b16 %v2854_v20  ;;  %v2602_v20 = vld [vmem:[%s3233_s1 + $0x110] sm:$0xff] }
  0x1f   : > { %474 = vmatpush.bf16.msra.mxu2 %v2587_v18  ;;  %v514_v59 = vor.u32 %v513_v51, %v510_v50  ;;  %v2612_v7 = vld [vmem:[%s3233_s1 + $0x160] sm:$0xff]  ;;  %v2619_v18 = vld [vmem:[%s3233_s1 + $0x198] sm:$0xff]  ;;  %v789_v21 = vunpack.c.l.b16 %v766_v13  ;;  %v2610_v23 = vld [vmem:[%s3233_s1 + $0x150] sm:$0xff] }
  0x20   : > { %568 = vmatpush.bf16.msra.mxu3 %v2595_v19  ;;  %v2620_v8 = vld [vmem:[%s3233_s1 + $0x1a0] sm:$0xff]  ;;  %v2627_v19 = vld [vmem:[%s3233_s1 + $0x1d8] sm:$0xff]  ;;  %v790_v22 = vpack.c.b16 %v788_v12, %v787_v11  ;;  %v603_v24 = vpack.c.b16 %v602_v17, %v601_v16  ;;  %v2601_v31 = vld [vmem:[%s3233_s1 + $0x108] sm:$0xff] }
  0x21   : > { %324 = vmatpush.bf16.msra.mxu0 %v2578_v25  ;;  %v2628_v9 = vld [vmem:[%s3233_s1 + $0x1e0] sm:$0xff]  ;;  %v2618_v25 = vld [vmem:[%s3233_s1 + $0x190] sm:$0xff]  ;;  %v791_v27 = vpack.c.b16 %v789_v21, %v789_v21  ;;  %v2609_v32 = vld [vmem:[%s3233_s1 + $0x148] sm:$0xff] }
  0x22   : > { %390 = vmatpush.bf16.msra.mxu1 %v2570_v26  ;;  %v2626_v26 = vld [vmem:[%s3233_s1 + $0x1d0] sm:$0xff]  ;;  %v794_v28 = vshrl.u32 %v790_v22, 16  ;;  %v2617_v35 = vld [vmem:[%s3233_s1 + $0x188] sm:$0xff]  ;;  %v2600_v41 = vld [vmem:[%s3233_s1 + $0x100] sm:$0xff] }
  0x23   : > { %475 = vmatpush.bf16.msra.mxu2 %v2586_v29  ;;  %v797_v29 = vshll.u32 %v790_v22, 16  ;;  %v2625_v36 = vld [vmem:[%s3233_s1 + $0x1c8] sm:$0xff]  ;;  %v802_v39 = vshll.u32 %v791_v27, 16  ;;  %v2616_v45 = vld [vmem:[%s3233_s1 + $0x180] sm:$0xff]  ;;  %v2639_v50 = vld [vmem:[%s3233_s1 + $0x238] sm:$0xff] }
  0x24   : > { %569 = vmatpush.bf16.msra.mxu3 %v2594_v30  ;;  %v677_v30 = vld [vmem:[%s2839_s28] sm:$0x8]  ;;  %v2647_v51 = vld [vmem:[%s3233_s1 + $0x278] sm:$0xff]  ;;  %v955_v22 = vld [vmem:[%s2839_s28 + $0x8] sm:$0x3] }
  0x25   : > { %325 = vmatpush.bf16.msra.mxu0 %v2577_v33  ;;  %v605_v33 = vshrl.u32 %v603_v24, 16  ;;  %v696_v40 = vunpack.c.l.b16 %v677_v30  ;;  %v2624_v46 = vld [vmem:[%s3233_s1 + $0x1c0] sm:$0xff]  ;;  %v2635_v10 = vld [vmem:[%s3233_s1 + $0x218] sm:$0xff]  ;;  %v2649_v27 = vld [vmem:[%s3233_s1 + $0x288] sm:$0xff] }
  0x26   : > { %391 = vmatpush.bf16.msra.mxu1 %v2569_v34  ;;  %v608_v34 = vshll.u32 %v603_v24, 16  ;;  %v2652_v4 = vld [vmem:[%s3233_s1 + $0x2a0] sm:$0xff]  ;;  %v2643_v11 = vld [vmem:[%s3233_s1 + $0x258] sm:$0xff]  ;;  %v2633_v24 = vld [vmem:[%s3233_s1 + $0x208] sm:$0xff] }
  0x27   : > { %476 = vmatpush.bf16.msra.mxu2 %v2585_v37  ;;  %v796_v37 = vrot.slane %v794_v28, 3  ;;  %v697_v49 = vpack.c.b16 %v602_v17, %v696_v40  ;;  %v2659_v13 = vld [vmem:[%s3233_s1 + $0x2d8] sm:$0xff]  ;;  %v1244_v17 = vunpack.c.h.b16 %v2935_v5  ;;  %v2658_v5 = vld [vmem:[%s3233_s1 + $0x2d0] sm:$0xff]  ;;  %v2657_v28 = vld [vmem:[%s3233_s1 + $0x2c8] sm:$0xff] }
  0x28   : > { %570 = vmatpush.bf16.msra.mxu3 %v2593_v38  ;;  %v799_v38 = vrot.slane %v797_v29, 4  ;;  %v610_v44 = vrot.slane %v608_v34, 3  ;;  %v2640_v34 = vld [vmem:[%s3233_s1 + $0x240] sm:$0xff] }
  0x29   : > { %326 = vmatpush.bf16.msra.mxu0 %v2576_v42  ;;  %v2608_v42 = vld [vmem:[%s3233_s1 + $0x140] sm:$0xff] }
  0x2a   : > { %392 = vmatpush.bf16.msra.mxu1 %v2568_v43  ;;  %v607_v43 = vrot.slane %v605_v33, 2  ;;  %v2632_v33 = vld [vmem:[%s3233_s1 + $0x200] sm:$0xff] }
  0x2b   : > { %477 = vmatpush.bf16.msra.mxu2 %v2584_v47  ;;  %v800_v47 = vor.u32 %v799_v38, %v796_v37  ;;  %v2648_v37 = vld [vmem:[%s3233_s1 + $0x280] sm:$0xff] }
  0x2c   : > { %571 = vmatpush.bf16.msra.mxu3 %v2592_v48  ;;  %327 = vmatmul.bf16.vlgmr.msra.gmra.mxu0 %v269_v56  ;;  %v804_v48 = vrot.slane %v802_v39, 4  ;;  %v698_v56 = vrot.slane %v697_v49, 3  ;;  %v2656_v38 = vld [vmem:[%s3233_s1 + $0x2c0] sm:$0xff] }
  0x2d   : > { %661 = vmatpush.bf16.msrb.mxu0 %v2607_v52  ;;  %393 = vmatmul.bf16.vlgmr.msra.gmra.mxu1 %v335_v58  ;;  %v2655_v52 = vld [vmem:[%s3233_s1 + $0x2b8] sm:$0xff]  ;;  %v2638_v58 = vld [vmem:[%s3233_s1 + $0x230] sm:$0xff] }
  0x2e   : > { %748 = vmatpush.bf16.msrb.mxu1 %v2615_v53  ;;  %478 = vmatmul.bf16.vlgmr.msra.gmra.mxu2 %v420_v57  ;;  %v2663_v53 = vld [vmem:[%s3233_s1 + $0x2f8] sm:$0xff]  ;;  %v888_v57 = vpack.c.b16 %v789_v21, %v788_v12  ;;  %v2650_v21 = vld [vmem:[%s3233_s1 + $0x290] sm:$0xff] }
  0x2f   : > { %855 = vmatpush.bf16.msrb.mxu2 %v2623_v54  ;;  %572 = vmatmul.bf16.vlgmr.msra.gmra.mxu3 %v514_v59  ;;  %v611_v54 = vor.u32 %v610_v44, %v607_v43  ;;  %v2646_v59 = vld [vmem:[%s3233_s1 + $0x270] sm:$0xff]  ;;  %v2651_v12 = vld [vmem:[%s3233_s1 + $0x298] sm:$0xff] }
  0x30   : > { %938 = vmatpush.bf16.msrb.mxu3 %v2631_v55  ;;  %v805_v55 = vsel %vm792_vm0, %v800_v47, %v804_v48  ;;  %v2671_v43 = vld [vmem:[%s3233_s1 + $0x338] sm:$0xff] }
  0x31   : > { %662 = vmatpush.bf16.msrb.mxu0 %v2606_v60  ;;  %v2654_v60 = vld [vmem:[%s3233_s1 + $0x2b0] sm:$0xff]  ;;  %v2679_v44 = vld [vmem:[%s3233_s1 + $0x378] sm:$0xff] }
  0x32   : > { %749 = vmatpush.bf16.msrb.mxu1 %v2614_v61  ;;  %v2662_v61 = vld [vmem:[%s3233_s1 + $0x2f0] sm:$0xff] }
  0x33   : > { %856 = vmatpush.bf16.msrb.mxu2 %v2622_v62  ;;  %v2637_v62 = vld [vmem:[%s3233_s1 + $0x228] sm:$0xff] }
  0x34   : > { %939 = vmatpush.bf16.msrb.mxu3 %v2630_v63  ;;  %v2645_v63 = vld [vmem:[%s3233_s1 + $0x268] sm:$0xff] }
  0x35   : > { %663 = vmatpush.bf16.msrb.mxu0 %v2605_v0  ;;  %v2653_v0 = vld [vmem:[%s3233_s1 + $0x2a8] sm:$0xff] }
  0x36   : > { %750 = vmatpush.bf16.msrb.mxu1 %v2613_v1  ;;  %v2661_v1 = vld [vmem:[%s3233_s1 + $0x2e8] sm:$0xff] }
  0x37   : > { %857 = vmatpush.bf16.msrb.mxu2 %v2621_v2  ;;  %v2636_v2 = vld [vmem:[%s3233_s1 + $0x220] sm:$0xff] }
  0x38   : > { %940 = vmatpush.bf16.msrb.mxu3 %v2629_v3  ;;  %v2644_v3 = vld [vmem:[%s3233_s1 + $0x260] sm:$0xff] }
  0x39   : > { %664 = vmatpush.bf16.msrb.mxu0 %v2604_v6  ;;  %v2660_v6 = vld [vmem:[%s3233_s1 + $0x2e0] sm:$0xff] }
  0x3a   : > { %751 = vmatpush.bf16.msrb.mxu1 %v2612_v7  ;;  %v954_v7 = vld [vmem:[%s2839_s28 + $0x4] sm:$0xe] }
  0x3b   : > { %858 = vmatpush.bf16.msrb.mxu2 %v2620_v8  ;;  %v1044_v8 = vld [vmem:[%s2839_s28 + $0x8] sm:$0x7] }
  0x3c   : > { %941 = vmatpush.bf16.msrb.mxu3 %v2628_v9  ;;  %v1138_v9 = vld [vmem:[%s2839_s28 + $0x4] sm:$0xc] }
  0x3d   : > { %665 = vmatpush.bf16.msrb.mxu0 %v2603_v14  ;;  %v975_v14 = vunpack.c.l.b16 %v954_v7  ;;  %v1157_v16 = vunpack.c.l.b16 %v1138_v9  ;;  %v2667_v7 = vld [vmem:[%s3233_s1 + $0x318] sm:$0xff] }
  0x3e   : > { %752 = vmatpush.bf16.msrb.mxu1 %v2611_v15  ;;  %v1063_v15 = vunpack.c.l.b16 %v1044_v8  ;;  %v2675_v8 = vld [vmem:[%s3233_s1 + $0x358] sm:$0xff] }
  0x3f   : > { %859 = vmatpush.bf16.msrb.mxu2 %v2619_v18  ;;  %v2634_v18 = vld [vmem:[%s3233_s1 + $0x210] sm:$0xff] }
  0x40   : > { %942 = vmatpush.bf16.msrb.mxu3 %v2627_v19  ;;  %v2642_v19 = vld [vmem:[%s3233_s1 + $0x250] sm:$0xff] }
  0x41   : > { %666 = vmatpush.bf16.msrb.mxu0 %v2602_v20  ;;  %v1064_v20 = vpack.c.b16 %v1063_v15, %v975_v14 }
  0x42   : > { %753 = vmatpush.bf16.msrb.mxu1 %v2610_v23  ;;  %v1245_v23 = vpack.c.b16 %v1244_v17, %v1157_v16 }
  0x43   : > { %860 = vmatpush.bf16.msrb.mxu2 %v2618_v25  ;;  %v2641_v25 = vld [vmem:[%s3233_s1 + $0x248] sm:$0xff]  ;;  %v1066_v29 = vshrl.u32 %v1064_v20, 16  ;;  %v1069_v30 = vshll.u32 %v1064_v20, 16 }
  0x44   : > { %943 = vmatpush.bf16.msrb.mxu3 %v2626_v26  ;;  %v976_v26 = vunpack.c.l.b16 %v955_v22  ;;  %v2665_v20 = vld [vmem:[%s3233_s1 + $0x308] sm:$0xff] }
  0x45   : > { %667 = vmatpush.bf16.msrb.mxu0 %v2601_v31  ;;  %v1247_v31 = vshrl.u32 %v1245_v23, 16  ;;  %v1068_v39 = vrot.slane %v1066_v29, 1  ;;  %v1071_v40 = vrot.slane %v1069_v30, 2  ;;  %v2689_v29 = vld [vmem:[%s3233_s1 + $0x3c8] sm:$0xff] }
  0x46   : > { %754 = vmatpush.bf16.msrb.mxu1 %v2609_v32  ;;  %v1250_v32 = vshll.u32 %v1245_v23, 16  ;;  %v2673_v23 = vld [vmem:[%s3233_s1 + $0x348] sm:$0xff] }
  0x47   : > { %861 = vmatpush.bf16.msrb.mxu2 %v2617_v35  ;;  %v977_v35 = vpack.c.b16 %v976_v26, %v975_v14  ;;  %v1072_v49 = vor.u32 %v1071_v40, %v1068_v39  ;;  %v2666_v14 = vld [vmem:[%s3233_s1 + $0x310] sm:$0xff] }
  0x48   : > { %944 = vmatpush.bf16.msrb.mxu3 %v2625_v36  ;;  %v1158_v36 = vpack.c.b16 %v1063_v15, %v1157_v16  ;;  %v2674_v15 = vld [vmem:[%s3233_s1 + $0x350] sm:$0xff] }
  0x49   : > { %668 = vmatpush.bf16.msrb.mxu0 %v2600_v41  ;;  %v1249_v41 = vrot.slane %v1247_v31, 2  ;;  %v978_v47 = vrot.slane %v977_v35, 1  ;;  %v2664_v31 = vld [vmem:[%s3233_s1 + $0x300] sm:$0xff] }
  0x4a   : > { %755 = vmatpush.bf16.msrb.mxu1 %v2608_v42  ;;  %v1252_v42 = vrot.slane %v1250_v32, 3  ;;  %v1159_v48 = vrot.slane %v1158_v36, 2  ;;  %v2672_v32 = vld [vmem:[%s3233_s1 + $0x340] sm:$0xff] }
  0x4b   : > { %862 = vmatpush.bf16.msrb.mxu2 %v2616_v45  ;;  %v2687_v45 = vld [vmem:[%s3233_s1 + $0x3b8] sm:$0xff] }
  0x4c   : > { %945 = vmatpush.bf16.msrb.mxu3 %v2624_v46  ;;  %669 = vmatmul.bf16.vlgmr.msrb.gmra.mxu0 %v611_v54  ;;  %v2695_v46 = vld [vmem:[%s3233_s1 + $0x3f8] sm:$0xff]  ;;  %v2694_v54 = vld [vmem:[%s3233_s1 + $0x3f0] sm:$0xff] }
  0x4d   : > { %1028 = vmatpush.bf16.msra.mxu0 %v2639_v50  ;;  %756 = vmatmul.bf16.vlgmr.msrb.gmra.mxu1 %v698_v56  ;;  %v1253_v50 = vor.u32 %v1252_v42, %v1249_v41  ;;  %v2677_v56 = vld [vmem:[%s3233_s1 + $0x368] sm:$0xff] }
  0x4e   : > { %1122 = vmatpush.bf16.msra.mxu1 %v2647_v51  ;;  %863 = vmatmul.bf16.vlgmr.msrb.gmra.mxu2 %v805_v55  ;;  %v2670_v51 = vld [vmem:[%s3233_s1 + $0x330] sm:$0xff]  ;;  %v2669_v55 = vld [vmem:[%s3233_s1 + $0x328] sm:$0xff] }
  0x4f   : > { %1209 = vmatpush.bf16.msra.mxu2 %v2655_v52  ;;  %946 = vmatmul.bf16.vlgmr.msrb.gmra.mxu3 %v888_v57  ;;  %v2678_v52 = vld [vmem:[%s3233_s1 + $0x370] sm:$0xff]  ;;  %v2685_v57 = vld [vmem:[%s3233_s1 + $0x3a8] sm:$0xff] }
  0x50   : > { %1303 = vmatpush.bf16.msra.mxu3 %v2663_v53  ;;  %v2686_v53 = vld [vmem:[%s3233_s1 + $0x3b0] sm:$0xff] }
  0x51   : > { %1029 = vmatpush.bf16.msra.mxu0 %v2638_v58  ;;  %v2693_v58 = vld [vmem:[%s3233_s1 + $0x3e8] sm:$0xff] }
  0x52   : > { %1123 = vmatpush.bf16.msra.mxu1 %v2646_v59  ;;  %v1319_v59 = vld [vmem:[%s2839_s28 + $0x4] sm:$0x8] }
  0x53   : > { %1210 = vmatpush.bf16.msra.mxu2 %v2654_v60  ;;  %v1320_v60 = vld [vmem:[%s2839_s28 + $0x8] sm:$0xf] }
  0x54   : > { %1304 = vmatpush.bf16.msra.mxu3 %v2662_v61  ;;  %v2668_v61 = vld [vmem:[%s3233_s1 + $0x320] sm:$0xff] }
  0x55   : > { %1030 = vmatpush.bf16.msra.mxu0 %v2637_v62  ;;  %v2676_v62 = vld [vmem:[%s3233_s1 + $0x360] sm:$0xff] }
  0x56   : > { %1124 = vmatpush.bf16.msra.mxu1 %v2645_v63  ;;  %v1342_v63 = vunpack.c.l.b16 %v1319_v59 }
  0x57   : > { %1211 = vmatpush.bf16.msra.mxu2 %v2653_v0  ;;  %v3152_v0 = vunpack.c.l.b16 %v1320_v60 }
  0x58   : > { %1305 = vmatpush.bf16.msra.mxu3 %v2661_v1  ;;  %v1508_v1 = vld [vmem:[%s2839_s28 + $0xc] sm:$0x3] }
  0x59   : > { %1031 = vmatpush.bf16.msra.mxu0 %v2636_v2  ;;  %v2684_v2 = vld [vmem:[%s3233_s1 + $0x3a0] sm:$0xff] }
  0x5a   : > { %1125 = vmatpush.bf16.msra.mxu1 %v2644_v3  ;;  %v2692_v3 = vld [vmem:[%s3233_s1 + $0x3e0] sm:$0xff] }
  0x5b   : > { %1212 = vmatpush.bf16.msra.mxu2 %v2652_v4  ;;  %v1321_v4 = vld [vmem:[%s2839_s28 + $0xc] sm:$0x1] }
  0x5c   : > { %1306 = vmatpush.bf16.msra.mxu3 %v2660_v6  ;;  %v1527_v6 = vunpack.c.l.b16 %v1508_v1  ;;  %v1344_v9 = vunpack.c.l.b16 %v1321_v4 }
  0x5d   : > { %1032 = vmatpush.bf16.msra.mxu0 %v2635_v10  ;;  %v1345_v10 = vpack.c.b16 %v3152_v0, %v1342_v63 }
  0x5e   : > { %1126 = vmatpush.bf16.msra.mxu1 %v2643_v11  ;;  %v2683_v11 = vld [vmem:[%s3233_s1 + $0x398] sm:$0xff]  ;;  %v1346_v16 = vpack.c.b16 %v1344_v9, %v1344_v9  ;;  %v1442_v39 = vpack.c.b16 %v1344_v9, %v3152_v0 }
  0x5f   : > { %1213 = vmatpush.bf16.msra.mxu2 %v2651_v12  ;;  %v2691_v12 = vld [vmem:[%s3233_s1 + $0x3d8] sm:$0xff]  ;;  %v1348_v17 = vshrl.u32 %v1345_v10, 16 }
  0x60   : > { %1307 = vmatpush.bf16.msra.mxu3 %v2659_v13  ;;  %v1528_v13 = vpack.c.b16 %v1527_v6, %v3152_v0  ;;  %v1356_v26 = vshll.u32 %v1346_v16, 16 }
  0x61   : > { %1033 = vmatpush.bf16.msra.mxu0 %v2634_v18  ;;  %v1351_v18 = vshll.u32 %v1345_v10, 16 }
  0x62   : > { %1127 = vmatpush.bf16.msra.mxu1 %v2642_v19  ;;  %v2682_v19 = vld [vmem:[%s3233_s1 + $0x390] sm:$0xff]  ;;  %v1532_v22 = vshll.u32 %v1528_v13, 16  ;;  %v1530_v30 = vshrl.u32 %v1528_v13, 16 }
  0x63   : > { %1214 = vmatpush.bf16.msra.mxu2 %v2650_v21  ;;  %v2690_v21 = vld [vmem:[%s3233_s1 + $0x3d0] sm:$0xff] }
  0x64   : > { %1308 = vmatpush.bf16.msra.mxu3 %v2658_v5  ;;  %v1601_v5 = vld [vmem:[%s2839_s28 + $0x8] sm:$0xe]  ;;  %v1534_v35 = vrot.slane %v1532_v22, 1 }
  0x65   : > { %1034 = vmatpush.bf16.msra.mxu0 %v2633_v24  ;;  %v1350_v24 = vrot.slane %v1348_v17, 3 }
  0x66   : > { %1128 = vmatpush.bf16.msra.mxu1 %v2641_v25  ;;  %v1353_v25 = vrot.slane %v1351_v18, 4  ;;  %v1535_v41 = vor.u32 %v1534_v35, %v1530_v30 }
  0x67   : > { %1215 = vmatpush.bf16.msra.mxu2 %v2649_v27  ;;  %v1620_v27 = vunpack.c.l.b16 %v1601_v5 }
  0x68   : > { %1309 = vmatpush.bf16.msra.mxu3 %v2657_v28  ;;  %v2681_v28 = vld [vmem:[%s3233_s1 + $0x388] sm:$0xff] }
  0x69   : > { %1035 = vmatpush.bf16.msra.mxu0 %v2632_v33  ;;  %v1354_v33 = vor.u32 %v1353_v25, %v1350_v24  ;;  %v1621_v36 = vpack.c.b16 %v1527_v6, %v1620_v27 }
  0x6a   : > { %1129 = vmatpush.bf16.msra.mxu1 %v2640_v34  ;;  %v1358_v34 = vrot.slane %v1356_v26, 4 }
  0x6b   : > { %1216 = vmatpush.bf16.msra.mxu2 %v2648_v37  ;;  %v2680_v37 = vld [vmem:[%s3233_s1 + $0x380] sm:$0xff]  ;;  %v1622_v42 = vrot.slane %v1621_v36, 1 }
  0x6c   : > { %1310 = vmatpush.bf16.msra.mxu3 %v2656_v38  ;;  %1036 = vmatmul.bf16.vlgmr.msra.gmra.mxu0 %v978_v47  ;;  %v2688_v38 = vld [vmem:[%s3233_s1 + $0x3c0] sm:$0xff]  ;;  %v1359_v40 = vsel %vm792_vm0, %v1354_v33, %v1358_v34 }
  0x6d   : > { %1409 = vmatpush.bf16.msrb.mxu0 %v2671_v43  ;;  %1130 = vmatmul.bf16.vlgmr.msra.gmra.mxu1 %v1072_v49 }
  0x6e   : > { %1492 = vmatpush.bf16.msrb.mxu1 %v2679_v44  ;;  %1217 = vmatmul.bf16.vlgmr.msra.gmra.mxu2 %v1159_v48 }
  0x6f   : > { %1585 = vmatpush.bf16.msrb.mxu2 %v2687_v45  ;;  %1311 = vmatmul.bf16.vlgmr.msra.gmra.mxu3 %v1253_v50 }
  0x70   : > { %1672 = vmatpush.bf16.msrb.mxu3 %v2695_v46 }
  0x71   : > { %1410 = vmatpush.bf16.msrb.mxu0 %v2670_v51 }
  0x72   : > { %1493 = vmatpush.bf16.msrb.mxu1 %v2678_v52 }
  0x73   : > { %1586 = vmatpush.bf16.msrb.mxu2 %v2686_v53 }
  0x74   : > { %1673 = vmatpush.bf16.msrb.mxu3 %v2694_v54 }
  0x75   : > { %1411 = vmatpush.bf16.msrb.mxu0 %v2669_v55 }
  0x76   : > { %1494 = vmatpush.bf16.msrb.mxu1 %v2677_v56 }
  0x77   : > { %1587 = vmatpush.bf16.msrb.mxu2 %v2685_v57 }
  0x78   : > { %1674 = vmatpush.bf16.msrb.mxu3 %v2693_v58 }
  0x79   : > { %1412 = vmatpush.bf16.msrb.mxu0 %v2668_v61 }
  0x7a   : > { %1495 = vmatpush.bf16.msrb.mxu1 %v2676_v62 }
  0x7b   : > { %1588 = vmatpush.bf16.msrb.mxu2 %v2684_v2 }
  0x7c   : > { %1675 = vmatpush.bf16.msrb.mxu3 %v2692_v3 }
  0x7d   : > { %1413 = vmatpush.bf16.msrb.mxu0 %v2667_v7 }
  0x7e   : > { %1496 = vmatpush.bf16.msrb.mxu1 %v2675_v8 }
  0x7f   : > { %1589 = vmatpush.bf16.msrb.mxu2 %v2683_v11 }
  0x80   : > { %1676 = vmatpush.bf16.msrb.mxu3 %v2691_v12 }
  0x81   : > { %1414 = vmatpush.bf16.msrb.mxu0 %v2666_v14 }
  0x82   : > { %1497 = vmatpush.bf16.msrb.mxu1 %v2674_v15 }
  0x83   : > { %1590 = vmatpush.bf16.msrb.mxu2 %v2682_v19 }
  0x84   : > { %1677 = vmatpush.bf16.msrb.mxu3 %v2690_v21 }
  0x85   : > { %1415 = vmatpush.bf16.msrb.mxu0 %v2665_v20 }
  0x86   : > { %1498 = vmatpush.bf16.msrb.mxu1 %v2673_v23 }
  0x87   : > { %1591 = vmatpush.bf16.msrb.mxu2 %v2681_v28 }
  0x88   : > { %1678 = vmatpush.bf16.msrb.mxu3 %v2689_v29 }
  0x89   : > { %1416 = vmatpush.bf16.msrb.mxu0 %v2664_v31 }
  0x8a   : > { %1499 = vmatpush.bf16.msrb.mxu1 %v2672_v32  ;;  %v2720_v32 = vld [vmem:[%s3234_s2] ss:$0 sm:$0xff] }
  0x8b   : > { %1592 = vmatpush.bf16.msrb.mxu2 %v2680_v37 }
  0x8c   : > { %1679 = vmatpush.bf16.msrb.mxu3 %v2688_v38  ;;  %1417 = vmatmul.bf16.vlgmr.msrb.gmra.mxu0 %v1359_v40 }
  0x8d   : > { %1500 = vmatmul.bf16.vlgmr.msrb.gmra.mxu1 %v1442_v39 }
  0x8e   : > { %1593 = vmatmul.bf16.vlgmr.msrb.gmra.mxu2 %v1535_v41 }
  0x8f   : > { %1680 = vmatmul.bf16.vlgmr.msrb.gmra.mxu3 %v1622_v42 }
  0xa9   : > { %v328_v43 = vpop.f32.mrf.mxu0 }
  0xaa   : > { %v394_v44 = vpop.f32.mrf.mxu1 }
  0xab   : > { %v395_v51 = vadd.f32 %v394_v44, %v328_v43 }
  0xb1   : > { %v479_v45 = vpop.f32.mrf.mxu2  ;;  %v330_v47 = vpop.f32.mrf.mxu0 }
  0xb2   : > { %v573_v46 = vpop.f32.mrf.mxu3  ;;  %v396_v48 = vpop.f32.mrf.mxu1  ;;  %v484_v54 = vadd.f32 %v479_v45, %v395_v51 }
  0xb3   : > { %v397_v59 = vadd.f32 %v396_v48, %v330_v47 }
  0xb4   : > { %v578_v57 = vadd.f32 %v573_v46, %v484_v54 }
  0xb9   : > { %v481_v49 = vpop.f32.mrf.mxu2 }
  0xba   : > { %v575_v50 = vpop.f32.mrf.mxu3  ;;  %v485_v62 = vadd.f32 %v481_v49, %v397_v59 }
  0xbc   : > { %v579_v3 = vadd.f32 %v575_v50, %v485_v62 }
  0xc9   : > { %v670_v52 = vpop.f32.mrf.mxu0 }
  0xca   : > { %v757_v53 = vpop.f32.mrf.mxu1  ;;  %v675_v60 = vadd.f32 %v670_v52, %v578_v57 }
  0xcc   : > { %v762_v63 = vadd.f32 %v757_v53, %v675_v60 }
  0xd1   : > { %v864_v55 = vpop.f32.mrf.mxu2  ;;  %v672_v58 = vpop.f32.mrf.mxu0 }
  0xd2   : > { %v947_v56 = vpop.f32.mrf.mxu3  ;;  %v759_v61 = vpop.f32.mrf.mxu1  ;;  %v869_v4 = vadd.f32 %v864_v55, %v762_v63  ;;  %v676_v7 = vadd.f32 %v672_v58, %v579_v3 }
  0xd4   : > { %v952_v8 = vadd.f32 %v947_v56, %v869_v4  ;;  %v763_v11 = vadd.f32 %v759_v61, %v676_v7 }
  0xd9   : > { %v866_v0 = vpop.f32.mrf.mxu2 }
  0xda   : > { %v949_v1 = vpop.f32.mrf.mxu3  ;;  %v870_v13 = vadd.f32 %v866_v0, %v763_v11 }
  0xdc   : > { %v953_v17 = vadd.f32 %v949_v1, %v870_v13 }
  0xe9   : > { %v1037_v2 = vpop.f32.mrf.mxu0 }
  0xea   : > { %v1131_v6 = vpop.f32.mrf.mxu1  ;;  %v1042_v12 = vadd.f32 %v1037_v2, %v952_v8 }
  0xec   : > { %v1136_v15 = vadd.f32 %v1131_v6, %v1042_v12 }
  0xf1   : > { %v1218_v9 = vpop.f32.mrf.mxu2  ;;  %v1039_v14 = vpop.f32.mrf.mxu0 }
  0xf2   : > { %v1312_v10 = vpop.f32.mrf.mxu3  ;;  %v1133_v16 = vpop.f32.mrf.mxu1  ;;  %v1223_v18 = vadd.f32 %v1218_v9, %v1136_v15  ;;  %v1043_v19 = vadd.f32 %v1039_v14, %v953_v17 }
  0xf4   : > { %v1317_v22 = vadd.f32 %v1312_v10, %v1223_v18  ;;  %v1137_v23 = vadd.f32 %v1133_v16, %v1043_v19 }
  0xf9   : > { %v1220_v21 = vpop.f32.mrf.mxu2 }
  0xfa   : > { %v1314_v5 = vpop.f32.mrf.mxu3  ;;  %v1224_v26 = vadd.f32 %v1220_v21, %v1137_v23 }
  0xfc   : > { %v1318_v30 = vadd.f32 %v1314_v5, %v1224_v26 }
 0x109   : > { %v1418_v20 = vpop.f32.mrf.mxu0 }
 0x10a   : > { %v1423_v24 = vadd.f32 %v1418_v20, %v1317_v22  ;;  %v1501_v25 = vpop.f32.mrf.mxu1 }
 0x10c   : > { %v1506_v27 = vadd.f32 %v1501_v25, %v1423_v24 }
 0x111   : > { %v1594_v28 = vpop.f32.mrf.mxu2  ;;  %v1420_v33 = vpop.f32.mrf.mxu0 }
 0x112   : > { %v1681_v29 = vpop.f32.mrf.mxu3  ;;  %v1599_v31 = vadd.f32 %v1594_v28, %v1506_v27  ;;  %v1424_v35 = vadd.f32 %v1420_v33, %v1318_v30  ;;  %v1503_v37 = vpop.f32.mrf.mxu1 }
 0x114   : > { %v1686_v34 = vadd.f32 %v1681_v29, %v1599_v31  ;;  %v1507_v38 = vadd.f32 %v1503_v37, %v1424_v35 }
 0x116   : > { %v1692_v36 = vadd.f32 %v2720_v32, %v1686_v34 }
 0x118   : > { %1694 = vst [vmem:[%s221_s24] sm:$0xff] %v1692_v36 }
 0x119   : > { %v1596_v39 = vpop.f32.mrf.mxu2 }
 0x11a   : > { %v1600_v40 = vadd.f32 %v1596_v39, %v1507_v38  ;;  %v1683_v41 = vpop.f32.mrf.mxu3 }
 0x11c   : > { %v1687_v42 = vadd.f32 %v1683_v41, %v1600_v40 }
 0x11e   : > { %v1693_v43 = vadd.f32 %v2720_v32, %v1687_v42 }
 0x120   : > { %1695 = vst [vmem:[%s221_s24 + $0x8] sm:$0x3] %v1693_v43 }
 0x121 PF: > { %s13_s14 = sadd.s32 1, %s2743_s14   ;;  %s3236_s12 = smov %s2739_s13 }
 0x122   : > { %p10_p5 = scmp.ge.s32.totalorder %s13_s14, 4   ;;  %s3237_s13 = smov %s3239_s15 }
 0x124   :  { %12 = sbr.rel (!%p10_p5) target bundleno = 2 (0x2), region = 83 }

// kernel: _lambda_.13
= control target key start
LH: loop header
LB: loop body
LE: loop exit
PB: predicated region body
PF: predicated region fallthrough
CT: control target
= control target key end

     0   :  { %s3090_s15 = smov 0   ;;  %s3092_s16 = smov 0   ;;  %s3678_s0 = inlined_call_operand.vmem [shape: bf16[2,1,39,128], index: 0, kind: input, shape index: {}]   ;;  %s3679_s1 = inlined_call_operand.vmem [shape: bf16[16,128,128], index: 1, kind: input, shape index: {}]   ;;  %s3680_s2 = inlined_call_operand.vmem [shape: f32[18,1], index: 2, kind: input, shape index: {}]   ;;  %s3681_s3 = inlined_call_operand.vmem [shape: bf16[2,18,128], index: 3, kind: output, shape index: {0}]   ;;  %s3682_s4 = inlined_call_operand.vmem [shape: f32[2,8,128], index: 4, kind: output, shape index: {1}]  }
   0x1   :  { %s3094_s17 = smov 0  }
   0x2 LB: > { %s27_s18 = sadd.s32 1, %s3058_s16  ;;  %p2106_p0 = scmp.ge.s32.totalorder %s3062_s17, 1  ;;  %s3062_s17 = sphi %s3094_s17, %s15_s17   ;;  %s3058_s16 = sphi %s3092_s16, %s3684_s16   ;;  %s3054_s15 = sphi %s3090_s15, %s3683_s15  }
   0x3   : > { %p29_p1 = scmp.ge.s32.totalorder %s27_s18, 2  ;;  %p190_p2 = scmp.lt.s32.totalorder %s3062_s17, 3 }
   0x5   : > { %s3686_s18 = smov (%p29_p1, %s27_s18), 0  ;;  %p191_p3 = pnand %p2106_p0, %p190_p2 }
   0x6   : > { %p230_p4 = scmp.lt.s32.totalorder (!%p191_p3), %s3054_s15, 1 }
   0x7   : > { %194 = sbr.rel (%p191_p3) target bundleno = 313 (0x139), region = 32 }
   0xc   : > { %v2883_v0 = vld [vmem:[%s3679_s1 + $0x78] sm:$0xff]  ;;  %v2882_v4 = vld [vmem:[%s3679_s1 + $0x70] sm:$0xff]  ;;  %s3688_s15 = smov (!%p230_p4, %s3054_s15), 1  ;;  %v2881_v8 = vld [vmem:[%s3679_s1 + $0x68] sm:$0xff]  ;;  %vm299_vm0 = vsmask.f32 7424 }
   0xd   : > { %v2875_v1 = vld [vmem:[%s3679_s1 + $0x38] sm:$0xff]  ;;  %365 = vmatpush.bf16.msra.mxu0 %v2883_v0  ;;  %v2874_v5 = vld [vmem:[%s3679_s1 + $0x30] sm:$0xff]  ;;  %s3006_s9 = smul.u32 20, %s3688_s15  ;;  %v2873_v9 = vld [vmem:[%s3679_s1 + $0x28] sm:$0xff]  ;;  %vm475_vm1 = vcmask 1046528   ;;  %vm685_vm3 = vcmask 1044480  }
   0xe   : > { %v2891_v2 = vld [vmem:[%s3679_s1 + $0xb8] sm:$0xff]  ;;  %436 = vmatpush.bf16.msra.mxu1 %v2875_v1  ;;  %v2890_v6 = vld [vmem:[%s3679_s1 + $0xb0] sm:$0xff]  ;;  %v2889_v10 = vld [vmem:[%s3679_s1 + $0xa8] sm:$0xff]  ;;  %vm571_vm2 = vsmask.f32 6400  ;;  %vm1102_vm5 = vcmask 1045504  }
   0xf   : > { %v2899_v3 = vld [vmem:[%s3679_s1 + $0xf8] sm:$0xff]  ;;  %529 = vmatpush.bf16.msra.mxu2 %v2891_v2  ;;  %v2898_v7 = vld [vmem:[%s3679_s1 + $0xf0] sm:$0xff]  ;;  %v2897_v11 = vld [vmem:[%s3679_s1 + $0xe8] sm:$0xff]  ;;  %s3150_s24 = scalar_lea.vmem %s3678_s0, %s3006_s9  ;;  %vm791_vm4 = vsmask.f32 4352  ;;  %s3007_s5 = smul.u32 12, %s3688_s15 }
  0x10   : > { %639 = vmatpush.bf16.msra.mxu3 %v2899_v3  ;;  %v2880_v12 = vld [vmem:[%s3679_s1 + $0x60] sm:$0xff]  ;;  %v273_v17 = vld [vmem:[%s3150_s24 + $0x8] sm:$0x3]  ;;  %v2879_v23 = vld [vmem:[%s3679_s1 + $0x58] sm:$0xff]  ;;  %vm1198_vm6 = vsmask.f32 5376 }
  0x11   : > { %366 = vmatpush.bf16.msra.mxu0 %v2882_v4  ;;  %v2872_v13 = vld [vmem:[%s3679_s1 + $0x20] sm:$0xff]  ;;  %v550_v21 = vld [vmem:[%s3150_s24 + $0x8] sm:$0x7]  ;;  %v2871_v24 = vld [vmem:[%s3679_s1 + $0x18] sm:$0xff]  ;;  %v296_v25 = vunpack.c.l.b16 %v273_v17  ;;  %s246_s7 = scalar_lea.vmem %s3681_s3, %s3007_s5  ;;  %vm1944_vm13 = vcmask 1041408   ;;  %s2109_s8 = sshll.u32 %s3688_s15, 3 }
  0x12   : > { %437 = vmatpush.bf16.msra.mxu1 %v2874_v5  ;;  %v2888_v14 = vld [vmem:[%s3679_s1 + $0xa0] sm:$0xff]  ;;  %v569_v22 = vunpack.c.l.b16 %v550_v21  ;;  %v2887_v26 = vld [vmem:[%s3679_s1 + $0x98] sm:$0xff]  ;;  %v2878_v30 = vld [vmem:[%s3679_s1 + $0x50] sm:$0xff]  ;;  %s253_s11 = scalar_lea.vmem %s3682_s4, %s2109_s8 }
  0x13   : > { %530 = vmatpush.bf16.msra.mxu2 %v2890_v6  ;;  %v3162_v15 = vld [vmem:[%s3150_s24] sm:$0xff]   ;;  %v2895_v27 = vld [vmem:[%s3679_s1 + $0xd8] sm:$0xff]  ;;  %v2870_v31 = vld [vmem:[%s3679_s1 + $0x10] sm:$0xff]  ;;  %v3191_v32 = vpack.c.b16 %v296_v25, %v296_v25 }
  0x14   : > { %640 = vmatpush.bf16.msra.mxu3 %v2898_v7  ;;  %v2896_v16 = vld [vmem:[%s3679_s1 + $0xe0] sm:$0xff]  ;;  %v3000_v18 = vunpack.c.h.b16 %v3162_v15  ;;  %v570_v29 = vpack.c.b16 %v569_v22, %v569_v22  ;;  %v303_v33 = vshll.u32 %v3162_v15, 16  ;;  %v2886_v34 = vld [vmem:[%s3679_s1 + $0x90] sm:$0xff]  ;;  %v2877_v40 = vld [vmem:[%s3679_s1 + $0x48] sm:$0xff]  ;;  %v301_v42 = vshrl.u32 %v3162_v15, 16 }
  0x15   : > { %367 = vmatpush.bf16.msra.mxu0 %v2881_v8  ;;  %v454_v19 = vld [vmem:[%s3150_s24] sm:$0xe]  ;;  %v2894_v35 = vld [vmem:[%s3679_s1 + $0xd0] sm:$0xff]  ;;  %v2869_v41 = vld [vmem:[%s3679_s1 + $0x8] sm:$0xff]  ;;  %v308_v44 = vshll.u32 %v3191_v32, 16  ;;  %v477_v58 = vrot.slane %v3191_v32, 1 }
  0x16   : > { %438 = vmatpush.bf16.msra.mxu1 %v2873_v9  ;;  %v473_v20 = vunpack.c.l.b16 %v454_v19  ;;  %v581_v38 = vshrl.u32 %v570_v29, 16  ;;  %v584_v39 = vshll.u32 %v570_v29, 16  ;;  %v305_v43 = vrot.slane %v303_v33, 1  ;;  %v2885_v45 = vld [vmem:[%s3679_s1 + $0x88] sm:$0xff]  ;;  %v2876_v51 = vld [vmem:[%s3679_s1 + $0x40] sm:$0xff]  ;;  %v2923_v61 = vld [vmem:[%s3679_s1 + $0x1b8] sm:$0xff] }
  0x17   : > { %531 = vmatpush.bf16.msra.mxu2 %v2889_v10  ;;  %v2893_v46 = vld [vmem:[%s3679_s1 + $0xc8] sm:$0xff]  ;;  %v2868_v52 = vld [vmem:[%s3679_s1] sm:$0xff]  ;;  %v3220_v54 = vrot.slane %v308_v44, 1  ;;  %v2907_v62 = vld [vmem:[%s3679_s1 + $0x138] sm:$0xff]  ;;  %v312_v21 = vshrl.u32 %v3191_v32, 16 }
  0x18   : > { %641 = vmatpush.bf16.msra.mxu3 %v2897_v11  ;;  %v474_v28 = vpack.c.b16 %v3000_v18, %v473_v20  ;;  %v583_v49 = vrot.slane %v581_v38, 1  ;;  %v586_v50 = vrot.slane %v584_v39, 2  ;;  %v306_v53 = vor.u32 %v305_v43, %v301_v42  ;;  %v2884_v55 = vld [vmem:[%s3679_s1 + $0x80] sm:$0xff]  ;;  %v2915_v2 = vld [vmem:[%s3679_s1 + $0x178] sm:$0xff]  ;;  %v2922_v4 = vld [vmem:[%s3679_s1 + $0x1b0] sm:$0xff] }
  0x19   : > { %368 = vmatpush.bf16.msra.mxu0 %v2880_v12  ;;  %v2892_v56 = vld [vmem:[%s3679_s1 + $0xc0] sm:$0xff]  ;;  %v2931_v3 = vld [vmem:[%s3679_s1 + $0x1f8] sm:$0xff]  ;;  %v2906_v5 = vld [vmem:[%s3679_s1 + $0x130] sm:$0xff]  ;;  %v314_v29 = vor.u32 %v312_v21, %v3220_v54 }
  0x1a   : > { %439 = vmatpush.bf16.msra.mxu1 %v2872_v13  ;;  %v573_v36 = vshrl.u32 %v474_v28, 16  ;;  %v576_v37 = vshll.u32 %v474_v28, 16  ;;  %v476_v57 = vrot.slane %v474_v28, 1  ;;  %v3229_v60 = vor.u32 %v586_v50, %v583_v49  ;;  %v2914_v6 = vld [vmem:[%s3679_s1 + $0x170] sm:$0xff]  ;;  %v2921_v8 = vld [vmem:[%s3679_s1 + $0x1a8] sm:$0xff]  ;;  %v2920_v13 = vld [vmem:[%s3679_s1 + $0x1a0] sm:$0xff] }
  0x1b   : > { %532 = vmatpush.bf16.msra.mxu2 %v2888_v14  ;;  %v311_v63 = vsel %vm299_vm0, %v306_v53, %v3220_v54  ;;  %v2930_v7 = vld [vmem:[%s3679_s1 + $0x1f0] sm:$0xff]  ;;  %v2905_v9 = vld [vmem:[%s3679_s1 + $0x128] sm:$0xff]  ;;  %v2904_v14 = vld [vmem:[%s3679_s1 + $0x120] sm:$0xff] }
  0x1c   : > { %642 = vmatpush.bf16.msra.mxu3 %v2896_v16  ;;  %v575_v47 = vrot.slane %v573_v36, 1  ;;  %v578_v48 = vrot.slane %v576_v37, 2  ;;  %v478_v0 = vsel %vm475_vm1, %v476_v57, %v477_v58  ;;  %v2913_v10 = vld [vmem:[%s3679_s1 + $0x168] sm:$0xff]  ;;  %v3049_v16 = vld [vmem:[%s3150_s24] sm:$0x8]  ;;  %v2903_v28 = vld [vmem:[%s3679_s1 + $0x118] sm:$0xff] }
  0x1d   : > { %369 = vmatpush.bf16.msra.mxu0 %v2879_v23  ;;  %v256_v11 = vld [vmem:[%s3150_s24 + $0x8] sm:$0x1]  ;;  %v3051_v19 = vld [vmem:[%s3150_s24] sm:$0xf0]   ;;  %v763_v20 = vld [vmem:[%s3150_s24 + $0xc] sm:$0x1] }
  0x1e   : > { %440 = vmatpush.bf16.msra.mxu1 %v2871_v24  ;;  %v579_v59 = vor.u32 %v578_v48, %v575_v47  ;;  %v2929_v12 = vld [vmem:[%s3679_s1 + $0x1e8] sm:$0xff]  ;;  %v384_v22 = vunpack.c.l.b16 %v256_v11  ;;  %v2912_v23 = vld [vmem:[%s3679_s1 + $0x160] sm:$0xff]  ;;  %v2911_v33 = vld [vmem:[%s3679_s1 + $0x158] sm:$0xff]  ;;  %v3050_v37 = vor.u32 %v3051_v19, %v3049_v16 }
  0x1f   : > { %533 = vmatpush.bf16.msra.mxu2 %v2887_v26  ;;  %v3284_v17 = vld [vmem:[%s3150_s24 + $0x4] sm:$0xff]   ;;  %v3298_v26 = vunpack.c.l.b16 %v763_v20  ;;  %v2918_v39 = vld [vmem:[%s3679_s1 + $0x190] sm:$0xff]  ;;  %v2964_v11 = vld [vmem:[%s3679_s1 + $0x2f8] sm:$0xff] }
  0x20   : > { %643 = vmatpush.bf16.msra.mxu3 %v2895_v27  ;;  %v588_v1 = vsel %vm571_vm2, %v579_v59, %v3229_v60  ;;  %v2928_v24 = vld [vmem:[%s3679_s1 + $0x1e0] sm:$0xff]  ;;  %v3296_v25 = vunpack.c.h.b16 %v3284_v17  ;;  %v2919_v27 = vld [vmem:[%s3679_s1 + $0x198] sm:$0xff]  ;;  %v3316_v36 = vld [vmem:[%s3150_s24 + $0x8] sm:$0xff]   ;;  %v796_v47 = vshll.u32 %v3050_v37, 16 }
  0x21   : > { %370 = vmatpush.bf16.msra.mxu0 %v2878_v30  ;;  %v385_v30 = vpack.c.b16 %v384_v22, %v384_v22  ;;  %v682_v43 = vunpack.c.l.b16 %v3316_v36  ;;  %v2910_v44 = vld [vmem:[%s3679_s1 + $0x150] sm:$0xff]  ;;  %v2917_v49 = vld [vmem:[%s3679_s1 + $0x188] sm:$0xff] }
  0x22   : > { %441 = vmatpush.bf16.msra.mxu1 %v2870_v31  ;;  %v970_v31 = vld [vmem:[%s3150_s24 + $0xc] sm:$0x3]  ;;  %v790_v38 = vpack.c.b16 %v3298_v26, %v3296_v25  ;;  %v2938_v16 = vld [vmem:[%s3679_s1 + $0x230] sm:$0xff] }
  0x23   : > { %534 = vmatpush.bf16.msra.mxu2 %v2886_v34  ;;  %v2927_v34 = vld [vmem:[%s3679_s1 + $0x1d8] sm:$0xff]  ;;  %v2901_v50 = vld [vmem:[%s3679_s1 + $0x108] sm:$0xff]  ;;  %v3347_v54 = vpack.c.b16 %v682_v43, %v682_v43  ;;  %v2946_v20 = vld [vmem:[%s3679_s1 + $0x270] sm:$0xff] }
  0x24   : > { %644 = vmatpush.bf16.msra.mxu3 %v2894_v35  ;;  %v660_v35 = vld [vmem:[%s3150_s24] sm:$0x8]  ;;  %v801_v48 = vshrl.u32 %v790_v38, 16  ;;  %v804_v32 = vshll.u32 %v790_v38, 16  ;;  %v2963_v21 = vld [vmem:[%s3679_s1 + $0x2f0] sm:$0xff]  ;;  %v2953_v22 = vld [vmem:[%s3679_s1 + $0x2a8] sm:$0xff] }
  0x25   : > { %371 = vmatpush.bf16.msra.mxu0 %v2877_v40  ;;  %v2902_v40 = vld [vmem:[%s3679_s1 + $0x110] sm:$0xff]  ;;  %v681_v42 = vunpack.c.l.b16 %v660_v35 }
  0x26   : > { %442 = vmatpush.bf16.msra.mxu1 %v2869_v41  ;;  %v989_v41 = vunpack.c.l.b16 %v970_v31  ;;  %v803_v59 = vrot.slane %v801_v48, 3  ;;  %v2961_v31 = vld [vmem:[%s3679_s1 + $0x2e0] sm:$0xff]  ;;  %v1385_v35 = vld [vmem:[%s3150_s24 + $0x10] sm:$0x1] }
  0x27   : > { %535 = vmatpush.bf16.msra.mxu2 %v2885_v45  ;;  %v2926_v45 = vld [vmem:[%s3679_s1 + $0x1d0] sm:$0xff]  ;;  %v683_v53 = vpack.c.b16 %v3000_v18, %v681_v42  ;;  %v2900_v18 = vld [vmem:[%s3679_s1 + $0x100] sm:$0xff]  ;;  %v2960_v42 = vld [vmem:[%s3679_s1 + $0x2d8] sm:$0xff] }
  0x28   : > { %645 = vmatpush.bf16.msra.mxu3 %v2893_v46  ;;  %v793_v46 = vshrl.u32 %v3050_v37, 16 }
  0x29   : > { %372 = vmatpush.bf16.msra.mxu0 %v2876_v51  ;;  %v994_v51 = vshll.u32 %v3284_v17, 16 }
  0x2a   : > { %443 = vmatpush.bf16.msra.mxu1 %v2868_v52  ;;  %v3343_v52 = vpack.c.b16 %v989_v41, %v989_v41  ;;  %v795_v57 = vrot.slane %v793_v46, 3  ;;  %v2943_v41 = vld [vmem:[%s3679_s1 + $0x258] sm:$0xff]  ;;  %v2956_v46 = vld [vmem:[%s3150_s24 + $0x4] sm:$0xf0] }
  0x2b   : > { %536 = vmatpush.bf16.msra.mxu2 %v2884_v55  ;;  %v2909_v55 = vld [vmem:[%s3679_s1 + $0x148] sm:$0xff] }
  0x2c   : > { %646 = vmatpush.bf16.msra.mxu3 %v2892_v56  ;;  %373 = vmatmul.bf16.vlgmr.msra.gmra.mxu0 %v311_v63  ;;  %v2925_v56 = vld [vmem:[%s3679_s1 + $0x1c8] sm:$0xff]  ;;  %v999_v63 = vshll.u32 %v3343_v52, 16  ;;  %v1003_v38 = vshrl.u32 %v3343_v52, 16  ;;  %v2942_v52 = vld [vmem:[%s3679_s1 + $0x250] sm:$0xff] }
  0x2d   : > { %739 = vmatpush.bf16.msrb.mxu0 %v2907_v62  ;;  %444 = vmatmul.bf16.vlgmr.msra.gmra.mxu1 %v3162_v15  ;;  %v2916_v15 = vld [vmem:[%s3679_s1 + $0x180] sm:$0xff]  ;;  %v996_v62 = vrot.slane %v994_v51, 1 }
  0x2e   : > { %537 = vmatmul.bf16.vlgmr.msra.gmra.mxu2 %v478_v0  ;;  %859 = vmatpush.bf16.msrb.mxu1 %v2915_v2  ;;  %v2955_v0 = vld [vmem:[%s3679_s1 + $0x2b8] sm:$0xff]  ;;  %v686_v2 = vrot.slane %v683_v53, 3  ;;  %v1287_v53 = vld [vmem:[%s3150_s24 + $0x4] sm:$0x8] }
  0x2f   : > { %949 = vmatpush.bf16.msrb.mxu2 %v2923_v61  ;;  %647 = vmatmul.bf16.vlgmr.msra.gmra.mxu3 %v588_v1  ;;  %v992_v61 = vshrl.u32 %v3284_v17, 16  ;;  %v2939_v1 = vld [vmem:[%s3679_s1 + $0x238] sm:$0xff] }
  0x30   : > { %1056 = vmatpush.bf16.msrb.mxu3 %v2931_v3  ;;  %v687_v3 = vrot.slane %v3347_v54, 3 }
  0x31   : > { %740 = vmatpush.bf16.msrb.mxu0 %v2906_v5  ;;  %v2924_v5 = vld [vmem:[%s3679_s1 + $0x1c0] sm:$0xff] }
  0x32   : > { %860 = vmatpush.bf16.msrb.mxu1 %v2914_v6 }
  0x33   : > { %950 = vmatpush.bf16.msrb.mxu2 %v2922_v4  ;;  %v2908_v4 = vld [vmem:[%s3679_s1 + $0x140] sm:$0xff] }
  0x34   : > { %1057 = vmatpush.bf16.msrb.mxu3 %v2930_v7 }
  0x35   : > { %741 = vmatpush.bf16.msrb.mxu0 %v2905_v9  ;;  %v1001_v9 = vrot.slane %v999_v63, 1  ;;  %v2958_v63 = vld [vmem:[%s3679_s1 + $0x2c8] sm:$0xff] }
  0x36   : > { %861 = vmatpush.bf16.msrb.mxu1 %v2913_v10  ;;  %v2947_v10 = vld [vmem:[%s3679_s1 + $0x278] sm:$0xff] }
  0x37   : > { %951 = vmatpush.bf16.msrb.mxu2 %v2921_v8  ;;  %v997_v8 = vor.u32 %v996_v62, %v992_v61  ;;  %v1306_v61 = vunpack.c.l.b16 %v1287_v53  ;;  %v2941_v62 = vld [vmem:[%s3679_s1 + $0x248] sm:$0xff]  ;;  %v1600_v53 = vld [vmem:[%s3150_s24 + $0x10] sm:$0x7] }
  0x38   : > { %1058 = vmatpush.bf16.msrb.mxu3 %v2929_v12  ;;  %v2954_v12 = vld [vmem:[%s3679_s1 + $0x2b0] sm:$0xff] }
  0x39   : > { %742 = vmatpush.bf16.msrb.mxu0 %v2904_v14  ;;  %v1002_v19 = vsel %vm299_vm0, %v997_v8, %v1001_v9  ;;  %v2932_v8 = vld [vmem:[%s3679_s1 + $0x200] sm:$0xff] }
  0x3a   : > { %862 = vmatpush.bf16.msrb.mxu1 %v2912_v23  ;;  %v2937_v23 = vld [vmem:[%s3679_s1 + $0x228] sm:$0xff] }
  0x3b   : > { %952 = vmatpush.bf16.msrb.mxu2 %v2920_v13  ;;  %v688_v13 = vsel %vm685_vm3, %v686_v2, %v687_v3 }
  0x3c   : > { %1059 = vmatpush.bf16.msrb.mxu3 %v2928_v24  ;;  %378 = vmatmul.bf16.gmra.mxu0 %v314_v29  ;;  %v2945_v24 = vld [vmem:[%s3679_s1 + $0x268] sm:$0xff]  ;;  %v1077_v29 = vld [vmem:[%s3150_s24 + $0x4] sm:$0xc] }
  0x3d   : > { %743 = vmatpush.bf16.msrb.mxu0 %v2903_v28  ;;  %449 = vmatmul.bf16.gmra.mxu1 %v385_v30  ;;  %v2936_v28 = vld [vmem:[%s3679_s1 + $0x220] sm:$0xff]  ;;  %v1098_v37 = vunpack.c.l.b16 %v1077_v29 }
  0x3e   : > { %542 = vmatmul.bf16.gmra.mxu2 %v477_v58  ;;  %863 = vmatpush.bf16.msrb.mxu1 %v2911_v33  ;;  %v798_v58 = vrot.slane %v796_v47, 4  ;;  %v2944_v30 = vld [vmem:[%s3679_s1 + $0x260] sm:$0xff]  ;;  %v2951_v33 = vld [vmem:[%s3679_s1 + $0x298] sm:$0xff]  ;;  %v898_v47 = vpack.c.b16 %v3298_v26, %v3298_v26  ;;  %v2959_v26 = vld [vmem:[%s3679_s1 + $0x2d0] sm:$0xff] }
  0x3f   : > { %953 = vmatpush.bf16.msrb.mxu2 %v2919_v27  ;;  %652 = vmatmul.bf16.gmra.mxu3 %v3229_v60  ;;  %v806_v60 = vrot.slane %v804_v32, 4  ;;  %v2962_v27 = vld [vmem:[%s3679_s1 + $0x2e8] sm:$0xff]  ;;  %v3457_v48 = vpack.c.b16 %v3296_v25, %v1098_v37  ;;  %v1005_v32 = vor.u32 %v1003_v38, %v1001_v9  ;;  %v2979_v37 = vld [vmem:[%s3679_s1 + $0x370] sm:$0xff] }
  0x40   : > { %1060 = vmatpush.bf16.msrb.mxu3 %v2927_v34  ;;  %v799_v6 = vor.u32 %v798_v58, %v795_v57  ;;  %v3432_v34 = vld [vmem:[%s3150_s24 + $0xc] sm:$0xff]  }
  0x41   : > { %744 = vmatpush.bf16.msrb.mxu0 %v2902_v40  ;;  %v3376_v7 = vor.u32 %v806_v60, %v803_v59  ;;  %v1196_v40 = vunpack.c.h.b16 %v3316_v36  ;;  %v3447_v43 = vunpack.c.l.b16 %v3432_v34  ;;  %v2950_v36 = vld [vmem:[%s3679_s1 + $0x290] sm:$0xff]  ;;  %v2949_v57 = vld [vmem:[%s3679_s1 + $0x288] sm:$0xff]  ;;  %v1200_v59 = vshrl.u32 %v3457_v48, 16 }
  0x42   : > { %864 = vmatpush.bf16.msrb.mxu1 %v2910_v44  ;;  %v1410_v44 = vunpack.c.l.b16 %v1385_v35  ;;  %v2933_v60 = vld [vmem:[%s3679_s1 + $0x208] sm:$0xff]  ;;  %v1203_v54 = vshll.u32 %v3457_v48, 16 }
  0x43   : > { %954 = vmatpush.bf16.msrb.mxu2 %v2918_v39  ;;  %v808_v14 = vsel %vm791_vm4, %v799_v6, %v3376_v7  ;;  %v2935_v39 = vld [vmem:[%s3679_s1 + $0x218] sm:$0xff]  ;;  %v3463_v51 = vpack.c.b16 %v1196_v40, %v1196_v40  ;;  %v1202_v6 = vrot.slane %v1200_v59, 2  ;;  %v1619_v59 = vunpack.c.l.b16 %v1600_v53 }
  0x44   : > { %1061 = vmatpush.bf16.msrb.mxu3 %v2926_v45  ;;  %v2640_v45 = vld [vmem:[%s3150_s24 + $0x4] sm:$0x8]  ;;  %v1205_v9 = vrot.slane %v1203_v54, 3  ;;  %v2992_v54 = vld [vmem:[%s3679_s1 + $0x3d8] sm:$0xff] }
  0x45   : > { %745 = vmatpush.bf16.msrb.mxu0 %v2901_v50  ;;  %v1078_v50 = vld [vmem:[%s3150_s24 + $0xc] sm:$0x7] }
  0x46   : > { %865 = vmatpush.bf16.msrb.mxu1 %v2909_v55  ;;  %v2641_v55 = vor.u32 %v2956_v46, %v2640_v45  ;;  %v1099_v58 = vunpack.c.l.b16 %v1078_v50  ;;  %v2978_v45 = vld [vmem:[%s3679_s1 + $0x368] sm:$0xff]  ;;  %v2993_v50 = vld [vmem:[%s3679_s1 + $0x3e0] sm:$0xff] }
  0x47   : > { %955 = vmatpush.bf16.msrb.mxu2 %v2917_v49  ;;  %v2934_v49 = vld [vmem:[%s3679_s1 + $0x210] sm:$0xff]  ;;  %v2970_v46 = vld [vmem:[%s3679_s1 + $0x328] sm:$0xff] }
  0x48   : > { %1062 = vmatpush.bf16.msrb.mxu3 %v2925_v56  ;;  %v1412_v56 = vpack.c.b16 %v1410_v44, %v3447_v43  ;;  %v2995_v44 = vld [vmem:[%s3679_s1 + $0x3f0] sm:$0xff] }
  0x49   : > { %746 = vmatpush.bf16.msrb.mxu0 %v2900_v18  ;;  %v1211_v18 = vshll.u32 %v3463_v51, 16 }
  0x4a   : > { %866 = vmatpush.bf16.msrb.mxu1 %v2908_v4  ;;  %v1422_v2 = vshrl.u32 %v1412_v56, 16  ;;  %v2948_v4 = vld [vmem:[%s3679_s1 + $0x280] sm:$0xff] }
  0x4b   : > { %956 = vmatpush.bf16.msrb.mxu2 %v2916_v15  ;;  %v1208_v15 = vshrl.u32 %v3463_v51, 16 }
  0x4c   : > { %1063 = vmatpush.bf16.msrb.mxu3 %v2924_v5  ;;  %747 = vmatmul.bf16.vlgmr.msrb.gmra.mxu0 %v688_v13  ;;  %v3495_v5 = vpack.c.b16 %v1099_v58, %v1099_v58  ;;  %v2940_v13 = vld [vmem:[%s3679_s1 + $0x240] sm:$0xff]  ;;  %v2968_v58 = vld [vmem:[%s3679_s1 + $0x318] sm:$0xff] }
  0x4d   : > { %1156 = vmatpush.bf16.msra.mxu0 %v2939_v1  ;;  %867 = vmatmul.bf16.vlgmr.msrb.gmra.mxu1 %v808_v14  ;;  %v1417_v1 = vshll.u32 %v2641_v55, 16  ;;  %v2957_v14 = vld [vmem:[%s3679_s1 + $0x2c0] sm:$0xff] }
  0x4e   : > { %1266 = vmatpush.bf16.msra.mxu1 %v2947_v10  ;;  %957 = vmatmul.bf16.vlgmr.msrb.gmra.mxu2 %v3284_v17  ;;  %v2952_v17 = vld [vmem:[%s3679_s1 + $0x2a0] sm:$0xff]  ;;  %v1210_v10 = vrot.slane %v1208_v15, 2  ;;  %v2983_v15 = vld [vmem:[%s3679_s1 + $0x390] sm:$0xff] }
  0x4f   : > { %1361 = vmatpush.bf16.msra.mxu2 %v2955_v0  ;;  %1064 = vmatmul.bf16.vlgmr.msrb.gmra.mxu3 %v1002_v19  ;;  %v1414_v0 = vshrl.u32 %v2641_v55, 16  ;;  %v1419_v19 = vrot.slane %v1417_v1, 4  ;;  %v1709_v55 = vld [vmem:[%s3150_s24 + $0x8] sm:$0xc]  ;;  %v3601_v1 = vpack.c.b16 %v1619_v59, %v1619_v59 }
  0x50   : > { %1480 = vmatpush.bf16.msra.mxu3 %v2964_v11  ;;  %v1213_v11 = vrot.slane %v1211_v18, 3  ;;  %v1823_v18 = vunpack.c.h.b16 %v3432_v34  ;;  %v2991_v34 = vld [vmem:[%s3679_s1 + $0x3d0] sm:$0xff] }
  0x51   : > { %1157 = vmatpush.bf16.msra.mxu0 %v2938_v16  ;;  %v1416_v16 = vrot.slane %v1414_v0, 3  ;;  %v1502_v0 = vld [vmem:[%s3150_s24 + $0x10] sm:$0x3] }
  0x52   : > { %1267 = vmatpush.bf16.msra.mxu1 %v2946_v20  ;;  %v1424_v20 = vrot.slane %v1422_v2, 3  ;;  %v3524_v29 = vor.u32 %v1213_v11, %v1210_v10  ;;  %v1633_v10 = vshll.u32 %v3601_v1, 16 }
  0x53   : > { %1362 = vmatpush.bf16.msra.mxu2 %v2954_v12  ;;  %v1307_v12 = vpack.c.b16 %v3296_v25, %v1306_v61  ;;  %v2980_v25 = vld [vmem:[%s3679_s1 + $0x378] sm:$0xff]  ;;  %v2975_v61 = vld [vmem:[%s3679_s1 + $0x350] sm:$0xff] }
  0x54   : > { %1481 = vmatpush.bf16.msra.mxu3 %v2963_v21 }
  0x55   : > { %1158 = vmatpush.bf16.msra.mxu0 %v2937_v23  ;;  %v1103_v23 = vrot.slane %v3457_v48, 2  ;;  %v2985_v48 = vld [vmem:[%s3679_s1 + $0x3a0] sm:$0xff] }
  0x56   : > { %1268 = vmatpush.bf16.msra.mxu1 %v2945_v24  ;;  %v1104_v24 = vrot.slane %v3495_v5, 2  ;;  %v2966_v5 = vld [vmem:[%s3679_s1 + $0x308] sm:$0xff] }
  0x57   : > { %1363 = vmatpush.bf16.msra.mxu2 %v2953_v22  ;;  %v2972_v22 = vld [vmem:[%s3679_s1 + $0x338] sm:$0xff] }
  0x58   : > { %1482 = vmatpush.bf16.msra.mxu3 %v2962_v27  ;;  %v2996_v27 = vld [vmem:[%s3679_s1 + $0x3f8] sm:$0xff]  ;;  %v1105_v38 = vsel %vm1102_vm5, %v1103_v23, %v1104_v24 }
  0x59   : > { %1159 = vmatpush.bf16.msra.mxu0 %v2936_v28  ;;  %v1206_v28 = vor.u32 %v1205_v9, %v1202_v6  ;;  %v1523_v6 = vunpack.c.l.b16 %v1502_v0  ;;  %v1630_v9 = vshrl.u32 %v3601_v1, 16 }
  0x5a   : > { %1269 = vmatpush.bf16.msra.mxu1 %v2944_v30  ;;  %v1308_v30 = vrot.slane %v1307_v12, 3  ;;  %v2990_v12 = vld [vmem:[%s3679_s1 + $0x3c8] sm:$0xff] }
  0x5b   : > { %1364 = vmatpush.bf16.msra.mxu2 %v2952_v17  ;;  %v2987_v17 = vld [vmem:[%s3679_s1 + $0x3b0] sm:$0xff]  ;;  %v1525_v23 = vpack.c.b16 %v1523_v6, %v1523_v6 }
  0x5c   : > { %1483 = vmatpush.bf16.msra.mxu3 %v2961_v31  ;;  %752 = vmatmul.bf16.gmra.mxu0 %v687_v3  ;;  %v1425_v3 = vshll.u32 %v1412_v56, 16  ;;  %v1309_v31 = vrot.slane %v3463_v51, 3  ;;  %v2976_v56 = vld [vmem:[%s3679_s1 + $0x358] sm:$0xff]  ;;  %v1919_v51 = vld [vmem:[%s3680_s2] sm:$0xff] }
  0x5d   : > { %1160 = vmatpush.bf16.msra.mxu0 %v2935_v39  ;;  %872 = vmatmul.bf16.gmra.mxu1 %v3376_v7  ;;  %v2988_v7 = vld [vmem:[%s3679_s1 + $0x3b8] sm:$0xff]  ;;  %v1215_v39 = vsel %vm1198_vm6, %v1206_v28, %v3524_v29  ;;  %vm1922_vm7 = vcmp.ne.f32.partialorder %v1919_v51, 0.0  ;;  %v1632_v28 = vrot.slane %v1630_v9, 1 }
  0x5e   : > { %1270 = vmatpush.bf16.msra.mxu1 %v2943_v41  ;;  %962 = vmatmul.bf16.gmra.mxu2 %v898_v47  ;;  %v1427_v21 = vrot.slane %v1425_v3, 4  ;;  %v1310_v40 = vsel %vm685_vm3, %v1308_v30, %v1309_v31  ;;  %v2971_v41 = vld [vmem:[%s3679_s1 + $0x330] sm:$0xff]  ;;  %v2994_v47 = vld [vmem:[%s3679_s1 + $0x3e8] sm:$0xff] }
  0x5f   : > { %1365 = vmatpush.bf16.msra.mxu2 %v2951_v33  ;;  %1069 = vmatmul.bf16.gmra.mxu3 %v1005_v32  ;;  %v1420_v33 = vor.u32 %v1419_v19, %v1416_v16  ;;  %v2977_v32 = vld [vmem:[%s3679_s1 + $0x360] sm:$0xff]  ;;  %v2982_v3 = vld [vmem:[%s3679_s1 + $0x388] sm:$0xff] }
  0x60   : > { %1484 = vmatpush.bf16.msra.mxu3 %v2960_v42  ;;  %v3527_v35 = vor.u32 %v1427_v21, %v1424_v20  ;;  %v2973_v20 = vld [vmem:[%s3679_s1 + $0x340] sm:$0xff]  ;;  %v3064_v21 = vmov 0  }
  0x61   : > { %1161 = vmatpush.bf16.msra.mxu0 %v2934_v49  ;;  %v2969_v49 = vld [vmem:[%s3679_s1 + $0x320] sm:$0xff]  ;;  %3033 = vset.pattern.permute.xlu0 %v3064_v21 }
  0x62   : > { %1271 = vmatpush.bf16.msra.mxu1 %v2942_v52  ;;  %v1429_v42 = vsel %vm791_vm4, %v1420_v33, %v3527_v35  ;;  %v1501_v52 = vld [vmem:[%s3150_s24 + $0x8] sm:$0xe]  ;;  %3034 = vset.pattern.permute.xlu1 %v3064_v21 }
  0x63   : > { %1366 = vmatpush.bf16.msra.mxu2 %v2950_v36  ;;  %v2986_v36 = vld [vmem:[%s3679_s1 + $0x3a8] sm:$0xff] }
  0x64   : > { %1485 = vmatpush.bf16.msra.mxu3 %v2959_v26  ;;  %v2984_v26 = vld [vmem:[%s3679_s1 + $0x398] sm:$0xff] }
  0x65   : > { %1162 = vmatpush.bf16.msra.mxu0 %v2933_v60  ;;  %v1728_v60 = vunpack.c.l.b16 %v1709_v55 }
  0x66   : > { %1272 = vmatpush.bf16.msra.mxu1 %v2941_v62 }
  0x67   : > { %1367 = vmatpush.bf16.msra.mxu2 %v2949_v57  ;;  %v1522_v57 = vunpack.c.l.b16 %v1501_v52  ;;  %v3604_v2 = vpack.c.b16 %v3447_v43, %v1728_v60 }
  0x68   : > { %1486 = vmatpush.bf16.msra.mxu3 %v2958_v63  ;;  %v2967_v63 = vld [vmem:[%s3679_s1 + $0x310] sm:$0xff] }
  0x69   : > { %1163 = vmatpush.bf16.msra.mxu0 %v2932_v8  ;;  %v3595_v62 = vpack.c.b16 %v3447_v43, %v1522_v57  ;;  %v2974_v43 = vld [vmem:[%s3679_s1 + $0x348] sm:$0xff]  ;;  %v1826_v11 = vshrl.u32 %v3604_v2, 16 }
  0x6a   : > { %1273 = vmatpush.bf16.msra.mxu1 %v2940_v13  ;;  %v2981_v13 = vld [vmem:[%s3679_s1 + $0x380] sm:$0xff] }
  0x6b   : > { %1368 = vmatpush.bf16.msra.mxu2 %v2948_v4  ;;  %v1824_v4 = vpack.c.b16 %v1823_v18, %v1823_v18  ;;  %v1625_v8 = vshll.u32 %v3595_v62, 16  ;;  %v1828_v30 = vrot.slane %v1826_v11, 2 }
  0x6c   : > { %1487 = vmatpush.bf16.msra.mxu3 %v2957_v14  ;;  %1164 = vmatmul.bf16.vlgmr.msra.gmra.mxu0 %v1105_v38  ;;  %v1829_v14 = vshll.u32 %v3604_v2, 16  ;;  %v1526_v38 = vrot.slane %v3595_v62, 1 }
  0x6d   : > { %1579 = vmatpush.bf16.msrb.mxu0 %v2972_v22  ;;  %1274 = vmatmul.bf16.vlgmr.msra.gmra.mxu1 %v1215_v39  ;;  %v1834_v16 = vshrl.u32 %v1824_v4, 16  ;;  %v1837_v19 = vshll.u32 %v1824_v4, 16  ;;  %v1925_v22 = vsel %vm1922_vm7, 1, %v3064_v21  ;;  %v1527_v39 = vrot.slane %v1525_v23, 1 }
  0x6e   : > { %1688 = vmatpush.bf16.msrb.mxu1 %v2980_v25  ;;  %1369 = vmatmul.bf16.vlgmr.msra.gmra.mxu2 %v1310_v40  ;;  %v1920_v25 = vld [vmem:[%s3680_s2 + $0x8] sm:$0xff]  ;;  %v1831_v33 = vrot.slane %v1829_v14, 3 }
  0x6f   : > { %1783 = vmatpush.bf16.msrb.mxu2 %v2988_v7  ;;  %1488 = vmatmul.bf16.vlgmr.msra.gmra.mxu3 %v1429_v42  ;;  %v1622_v7 = vshrl.u32 %v3595_v62, 16  ;;  %vm1923_vm8 = vcmp.ne.f32.partialorder %v1920_v25, 0.0  ;;  %v1730_v42 = vrot.slane %v3604_v2, 2 }
  0x70   : > { %1892 = vmatpush.bf16.msrb.mxu3 %v2996_v27  ;;  %v1627_v27 = vrot.slane %v1625_v8, 2  ;;  %1929 = vperm.xlu0 %3033, %v1925_v22  }
  0x71   : > { %1580 = vmatpush.bf16.msrb.mxu0 %v2971_v41 }
  0x72   : > { %1689 = vmatpush.bf16.msrb.mxu1 %v2979_v37  ;;  %v1839_v37 = vrot.slane %v1837_v19, 3 }
  0x73   : > { %1784 = vmatpush.bf16.msrb.mxu2 %v2987_v17  ;;  %v2965_v17 = vld [vmem:[%s3679_s1 + $0x300] sm:$0xff] }
  0x74   : > { %1893 = vmatpush.bf16.msrb.mxu3 %v2995_v44  ;;  %v1731_v44 = vrot.slane %v3601_v1, 2 }
  0x75   : > { %1581 = vmatpush.bf16.msrb.mxu0 %v2970_v46 }
  0x76   : > { %1690 = vmatpush.bf16.msrb.mxu1 %v2978_v45  ;;  %v1832_v45 = vor.u32 %v1831_v33, %v1828_v30 }
  0x77   : > { %1785 = vmatpush.bf16.msrb.mxu2 %v2986_v36  ;;  %v1926_v36 = vsel %vm1923_vm8, 1, %v3064_v21 }
  0x78   : > { %1894 = vmatpush.bf16.msrb.mxu3 %v2994_v47  ;;  %v1528_v47 = vsel %vm475_vm1, %v1526_v38, %v1527_v39  ;;  %1932 = vperm.xlu0 %3033, %v1926_v36  }
  0x79   : > { %1582 = vmatpush.bf16.msrb.mxu0 %v2969_v49 }
  0x7a   : > { %1691 = vmatpush.bf16.msrb.mxu1 %v2977_v32  ;;  %v1732_v32 = vsel %vm1102_vm5, %v1730_v42, %v1731_v44 }
  0x7b   : > { %1786 = vmatpush.bf16.msrb.mxu2 %v2985_v48 }
  0x7c   : > { %1895 = vmatpush.bf16.msrb.mxu3 %v2993_v50  ;;  %1169 = vmatmul.bf16.gmra.mxu0 %v1104_v24  ;;  %v1624_v24 = vrot.slane %v1622_v7, 1  ;;  %v1921_v50 = vld [vmem:[%s3680_s2 + $0x10] sm:$0x3] }
  0x7d   : > { %1583 = vmatpush.bf16.msrb.mxu0 %v2968_v58  ;;  %1279 = vmatmul.bf16.gmra.mxu1 %v3524_v29  ;;  %v1635_v29 = vrot.slane %v1633_v10, 2  ;;  %vm1924_vm9 = vcmp.ne.f32.partialorder %v1921_v50, 0.0 }
  0x7e   : > { %1692 = vmatpush.bf16.msrb.mxu1 %v2976_v56  ;;  %1374 = vmatmul.bf16.gmra.mxu2 %v1309_v31  ;;  %v2989_v31 = vld [vmem:[%s3679_s1 + $0x3c0] sm:$0xff]  ;;  %v1628_v40 = vor.u32 %v1627_v27, %v1624_v24  ;;  %v1927_v52 = vsel %vm1924_vm9, 1, %v3064_v21 }
  0x7f   : > { %1787 = vmatpush.bf16.msrb.mxu2 %v2984_v26  ;;  %1493 = vmatmul.bf16.gmra.mxu3 %v3527_v35  ;;  %v1836_v35 = vrot.slane %v1834_v16, 2  ;;  %v1636_v41 = vor.u32 %v1635_v29, %v1632_v28 }
  0x80   : > { %1896 = vmatpush.bf16.msrb.mxu3 %v2992_v54  ;;  %1935 = vperm.xlu1 %3034, %v1927_v52  }
  0x81   : > { %1584 = vmatpush.bf16.msrb.mxu0 %v2967_v63  ;;  %v1840_v46 = vor.u32 %v1839_v37, %v1836_v35  ;;  %v1637_v48 = vsel %vm571_vm2, %v1628_v40, %v1636_v41 }
  0x82   : > { %1693 = vmatpush.bf16.msrb.mxu1 %v2975_v61 }
  0x83   : > { %1788 = vmatpush.bf16.msrb.mxu2 %v2983_v15  ;;  %v1841_v49 = vsel %vm1198_vm6, %v1832_v45, %v1840_v46 }
  0x84   : > { %1897 = vmatpush.bf16.msrb.mxu3 %v2991_v34 }
  0x85   : > { %1585 = vmatpush.bf16.msrb.mxu0 %v2966_v5 }
  0x86   : > { %1694 = vmatpush.bf16.msrb.mxu1 %v2974_v43 }
  0x87   : > { %1789 = vmatpush.bf16.msrb.mxu2 %v2982_v3 }
  0x88   : > { %1898 = vmatpush.bf16.msrb.mxu3 %v2990_v12 }
  0x89   : > { %1586 = vmatpush.bf16.msrb.mxu0 %v2965_v17 }
  0x8a   : > { %1695 = vmatpush.bf16.msrb.mxu1 %v2973_v20 }
  0x8b   : > { %1790 = vmatpush.bf16.msrb.mxu2 %v2981_v13 }
  0x8c   : > { %1899 = vmatpush.bf16.msrb.mxu3 %v2989_v31  ;;  %1587 = vmatmul.bf16.vlgmr.msrb.gmra.mxu0 %v1528_v47 }
  0x8d   : > { %1696 = vmatmul.bf16.vlgmr.msrb.gmra.mxu1 %v1637_v48 }
  0x8e   : > { %1791 = vmatmul.bf16.vlgmr.msrb.gmra.mxu2 %v1732_v32 }
  0x8f   : > { %1900 = vmatmul.bf16.vlgmr.msrb.gmra.mxu3 %v1841_v49 }
  0x9c   : > { %1592 = vmatmul.bf16.gmra.mxu0 %v1527_v39 }
  0x9d   : > { %1701 = vmatmul.bf16.gmra.mxu1 %v1636_v41 }
  0x9e   : > { %1796 = vmatmul.bf16.gmra.mxu2 %v1731_v44 }
  0x9f   : > { %1905 = vmatmul.bf16.gmra.mxu3 %v1840_v46 }
  0xa9   : > { %v374_v26 = vpop.f32.mrf.mxu0 }
  0xaa   : > { %v445_v53 = vpop.f32.mrf.mxu1 }
  0xab   : > { %v446_v55 = vadd.f32 %v445_v53, %v374_v26 }
  0xb1   : > { %v538_v56 = vpop.f32.mrf.mxu2  ;;  %v376_v59 = vpop.f32.mrf.mxu0 }
  0xb2   : > { %v648_v57 = vpop.f32.mrf.mxu3  ;;  %v547_v58 = vadd.f32 %v538_v56, %v446_v55  ;;  %v447_v60 = vpop.f32.mrf.mxu1 }
  0xb3   : > { %v448_v54 = vadd.f32 %v447_v60, %v376_v59 }
  0xb4   : > { %v657_v15 = vadd.f32 %v648_v57, %v547_v58 }
  0xb9   : > { %v540_v18 = vpop.f32.mrf.mxu2  ;;  %v379_v63 = vpop.f32.mrf.mxu0 }
  0xba   : > { %v650_v61 = vpop.f32.mrf.mxu3  ;;  %v548_v62 = vadd.f32 %v540_v18, %v448_v54  ;;  %v450_v0 = vpop.f32.mrf.mxu1 }
  0xbb   : > { %v451_v1 = vadd.f32 %v450_v0, %v379_v63 }
  0xbc   : > { %v658_v2 = vadd.f32 %v650_v61, %v548_v62 }
  0xc1   : > { %v543_v34 = vpop.f32.mrf.mxu2  ;;  %v381_v43 = vpop.f32.mrf.mxu0 }
  0xc2   : > { %v653_v3 = vpop.f32.mrf.mxu3  ;;  %v549_v4 = vadd.f32 %v543_v34, %v451_v1  ;;  %v452_v6 = vpop.f32.mrf.mxu1 }
  0xc4   : > { %v659_v7 = vadd.f32 %v653_v3, %v549_v4 }
  0xc9   : > { %v545_v8 = vpop.f32.mrf.mxu2  ;;  %v748_v9 = vpop.f32.mrf.mxu0 }
  0xca   : > { %v655_v5 = vpop.f32.mrf.mxu3  ;;  %v868_v10 = vpop.f32.mrf.mxu1  ;;  %v757_v35 = vadd.f32 %v748_v9, %v657_v15 }
  0xcc   : > { %v877_v38 = vadd.f32 %v868_v10, %v757_v35 }
  0xd1   : > { %v958_v11 = vpop.f32.mrf.mxu2  ;;  %v750_v12 = vpop.f32.mrf.mxu0 }
  0xd2   : > { %v1065_v51 = vpop.f32.mrf.mxu3  ;;  %v870_v13 = vpop.f32.mrf.mxu1  ;;  %v967_v42 = vadd.f32 %v958_v11, %v877_v38  ;;  %v758_v44 = vadd.f32 %v750_v12, %v658_v2 }
  0xd4   : > { %v1074_v36 = vadd.f32 %v1065_v51, %v967_v42  ;;  %v878_v45 = vadd.f32 %v870_v13, %v758_v44 }
  0xd9   : > { %v960_v14 = vpop.f32.mrf.mxu2  ;;  %v753_v19 = vpop.f32.mrf.mxu0 }
  0xda   : > { %v1067_v16 = vpop.f32.mrf.mxu3  ;;  %v873_v20 = vpop.f32.mrf.mxu1  ;;  %v968_v47 = vadd.f32 %v960_v14, %v878_v45  ;;  %v759_v52 = vadd.f32 %v753_v19, %v659_v7 }
  0xdc   : > { %v1075_v26 = vadd.f32 %v1067_v16, %v968_v47  ;;  %v879_v55 = vadd.f32 %v873_v20, %v759_v52 }
  0xe1   : > { %v963_v21 = vpop.f32.mrf.mxu2  ;;  %v755_v25 = vpop.f32.mrf.mxu0 }
  0xe2   : > { %v1070_v22 = vpop.f32.mrf.mxu3  ;;  %v875_v23 = vpop.f32.mrf.mxu1  ;;  %v969_v59 = vadd.f32 %v963_v21, %v879_v55 }
  0xe3   : > { %v1930_v1 = vpop.permute.xlu0 %1929 }
  0xe4   : > { %v1076_v62 = vadd.f32 %v1070_v22, %v969_v59  ;;  %vm1937_vm10 = vcmp.eq.s32.totalorder %v1930_v1, 1 }
  0xe9   : > { %v965_v24 = vpop.f32.mrf.mxu2  ;;  %v1165_v17 = vpop.f32.mrf.mxu0 }
  0xea   : > { %v1072_v27 = vpop.f32.mrf.mxu3  ;;  %v1275_v28 = vpop.f32.mrf.mxu1  ;;  %v1174_v48 = vadd.f32 %v1165_v17, %v1074_v36 }
  0xeb   : > { %v1933_v12 = vpop.permute.xlu0 %1932 }
  0xec   : > { %v1284_v53 = vadd.f32 %v1275_v28, %v1174_v48  ;;  %vm1938_vm11 = vcmp.eq.s32.totalorder %v1933_v12, 1 }
  0xf1   : > { %v1370_v29 = vpop.f32.mrf.mxu2  ;;  %v1167_v31 = vpop.f32.mrf.mxu0 }
  0xf2   : > { %v1489_v30 = vpop.f32.mrf.mxu3  ;;  %v1277_v33 = vpop.f32.mrf.mxu1  ;;  %v1379_v56 = vadd.f32 %v1370_v29, %v1284_v53  ;;  %v1175_v57 = vadd.f32 %v1167_v31, %v1075_v26 }
  0xf3   : > { %v1936_v31 = vpop.permute.xlu1 %1935 }
  0xf4   : > { %v1498_v18 = vadd.f32 %v1489_v30, %v1379_v56  ;;  %v1285_v61 = vadd.f32 %v1277_v33, %v1175_v57  ;;  %vm1939_vm12 = vcmp.eq.s32.totalorder %v1936_v31, 1 }
  0xf9   : > { %v1372_v37 = vpop.f32.mrf.mxu2  ;;  %v1170_v40 = vpop.f32.mrf.mxu0 }
  0xfa   : > { %v1491_v39 = vpop.f32.mrf.mxu3  ;;  %v1280_v41 = vpop.f32.mrf.mxu1  ;;  %v1380_v63 = vadd.f32 %v1372_v37, %v1285_v61  ;;  %v1176_v2 = vadd.f32 %v1170_v40, %v1076_v62 }
  0xfc   : > { %v1499_v3 = vadd.f32 %v1491_v39, %v1380_v63  ;;  %v1286_v8 = vadd.f32 %v1280_v41, %v1176_v2 }
 0x101   : > { %v1375_v46 = vpop.f32.mrf.mxu2  ;;  %v1172_v49 = vpop.f32.mrf.mxu0 }
 0x102   : > { %v1494_v32 = vpop.f32.mrf.mxu3  ;;  %v1282_v50 = vpop.f32.mrf.mxu1  ;;  %v1381_v10 = vadd.f32 %v1375_v46, %v1286_v8 }
 0x104   : > { %v1500_v14 = vadd.f32 %v1494_v32, %v1381_v10 }
 0x109   : > { %v1377_v58 = vpop.f32.mrf.mxu2  ;;  %v1588_v54 = vpop.f32.mrf.mxu0 }
 0x10a   : > { %v1496_v60 = vpop.f32.mrf.mxu3  ;;  %v1697_v15 = vpop.f32.mrf.mxu1  ;;  %v1597_v0 = vadd.f32 %v1588_v54, %v1498_v18 }
 0x10c   : > { %v1706_v4 = vadd.f32 %v1697_v15, %v1597_v0 }
 0x111   : > { %v1792_v34 = vpop.f32.mrf.mxu2  ;;  %v1590_v6 = vpop.f32.mrf.mxu0 }
 0x112   : > { %v1901_v43 = vpop.f32.mrf.mxu3  ;;  %v1699_v7 = vpop.f32.mrf.mxu1  ;;  %v1801_v5 = vadd.f32 %v1792_v34, %v1706_v4  ;;  %v1598_v9 = vadd.f32 %v1590_v6, %v1499_v3 }
 0x114   : > { %v1910_v11 = vadd.f32 %v1901_v43, %v1801_v5  ;;  %v1707_v51 = vadd.f32 %v1699_v7, %v1598_v9 }
 0x116   : > { %v1940_v22 = vsel %vm1937_vm10, %v1910_v11, 0.0 }
 0x117   : > { %v1954_v17 = vmul.f32 %v1940_v22, %v1940_v22 }
 0x119   : > { %v1794_v13 = vpop.f32.mrf.mxu2  ;;  %v1593_v20 = vpop.f32.mrf.mxu0 }
 0x11a   : > { %v1802_v16 = vadd.f32 %v1794_v13, %v1707_v51  ;;  %v1903_v19 = vpop.f32.mrf.mxu3  ;;  %v1702_v21 = vpop.f32.mrf.mxu1  ;;  %v1599_v23 = vadd.f32 %v1593_v20, %v1500_v14 }
 0x11c   : > { %v1911_v25 = vadd.f32 %v1903_v19, %v1802_v16  ;;  %v1708_v30 = vadd.f32 %v1702_v21, %v1599_v23 }
 0x11e   : > { %v3004_v24 = vpack.c.bf16 %v1911_v25, %v1910_v11  ;;  %v1941_v27 = vsel %vm1938_vm11, %v1911_v25, 0.0 }
 0x11f   : > { %v1943_v28 = vadd.f32 %v1941_v27, %v1940_v22  ;;  %v1955_v29 = vmul.f32 %v1941_v27, %v1941_v27 }
 0x120   : > { %3005 = vst [vmem:[%s246_s7] sm:$0xff] %v3004_v24  }
 0x121   : > { %v1957_v33 = vadd.f32 %v1955_v29, %v1954_v17  ;;  %v1797_v35 = vpop.f32.mrf.mxu2  ;;  %v1595_v39 = vpop.f32.mrf.mxu0 }
 0x122   : > { %v1803_v37 = vadd.f32 %v1797_v35, %v1708_v30  ;;  %v1906_v38 = vpop.f32.mrf.mxu3  ;;  %v1704_v40 = vpop.f32.mrf.mxu1 }
 0x124   : > { %v1912_v41 = vadd.f32 %v1906_v38, %v1803_v37 }
 0x126   : > { %v1915_v42 = vpack.c.bf16 %v1912_v41, %v1912_v41  ;;  %v1942_v44 = vsel %vm1939_vm12, %v1912_v41, 0.0 }
 0x127   : > { %v1945_v36 = vsel %vm1944_vm13, %v1942_v44, 0.0  ;;  %v1956_v45 = vmul.f32 %v1942_v44, %v1942_v44 }
 0x128   : > { %1918 = vst [vmem:[%s246_s7 + $0x8] sm:$0x1] %v1915_v42  ;;  %v1946_v46 = vadd.f32 %v1945_v36, %v1943_v28 }
 0x129   : > { %v1958_v47 = vsel %vm1944_vm13, %v1956_v45, 0.0  ;;  %v1799_v48 = vpop.f32.mrf.mxu2 }
 0x12a   : > { %v1947_v32 = vrot.slane %v1946_v46, 4  ;;  %v1959_v49 = vadd.f32 %v1958_v47, %v1957_v33  ;;  %v1908_v50 = vpop.f32.mrf.mxu3 }
 0x12c   : > { %v1948_v52 = vadd.f32 %v1947_v32, %v1946_v46  ;;  %v1960_v26 = vrot.slane %v1959_v49, 4 }
 0x12e   : > { %v1949_v53 = vrot.slane %v1948_v52, 2  ;;  %v1961_v55 = vadd.f32 %v1960_v26, %v1959_v49 }
 0x130   : > { %v1950_v56 = vadd.f32 %v1949_v53, %v1948_v52  ;;  %v1962_v57 = vrot.slane %v1961_v55, 2 }
 0x132   : > { %v1951_v58 = vrot.slane %v1950_v56, 1  ;;  %v1963_v59 = vadd.f32 %v1962_v57, %v1961_v55 }
 0x134   : > { %v1952_v60 = vadd.f32 %v1951_v58, %v1950_v56  ;;  %v1964_v54 = vrot.slane %v1963_v59, 1 }
 0x136   : > { %1953 = vst [vmem:[%s253_s11] sm:$0x1] %v1952_v60  ;;  %v1965_v15 = vadd.f32 %v1964_v54, %v1963_v59 }
 0x138   : > { %1966 = vst [vmem:[%s253_s11 + $0x1] sm:$0x1] %v1965_v15 }
 0x139 PF: > { %s15_s17 = sadd.s32 1, %s3062_s17   ;;  %s3683_s15 = smov %s3058_s16 }
 0x13a   : > { %p12_p5 = scmp.ge.s32.totalorder %s15_s17, 4   ;;  %s3684_s16 = smov %s3686_s18 }
 0x13c   :  { %14 = sbr.rel (!%p12_p5) target bundleno = 2 (0x2), region = 92 }

</bundles_post_ra>
